<compile_context>
chip_gen: v6e
topology: v6e:2x2x1
jax: 0.10.0
libtpu: 0.0.40
codegen_flags: <defaults>
</compile_context>

<pallas_src>
import functools
import math

import jax
import jax.numpy as jnp
from jax import lax
from jax.experimental import pallas as pl
from jax.experimental.pallas import tpu as pltpu


# --------------------------------------------------------------------------- #
# helpers
# --------------------------------------------------------------------------- #
def _apply_act(y, act):
    if act == "none":
        return y
    if act == "leaky_relu":          # nn.LeakyReLU(0.2)
        return jnp.where(y >= 0, y, 0.2 * y)
    if act == "relu":                # nn.ReLU
        return jnp.maximum(y, 0.0)
    if act == "softplus":            # nn.Softplus (stable: relu(y)+log1p(e^-|y|))
        return jnp.maximum(y, 0.0) + jnp.log1p(jnp.exp(-jnp.abs(y)))
    raise ValueError(act)


def _choose_tm(M):
    """M-tile: 512 for big GEMMs, >=2 tiles when cleanly splittable (megacore),
    else the full (legal) dimension."""
    if M > 512:
        for tm in (512, 256, 128, 64, 32, 16, 8):
            if M % tm == 0:
                return tm
        return M
    if M % 2 == 0 and (M // 2) % 8 == 0:
        return M // 2                # two parallel tiles
    return M                         # single full-dim tile (always legal)


# --------------------------------------------------------------------------- #
# Pallas GEMM + fused activation (conv hot path via im2col)
# --------------------------------------------------------------------------- #
def _matmul_act_kernel(a_ref, b_ref, o_ref, *, act):
    y = jnp.dot(a_ref[...], b_ref[...], preferred_element_type=jnp.float32)
    o_ref[...] = _apply_act(y, act).astype(o_ref.dtype)


def pallas_matmul(a, b, act="none", out_dtype=jnp.bfloat16):
    """out = act(a @ b).  Full-K single-step GEMM per M tile: no HBM padding,
    no accumulator scratch.  bf16 MXU inputs, f32 accumulation/epilogue."""
    M, K = a.shape
    K2, N = b.shape
    assert K == K2
    a = a.astype(jnp.bfloat16)
    b = b.astype(jnp.bfloat16)
    tm = _choose_tm(M)
    return pl.pallas_call(
        functools.partial(_matmul_act_kernel, act=act),
        out_shape=jax.ShapeDtypeStruct((M, N), out_dtype),
        grid=(M // tm,),
        in_specs=[pl.BlockSpec((tm, K), lambda i: (i, 0)),
                  pl.BlockSpec((K, N), lambda i: (0, 0))],   # weights stay resident
        out_specs=pl.BlockSpec((tm, N), lambda i: (i, 0)),
        compiler_params=pltpu.CompilerParams(
            dimension_semantics=("parallel",)),
    )(a, b)


# --------------------------------------------------------------------------- #
# Pallas GroupNorm + fused activation (NHWC, one program per batch element)
# --------------------------------------------------------------------------- #
def _gn_kernel(x_ref, g_ref, b_ref, o_ref, *, groups, eps, act):
    x = x_ref[0].astype(jnp.float32)                          # (HW, C)
    HW, C = x.shape
    Cg = C // groups
    if Cg == 1:                                               # groups == channels
        mean = jnp.mean(x, axis=0, keepdims=True)                       # (1, C)
        var = jnp.mean(jnp.square(x - mean), axis=0, keepdims=True)     # (1, C)
    else:                                                     # general path
        xg = x.reshape(HW, groups, Cg)
        mean_g = jnp.mean(xg, axis=(0, 2), keepdims=True)               # (1, G, 1)
        var_g = jnp.mean(jnp.square(xg - mean_g), axis=(0, 2), keepdims=True)
        mean = jnp.broadcast_to(mean_g, (1, groups, Cg)).reshape(1, C)
        var = jnp.broadcast_to(var_g, (1, groups, Cg)).reshape(1, C)
    inv = lax.rsqrt(var + eps)
    y = (x - mean) * (inv * g_ref[...]) + b_ref[...]
    o_ref[0] = _apply_act(y, act).astype(o_ref.dtype)


def pallas_group_norm(x_nhwc, gamma, beta, groups, act="none", eps=1e-5):
    N, H, W, C = x_nhwc.shape
    HW = H * W
    xr = x_nhwc.reshape(N, HW, C)                             # free reshape (NHWC)
    gam = gamma.astype(jnp.float32).reshape(1, C)
    bet = beta.astype(jnp.float32).reshape(1, C)
    out = pl.pallas_call(
        functools.partial(_gn_kernel, groups=groups, eps=eps, act=act),
        out_shape=jax.ShapeDtypeStruct((N, HW, C), x_nhwc.dtype),
        grid=(N,),
        in_specs=[pl.BlockSpec((1, HW, C), lambda n: (n, 0, 0)),
                  pl.BlockSpec((1, C), lambda n: (0, 0)),
                  pl.BlockSpec((1, C), lambda n: (0, 0))],
        out_specs=pl.BlockSpec((1, HW, C), lambda n: (n, 0, 0)),
        compiler_params=pltpu.CompilerParams(
            dimension_semantics=("parallel",)),
    )(xr, gam, bet)
    return out.reshape(N, H, W, C)


# --------------------------------------------------------------------------- #
# conv / conv-transpose glue (bf16 im2col + Pallas GEMM)
# --------------------------------------------------------------------------- #
def _im2col(x, kh, kw, stride, pad):
    # x: NHWC -> ([N*OH*OW, kh*kw*C], OH, OW);  K ordering = (kh, kw, C)
    if pad > 0:
        x = jnp.pad(x, ((0, 0), (pad, pad), (pad, pad), (0, 0)))
    N, H, W, C = x.shape
    OH = (H - kh) // stride + 1
    OW = (W - kw) // stride + 1
    patches = []
    for i in range(kh):
        for j in range(kw):
            patches.append(x[:, i:i + stride * OH:stride,
                             j:j + stride * OW:stride, :])
    patches = jnp.stack(patches, axis=3)                      # (N, OH, OW, kh*kw, C)
    # TODO(synk): fold im2col into the GEMM kernel (kh*kw grid axis) so the
    # patch tensor is never materialized in HBM.
    return patches.reshape(N * OH * OW, kh * kw * C), OH, OW


def conv2d(x, w_pt, stride, pad, act="none", out_dtype=jnp.bfloat16):
    # x: NHWC, w_pt: PyTorch Conv2d weight [Cout, Cin, kh, kw]  (bias=False)
    Cout, Cin, kh, kw = w_pt.shape
    cols, OH, OW = _im2col(x.astype(jnp.bfloat16), kh, kw, stride, pad)
    wmat = jnp.transpose(w_pt, (2, 3, 1, 0)).reshape(kh * kw * Cin, Cout)
    out = pallas_matmul(cols, wmat, act=act, out_dtype=out_dtype)
    return out.reshape(x.shape[0], OH, OW, Cout)


def _convT_s2k4p1_weight(w_pt):
    # w_pt: PyTorch ConvTranspose2d weight [Cin, Cout, 4, 4].
    # Output phase (a, b), 2x2 patch offset (p, q) uses tap W[:, :, 3-a-2p, 3-b-2q].
    # Rows ordered (p, q, ci) to match _im2col; columns ordered (a, b, co).
    Cin, Cout = w_pt.shape[0], w_pt.shape[1]
    phase_cols = []
    for a in range(2):
        for b in range(2):
            taps = [w_pt[:, :, 3 - a - 2 * p, 3 - b - 2 * q]
                    for p in range(2) for q in range(2)]       # each (Cin, Cout)
            phase_cols.append(jnp.stack(taps, axis=0).reshape(4 * Cin, Cout))
    return jnp.concatenate(phase_cols, axis=1)                 # (4*Cin, 4*Cout)


def conv_transpose2d(x, w_pt, stride, pad, act="none", out_dtype=jnp.bfloat16):
    # x: NHWC, w_pt: PyTorch ConvTranspose2d weight [Cin, Cout, kh, kw] (bias=False)
    Cin, Cout, kh, kw = w_pt.shape
    if stride == 1:
        # Plain conv with spatially flipped kernel, pad = k-1-p (no dilation needed).
        w_eq = jnp.transpose(jnp.flip(w_pt, axis=(2, 3)), (1, 0, 2, 3))
        return conv2d(x, w_eq, stride=1, pad=kh - 1 - pad, act=act,
                      out_dtype=out_dtype)
    assert stride == 2 and kh == 4 and kw == 4 and pad == 1
    # Sub-pixel decomposition: the 4 output phases are 2x2 convs over the pad=1
    # input; all phases share one im2col and one GEMM (no zero-dilation waste).
    N, H, W, _ = x.shape
    xp = jnp.pad(x.astype(jnp.bfloat16), ((0, 0), (1, 1), (1, 1), (0, 0)))
    cols, OH, OW = _im2col(xp, 2, 2, 1, 0)                     # OH = H+1, OW = W+1
    bmat = _convT_s2k4p1_weight(w_pt)                          # (4*Cin, 4*Cout)
    out = pallas_matmul(cols, bmat, act=act, out_dtype=out_dtype)
    out = out.reshape(N, H + 1, W + 1, 2, 2, Cout)
    # y[:, 2m+a, 2n+b, :] = out[:, m+a, n+b, a, b, :]
    rows = []
    for a in range(2):
        cols_ab = [out[:, a:a + H, b:b + W, a, b, :] for b in range(2)]
        rows.append(jnp.stack(cols_ab, axis=3))                # (N, H, W, 2, Cout)
    y = jnp.stack(rows, axis=2)                                # (N, H, 2, W, 2, Cout)
    return y.reshape(N, 2 * H, 2 * W, Cout)


# --------------------------------------------------------------------------- #
# ConfNet parameters + forward
# --------------------------------------------------------------------------- #
def _conv_w(key, cout, cin, k):
    bound = 1.0 / math.sqrt(cin * k * k)
    return jax.random.uniform(key, (cout, cin, k, k), jnp.float32, -bound, bound)


def _convT_w(key, cin, cout, k):
    bound = 1.0 / math.sqrt(cout * k * k)
    return jax.random.uniform(key, (cin, cout, k, k), jnp.float32, -bound, bound)


def init_params(key, cin=3, zdim=32, nf=16):
    ks = jax.random.split(key, 9)
    f32 = jnp.float32
    return {
        "w1": _conv_w(ks[0], nf, cin, 4),
        "g1_w": jnp.ones((nf,), f32), "g1_b": jnp.zeros((nf,), f32),
        "w2": _conv_w(ks[1], nf * 2, nf, 4),
        "g2_w": jnp.ones((nf * 2,), f32), "g2_b": jnp.zeros((nf * 2,), f32),
        "w3": _conv_w(ks[2], nf * 4, nf * 2, 4),
        "g3_w": jnp.ones((nf * 4,), f32), "g3_b": jnp.zeros((nf * 4,), f32),
        "w4": _conv_w(ks[3], nf * 8, nf * 4, 4),
        "w5": _conv_w(ks[4], zdim, nf * 8, 4),
        "w6": _convT_w(ks[5], zdim, nf * 8, 4),
        "w7": _convT_w(ks[6], nf * 8, nf * 4, 4),
        "g7_w": jnp.ones((nf * 4,), f32), "g7_b": jnp.zeros((nf * 4,), f32),
        "w8": _convT_w(ks[7], nf * 4, nf * 2, 4),
        "g8_w": jnp.ones((nf * 2,), f32), "g8_b": jnp.zeros((nf * 2,), f32),
        "w9": _conv_w(ks[8], 2, nf * 2, 3),
    }


def confnet_forward(x_nchw, p):
    # TODO(synk): fuse conv + GroupNorm + activation chains into VMEM-resident
    # mega-kernels to drop the remaining inter-layer HBM round trips.
    x = jnp.transpose(x_nchw, (0, 2, 3, 1))                    # NCHW -> NHWC (once)
    # encoder
    x = conv2d(x, p["w1"], stride=2, pad=1)
    x = pallas_group_norm(x, p["g1_w"], p["g1_b"], groups=16, act="leaky_relu")
    x = conv2d(x, p["w2"], stride=2, pad=1)
    x = pallas_group_norm(x, p["g2_w"], p["g2_b"], groups=32, act="leaky_relu")
    x = conv2d(x, p["w3"], stride=2, pad=1)
    x = pallas_group_norm(x, p["g3_w"], p["g3_b"], groups=64, act="leaky_relu")
    x = conv2d(x, p["w4"], stride=2, pad=1, act="leaky_relu")
    x = conv2d(x, p["w5"], stride=1, pad=0, act="relu")
    # decoder
    x = conv_transpose2d(x, p["w6"], stride=1, pad=0, act="relu")
    x = conv_transpose2d(x, p["w7"], stride=2, pad=1)
    x = pallas_group_norm(x, p["g7_w"], p["g7_b"], groups=64, act="relu")
    x = conv_transpose2d(x, p["w8"], stride=2, pad=1)
    x = pallas_group_norm(x, p["g8_w"], p["g8_b"], groups=32, act="relu")
    # out_net2: Conv2d(nf*2 -> 2, k3 s1 p1, bias=False) + Softplus
    x = conv2d(x, p["w9"], stride=1, pad=1, act="softplus", out_dtype=jnp.float32)
    return jnp.transpose(x, (0, 3, 1, 2))                      # NHWC -> NCHW


if __name__ == "__main__":
    key = jax.random.PRNGKey(0)
    kx, kp = jax.random.split(key)
    # Spatial size must be 64 so the k=4/s=1/p=0 bottleneck conv reaches 1x1
    # (as in the original usage).  Shrunk nf=16, zdim=32 for a small test.
    x = jax.random.normal(kx, (2, 3, 64, 64), dtype=jnp.float32)
    params = init_params(kp, cin=3, zdim=32, nf=16)

    fwd = jax.jit(confnet_forward)
    out = jax.block_until_ready(fwd(x, params))

    assert out.shape == (2, 2, 16, 16), out.shape
    assert bool(jnp.all(jnp.isfinite(out)))
    assert bool(jnp.all(out >= 0.0))    # Softplus output is non-negative
    print("KERNEL_OK")
</pallas_src>

<mosaic_0001>
module attributes {stable_mosaic.version = 11 : i64} {
  func.func @_gn_kernel(%arg0: i32, %arg1: memref<1x1024x16xbf16, #tpu.memory_space<vmem>>, %arg2: memref<1x16xf32, #tpu.memory_space<vmem>>, %arg3: memref<1x16xf32, #tpu.memory_space<vmem>>, %arg4: memref<1x1024x16xbf16, #tpu.memory_space<vmem>>) attributes {dimension_semantics = [#tpu.dimension_semantics<parallel>], iteration_bounds = array<i64: 2>, scalar_prefetch = 0 : i64, scratch_operands = 0 : i64, tpu.core_type = #tpu.core_type<tc>, window_params = [{transform_indices = @transform_0, window_bounds = array<i64: 1, 1024, 16>}, {pipeline_mode = #tpu.pipeline_mode<synchronous>, transform_indices = @transform_1, window_bounds = array<i64: 1, 16>}, {pipeline_mode = #tpu.pipeline_mode<synchronous>, transform_indices = @transform_2, window_bounds = array<i64: 1, 16>}, {transform_indices = @transform_3, window_bounds = array<i64: 1, 1024, 16>}]} {
    %c0 = arith.constant 0 : index
    %c0_0 = arith.constant 0 : index
    %c0_1 = arith.constant 0 : index
    %0 = vector.load %arg1[%c0, %c0_0, %c0_1] : memref<1x1024x16xbf16, #tpu.memory_space<vmem>>, vector<1x1024x16xbf16>
    %1 = vector.shape_cast %0 : vector<1x1024x16xbf16> to vector<1024x16xbf16>
    %2 = arith.extf %1 : vector<1024x16xbf16> to vector<1024x16xf32>
    %cst = arith.constant dense<0.000000e+00> : vector<16xf32>
    %3 = vector.multi_reduction <add>, %2, %cst [0] : vector<1024x16xf32> to vector<16xf32>
    %4 = vector.shape_cast %3 : vector<16xf32> to vector<1x16xf32>
    %cst_2 = arith.constant 1.024000e+03 : f32
    %5 = vector.broadcast %cst_2 : f32 to vector<1x16xf32>
    %6 = arith.divf %4, %5 : vector<1x16xf32>
    %7 = vector.broadcast %6 : vector<1x16xf32> to vector<1024x16xf32>
    %8 = arith.subf %2, %7 : vector<1024x16xf32>
    %9 = arith.mulf %8, %8 : vector<1024x16xf32>
    %cst_3 = arith.constant dense<0.000000e+00> : vector<16xf32>
    %10 = vector.multi_reduction <add>, %9, %cst_3 [0] : vector<1024x16xf32> to vector<16xf32>
    %11 = vector.shape_cast %10 : vector<16xf32> to vector<1x16xf32>
    %cst_4 = arith.constant 1.024000e+03 : f32
    %12 = vector.broadcast %cst_4 : f32 to vector<1x16xf32>
    %13 = arith.divf %11, %12 : vector<1x16xf32>
    %cst_5 = arith.constant 9.99999974E-6 : f32
    %14 = vector.broadcast %cst_5 : f32 to vector<1x16xf32>
    %15 = arith.addf %13, %14 : vector<1x16xf32>
    %16 = math.rsqrt %15 : vector<1x16xf32>
    %17 = vector.broadcast %6 : vector<1x16xf32> to vector<1024x16xf32>
    %18 = arith.subf %2, %17 : vector<1024x16xf32>
    %c0_6 = arith.constant 0 : index
    %c0_7 = arith.constant 0 : index
    %19 = vector.load %arg2[%c0_6, %c0_7] : memref<1x16xf32, #tpu.memory_space<vmem>>, vector<1x16xf32>
    %20 = arith.mulf %16, %19 : vector<1x16xf32>
    %21 = vector.broadcast %20 : vector<1x16xf32> to vector<1024x16xf32>
    %22 = arith.mulf %18, %21 : vector<1024x16xf32>
    %c0_8 = arith.constant 0 : index
    %c0_9 = arith.constant 0 : index
    %23 = vector.load %arg3[%c0_8, %c0_9] : memref<1x16xf32, #tpu.memory_space<vmem>>, vector<1x16xf32>
    %24 = vector.broadcast %23 : vector<1x16xf32> to vector<1024x16xf32>
    %25 = arith.addf %22, %24 : vector<1024x16xf32>
    %cst_10 = arith.constant 0.000000e+00 : f32
    %26 = vector.broadcast %cst_10 : f32 to vector<1024x16xf32>
    %27 = arith.cmpf oge, %25, %26 : vector<1024x16xf32>
    %cst_11 = arith.constant 2.000000e-01 : f32
    %28 = vector.broadcast %cst_11 : f32 to vector<1024x16xf32>
    %29 = arith.mulf %28, %25 : vector<1024x16xf32>
    %30 = arith.select %27, %25, %29 : vector<1024x16xi1>, vector<1024x16xf32>
    %31 = arith.truncf %30 : vector<1024x16xf32> to vector<1024x16xbf16>
    %c0_12 = arith.constant 0 : index
    %c0_13 = arith.constant 0 : index
    %c0_14 = arith.constant 0 : index
    %32 = vector.load %arg4[%c0_12, %c0_13, %c0_14] : memref<1x1024x16xbf16, #tpu.memory_space<vmem>>, vector<1x1024x16xbf16>
    %33 = vector.shape_cast %32 : vector<1x1024x16xbf16> to vector<1024x16xbf16>
    %34 = vector.shape_cast %31 : vector<1024x16xbf16> to vector<1x1024x16xbf16>
    tpu.vector_store %arg4[%c0_12, %c0_13, %c0_14], %34 {strides = array<i32>} : memref<1x1024x16xbf16, #tpu.memory_space<vmem>>, vector<1x1024x16xbf16>,
    return
  }
  func.func @transform_0(%arg0: i32) -> (i32, i32, i32) {
    %c0_i32 = arith.constant 0 : i32
    %c0_i32_0 = arith.constant 0 : i32
    %c0_i32_1 = arith.constant 0 : i32
    return %arg0, %c0_i32, %c0_i32_0 : i32, i32, i32
  }
  func.func @transform_1(%arg0: i32) -> (i32, i32) {
    %c0_i32 = arith.constant 0 : i32
    %c0_i32_0 = arith.constant 0 : i32
    %c0_i32_1 = arith.constant 0 : i32
    return %c0_i32, %c0_i32_0 : i32, i32
  }
  func.func @transform_2(%arg0: i32) -> (i32, i32) {
    %c0_i32 = arith.constant 0 : i32
    %c0_i32_0 = arith.constant 0 : i32
    %c0_i32_1 = arith.constant 0 : i32
    return %c0_i32, %c0_i32_0 : i32, i32
  }
  func.func @transform_3(%arg0: i32) -> (i32, i32, i32) {
    %c0_i32 = arith.constant 0 : i32
    %c0_i32_0 = arith.constant 0 : i32
    %c0_i32_1 = arith.constant 0 : i32
    return %arg0, %c0_i32, %c0_i32_0 : i32, i32, i32
  }
}

module attributes {stable_mosaic.version = 11 : i64} {
  func.func @_matmul_act_kernel(%arg0: i32, %arg1: memref<512x48xbf16, #tpu.memory_space<vmem>>, %arg2: memref<48x16xbf16, #tpu.memory_space<vmem>>, %arg3: memref<512x16xbf16, #tpu.memory_space<vmem>>) attributes {dimension_semantics = [#tpu.dimension_semantics<parallel>], iteration_bounds = array<i64: 4>, scalar_prefetch = 0 : i64, scratch_operands = 0 : i64, tpu.core_type = #tpu.core_type<tc>, window_params = [{transform_indices = @transform_0, window_bounds = array<i64: 512, 48>}, {pipeline_mode = #tpu.pipeline_mode<synchronous>, transform_indices = @transform_1, window_bounds = array<i64: 48, 16>}, {transform_indices = @transform_2, window_bounds = array<i64: 512, 16>}]} {
    %c0 = arith.constant 0 : index
    %c0_0 = arith.constant 0 : index
    %0 = vector.load %arg1[%c0, %c0_0] : memref<512x48xbf16, #tpu.memory_space<vmem>>, vector<512x48xbf16>
    %c0_1 = arith.constant 0 : index
    %c0_2 = arith.constant 0 : index
    %1 = vector.load %arg2[%c0_1, %c0_2] : memref<48x16xbf16, #tpu.memory_space<vmem>>, vector<48x16xbf16>
    %cst = arith.constant dense<0.000000e+00> : vector<512x16xf32>
    %2 = tpu.matmul %0, %1, %cst {dimension_numbers = #tpu.dot_dimension_numbers<[1], [0], [0], [1], [0, 0, 1, 1], [], []>} : vector<512x48xbf16>, vector<48x16xbf16>, vector<512x16xf32> -> vector<512x16xf32>
    %3 = arith.truncf %2 : vector<512x16xf32> to vector<512x16xbf16>
    %c0_3 = arith.constant 0 : index
    %c0_4 = arith.constant 0 : index
    %4 = vector.load %arg3[%c0_3, %c0_4] : memref<512x16xbf16, #tpu.memory_space<vmem>>, vector<512x16xbf16>
    tpu.vector_store %arg3[%c0_3, %c0_4], %3 {strides = array<i32>} : memref<512x16xbf16, #tpu.memory_space<vmem>>, vector<512x16xbf16>,
    return
  }
  func.func @transform_0(%arg0: i32) -> (i32, i32) {
    %c0_i32 = arith.constant 0 : i32
    %c0_i32_0 = arith.constant 0 : i32
    return %arg0, %c0_i32 : i32, i32
  }
  func.func @transform_1(%arg0: i32) -> (i32, i32) {
    %c0_i32 = arith.constant 0 : i32
    %c0_i32_0 = arith.constant 0 : i32
    %c0_i32_1 = arith.constant 0 : i32
    return %c0_i32, %c0_i32_0 : i32, i32
  }
  func.func @transform_2(%arg0: i32) -> (i32, i32) {
    %c0_i32 = arith.constant 0 : i32
    %c0_i32_0 = arith.constant 0 : i32
    return %arg0, %c0_i32 : i32, i32
  }
}

module attributes {stable_mosaic.version = 11 : i64} {
  func.func @_matmul_act_kernel(%arg0: i32, %arg1: memref<256x256xbf16, #tpu.memory_space<vmem>>, %arg2: memref<256x32xbf16, #tpu.memory_space<vmem>>, %arg3: memref<256x32xbf16, #tpu.memory_space<vmem>>) attributes {dimension_semantics = [#tpu.dimension_semantics<parallel>], iteration_bounds = array<i64: 2>, scalar_prefetch = 0 : i64, scratch_operands = 0 : i64, tpu.core_type = #tpu.core_type<tc>, window_params = [{transform_indices = @transform_0, window_bounds = array<i64: 256, 256>}, {pipeline_mode = #tpu.pipeline_mode<synchronous>, transform_indices = @transform_1, window_bounds = array<i64: 256, 32>}, {transform_indices = @transform_2, window_bounds = array<i64: 256, 32>}]} {
    %c0 = arith.constant 0 : index
    %c0_0 = arith.constant 0 : index
    %0 = vector.load %arg1[%c0, %c0_0] : memref<256x256xbf16, #tpu.memory_space<vmem>>, vector<256x256xbf16>
    %c0_1 = arith.constant 0 : index
    %c0_2 = arith.constant 0 : index
    %1 = vector.load %arg2[%c0_1, %c0_2] : memref<256x32xbf16, #tpu.memory_space<vmem>>, vector<256x32xbf16>
    %cst = arith.constant dense<0.000000e+00> : vector<256x32xf32>
    %2 = tpu.matmul %0, %1, %cst {dimension_numbers = #tpu.dot_dimension_numbers<[1], [0], [0], [1], [0, 0, 1, 1], [], []>} : vector<256x256xbf16>, vector<256x32xbf16>, vector<256x32xf32> -> vector<256x32xf32>
    %3 = arith.truncf %2 : vector<256x32xf32> to vector<256x32xbf16>
    %c0_3 = arith.constant 0 : index
    %c0_4 = arith.constant 0 : index
    %4 = vector.load %arg3[%c0_3, %c0_4] : memref<256x32xbf16, #tpu.memory_space<vmem>>, vector<256x32xbf16>
    tpu.vector_store %arg3[%c0_3, %c0_4], %3 {strides = array<i32>} : memref<256x32xbf16, #tpu.memory_space<vmem>>, vector<256x32xbf16>,
    return
  }
  func.func @transform_0(%arg0: i32) -> (i32, i32) {
    %c0_i32 = arith.constant 0 : i32
    %c0_i32_0 = arith.constant 0 : i32
    return %arg0, %c0_i32 : i32, i32
  }
  func.func @transform_1(%arg0: i32) -> (i32, i32) {
    %c0_i32 = arith.constant 0 : i32
    %c0_i32_0 = arith.constant 0 : i32
    %c0_i32_1 = arith.constant 0 : i32
    return %c0_i32, %c0_i32_0 : i32, i32
  }
  func.func @transform_2(%arg0: i32) -> (i32, i32) {
    %c0_i32 = arith.constant 0 : i32
    %c0_i32_0 = arith.constant 0 : i32
    return %arg0, %c0_i32 : i32, i32
  }
}

module attributes {stable_mosaic.version = 11 : i64} {
  func.func @_gn_kernel(%arg0: i32, %arg1: memref<1x256x32xbf16, #tpu.memory_space<vmem>>, %arg2: memref<1x32xf32, #tpu.memory_space<vmem>>, %arg3: memref<1x32xf32, #tpu.memory_space<vmem>>, %arg4: memref<1x256x32xbf16, #tpu.memory_space<vmem>>) attributes {dimension_semantics = [#tpu.dimension_semantics<parallel>], iteration_bounds = array<i64: 2>, scalar_prefetch = 0 : i64, scratch_operands = 0 : i64, tpu.core_type = #tpu.core_type<tc>, window_params = [{transform_indices = @transform_0, window_bounds = array<i64: 1, 256, 32>}, {pipeline_mode = #tpu.pipeline_mode<synchronous>, transform_indices = @transform_1, window_bounds = array<i64: 1, 32>}, {pipeline_mode = #tpu.pipeline_mode<synchronous>, transform_indices = @transform_2, window_bounds = array<i64: 1, 32>}, {transform_indices = @transform_3, window_bounds = array<i64: 1, 256, 32>}]} {
    %c0 = arith.constant 0 : index
    %c0_0 = arith.constant 0 : index
    %c0_1 = arith.constant 0 : index
    %0 = vector.load %arg1[%c0, %c0_0, %c0_1] : memref<1x256x32xbf16, #tpu.memory_space<vmem>>, vector<1x256x32xbf16>
    %1 = vector.shape_cast %0 : vector<1x256x32xbf16> to vector<256x32xbf16>
    %2 = arith.extf %1 : vector<256x32xbf16> to vector<256x32xf32>
    %cst = arith.constant dense<0.000000e+00> : vector<32xf32>
    %3 = vector.multi_reduction <add>, %2, %cst [0] : vector<256x32xf32> to vector<32xf32>
    %4 = vector.shape_cast %3 : vector<32xf32> to vector<1x32xf32>
    %cst_2 = arith.constant 2.560000e+02 : f32
    %5 = vector.broadcast %cst_2 : f32 to vector<1x32xf32>
    %6 = arith.divf %4, %5 : vector<1x32xf32>
    %7 = vector.broadcast %6 : vector<1x32xf32> to vector<256x32xf32>
    %8 = arith.subf %2, %7 : vector<256x32xf32>
    %9 = arith.mulf %8, %8 : vector<256x32xf32>
    %cst_3 = arith.constant dense<0.000000e+00> : vector<32xf32>
    %10 = vector.multi_reduction <add>, %9, %cst_3 [0] : vector<256x32xf32> to vector<32xf32>
    %11 = vector.shape_cast %10 : vector<32xf32> to vector<1x32xf32>
    %cst_4 = arith.constant 2.560000e+02 : f32
    %12 = vector.broadcast %cst_4 : f32 to vector<1x32xf32>
    %13 = arith.divf %11, %12 : vector<1x32xf32>
    %cst_5 = arith.constant 9.99999974E-6 : f32
    %14 = vector.broadcast %cst_5 : f32 to vector<1x32xf32>
    %15 = arith.addf %13, %14 : vector<1x32xf32>
    %16 = math.rsqrt %15 : vector<1x32xf32>
    %17 = vector.broadcast %6 : vector<1x32xf32> to vector<256x32xf32>
    %18 = arith.subf %2, %17 : vector<256x32xf32>
    %c0_6 = arith.constant 0 : index
    %c0_7 = arith.constant 0 : index
    %19 = vector.load %arg2[%c0_6, %c0_7] : memref<1x32xf32, #tpu.memory_space<vmem>>, vector<1x32xf32>
    %20 = arith.mulf %16, %19 : vector<1x32xf32>
    %21 = vector.broadcast %20 : vector<1x32xf32> to vector<256x32xf32>
    %22 = arith.mulf %18, %21 : vector<256x32xf32>
    %c0_8 = arith.constant 0 : index
    %c0_9 = arith.constant 0 : index
    %23 = vector.load %arg3[%c0_8, %c0_9] : memref<1x32xf32, #tpu.memory_space<vmem>>, vector<1x32xf32>
    %24 = vector.broadcast %23 : vector<1x32xf32> to vector<256x32xf32>
    %25 = arith.addf %22, %24 : vector<256x32xf32>
    %cst_10 = arith.constant 0.000000e+00 : f32
    %26 = vector.broadcast %cst_10 : f32 to vector<256x32xf32>
    %27 = arith.cmpf oge, %25, %26 : vector<256x32xf32>
    %cst_11 = arith.constant 2.000000e-01 : f32
    %28 = vector.broadcast %cst_11 : f32 to vector<256x32xf32>
    %29 = arith.mulf %28, %25 : vector<256x32xf32>
    %30 = arith.select %27, %25, %29 : vector<256x32xi1>, vector<256x32xf32>
    %31 = arith.truncf %30 : vector<256x32xf32> to vector<256x32xbf16>
    %c0_12 = arith.constant 0 : index
    %c0_13 = arith.constant 0 : index
    %c0_14 = arith.constant 0 : index
    %32 = vector.load %arg4[%c0_12, %c0_13, %c0_14] : memref<1x256x32xbf16, #tpu.memory_space<vmem>>, vector<1x256x32xbf16>
    %33 = vector.shape_cast %32 : vector<1x256x32xbf16> to vector<256x32xbf16>
    %34 = vector.shape_cast %31 : vector<256x32xbf16> to vector<1x256x32xbf16>
    tpu.vector_store %arg4[%c0_12, %c0_13, %c0_14], %34 {strides = array<i32>} : memref<1x256x32xbf16, #tpu.memory_space<vmem>>, vector<1x256x32xbf16>,
    return
  }
  func.func @transform_0(%arg0: i32) -> (i32, i32, i32) {
    %c0_i32 = arith.constant 0 : i32
    %c0_i32_0 = arith.constant 0 : i32
    %c0_i32_1 = arith.constant 0 : i32
    return %arg0, %c0_i32, %c0_i32_0 : i32, i32, i32
  }
  func.func @transform_1(%arg0: i32) -> (i32, i32) {
    %c0_i32 = arith.constant 0 : i32
    %c0_i32_0 = arith.constant 0 : i32
    %c0_i32_1 = arith.constant 0 : i32
    return %c0_i32, %c0_i32_0 : i32, i32
  }
  func.func @transform_2(%arg0: i32) -> (i32, i32) {
    %c0_i32 = arith.constant 0 : i32
    %c0_i32_0 = arith.constant 0 : i32
    %c0_i32_1 = arith.constant 0 : i32
    return %c0_i32, %c0_i32_0 : i32, i32
  }
  func.func @transform_3(%arg0: i32) -> (i32, i32, i32) {
    %c0_i32 = arith.constant 0 : i32
    %c0_i32_0 = arith.constant 0 : i32
    %c0_i32_1 = arith.constant 0 : i32
    return %arg0, %c0_i32, %c0_i32_0 : i32, i32, i32
  }
}

module attributes {stable_mosaic.version = 11 : i64} {
  func.func @_matmul_act_kernel(%arg0: i32, %arg1: memref<64x512xbf16, #tpu.memory_space<vmem>>, %arg2: memref<512x64xbf16, #tpu.memory_space<vmem>>, %arg3: memref<64x64xbf16, #tpu.memory_space<vmem>>) attributes {dimension_semantics = [#tpu.dimension_semantics<parallel>], iteration_bounds = array<i64: 2>, scalar_prefetch = 0 : i64, scratch_operands = 0 : i64, tpu.core_type = #tpu.core_type<tc>, window_params = [{transform_indices = @transform_0, window_bounds = array<i64: 64, 512>}, {pipeline_mode = #tpu.pipeline_mode<synchronous>, transform_indices = @transform_1, window_bounds = array<i64: 512, 64>}, {transform_indices = @transform_2, window_bounds = array<i64: 64, 64>}]} {
    %c0 = arith.constant 0 : index
    %c0_0 = arith.constant 0 : index
    %0 = vector.load %arg1[%c0, %c0_0] : memref<64x512xbf16, #tpu.memory_space<vmem>>, vector<64x512xbf16>
    %c0_1 = arith.constant 0 : index
    %c0_2 = arith.constant 0 : index
    %1 = vector.load %arg2[%c0_1, %c0_2] : memref<512x64xbf16, #tpu.memory_space<vmem>>, vector<512x64xbf16>
    %cst = arith.constant dense<0.000000e+00> : vector<64x64xf32>
    %2 = tpu.matmul %0, %1, %cst {dimension_numbers = #tpu.dot_dimension_numbers<[1], [0], [0], [1], [0, 0, 1, 1], [], []>} : vector<64x512xbf16>, vector<512x64xbf16>, vector<64x64xf32> -> vector<64x64xf32>
    %3 = arith.truncf %2 : vector<64x64xf32> to vector<64x64xbf16>
    %c0_3 = arith.constant 0 : index
    %c0_4 = arith.constant 0 : index
    %4 = vector.load %arg3[%c0_3, %c0_4] : memref<64x64xbf16, #tpu.memory_space<vmem>>, vector<64x64xbf16>
    tpu.vector_store %arg3[%c0_3, %c0_4], %3 {strides = array<i32>} : memref<64x64xbf16, #tpu.memory_space<vmem>>, vector<64x64xbf16>,
    return
  }
  func.func @transform_0(%arg0: i32) -> (i32, i32) {
    %c0_i32 = arith.constant 0 : i32
    %c0_i32_0 = arith.constant 0 : i32
    return %arg0, %c0_i32 : i32, i32
  }
  func.func @transform_1(%arg0: i32) -> (i32, i32) {
    %c0_i32 = arith.constant 0 : i32
    %c0_i32_0 = arith.constant 0 : i32
    %c0_i32_1 = arith.constant 0 : i32
    return %c0_i32, %c0_i32_0 : i32, i32
  }
  func.func @transform_2(%arg0: i32) -> (i32, i32) {
    %c0_i32 = arith.constant 0 : i32
    %c0_i32_0 = arith.constant 0 : i32
    return %arg0, %c0_i32 : i32, i32
  }
}

module attributes {stable_mosaic.version = 11 : i64} {
  func.func @_gn_kernel(%arg0: i32, %arg1: memref<1x64x64xbf16, #tpu.memory_space<vmem>>, %arg2: memref<1x64xf32, #tpu.memory_space<vmem>>, %arg3: memref<1x64xf32, #tpu.memory_space<vmem>>, %arg4: memref<1x64x64xbf16, #tpu.memory_space<vmem>>) attributes {dimension_semantics = [#tpu.dimension_semantics<parallel>], iteration_bounds = array<i64: 2>, scalar_prefetch = 0 : i64, scratch_operands = 0 : i64, tpu.core_type = #tpu.core_type<tc>, window_params = [{transform_indices = @transform_0, window_bounds = array<i64: 1, 64, 64>}, {pipeline_mode = #tpu.pipeline_mode<synchronous>, transform_indices = @transform_1, window_bounds = array<i64: 1, 64>}, {pipeline_mode = #tpu.pipeline_mode<synchronous>, transform_indices = @transform_2, window_bounds = array<i64: 1, 64>}, {transform_indices = @transform_3, window_bounds = array<i64: 1, 64, 64>}]} {
    %c0 = arith.constant 0 : index
    %c0_0 = arith.constant 0 : index
    %c0_1 = arith.constant 0 : index
    %0 = vector.load %arg1[%c0, %c0_0, %c0_1] : memref<1x64x64xbf16, #tpu.memory_space<vmem>>, vector<1x64x64xbf16>
    %1 = vector.shape_cast %0 : vector<1x64x64xbf16> to vector<64x64xbf16>
    %2 = arith.extf %1 : vector<64x64xbf16> to vector<64x64xf32>
    %cst = arith.constant dense<0.000000e+00> : vector<64xf32>
    %3 = vector.multi_reduction <add>, %2, %cst [0] : vector<64x64xf32> to vector<64xf32>
    %4 = vector.shape_cast %3 : vector<64xf32> to vector<1x64xf32>
    %cst_2 = arith.constant 6.400000e+01 : f32
    %5 = vector.broadcast %cst_2 : f32 to vector<1x64xf32>
    %6 = arith.divf %4, %5 : vector<1x64xf32>
    %7 = vector.broadcast %6 : vector<1x64xf32> to vector<64x64xf32>
    %8 = arith.subf %2, %7 : vector<64x64xf32>
    %9 = arith.mulf %8, %8 : vector<64x64xf32>
    %cst_3 = arith.constant dense<0.000000e+00> : vector<64xf32>
    %10 = vector.multi_reduction <add>, %9, %cst_3 [0] : vector<64x64xf32> to vector<64xf32>
    %11 = vector.shape_cast %10 : vector<64xf32> to vector<1x64xf32>
    %cst_4 = arith.constant 6.400000e+01 : f32
    %12 = vector.broadcast %cst_4 : f32 to vector<1x64xf32>
    %13 = arith.divf %11, %12 : vector<1x64xf32>
    %cst_5 = arith.constant 9.99999974E-6 : f32
    %14 = vector.broadcast %cst_5 : f32 to vector<1x64xf32>
    %15 = arith.addf %13, %14 : vector<1x64xf32>
    %16 = math.rsqrt %15 : vector<1x64xf32>
    %17 = vector.broadcast %6 : vector<1x64xf32> to vector<64x64xf32>
    %18 = arith.subf %2, %17 : vector<64x64xf32>
    %c0_6 = arith.constant 0 : index
    %c0_7 = arith.constant 0 : index
    %19 = vector.load %arg2[%c0_6, %c0_7] : memref<1x64xf32, #tpu.memory_space<vmem>>, vector<1x64xf32>
    %20 = arith.mulf %16, %19 : vector<1x64xf32>
    %21 = vector.broadcast %20 : vector<1x64xf32> to vector<64x64xf32>
    %22 = arith.mulf %18, %21 : vector<64x64xf32>
    %c0_8 = arith.constant 0 : index
    %c0_9 = arith.constant 0 : index
    %23 = vector.load %arg3[%c0_8, %c0_9] : memref<1x64xf32, #tpu.memory_space<vmem>>, vector<1x64xf32>
    %24 = vector.broadcast %23 : vector<1x64xf32> to vector<64x64xf32>
    %25 = arith.addf %22, %24 : vector<64x64xf32>
    %cst_10 = arith.constant 0.000000e+00 : f32
    %26 = vector.broadcast %cst_10 : f32 to vector<64x64xf32>
    %27 = arith.cmpf oge, %25, %26 : vector<64x64xf32>
    %cst_11 = arith.constant 2.000000e-01 : f32
    %28 = vector.broadcast %cst_11 : f32 to vector<64x64xf32>
    %29 = arith.mulf %28, %25 : vector<64x64xf32>
    %30 = arith.select %27, %25, %29 : vector<64x64xi1>, vector<64x64xf32>
    %31 = arith.truncf %30 : vector<64x64xf32> to vector<64x64xbf16>
    %c0_12 = arith.constant 0 : index
    %c0_13 = arith.constant 0 : index
    %c0_14 = arith.constant 0 : index
    %32 = vector.load %arg4[%c0_12, %c0_13, %c0_14] : memref<1x64x64xbf16, #tpu.memory_space<vmem>>, vector<1x64x64xbf16>
    %33 = vector.shape_cast %32 : vector<1x64x64xbf16> to vector<64x64xbf16>
    %34 = vector.shape_cast %31 : vector<64x64xbf16> to vector<1x64x64xbf16>
    tpu.vector_store %arg4[%c0_12, %c0_13, %c0_14], %34 {strides = array<i32>} : memref<1x64x64xbf16, #tpu.memory_space<vmem>>, vector<1x64x64xbf16>,
    return
  }
  func.func @transform_0(%arg0: i32) -> (i32, i32, i32) {
    %c0_i32 = arith.constant 0 : i32
    %c0_i32_0 = arith.constant 0 : i32
    %c0_i32_1 = arith.constant 0 : i32
    return %arg0, %c0_i32, %c0_i32_0 : i32, i32, i32
  }
  func.func @transform_1(%arg0: i32) -> (i32, i32) {
    %c0_i32 = arith.constant 0 : i32
    %c0_i32_0 = arith.constant 0 : i32
    %c0_i32_1 = arith.constant 0 : i32
    return %c0_i32, %c0_i32_0 : i32, i32
  }
  func.func @transform_2(%arg0: i32) -> (i32, i32) {
    %c0_i32 = arith.constant 0 : i32
    %c0_i32_0 = arith.constant 0 : i32
    %c0_i32_1 = arith.constant 0 : i32
    return %c0_i32, %c0_i32_0 : i32, i32
  }
  func.func @transform_3(%arg0: i32) -> (i32, i32, i32) {
    %c0_i32 = arith.constant 0 : i32
    %c0_i32_0 = arith.constant 0 : i32
    %c0_i32_1 = arith.constant 0 : i32
    return %arg0, %c0_i32, %c0_i32_0 : i32, i32, i32
  }
}

module attributes {stable_mosaic.version = 11 : i64} {
  func.func @_matmul_act_kernel(%arg0: i32, %arg1: memref<16x1024xbf16, #tpu.memory_space<vmem>>, %arg2: memref<1024x128xbf16, #tpu.memory_space<vmem>>, %arg3: memref<16x128xbf16, #tpu.memory_space<vmem>>) attributes {dimension_semantics = [#tpu.dimension_semantics<parallel>], iteration_bounds = array<i64: 2>, scalar_prefetch = 0 : i64, scratch_operands = 0 : i64, tpu.core_type = #tpu.core_type<tc>, window_params = [{transform_indices = @transform_0, window_bounds = array<i64: 16, 1024>}, {pipeline_mode = #tpu.pipeline_mode<synchronous>, transform_indices = @transform_1, window_bounds = array<i64: 1024, 128>}, {transform_indices = @transform_2, window_bounds = array<i64: 16, 128>}]} {
    %c0 = arith.constant 0 : index
    %c0_0 = arith.constant 0 : index
    %0 = vector.load %arg1[%c0, %c0_0] : memref<16x1024xbf16, #tpu.memory_space<vmem>>, vector<16x1024xbf16>
    %c0_1 = arith.constant 0 : index
    %c0_2 = arith.constant 0 : index
    %1 = vector.load %arg2[%c0_1, %c0_2] : memref<1024x128xbf16, #tpu.memory_space<vmem>>, vector<1024x128xbf16>
    %cst = arith.constant dense<0.000000e+00> : vector<16x128xf32>
    %2 = tpu.matmul %0, %1, %cst {dimension_numbers = #tpu.dot_dimension_numbers<[1], [0], [0], [1], [0, 0, 1, 1], [], []>} : vector<16x1024xbf16>, vector<1024x128xbf16>, vector<16x128xf32> -> vector<16x128xf32>
    %cst_3 = arith.constant 0.000000e+00 : f32
    %3 = vector.broadcast %cst_3 : f32 to vector<16x128xf32>
    %4 = arith.cmpf oge, %2, %3 : vector<16x128xf32>
    %cst_4 = arith.constant 2.000000e-01 : f32
    %5 = vector.broadcast %cst_4 : f32 to vector<16x128xf32>
    %6 = arith.mulf %5, %2 : vector<16x128xf32>
    %7 = arith.select %4, %2, %6 : vector<16x128xi1>, vector<16x128xf32>
    %8 = arith.truncf %7 : vector<16x128xf32> to vector<16x128xbf16>
    %c0_5 = arith.constant 0 : index
    %c0_6 = arith.constant 0 : index
    %9 = vector.load %arg3[%c0_5, %c0_6] : memref<16x128xbf16, #tpu.memory_space<vmem>>, vector<16x128xbf16>
    tpu.vector_store %arg3[%c0_5, %c0_6], %8 {strides = array<i32>} : memref<16x128xbf16, #tpu.memory_space<vmem>>, vector<16x128xbf16>,
    return
  }
  func.func @transform_0(%arg0: i32) -> (i32, i32) {
    %c0_i32 = arith.constant 0 : i32
    %c0_i32_0 = arith.constant 0 : i32
    return %arg0, %c0_i32 : i32, i32
  }
  func.func @transform_1(%arg0: i32) -> (i32, i32) {
    %c0_i32 = arith.constant 0 : i32
    %c0_i32_0 = arith.constant 0 : i32
    %c0_i32_1 = arith.constant 0 : i32
    return %c0_i32, %c0_i32_0 : i32, i32
  }
  func.func @transform_2(%arg0: i32) -> (i32, i32) {
    %c0_i32 = arith.constant 0 : i32
    %c0_i32_0 = arith.constant 0 : i32
    return %arg0, %c0_i32 : i32, i32
  }
}

module attributes {stable_mosaic.version = 11 : i64} {
  func.func @_matmul_act_kernel(%arg0: i32, %arg1: memref<2x2048xbf16, #tpu.memory_space<vmem>>, %arg2: memref<2048x32xbf16, #tpu.memory_space<vmem>>, %arg3: memref<2x32xbf16, #tpu.memory_space<vmem>>) attributes {dimension_semantics = [#tpu.dimension_semantics<parallel>], iteration_bounds = array<i64: 1>, scalar_prefetch = 0 : i64, scratch_operands = 0 : i64, tpu.core_type = #tpu.core_type<tc>, window_params = [{transform_indices = @transform_0, window_bounds = array<i64: 2, 2048>}, {pipeline_mode = #tpu.pipeline_mode<synchronous>, transform_indices = @transform_1, window_bounds = array<i64: 2048, 32>}, {transform_indices = @transform_2, window_bounds = array<i64: 2, 32>}]} {
    %c0 = arith.constant 0 : index
    %c0_0 = arith.constant 0 : index
    %0 = vector.load %arg1[%c0, %c0_0] : memref<2x2048xbf16, #tpu.memory_space<vmem>>, vector<2x2048xbf16>
    %c0_1 = arith.constant 0 : index
    %c0_2 = arith.constant 0 : index
    %1 = vector.load %arg2[%c0_1, %c0_2] : memref<2048x32xbf16, #tpu.memory_space<vmem>>, vector<2048x32xbf16>
    %cst = arith.constant dense<0.000000e+00> : vector<2x32xf32>
    %2 = tpu.matmul %0, %1, %cst {dimension_numbers = #tpu.dot_dimension_numbers<[1], [0], [0], [1], [0, 0, 1, 1], [], []>} : vector<2x2048xbf16>, vector<2048x32xbf16>, vector<2x32xf32> -> vector<2x32xf32>
    %cst_3 = arith.constant 0.000000e+00 : f32
    %3 = vector.broadcast %cst_3 : f32 to vector<2x32xf32>
    %4 = arith.maximumf %2, %3 : vector<2x32xf32>
    %5 = arith.truncf %4 : vector<2x32xf32> to vector<2x32xbf16>
    %c0_4 = arith.constant 0 : index
    %c0_5 = arith.constant 0 : index
    %6 = vector.load %arg3[%c0_4, %c0_5] : memref<2x32xbf16, #tpu.memory_space<vmem>>, vector<2x32xbf16>
    tpu.vector_store %arg3[%c0_4, %c0_5], %5 {strides = array<i32>} : memref<2x32xbf16, #tpu.memory_space<vmem>>, vector<2x32xbf16>,
    return
  }
  func.func @transform_0(%arg0: i32) -> (i32, i32) {
    %c0_i32 = arith.constant 0 : i32
    %c0_i32_0 = arith.constant 0 : i32
    return %arg0, %c0_i32 : i32, i32
  }
  func.func @transform_1(%arg0: i32) -> (i32, i32) {
    %c0_i32 = arith.constant 0 : i32
    %c0_i32_0 = arith.constant 0 : i32
    %c0_i32_1 = arith.constant 0 : i32
    return %c0_i32, %c0_i32_0 : i32, i32
  }
  func.func @transform_2(%arg0: i32) -> (i32, i32) {
    %c0_i32 = arith.constant 0 : i32
    %c0_i32_0 = arith.constant 0 : i32
    return %arg0, %c0_i32 : i32, i32
  }
}

module attributes {stable_mosaic.version = 11 : i64} {
  func.func @_matmul_act_kernel(%arg0: i32, %arg1: memref<16x512xbf16, #tpu.memory_space<vmem>>, %arg2: memref<512x128xbf16, #tpu.memory_space<vmem>>, %arg3: memref<16x128xbf16, #tpu.memory_space<vmem>>) attributes {dimension_semantics = [#tpu.dimension_semantics<parallel>], iteration_bounds = array<i64: 2>, scalar_prefetch = 0 : i64, scratch_operands = 0 : i64, tpu.core_type = #tpu.core_type<tc>, window_params = [{transform_indices = @transform_0, window_bounds = array<i64: 16, 512>}, {pipeline_mode = #tpu.pipeline_mode<synchronous>, transform_indices = @transform_1, window_bounds = array<i64: 512, 128>}, {transform_indices = @transform_2, window_bounds = array<i64: 16, 128>}]} {
    %c0 = arith.constant 0 : index
    %c0_0 = arith.constant 0 : index
    %0 = vector.load %arg1[%c0, %c0_0] : memref<16x512xbf16, #tpu.memory_space<vmem>>, vector<16x512xbf16>
    %c0_1 = arith.constant 0 : index
    %c0_2 = arith.constant 0 : index
    %1 = vector.load %arg2[%c0_1, %c0_2] : memref<512x128xbf16, #tpu.memory_space<vmem>>, vector<512x128xbf16>
    %cst = arith.constant dense<0.000000e+00> : vector<16x128xf32>
    %2 = tpu.matmul %0, %1, %cst {dimension_numbers = #tpu.dot_dimension_numbers<[1], [0], [0], [1], [0, 0, 1, 1], [], []>} : vector<16x512xbf16>, vector<512x128xbf16>, vector<16x128xf32> -> vector<16x128xf32>
    %cst_3 = arith.constant 0.000000e+00 : f32
    %3 = vector.broadcast %cst_3 : f32 to vector<16x128xf32>
    %4 = arith.maximumf %2, %3 : vector<16x128xf32>
    %5 = arith.truncf %4 : vector<16x128xf32> to vector<16x128xbf16>
    %c0_4 = arith.constant 0 : index
    %c0_5 = arith.constant 0 : index
    %6 = vector.load %arg3[%c0_4, %c0_5] : memref<16x128xbf16, #tpu.memory_space<vmem>>, vector<16x128xbf16>
    tpu.vector_store %arg3[%c0_4, %c0_5], %5 {strides = array<i32>} : memref<16x128xbf16, #tpu.memory_space<vmem>>, vector<16x128xbf16>,
    return
  }
  func.func @transform_0(%arg0: i32) -> (i32, i32) {
    %c0_i32 = arith.constant 0 : i32
    %c0_i32_0 = arith.constant 0 : i32
    return %arg0, %c0_i32 : i32, i32
  }
  func.func @transform_1(%arg0: i32) -> (i32, i32) {
    %c0_i32 = arith.constant 0 : i32
    %c0_i32_0 = arith.constant 0 : i32
    %c0_i32_1 = arith.constant 0 : i32
    return %c0_i32, %c0_i32_0 : i32, i32
  }
  func.func @transform_2(%arg0: i32) -> (i32, i32) {
    %c0_i32 = arith.constant 0 : i32
    %c0_i32_0 = arith.constant 0 : i32
    return %arg0, %c0_i32 : i32, i32
  }
}

module attributes {stable_mosaic.version = 11 : i64} {
  func.func @_matmul_act_kernel(%arg0: i32, %arg1: memref<50x512xbf16, #tpu.memory_space<vmem>>, %arg2: memref<512x256xbf16, #tpu.memory_space<vmem>>, %arg3: memref<50x256xbf16, #tpu.memory_space<vmem>>) attributes {dimension_semantics = [#tpu.dimension_semantics<parallel>], iteration_bounds = array<i64: 1>, scalar_prefetch = 0 : i64, scratch_operands = 0 : i64, tpu.core_type = #tpu.core_type<tc>, window_params = [{transform_indices = @transform_0, window_bounds = array<i64: 50, 512>}, {pipeline_mode = #tpu.pipeline_mode<synchronous>, transform_indices = @transform_1, window_bounds = array<i64: 512, 256>}, {transform_indices = @transform_2, window_bounds = array<i64: 50, 256>}]} {
    %c0 = arith.constant 0 : index
    %c0_0 = arith.constant 0 : index
    %0 = vector.load %arg1[%c0, %c0_0] : memref<50x512xbf16, #tpu.memory_space<vmem>>, vector<50x512xbf16>
    %c0_1 = arith.constant 0 : index
    %c0_2 = arith.constant 0 : index
    %1 = vector.load %arg2[%c0_1, %c0_2] : memref<512x256xbf16, #tpu.memory_space<vmem>>, vector<512x256xbf16>
    %cst = arith.constant dense<0.000000e+00> : vector<50x256xf32>
    %2 = tpu.matmul %0, %1, %cst {dimension_numbers = #tpu.dot_dimension_numbers<[1], [0], [0], [1], [0, 0, 1, 1], [], []>} : vector<50x512xbf16>, vector<512x256xbf16>, vector<50x256xf32> -> vector<50x256xf32>
    %3 = arith.truncf %2 : vector<50x256xf32> to vector<50x256xbf16>
    %c0_3 = arith.constant 0 : index
    %c0_4 = arith.constant 0 : index
    %4 = vector.load %arg3[%c0_3, %c0_4] : memref<50x256xbf16, #tpu.memory_space<vmem>>, vector<50x256xbf16>
    tpu.vector_store %arg3[%c0_3, %c0_4], %3 {strides = array<i32>} : memref<50x256xbf16, #tpu.memory_space<vmem>>, vector<50x256xbf16>,
    return
  }
  func.func @transform_0(%arg0: i32) -> (i32, i32) {
    %c0_i32 = arith.constant 0 : i32
    %c0_i32_0 = arith.constant 0 : i32
    return %arg0, %c0_i32 : i32, i32
  }
  func.func @transform_1(%arg0: i32) -> (i32, i32) {
    %c0_i32 = arith.constant 0 : i32
    %c0_i32_0 = arith.constant 0 : i32
    %c0_i32_1 = arith.constant 0 : i32
    return %c0_i32, %c0_i32_0 : i32, i32
  }
  func.func @transform_2(%arg0: i32) -> (i32, i32) {
    %c0_i32 = arith.constant 0 : i32
    %c0_i32_0 = arith.constant 0 : i32
    return %arg0, %c0_i32 : i32, i32
  }
}

module attributes {stable_mosaic.version = 11 : i64} {
  func.func @_gn_kernel(%arg0: i32, %arg1: memref<1x64x64xbf16, #tpu.memory_space<vmem>>, %arg2: memref<1x64xf32, #tpu.memory_space<vmem>>, %arg3: memref<1x64xf32, #tpu.memory_space<vmem>>, %arg4: memref<1x64x64xbf16, #tpu.memory_space<vmem>>) attributes {dimension_semantics = [#tpu.dimension_semantics<parallel>], iteration_bounds = array<i64: 2>, scalar_prefetch = 0 : i64, scratch_operands = 0 : i64, tpu.core_type = #tpu.core_type<tc>, window_params = [{transform_indices = @transform_0, window_bounds = array<i64: 1, 64, 64>}, {pipeline_mode = #tpu.pipeline_mode<synchronous>, transform_indices = @transform_1, window_bounds = array<i64: 1, 64>}, {pipeline_mode = #tpu.pipeline_mode<synchronous>, transform_indices = @transform_2, window_bounds = array<i64: 1, 64>}, {transform_indices = @transform_3, window_bounds = array<i64: 1, 64, 64>}]} {
    %c0 = arith.constant 0 : index
    %c0_0 = arith.constant 0 : index
    %c0_1 = arith.constant 0 : index
    %0 = vector.load %arg1[%c0, %c0_0, %c0_1] : memref<1x64x64xbf16, #tpu.memory_space<vmem>>, vector<1x64x64xbf16>
    %1 = vector.shape_cast %0 : vector<1x64x64xbf16> to vector<64x64xbf16>
    %2 = arith.extf %1 : vector<64x64xbf16> to vector<64x64xf32>
    %cst = arith.constant dense<0.000000e+00> : vector<64xf32>
    %3 = vector.multi_reduction <add>, %2, %cst [0] : vector<64x64xf32> to vector<64xf32>
    %4 = vector.shape_cast %3 : vector<64xf32> to vector<1x64xf32>
    %cst_2 = arith.constant 6.400000e+01 : f32
    %5 = vector.broadcast %cst_2 : f32 to vector<1x64xf32>
    %6 = arith.divf %4, %5 : vector<1x64xf32>
    %7 = vector.broadcast %6 : vector<1x64xf32> to vector<64x64xf32>
    %8 = arith.subf %2, %7 : vector<64x64xf32>
    %9 = arith.mulf %8, %8 : vector<64x64xf32>
    %cst_3 = arith.constant dense<0.000000e+00> : vector<64xf32>
    %10 = vector.multi_reduction <add>, %9, %cst_3 [0] : vector<64x64xf32> to vector<64xf32>
    %11 = vector.shape_cast %10 : vector<64xf32> to vector<1x64xf32>
    %cst_4 = arith.constant 6.400000e+01 : f32
    %12 = vector.broadcast %cst_4 : f32 to vector<1x64xf32>
    %13 = arith.divf %11, %12 : vector<1x64xf32>
    %cst_5 = arith.constant 9.99999974E-6 : f32
    %14 = vector.broadcast %cst_5 : f32 to vector<1x64xf32>
    %15 = arith.addf %13, %14 : vector<1x64xf32>
    %16 = math.rsqrt %15 : vector<1x64xf32>
    %17 = vector.broadcast %6 : vector<1x64xf32> to vector<64x64xf32>
    %18 = arith.subf %2, %17 : vector<64x64xf32>
    %c0_6 = arith.constant 0 : index
    %c0_7 = arith.constant 0 : index
    %19 = vector.load %arg2[%c0_6, %c0_7] : memref<1x64xf32, #tpu.memory_space<vmem>>, vector<1x64xf32>
    %20 = arith.mulf %16, %19 : vector<1x64xf32>
    %21 = vector.broadcast %20 : vector<1x64xf32> to vector<64x64xf32>
    %22 = arith.mulf %18, %21 : vector<64x64xf32>
    %c0_8 = arith.constant 0 : index
    %c0_9 = arith.constant 0 : index
    %23 = vector.load %arg3[%c0_8, %c0_9] : memref<1x64xf32, #tpu.memory_space<vmem>>, vector<1x64xf32>
    %24 = vector.broadcast %23 : vector<1x64xf32> to vector<64x64xf32>
    %25 = arith.addf %22, %24 : vector<64x64xf32>
    %cst_10 = arith.constant 0.000000e+00 : f32
    %26 = vector.broadcast %cst_10 : f32 to vector<64x64xf32>
    %27 = arith.maximumf %25, %26 : vector<64x64xf32>
    %28 = arith.truncf %27 : vector<64x64xf32> to vector<64x64xbf16>
    %c0_11 = arith.constant 0 : index
    %c0_12 = arith.constant 0 : index
    %c0_13 = arith.constant 0 : index
    %29 = vector.load %arg4[%c0_11, %c0_12, %c0_13] : memref<1x64x64xbf16, #tpu.memory_space<vmem>>, vector<1x64x64xbf16>
    %30 = vector.shape_cast %29 : vector<1x64x64xbf16> to vector<64x64xbf16>
    %31 = vector.shape_cast %28 : vector<64x64xbf16> to vector<1x64x64xbf16>
    tpu.vector_store %arg4[%c0_11, %c0_12, %c0_13], %31 {strides = array<i32>} : memref<1x64x64xbf16, #tpu.memory_space<vmem>>, vector<1x64x64xbf16>,
    return
  }
  func.func @transform_0(%arg0: i32) -> (i32, i32, i32) {
    %c0_i32 = arith.constant 0 : i32
    %c0_i32_0 = arith.constant 0 : i32
    %c0_i32_1 = arith.constant 0 : i32
    return %arg0, %c0_i32, %c0_i32_0 : i32, i32, i32
  }
  func.func @transform_1(%arg0: i32) -> (i32, i32) {
    %c0_i32 = arith.constant 0 : i32
    %c0_i32_0 = arith.constant 0 : i32
    %c0_i32_1 = arith.constant 0 : i32
    return %c0_i32, %c0_i32_0 : i32, i32
  }
  func.func @transform_2(%arg0: i32) -> (i32, i32) {
    %c0_i32 = arith.constant 0 : i32
    %c0_i32_0 = arith.constant 0 : i32
    %c0_i32_1 = arith.constant 0 : i32
    return %c0_i32, %c0_i32_0 : i32, i32
  }
  func.func @transform_3(%arg0: i32) -> (i32, i32, i32) {
    %c0_i32 = arith.constant 0 : i32
    %c0_i32_0 = arith.constant 0 : i32
    %c0_i32_1 = arith.constant 0 : i32
    return %arg0, %c0_i32, %c0_i32_0 : i32, i32, i32
  }
}

module attributes {stable_mosaic.version = 11 : i64} {
  func.func @_matmul_act_kernel(%arg0: i32, %arg1: memref<162x256xbf16, #tpu.memory_space<vmem>>, %arg2: memref<256x128xbf16, #tpu.memory_space<vmem>>, %arg3: memref<162x128xbf16, #tpu.memory_space<vmem>>) attributes {dimension_semantics = [#tpu.dimension_semantics<parallel>], iteration_bounds = array<i64: 1>, scalar_prefetch = 0 : i64, scratch_operands = 0 : i64, tpu.core_type = #tpu.core_type<tc>, window_params = [{transform_indices = @transform_0, window_bounds = array<i64: 162, 256>}, {pipeline_mode = #tpu.pipeline_mode<synchronous>, transform_indices = @transform_1, window_bounds = array<i64: 256, 128>}, {transform_indices = @transform_2, window_bounds = array<i64: 162, 128>}]} {
    %c0 = arith.constant 0 : index
    %c0_0 = arith.constant 0 : index
    %0 = vector.load %arg1[%c0, %c0_0] : memref<162x256xbf16, #tpu.memory_space<vmem>>, vector<162x256xbf16>
    %c0_1 = arith.constant 0 : index
    %c0_2 = arith.constant 0 : index
    %1 = vector.load %arg2[%c0_1, %c0_2] : memref<256x128xbf16, #tpu.memory_space<vmem>>, vector<256x128xbf16>
    %cst = arith.constant dense<0.000000e+00> : vector<162x128xf32>
    %2 = tpu.matmul %0, %1, %cst {dimension_numbers = #tpu.dot_dimension_numbers<[1], [0], [0], [1], [0, 0, 1, 1], [], []>} : vector<162x256xbf16>, vector<256x128xbf16>, vector<162x128xf32> -> vector<162x128xf32>
    %3 = arith.truncf %2 : vector<162x128xf32> to vector<162x128xbf16>
    %c0_3 = arith.constant 0 : index
    %c0_4 = arith.constant 0 : index
    %4 = vector.load %arg3[%c0_3, %c0_4] : memref<162x128xbf16, #tpu.memory_space<vmem>>, vector<162x128xbf16>
    tpu.vector_store %arg3[%c0_3, %c0_4], %3 {strides = array<i32>} : memref<162x128xbf16, #tpu.memory_space<vmem>>, vector<162x128xbf16>,
    return
  }
  func.func @transform_0(%arg0: i32) -> (i32, i32) {
    %c0_i32 = arith.constant 0 : i32
    %c0_i32_0 = arith.constant 0 : i32
    return %arg0, %c0_i32 : i32, i32
  }
  func.func @transform_1(%arg0: i32) -> (i32, i32) {
    %c0_i32 = arith.constant 0 : i32
    %c0_i32_0 = arith.constant 0 : i32
    %c0_i32_1 = arith.constant 0 : i32
    return %c0_i32, %c0_i32_0 : i32, i32
  }
  func.func @transform_2(%arg0: i32) -> (i32, i32) {
    %c0_i32 = arith.constant 0 : i32
    %c0_i32_0 = arith.constant 0 : i32
    return %arg0, %c0_i32 : i32, i32
  }
}

module attributes {stable_mosaic.version = 11 : i64} {
  func.func @_gn_kernel(%arg0: i32, %arg1: memref<1x256x32xbf16, #tpu.memory_space<vmem>>, %arg2: memref<1x32xf32, #tpu.memory_space<vmem>>, %arg3: memref<1x32xf32, #tpu.memory_space<vmem>>, %arg4: memref<1x256x32xbf16, #tpu.memory_space<vmem>>) attributes {dimension_semantics = [#tpu.dimension_semantics<parallel>], iteration_bounds = array<i64: 2>, scalar_prefetch = 0 : i64, scratch_operands = 0 : i64, tpu.core_type = #tpu.core_type<tc>, window_params = [{transform_indices = @transform_0, window_bounds = array<i64: 1, 256, 32>}, {pipeline_mode = #tpu.pipeline_mode<synchronous>, transform_indices = @transform_1, window_bounds = array<i64: 1, 32>}, {pipeline_mode = #tpu.pipeline_mode<synchronous>, transform_indices = @transform_2, window_bounds = array<i64: 1, 32>}, {transform_indices = @transform_3, window_bounds = array<i64: 1, 256, 32>}]} {
    %c0 = arith.constant 0 : index
    %c0_0 = arith.constant 0 : index
    %c0_1 = arith.constant 0 : index
    %0 = vector.load %arg1[%c0, %c0_0, %c0_1] : memref<1x256x32xbf16, #tpu.memory_space<vmem>>, vector<1x256x32xbf16>
    %1 = vector.shape_cast %0 : vector<1x256x32xbf16> to vector<256x32xbf16>
    %2 = arith.extf %1 : vector<256x32xbf16> to vector<256x32xf32>
    %cst = arith.constant dense<0.000000e+00> : vector<32xf32>
    %3 = vector.multi_reduction <add>, %2, %cst [0] : vector<256x32xf32> to vector<32xf32>
    %4 = vector.shape_cast %3 : vector<32xf32> to vector<1x32xf32>
    %cst_2 = arith.constant 2.560000e+02 : f32
    %5 = vector.broadcast %cst_2 : f32 to vector<1x32xf32>
    %6 = arith.divf %4, %5 : vector<1x32xf32>
    %7 = vector.broadcast %6 : vector<1x32xf32> to vector<256x32xf32>
    %8 = arith.subf %2, %7 : vector<256x32xf32>
    %9 = arith.mulf %8, %8 : vector<256x32xf32>
    %cst_3 = arith.constant dense<0.000000e+00> : vector<32xf32>
    %10 = vector.multi_reduction <add>, %9, %cst_3 [0] : vector<256x32xf32> to vector<32xf32>
    %11 = vector.shape_cast %10 : vector<32xf32> to vector<1x32xf32>
    %cst_4 = arith.constant 2.560000e+02 : f32
    %12 = vector.broadcast %cst_4 : f32 to vector<1x32xf32>
    %13 = arith.divf %11, %12 : vector<1x32xf32>
    %cst_5 = arith.constant 9.99999974E-6 : f32
    %14 = vector.broadcast %cst_5 : f32 to vector<1x32xf32>
    %15 = arith.addf %13, %14 : vector<1x32xf32>
    %16 = math.rsqrt %15 : vector<1x32xf32>
    %17 = vector.broadcast %6 : vector<1x32xf32> to vector<256x32xf32>
    %18 = arith.subf %2, %17 : vector<256x32xf32>
    %c0_6 = arith.constant 0 : index
    %c0_7 = arith.constant 0 : index
    %19 = vector.load %arg2[%c0_6, %c0_7] : memref<1x32xf32, #tpu.memory_space<vmem>>, vector<1x32xf32>
    %20 = arith.mulf %16, %19 : vector<1x32xf32>
    %21 = vector.broadcast %20 : vector<1x32xf32> to vector<256x32xf32>
    %22 = arith.mulf %18, %21 : vector<256x32xf32>
    %c0_8 = arith.constant 0 : index
    %c0_9 = arith.constant 0 : index
    %23 = vector.load %arg3[%c0_8, %c0_9] : memref<1x32xf32, #tpu.memory_space<vmem>>, vector<1x32xf32>
    %24 = vector.broadcast %23 : vector<1x32xf32> to vector<256x32xf32>
    %25 = arith.addf %22, %24 : vector<256x32xf32>
    %cst_10 = arith.constant 0.000000e+00 : f32
    %26 = vector.broadcast %cst_10 : f32 to vector<256x32xf32>
    %27 = arith.maximumf %25, %26 : vector<256x32xf32>
    %28 = arith.truncf %27 : vector<256x32xf32> to vector<256x32xbf16>
    %c0_11 = arith.constant 0 : index
    %c0_12 = arith.constant 0 : index
    %c0_13 = arith.constant 0 : index
    %29 = vector.load %arg4[%c0_11, %c0_12, %c0_13] : memref<1x256x32xbf16, #tpu.memory_space<vmem>>, vector<1x256x32xbf16>
    %30 = vector.shape_cast %29 : vector<1x256x32xbf16> to vector<256x32xbf16>
    %31 = vector.shape_cast %28 : vector<256x32xbf16> to vector<1x256x32xbf16>
    tpu.vector_store %arg4[%c0_11, %c0_12, %c0_13], %31 {strides = array<i32>} : memref<1x256x32xbf16, #tpu.memory_space<vmem>>, vector<1x256x32xbf16>,
    return
  }
  func.func @transform_0(%arg0: i32) -> (i32, i32, i32) {
    %c0_i32 = arith.constant 0 : i32
    %c0_i32_0 = arith.constant 0 : i32
    %c0_i32_1 = arith.constant 0 : i32
    return %arg0, %c0_i32, %c0_i32_0 : i32, i32, i32
  }
  func.func @transform_1(%arg0: i32) -> (i32, i32) {
    %c0_i32 = arith.constant 0 : i32
    %c0_i32_0 = arith.constant 0 : i32
    %c0_i32_1 = arith.constant 0 : i32
    return %c0_i32, %c0_i32_0 : i32, i32
  }
  func.func @transform_2(%arg0: i32) -> (i32, i32) {
    %c0_i32 = arith.constant 0 : i32
    %c0_i32_0 = arith.constant 0 : i32
    %c0_i32_1 = arith.constant 0 : i32
    return %c0_i32, %c0_i32_0 : i32, i32
  }
  func.func @transform_3(%arg0: i32) -> (i32, i32, i32) {
    %c0_i32 = arith.constant 0 : i32
    %c0_i32_0 = arith.constant 0 : i32
    %c0_i32_1 = arith.constant 0 : i32
    return %arg0, %c0_i32, %c0_i32_0 : i32, i32, i32
  }
}

module attributes {stable_mosaic.version = 11 : i64} {
  func.func @_matmul_act_kernel(%arg0: i32, %arg1: memref<256x288xbf16, #tpu.memory_space<vmem>>, %arg2: memref<288x2xbf16, #tpu.memory_space<vmem>>, %arg3: memref<256x2xf32, #tpu.memory_space<vmem>>) attributes {dimension_semantics = [#tpu.dimension_semantics<parallel>], iteration_bounds = array<i64: 2>, scalar_prefetch = 0 : i64, scratch_operands = 0 : i64, tpu.core_type = #tpu.core_type<tc>, window_params = [{transform_indices = @transform_0, window_bounds = array<i64: 256, 288>}, {pipeline_mode = #tpu.pipeline_mode<synchronous>, transform_indices = @transform_1, window_bounds = array<i64: 288, 2>}, {transform_indices = @transform_2, window_bounds = array<i64: 256, 2>}]} {
    %c0 = arith.constant 0 : index
    %c0_0 = arith.constant 0 : index
    %0 = vector.load %arg1[%c0, %c0_0] : memref<256x288xbf16, #tpu.memory_space<vmem>>, vector<256x288xbf16>
    %c0_1 = arith.constant 0 : index
    %c0_2 = arith.constant 0 : index
    %1 = vector.load %arg2[%c0_1, %c0_2] : memref<288x2xbf16, #tpu.memory_space<vmem>>, vector<288x2xbf16>
    %cst = arith.constant dense<0.000000e+00> : vector<256x2xf32>
    %2 = tpu.matmul %0, %1, %cst {dimension_numbers = #tpu.dot_dimension_numbers<[1], [0], [0], [1], [0, 0, 1, 1], [], []>} : vector<256x288xbf16>, vector<288x2xbf16>, vector<256x2xf32> -> vector<256x2xf32>
    %cst_3 = arith.constant 0.000000e+00 : f32
    %3 = vector.broadcast %cst_3 : f32 to vector<256x2xf32>
    %4 = arith.maximumf %2, %3 : vector<256x2xf32>
    %5 = math.absf %2 : vector<256x2xf32>
    %cst_4 = arith.constant 0.000000e+00 : f32
    %6 = vector.broadcast %cst_4 : f32 to vector<256x2xf32>
    %7 = arith.subf %6, %5 : vector<256x2xf32>
    %8 = math.exp %7 : vector<256x2xf32>
    %9 = math.log1p %8 : vector<256x2xf32>
    %10 = arith.addf %4, %9 : vector<256x2xf32>
    %c0_5 = arith.constant 0 : index
    %c0_6 = arith.constant 0 : index
    %11 = vector.load %arg3[%c0_5, %c0_6] : memref<256x2xf32, #tpu.memory_space<vmem>>, vector<256x2xf32>
    tpu.vector_store %arg3[%c0_5, %c0_6], %10 {strides = array<i32>} : memref<256x2xf32, #tpu.memory_space<vmem>>, vector<256x2xf32>,
    return
  }
  func.func @transform_0(%arg0: i32) -> (i32, i32) {
    %c0_i32 = arith.constant 0 : i32
    %c0_i32_0 = arith.constant 0 : i32
    return %arg0, %c0_i32 : i32, i32
  }
  func.func @transform_1(%arg0: i32) -> (i32, i32) {
    %c0_i32 = arith.constant 0 : i32
    %c0_i32_0 = arith.constant 0 : i32
    %c0_i32_1 = arith.constant 0 : i32
    return %c0_i32, %c0_i32_0 : i32, i32
  }
  func.func @transform_2(%arg0: i32) -> (i32, i32) {
    %c0_i32 = arith.constant 0 : i32
    %c0_i32_0 = arith.constant 0 : i32
    return %arg0, %c0_i32 : i32, i32
  }
}

</mosaic_0001>

<bundles_post_ra>
// kernel: confnet_forward.14
= control target key start
LH: loop header
LB: loop body
LE: loop exit
PB: predicated region body
PF: predicated region fallthrough
CT: control target
= control target key end

     0   :  { %s1542_s9 = smov 0   ;;  %s1771_s0 = inlined_call_operand.vmem [shape: bf16[2048,48], index: 0, kind: input, shape index: {}]   ;;  %s1772_s1 = inlined_call_operand.vmem [shape: bf16[48,16], index: 1, kind: input, shape index: {}]   ;;  %s1773_s2 = inlined_call_operand.vmem [shape: bf16[2048,16], index: 2, kind: output, shape index: {}]  }
   0x1 LB: > { %s1159_s10 = sadd.s32 4294967295, %s1525_s9   ;;  %p1163_p0 = scmp.ge.s32.totalorder %s1525_s9, 1  ;;  %s1525_s9 = sphi %s1542_s9, %s12_s9  }
   0x2   : > { %p113_p1 = scmp.lt.s32.totalorder %s1525_s9, 5 }
   0x4   : > { %p114_p2 = pnand %p1163_p0, %p113_p1 }
   0x5   : > { %s1164_s13 = sshll.u32 (!%p114_p2), %s1159_s10, 6 }
   0x6   : > { %117 = sbr.rel (%p114_p2) target bundleno = 282 (0x11a), region = 28  ;;  %p136_p3 = scmp.lt.s32.totalorder (!%p114_p2), %s1164_s13, 255 }
   0xb   : > { %v1484_v0 = vld [vmem:[%s1772_s1 + $0x10] sm:$0xff]   ;;  %v1485_v1 = vld [vmem:[%s1772_s1 + $0x8] sm:$0xff]   ;;  %s1775_s13 = smov (!%p136_p3, %s1164_s13), 255  ;;  %v1486_v2 = vld [vmem:[%s1772_s1] sm:$0xff]   ;;  %vm396_vm0 = vcmask 392192   ;;  %vm1038_vm1 = vcmask 125952  }
   0xc   : > { %1400 = vmatprep.subr.bf16.mxu0 %v1484_v0  ;;  %1470 = vmatprep.subr.bf16.mxu1 %v1484_v0  ;;  %s1165_s18 = sshll.u32 %s1775_s13, 2 }
   0xd   : > { %1401 = vmatpush3.bf16.msra.mxu0 %v1484_v0  ;;  %1473 = vmatpush3.bf16.msra.mxu1 %v1484_v0  ;;  %s1567_s21 = scalar_lea.vmem %s1771_s0, %s1165_s18  ;;  %s1638_s24 = scalar_lea.vmem %s1773_s2, %s1165_s18 }
   0xe   : > { %1402 = vmatprep.subr.bf16.mxu0 %v1485_v1  ;;  %1471 = vmatprep.subr.bf16.mxu1 %v1485_v1  ;;  %v1487_v3 = vld [vmem:[%s1567_s21] sm:$0xff]   ;;  %v1489_v5 = vld [vmem:[%s1567_s21 + $0x8] sm:$0xff]   ;;  %v1491_v7 = vld [vmem:[%s1567_s21 + $0x10] sm:$0xff]  }
   0xf   : > { %v1488_v4 = vld [vmem:[%s1567_s21 + $0x80] sm:$0xff]   ;;  %1406 = vmatprep.mubr.msk.bf16.mxu0 %vm396_vm0, %v1487_v3  ;;  %v1490_v6 = vld [vmem:[%s1567_s21 + $0x88] sm:$0xff]   ;;  %v1492_v8 = vld [vmem:[%s1567_s21 + $0x90] sm:$0xff]  }
  0x10   : > { %1438 = vmatprep.mubr.msk.bf16.mxu1 %vm396_vm0, %v1488_v4  ;;  %v1493_v9 = vld [vmem:[%s1567_s21 + $0x18] sm:$0xff]   ;;  %v1495_v11 = vld [vmem:[%s1567_s21 + $0x20] sm:$0xff]   ;;  %v1497_v13 = vld [vmem:[%s1567_s21 + $0x28] sm:$0xff]  }
  0x11   : > { %1403 = vmatpush3.bf16.msra.mxu0 %v1485_v1  ;;  %1474 = vmatpush3.bf16.msra.mxu1 %v1485_v1  ;;  %v1494_v10 = vld [vmem:[%s1567_s21 + $0x98] sm:$0xff]   ;;  %v1496_v12 = vld [vmem:[%s1567_s21 + $0xa0] sm:$0xff]   ;;  %v1498_v14 = vld [vmem:[%s1567_s21 + $0xa8] sm:$0xff]  }
  0x12   : > { %1404 = vmatprep.subr.bf16.mxu0 %v1486_v2  ;;  %1472 = vmatprep.subr.bf16.mxu1 %v1486_v2  ;;  %v1499_v15 = vld [vmem:[%s1567_s21 + $0x30] sm:$0xff]   ;;  %v1501_v17 = vld [vmem:[%s1567_s21 + $0x38] sm:$0xff]   ;;  %v1503_v19 = vld [vmem:[%s1567_s21 + $0x40] sm:$0xff]  }
  0x13   : > { %v1500_v16 = vld [vmem:[%s1567_s21 + $0xb0] sm:$0xff]   ;;  %v1502_v18 = vld [vmem:[%s1567_s21 + $0xb8] sm:$0xff]   ;;  %v1504_v20 = vld [vmem:[%s1567_s21 + $0xc0] sm:$0xff]  }
  0x14   : > { %v1505_v21 = vld [vmem:[%s1567_s21 + $0x48] sm:$0xff]   ;;  %v1507_v23 = vld [vmem:[%s1567_s21 + $0x50] sm:$0xff]   ;;  %v1509_v25 = vld [vmem:[%s1567_s21 + $0x58] sm:$0xff]  }
  0x15   : > { %1405 = vmatpush3.bf16.msra.mxu0 %v1486_v2  ;;  %1475 = vmatpush3.bf16.msra.mxu1 %v1486_v2  ;;  %v1506_v22 = vld [vmem:[%s1567_s21 + $0xc8] sm:$0xff]   ;;  %v1508_v24 = vld [vmem:[%s1567_s21 + $0xd0] sm:$0xff]   ;;  %v1510_v26 = vld [vmem:[%s1567_s21 + $0xd8] sm:$0xff]  }
  0x16   : > { %v1511_v27 = vld [vmem:[%s1567_s21 + $0x60] sm:$0xff]   ;;  %v1513_v29 = vld [vmem:[%s1567_s21 + $0x68] sm:$0xff]   ;;  %v1515_v31 = vld [vmem:[%s1567_s21 + $0x70] sm:$0xff]  }
  0x17   : > { %v1512_v28 = vld [vmem:[%s1567_s21 + $0xe0] sm:$0xff]   ;;  %v1514_v30 = vld [vmem:[%s1567_s21 + $0xe8] sm:$0xff]   ;;  %v1516_v32 = vld [vmem:[%s1567_s21 + $0xf0] sm:$0xff]  }
  0x18   : > { %1407 = vmatmul.mubr.msk.bf16.vlgmr.msra.gmra.mxu0 %vm396_vm0, %v1489_v5  ;;  %1439 = vmatmul.mubr.msk.bf16.vlgmr.msra.gmra.mxu1 %vm396_vm0, %v1490_v6  ;;  %v1517_v33 = vld [vmem:[%s1567_s21 + $0x78] sm:$0xff]  }
  0x19   : > { %1410 = vmatprep.mubr.msk.bf16.mxu0 %vm396_vm0, %v1491_v7  ;;  %1442 = vmatprep.mubr.msk.bf16.mxu1 %vm396_vm0, %v1492_v8  ;;  %v1518_v34 = vld [vmem:[%s1567_s21 + $0xf8] sm:$0xff]  }
  0x20   : > { %1411 = vmatmul.mubr.msk.bf16.gmra.mxu0 %vm396_vm0, %v1493_v9  ;;  %1443 = vmatmul.mubr.msk.bf16.gmra.mxu1 %vm396_vm0, %v1494_v10 }
  0x21   : > { %1414 = vmatprep.mubr.msk.bf16.mxu0 %vm396_vm0, %v1495_v11  ;;  %1446 = vmatprep.mubr.msk.bf16.mxu1 %vm396_vm0, %v1496_v12 }
  0x28   : > { %1415 = vmatmul.mubr.msk.bf16.gmra.mxu0 %vm396_vm0, %v1497_v13  ;;  %1447 = vmatmul.mubr.msk.bf16.gmra.mxu1 %vm396_vm0, %v1498_v14 }
  0x29   : > { %1418 = vmatprep.mubr.msk.bf16.mxu0 %vm396_vm0, %v1499_v15  ;;  %1450 = vmatprep.mubr.msk.bf16.mxu1 %vm396_vm0, %v1500_v16 }
  0x30   : > { %1419 = vmatmul.mubr.msk.bf16.gmra.mxu0 %vm396_vm0, %v1501_v17  ;;  %1451 = vmatmul.mubr.msk.bf16.gmra.mxu1 %vm396_vm0, %v1502_v18 }
  0x31   : > { %1422 = vmatprep.mubr.msk.bf16.mxu0 %vm396_vm0, %v1503_v19  ;;  %1454 = vmatprep.mubr.msk.bf16.mxu1 %vm396_vm0, %v1504_v20 }
  0x38   : > { %1423 = vmatmul.mubr.msk.bf16.gmra.mxu0 %vm396_vm0, %v1505_v21  ;;  %1455 = vmatmul.mubr.msk.bf16.gmra.mxu1 %vm396_vm0, %v1506_v22 }
  0x39   : > { %1426 = vmatprep.mubr.msk.bf16.mxu0 %vm396_vm0, %v1507_v23  ;;  %1458 = vmatprep.mubr.msk.bf16.mxu1 %vm396_vm0, %v1508_v24 }
  0x40   : > { %1427 = vmatmul.mubr.msk.bf16.gmra.mxu0 %vm396_vm0, %v1509_v25  ;;  %1459 = vmatmul.mubr.msk.bf16.gmra.mxu1 %vm396_vm0, %v1510_v26 }
  0x41   : > { %1430 = vmatprep.mubr.msk.bf16.mxu0 %vm396_vm0, %v1511_v27  ;;  %1462 = vmatprep.mubr.msk.bf16.mxu1 %vm396_vm0, %v1512_v28 }
  0x48   : > { %1431 = vmatmul.mubr.msk.bf16.gmra.mxu0 %vm396_vm0, %v1513_v29  ;;  %1463 = vmatmul.mubr.msk.bf16.gmra.mxu1 %vm396_vm0, %v1514_v30 }
  0x49   : > { %1434 = vmatprep.mubr.msk.bf16.mxu0 %vm396_vm0, %v1515_v31  ;;  %1466 = vmatprep.mubr.msk.bf16.mxu1 %vm396_vm0, %v1516_v32 }
  0x50   : > { %1435 = vmatmul.mubr.msk.bf16.gmra.mxu0 %vm396_vm0, %v1517_v33  ;;  %1467 = vmatmul.mubr.msk.bf16.gmra.mxu1 %vm396_vm0, %v1518_v34 }
  0xd8   : > { %v1408_v35 = vpop.f32.mrf.mxu0  ;;  %v1440_v36 = vpop.f32.mrf.mxu1 }
  0xd9   : > { %v1303_v37 = vpack.c.bf16 %v1408_v35, %v1408_v35  ;;  %v1335_v38 = vpack.c.bf16 %v1440_v36, %v1440_v36 }
  0xda   : > { %v527_v39 = vpop.f32.mrf.mxu0  ;;  %v655_v40 = vpop.f32.mrf.mxu1 }
  0xdb   : > { %1041 = vst.msk [vmem:[%s1638_s24 + $0x8] sm:$0xf] %vm1038_vm1, %v1303_v37  ;;  %1073 = vst.msk [vmem:[%s1638_s24 + $0x88] sm:$0xf] %vm1038_vm1, %v1335_v38  ;;  %v1301_v41 = vpack.c.bf16 %v527_v39, %v527_v39  ;;  %v1333_v42 = vpack.c.bf16 %v655_v40, %v655_v40 }
  0xdc   : > { %v1409_v43 = vpop.f32.mrf.mxu0  ;;  %v1441_v44 = vpop.f32.mrf.mxu1 }
  0xdd   : > { %1039 = vst.msk [vmem:[%s1638_s24] sm:$0xf] %vm1038_vm1, %v1301_v41  ;;  %1071 = vst.msk [vmem:[%s1638_s24 + $0x80] sm:$0xf] %vm1038_vm1, %v1333_v42  ;;  %v1304_v45 = vpack.c.bf16 %v1409_v43, %v1409_v43  ;;  %v1336_v46 = vpack.c.bf16 %v1441_v44, %v1441_v44 }
  0xde   : > { %v530_v47 = vpop.f32.mrf.mxu0  ;;  %v658_v48 = vpop.f32.mrf.mxu1 }
  0xdf   : > { %1042 = vst.msk [vmem:[%s1638_s24 + $0xc] sm:$0xf] %vm1038_vm1, %v1304_v45  ;;  %1074 = vst.msk [vmem:[%s1638_s24 + $0x8c] sm:$0xf] %vm1038_vm1, %v1336_v46  ;;  %v1302_v49 = vpack.c.bf16 %v530_v47, %v530_v47  ;;  %v1334_v50 = vpack.c.bf16 %v658_v48, %v658_v48 }
  0xe0   : > { %v1412_v51 = vpop.f32.mrf.mxu0  ;;  %v1444_v52 = vpop.f32.mrf.mxu1 }
  0xe1   : > { %1040 = vst.msk [vmem:[%s1638_s24 + $0x4] sm:$0xf] %vm1038_vm1, %v1302_v49  ;;  %1072 = vst.msk [vmem:[%s1638_s24 + $0x84] sm:$0xf] %vm1038_vm1, %v1334_v50  ;;  %v1307_v53 = vpack.c.bf16 %v1412_v51, %v1412_v51  ;;  %v1339_v54 = vpack.c.bf16 %v1444_v52, %v1444_v52 }
  0xe2   : > { %v543_v55 = vpop.f32.mrf.mxu0  ;;  %v671_v56 = vpop.f32.mrf.mxu1 }
  0xe3   : > { %1045 = vst.msk [vmem:[%s1638_s24 + $0x18] sm:$0xf] %vm1038_vm1, %v1307_v53  ;;  %1077 = vst.msk [vmem:[%s1638_s24 + $0x98] sm:$0xf] %vm1038_vm1, %v1339_v54  ;;  %v1305_v57 = vpack.c.bf16 %v543_v55, %v543_v55  ;;  %v1337_v58 = vpack.c.bf16 %v671_v56, %v671_v56 }
  0xe4   : > { %v1413_v59 = vpop.f32.mrf.mxu0  ;;  %v1445_v60 = vpop.f32.mrf.mxu1 }
  0xe5   : > { %1043 = vst.msk [vmem:[%s1638_s24 + $0x10] sm:$0xf] %vm1038_vm1, %v1305_v57  ;;  %1075 = vst.msk [vmem:[%s1638_s24 + $0x90] sm:$0xf] %vm1038_vm1, %v1337_v58  ;;  %v1308_v61 = vpack.c.bf16 %v1413_v59, %v1413_v59  ;;  %v1340_v62 = vpack.c.bf16 %v1445_v60, %v1445_v60 }
  0xe6   : > { %v546_v63 = vpop.f32.mrf.mxu0  ;;  %v674_v0 = vpop.f32.mrf.mxu1 }
  0xe7   : > { %1046 = vst.msk [vmem:[%s1638_s24 + $0x1c] sm:$0xf] %vm1038_vm1, %v1308_v61  ;;  %1078 = vst.msk [vmem:[%s1638_s24 + $0x9c] sm:$0xf] %vm1038_vm1, %v1340_v62  ;;  %v1306_v1 = vpack.c.bf16 %v546_v63, %v546_v63  ;;  %v1338_v2 = vpack.c.bf16 %v674_v0, %v674_v0 }
  0xe8   : > { %v1416_v3 = vpop.f32.mrf.mxu0  ;;  %v1448_v4 = vpop.f32.mrf.mxu1 }
  0xe9   : > { %1044 = vst.msk [vmem:[%s1638_s24 + $0x14] sm:$0xf] %vm1038_vm1, %v1306_v1  ;;  %1076 = vst.msk [vmem:[%s1638_s24 + $0x94] sm:$0xf] %vm1038_vm1, %v1338_v2  ;;  %v1311_v5 = vpack.c.bf16 %v1416_v3, %v1416_v3  ;;  %v1343_v6 = vpack.c.bf16 %v1448_v4, %v1448_v4 }
  0xea   : > { %v559_v7 = vpop.f32.mrf.mxu0  ;;  %v687_v8 = vpop.f32.mrf.mxu1 }
  0xeb   : > { %1049 = vst.msk [vmem:[%s1638_s24 + $0x28] sm:$0xf] %vm1038_vm1, %v1311_v5  ;;  %1081 = vst.msk [vmem:[%s1638_s24 + $0xa8] sm:$0xf] %vm1038_vm1, %v1343_v6  ;;  %v1309_v9 = vpack.c.bf16 %v559_v7, %v559_v7  ;;  %v1341_v10 = vpack.c.bf16 %v687_v8, %v687_v8 }
  0xec   : > { %v1417_v11 = vpop.f32.mrf.mxu0  ;;  %v1449_v12 = vpop.f32.mrf.mxu1 }
  0xed   : > { %1047 = vst.msk [vmem:[%s1638_s24 + $0x20] sm:$0xf] %vm1038_vm1, %v1309_v9  ;;  %1079 = vst.msk [vmem:[%s1638_s24 + $0xa0] sm:$0xf] %vm1038_vm1, %v1341_v10  ;;  %v1312_v13 = vpack.c.bf16 %v1417_v11, %v1417_v11  ;;  %v1344_v14 = vpack.c.bf16 %v1449_v12, %v1449_v12 }
  0xee   : > { %v562_v15 = vpop.f32.mrf.mxu0  ;;  %v690_v16 = vpop.f32.mrf.mxu1 }
  0xef   : > { %1050 = vst.msk [vmem:[%s1638_s24 + $0x2c] sm:$0xf] %vm1038_vm1, %v1312_v13  ;;  %1082 = vst.msk [vmem:[%s1638_s24 + $0xac] sm:$0xf] %vm1038_vm1, %v1344_v14  ;;  %v1310_v17 = vpack.c.bf16 %v562_v15, %v562_v15  ;;  %v1342_v18 = vpack.c.bf16 %v690_v16, %v690_v16 }
  0xf0   : > { %v1420_v19 = vpop.f32.mrf.mxu0  ;;  %v1452_v20 = vpop.f32.mrf.mxu1 }
  0xf1   : > { %1048 = vst.msk [vmem:[%s1638_s24 + $0x24] sm:$0xf] %vm1038_vm1, %v1310_v17  ;;  %1080 = vst.msk [vmem:[%s1638_s24 + $0xa4] sm:$0xf] %vm1038_vm1, %v1342_v18  ;;  %v1315_v21 = vpack.c.bf16 %v1420_v19, %v1420_v19  ;;  %v1347_v22 = vpack.c.bf16 %v1452_v20, %v1452_v20 }
  0xf2   : > { %v575_v23 = vpop.f32.mrf.mxu0  ;;  %v703_v24 = vpop.f32.mrf.mxu1 }
  0xf3   : > { %1053 = vst.msk [vmem:[%s1638_s24 + $0x38] sm:$0xf] %vm1038_vm1, %v1315_v21  ;;  %1085 = vst.msk [vmem:[%s1638_s24 + $0xb8] sm:$0xf] %vm1038_vm1, %v1347_v22  ;;  %v1313_v25 = vpack.c.bf16 %v575_v23, %v575_v23  ;;  %v1345_v26 = vpack.c.bf16 %v703_v24, %v703_v24 }
  0xf4   : > { %v1421_v27 = vpop.f32.mrf.mxu0  ;;  %v1453_v28 = vpop.f32.mrf.mxu1 }
  0xf5   : > { %1051 = vst.msk [vmem:[%s1638_s24 + $0x30] sm:$0xf] %vm1038_vm1, %v1313_v25  ;;  %1083 = vst.msk [vmem:[%s1638_s24 + $0xb0] sm:$0xf] %vm1038_vm1, %v1345_v26  ;;  %v1316_v29 = vpack.c.bf16 %v1421_v27, %v1421_v27  ;;  %v1348_v30 = vpack.c.bf16 %v1453_v28, %v1453_v28 }
  0xf6   : > { %v578_v31 = vpop.f32.mrf.mxu0  ;;  %v706_v32 = vpop.f32.mrf.mxu1 }
  0xf7   : > { %1054 = vst.msk [vmem:[%s1638_s24 + $0x3c] sm:$0xf] %vm1038_vm1, %v1316_v29  ;;  %1086 = vst.msk [vmem:[%s1638_s24 + $0xbc] sm:$0xf] %vm1038_vm1, %v1348_v30  ;;  %v1314_v33 = vpack.c.bf16 %v578_v31, %v578_v31  ;;  %v1346_v34 = vpack.c.bf16 %v706_v32, %v706_v32 }
  0xf8   : > { %v1424_v35 = vpop.f32.mrf.mxu0  ;;  %v1456_v36 = vpop.f32.mrf.mxu1 }
  0xf9   : > { %1052 = vst.msk [vmem:[%s1638_s24 + $0x34] sm:$0xf] %vm1038_vm1, %v1314_v33  ;;  %1084 = vst.msk [vmem:[%s1638_s24 + $0xb4] sm:$0xf] %vm1038_vm1, %v1346_v34  ;;  %v1319_v37 = vpack.c.bf16 %v1424_v35, %v1424_v35  ;;  %v1351_v38 = vpack.c.bf16 %v1456_v36, %v1456_v36 }
  0xfa   : > { %v591_v39 = vpop.f32.mrf.mxu0  ;;  %v719_v40 = vpop.f32.mrf.mxu1 }
  0xfb   : > { %1057 = vst.msk [vmem:[%s1638_s24 + $0x48] sm:$0xf] %vm1038_vm1, %v1319_v37  ;;  %1089 = vst.msk [vmem:[%s1638_s24 + $0xc8] sm:$0xf] %vm1038_vm1, %v1351_v38  ;;  %v1317_v41 = vpack.c.bf16 %v591_v39, %v591_v39  ;;  %v1349_v42 = vpack.c.bf16 %v719_v40, %v719_v40 }
  0xfc   : > { %v1425_v43 = vpop.f32.mrf.mxu0  ;;  %v1457_v44 = vpop.f32.mrf.mxu1 }
  0xfd   : > { %1055 = vst.msk [vmem:[%s1638_s24 + $0x40] sm:$0xf] %vm1038_vm1, %v1317_v41  ;;  %1087 = vst.msk [vmem:[%s1638_s24 + $0xc0] sm:$0xf] %vm1038_vm1, %v1349_v42  ;;  %v1320_v45 = vpack.c.bf16 %v1425_v43, %v1425_v43  ;;  %v1352_v46 = vpack.c.bf16 %v1457_v44, %v1457_v44 }
  0xfe   : > { %v594_v47 = vpop.f32.mrf.mxu0  ;;  %v722_v48 = vpop.f32.mrf.mxu1 }
  0xff   : > { %1058 = vst.msk [vmem:[%s1638_s24 + $0x4c] sm:$0xf] %vm1038_vm1, %v1320_v45  ;;  %1090 = vst.msk [vmem:[%s1638_s24 + $0xcc] sm:$0xf] %vm1038_vm1, %v1352_v46  ;;  %v1318_v49 = vpack.c.bf16 %v594_v47, %v594_v47  ;;  %v1350_v50 = vpack.c.bf16 %v722_v48, %v722_v48 }
 0x100   : > { %v1428_v51 = vpop.f32.mrf.mxu0  ;;  %v1460_v52 = vpop.f32.mrf.mxu1 }
 0x101   : > { %1056 = vst.msk [vmem:[%s1638_s24 + $0x44] sm:$0xf] %vm1038_vm1, %v1318_v49  ;;  %1088 = vst.msk [vmem:[%s1638_s24 + $0xc4] sm:$0xf] %vm1038_vm1, %v1350_v50  ;;  %v1323_v53 = vpack.c.bf16 %v1428_v51, %v1428_v51  ;;  %v1355_v54 = vpack.c.bf16 %v1460_v52, %v1460_v52 }
 0x102   : > { %v607_v55 = vpop.f32.mrf.mxu0  ;;  %v735_v56 = vpop.f32.mrf.mxu1 }
 0x103   : > { %1061 = vst.msk [vmem:[%s1638_s24 + $0x58] sm:$0xf] %vm1038_vm1, %v1323_v53  ;;  %1093 = vst.msk [vmem:[%s1638_s24 + $0xd8] sm:$0xf] %vm1038_vm1, %v1355_v54  ;;  %v1321_v57 = vpack.c.bf16 %v607_v55, %v607_v55  ;;  %v1353_v58 = vpack.c.bf16 %v735_v56, %v735_v56 }
 0x104   : > { %v1429_v59 = vpop.f32.mrf.mxu0  ;;  %v1461_v60 = vpop.f32.mrf.mxu1 }
 0x105   : > { %1059 = vst.msk [vmem:[%s1638_s24 + $0x50] sm:$0xf] %vm1038_vm1, %v1321_v57  ;;  %1091 = vst.msk [vmem:[%s1638_s24 + $0xd0] sm:$0xf] %vm1038_vm1, %v1353_v58  ;;  %v1324_v61 = vpack.c.bf16 %v1429_v59, %v1429_v59  ;;  %v1356_v62 = vpack.c.bf16 %v1461_v60, %v1461_v60 }
 0x106   : > { %v610_v63 = vpop.f32.mrf.mxu0  ;;  %v738_v0 = vpop.f32.mrf.mxu1 }
 0x107   : > { %1062 = vst.msk [vmem:[%s1638_s24 + $0x5c] sm:$0xf] %vm1038_vm1, %v1324_v61  ;;  %1094 = vst.msk [vmem:[%s1638_s24 + $0xdc] sm:$0xf] %vm1038_vm1, %v1356_v62  ;;  %v1322_v1 = vpack.c.bf16 %v610_v63, %v610_v63  ;;  %v1354_v2 = vpack.c.bf16 %v738_v0, %v738_v0 }
 0x108   : > { %v1432_v3 = vpop.f32.mrf.mxu0  ;;  %v1464_v4 = vpop.f32.mrf.mxu1 }
 0x109   : > { %1060 = vst.msk [vmem:[%s1638_s24 + $0x54] sm:$0xf] %vm1038_vm1, %v1322_v1  ;;  %1092 = vst.msk [vmem:[%s1638_s24 + $0xd4] sm:$0xf] %vm1038_vm1, %v1354_v2  ;;  %v1327_v5 = vpack.c.bf16 %v1432_v3, %v1432_v3  ;;  %v1359_v6 = vpack.c.bf16 %v1464_v4, %v1464_v4 }
 0x10a   : > { %v623_v7 = vpop.f32.mrf.mxu0  ;;  %v751_v8 = vpop.f32.mrf.mxu1 }
 0x10b   : > { %1065 = vst.msk [vmem:[%s1638_s24 + $0x68] sm:$0xf] %vm1038_vm1, %v1327_v5  ;;  %1097 = vst.msk [vmem:[%s1638_s24 + $0xe8] sm:$0xf] %vm1038_vm1, %v1359_v6  ;;  %v1325_v9 = vpack.c.bf16 %v623_v7, %v623_v7  ;;  %v1357_v10 = vpack.c.bf16 %v751_v8, %v751_v8 }
 0x10c   : > { %v1433_v11 = vpop.f32.mrf.mxu0  ;;  %v1465_v12 = vpop.f32.mrf.mxu1 }
 0x10d   : > { %1063 = vst.msk [vmem:[%s1638_s24 + $0x60] sm:$0xf] %vm1038_vm1, %v1325_v9  ;;  %1095 = vst.msk [vmem:[%s1638_s24 + $0xe0] sm:$0xf] %vm1038_vm1, %v1357_v10  ;;  %v1328_v13 = vpack.c.bf16 %v1433_v11, %v1433_v11  ;;  %v1360_v14 = vpack.c.bf16 %v1465_v12, %v1465_v12 }
 0x10e   : > { %v626_v15 = vpop.f32.mrf.mxu0  ;;  %v754_v16 = vpop.f32.mrf.mxu1 }
 0x10f   : > { %1066 = vst.msk [vmem:[%s1638_s24 + $0x6c] sm:$0xf] %vm1038_vm1, %v1328_v13  ;;  %1098 = vst.msk [vmem:[%s1638_s24 + $0xec] sm:$0xf] %vm1038_vm1, %v1360_v14  ;;  %v1326_v17 = vpack.c.bf16 %v626_v15, %v626_v15  ;;  %v1358_v18 = vpack.c.bf16 %v754_v16, %v754_v16 }
 0x110   : > { %v1436_v19 = vpop.f32.mrf.mxu0  ;;  %v1468_v20 = vpop.f32.mrf.mxu1 }
 0x111   : > { %1064 = vst.msk [vmem:[%s1638_s24 + $0x64] sm:$0xf] %vm1038_vm1, %v1326_v17  ;;  %1096 = vst.msk [vmem:[%s1638_s24 + $0xe4] sm:$0xf] %vm1038_vm1, %v1358_v18  ;;  %v1331_v21 = vpack.c.bf16 %v1436_v19, %v1436_v19  ;;  %v1363_v22 = vpack.c.bf16 %v1468_v20, %v1468_v20 }
 0x112   : > { %v639_v23 = vpop.f32.mrf.mxu0  ;;  %v767_v24 = vpop.f32.mrf.mxu1 }
 0x113   : > { %1069 = vst.msk [vmem:[%s1638_s24 + $0x78] sm:$0xf] %vm1038_vm1, %v1331_v21  ;;  %1101 = vst.msk [vmem:[%s1638_s24 + $0xf8] sm:$0xf] %vm1038_vm1, %v1363_v22  ;;  %v1329_v25 = vpack.c.bf16 %v639_v23, %v639_v23  ;;  %v1361_v26 = vpack.c.bf16 %v767_v24, %v767_v24 }
 0x114   : > { %v1437_v27 = vpop.f32.mrf.mxu0  ;;  %v1469_v28 = vpop.f32.mrf.mxu1 }
 0x115   : > { %1067 = vst.msk [vmem:[%s1638_s24 + $0x70] sm:$0xf] %vm1038_vm1, %v1329_v25  ;;  %1099 = vst.msk [vmem:[%s1638_s24 + $0xf0] sm:$0xf] %vm1038_vm1, %v1361_v26  ;;  %v1332_v29 = vpack.c.bf16 %v1437_v27, %v1437_v27  ;;  %v1364_v30 = vpack.c.bf16 %v1469_v28, %v1469_v28 }
 0x116   : > { %v642_v31 = vpop.f32.mrf.mxu0  ;;  %v770_v32 = vpop.f32.mrf.mxu1 }
 0x117   : > { %1070 = vst.msk [vmem:[%s1638_s24 + $0x7c] sm:$0xf] %vm1038_vm1, %v1332_v29  ;;  %1102 = vst.msk [vmem:[%s1638_s24 + $0xfc] sm:$0xf] %vm1038_vm1, %v1364_v30  ;;  %v1330_v33 = vpack.c.bf16 %v642_v31, %v642_v31  ;;  %v1362_v34 = vpack.c.bf16 %v770_v32, %v770_v32 }
 0x119   : > { %1068 = vst.msk [vmem:[%s1638_s24 + $0x74] sm:$0xf] %vm1038_vm1, %v1330_v33  ;;  %1100 = vst.msk [vmem:[%s1638_s24 + $0xf4] sm:$0xf] %vm1038_vm1, %v1362_v34 }
 0x11a PF: > { %s12_s9 = sadd.s32 1, %s1525_s9  }
 0x11b   : > { %p9_p4 = scmp.ge.s32.totalorder %s12_s9, 6  }
 0x11d   :  { %11 = sbr.rel (!%p9_p4) target bundleno = 1 (0x1), region = 58 }

// kernel: confnet_forward.15
= control target key start
LH: loop header
LB: loop body
LE: loop exit
PB: predicated region body
PF: predicated region fallthrough
CT: control target
= control target key end

     0   :  { %s3188_s12 = smov 0   ;;  %s5601_s0 = inlined_call_operand.vmem [shape: bf16[2,1024,16], index: 0, kind: input, shape index: {}]   ;;  %s5602_s1 = inlined_call_operand.vmem [shape: f32[1,16], index: 1, kind: input, shape index: {}]   ;;  %s5603_s2 = inlined_call_operand.vmem [shape: f32[1,16], index: 2, kind: input, shape index: {}]   ;;  %s5604_s3 = inlined_call_operand.vmem [shape: bf16[2,1024,16], index: 3, kind: output, shape index: {}]  }
   0x1 LB: > { %s2560_s13 = sadd.s32 4294967295, %s3166_s12   ;;  %p2564_p0 = scmp.ge.s32.totalorder %s3166_s12, 1  ;;  %s3166_s12 = sphi %s3188_s12, %s13_s12  }
   0x2   : > { %p137_p1 = scmp.lt.s32.totalorder %s3166_s12, 3 }
   0x4   : > { %p138_p2 = pnand %p2564_p0, %p137_p1 }
   0x6   : > { %141 = sbr.rel (%p138_p2) target bundleno = 779 (0x30b), region = 32 }
   0xb   : > { %p161_p3 = scmp.lt.s32.totalorder %s2560_s13, 1  ;;  %vm427_vm0 = vcmask 130048   ;;  %vm2376_vm1 = vcmask 125952  }
   0xd   : > { %s6184_s13 = smov (!%p161_p3, %s2560_s13), 1 }
   0xe   : > { %s2700_s14 = sshll.u32 %s6184_s13, 9 }
   0xf   : > { %s3204_s17 = scalar_lea.vmem %s5601_s0, %s2700_s14  ;;  %s4975_s24 = scalar_lea.vmem %s5604_s3, %s2700_s14 }
  0x10   : > { %v3207_v0 = vld [vmem:[%s3204_s17] sm:$0xff]   ;;  %v3210_v1 = vld [vmem:[%s3204_s17 + $0x8] sm:$0xff]   ;;  %v3216_v5 = vld [vmem:[%s3204_s17 + $0x10] sm:$0xff]  }
  0x11   : > { %v5699_v2 = vunpack.c.l.bf16 %v3207_v0  ;;  %v5696_v3 = vunpack.c.h.bf16 %v3207_v0  ;;  %v5693_v4 = vunpack.c.l.bf16 %v3210_v1  ;;  %v5690_v6 = vunpack.c.h.bf16 %v3210_v1  ;;  %v3230_v11 = vld [vmem:[%s3204_s17 + $0x18] sm:$0xff]   ;;  %v3241_v18 = vld [vmem:[%s3204_s17 + $0x20] sm:$0xff]   ;;  %v3252_v25 = vld [vmem:[%s3204_s17 + $0x28] sm:$0xff]  }
  0x12   : > { %v5687_v7 = vunpack.c.l.bf16 %v3216_v5  ;;  %v5684_v13 = vunpack.c.h.bf16 %v3216_v5  ;;  %v5681_v16 = vunpack.c.l.bf16 %v3230_v11  ;;  %v5678_v20 = vunpack.c.h.bf16 %v3230_v11  ;;  %v3263_v32 = vld [vmem:[%s3204_s17 + $0x30] sm:$0xff]   ;;  %v3274_v39 = vld [vmem:[%s3204_s17 + $0x38] sm:$0xff]   ;;  %v3285_v46 = vld [vmem:[%s3204_s17 + $0x40] sm:$0xff]  }
  0x13   : > { %v428_v8 = vsel %vm427_vm0, %v5699_v2, 0.0  ;;  %v429_v9 = vsel %vm427_vm0, %v5696_v3, 0.0  ;;  %v431_v10 = vsel %vm427_vm0, %v5693_v4, 0.0  ;;  %v433_v14 = vsel %vm427_vm0, %v5690_v6, 0.0  ;;  %v3296_v53 = vld [vmem:[%s3204_s17 + $0x48] sm:$0xff]   ;;  %v3307_v60 = vld [vmem:[%s3204_s17 + $0x50] sm:$0xff]  }
  0x14   : > { %v430_v12 = vadd.f32 %v429_v9, %v428_v8  ;;  %v435_v17 = vsel %vm427_vm0, %v5687_v7, 0.0  ;;  %v437_v21 = vsel %vm427_vm0, %v5684_v13, 0.0  ;;  %v5675_v23 = vunpack.c.l.bf16 %v3241_v18 }
  0x15   : > { %v439_v24 = vsel %vm427_vm0, %v5681_v16, 0.0  ;;  %v5672_v27 = vunpack.c.h.bf16 %v3241_v18  ;;  %v441_v28 = vsel %vm427_vm0, %v5678_v20, 0.0  ;;  %v5669_v30 = vunpack.c.l.bf16 %v3252_v25 }
  0x16   : > { %v432_v15 = vadd.f32 %v431_v10, %v430_v12  ;;  %v443_v31 = vsel %vm427_vm0, %v5675_v23, 0.0  ;;  %v5666_v34 = vunpack.c.h.bf16 %v3252_v25  ;;  %v5663_v37 = vunpack.c.l.bf16 %v3263_v32  ;;  %v3318_v12 = vld [vmem:[%s3204_s17 + $0x58] sm:$0xff]  }
  0x17   : > { %v445_v35 = vsel %vm427_vm0, %v5672_v27, 0.0  ;;  %v447_v38 = vsel %vm427_vm0, %v5669_v30, 0.0  ;;  %v5660_v41 = vunpack.c.h.bf16 %v3263_v32  ;;  %v5657_v44 = vunpack.c.l.bf16 %v3274_v39 }
  0x18   : > { %v434_v19 = vadd.f32 %v433_v14, %v432_v15  ;;  %v449_v42 = vsel %vm427_vm0, %v5666_v34, 0.0  ;;  %v451_v45 = vsel %vm427_vm0, %v5663_v37, 0.0  ;;  %v5654_v48 = vunpack.c.h.bf16 %v3274_v39 }
  0x19   : > { %v453_v49 = vsel %vm427_vm0, %v5660_v41, 0.0  ;;  %v5651_v51 = vunpack.c.l.bf16 %v3285_v46  ;;  %v455_v52 = vsel %vm427_vm0, %v5657_v44, 0.0  ;;  %v5648_v55 = vunpack.c.h.bf16 %v3285_v46 }
  0x1a   : > { %v436_v22 = vadd.f32 %v435_v17, %v434_v19  ;;  %v457_v56 = vsel %vm427_vm0, %v5654_v48, 0.0  ;;  %v5645_v58 = vunpack.c.l.bf16 %v3296_v53  ;;  %v5642_v62 = vunpack.c.h.bf16 %v3296_v53 }
  0x1b   : > { %v459_v59 = vsel %vm427_vm0, %v5651_v51, 0.0  ;;  %v461_v63 = vsel %vm427_vm0, %v5648_v55, 0.0  ;;  %v5639_v9 = vunpack.c.l.bf16 %v3307_v60  ;;  %v5636_v15 = vunpack.c.h.bf16 %v3307_v60 }
  0x1c   : > { %v438_v26 = vadd.f32 %v437_v21, %v436_v22  ;;  %v463_v10 = vsel %vm427_vm0, %v5645_v58, 0.0  ;;  %v465_v17 = vsel %vm427_vm0, %v5642_v62, 0.0  ;;  %v5633_v21 = vunpack.c.l.bf16 %v3318_v12 }
  0x1d   : > { %v467_v22 = vsel %vm427_vm0, %v5639_v9, 0.0 }
  0x1e   : > { %v440_v29 = vadd.f32 %v439_v24, %v438_v26  ;;  %v3329_v24 = vld [vmem:[%s3204_s17 + $0x60] sm:$0xff]  }
  0x20   : > { %v442_v33 = vadd.f32 %v441_v28, %v440_v29  ;;  %v5630_v28 = vunpack.c.h.bf16 %v3318_v12  ;;  %v469_v29 = vsel %vm427_vm0, %v5636_v15, 0.0 }
  0x22   : > { %v444_v36 = vadd.f32 %v443_v31, %v442_v33  ;;  %v5627_v33 = vunpack.c.l.bf16 %v3329_v24 }
  0x24   : > { %v446_v40 = vadd.f32 %v445_v35, %v444_v36  ;;  %v471_v35 = vsel %vm427_vm0, %v5633_v21, 0.0  ;;  %v3340_v36 = vld [vmem:[%s3204_s17 + $0x68] sm:$0xff]  }
  0x26   : > { %v448_v43 = vadd.f32 %v447_v38, %v446_v40  ;;  %v5624_v40 = vunpack.c.h.bf16 %v3329_v24 }
  0x28   : > { %v450_v47 = vadd.f32 %v449_v42, %v448_v43  ;;  %v473_v42 = vsel %vm427_vm0, %v5630_v28, 0.0 }
  0x2a   : > { %v452_v50 = vadd.f32 %v451_v45, %v450_v47  ;;  %v5621_v45 = vunpack.c.l.bf16 %v3340_v36  ;;  %v475_v47 = vsel %vm427_vm0, %v5627_v33, 0.0 }
  0x2c   : > { %v454_v54 = vadd.f32 %v453_v49, %v452_v50  ;;  %v3351_v49 = vld [vmem:[%s3204_s17 + $0x70] sm:$0xff]  }
  0x2e   : > { %v456_v57 = vadd.f32 %v455_v52, %v454_v54  ;;  %v5618_v52 = vunpack.c.h.bf16 %v3340_v36  ;;  %v477_v54 = vsel %vm427_vm0, %v5624_v40, 0.0 }
  0x30   : > { %v458_v61 = vadd.f32 %v457_v56, %v456_v57  ;;  %v5615_v57 = vunpack.c.l.bf16 %v3351_v49 }
  0x32   : > { %v460_v8 = vadd.f32 %v459_v59, %v458_v61  ;;  %v479_v59 = vsel %vm427_vm0, %v5621_v45, 0.0  ;;  %v3362_v61 = vld [vmem:[%s3204_s17 + $0x78] sm:$0xff]  }
  0x34   : > { %v462_v14 = vadd.f32 %v461_v63, %v460_v8  ;;  %v5612_v8 = vunpack.c.h.bf16 %v3351_v49 }
  0x36   : > { %v464_v19 = vadd.f32 %v463_v10, %v462_v14  ;;  %v481_v10 = vsel %vm427_vm0, %v5618_v52, 0.0 }
  0x38   : > { %v466_v26 = vadd.f32 %v465_v17, %v464_v19  ;;  %v5609_v17 = vunpack.c.l.bf16 %v3362_v61  ;;  %v483_v19 = vsel %vm427_vm0, %v5615_v57, 0.0 }
  0x3a   : > { %v468_v31 = vadd.f32 %v467_v22, %v466_v26  ;;  %v3373_v22 = vld [vmem:[%s3204_s17 + $0x80] sm:$0xff]  }
  0x3c   : > { %v470_v38 = vadd.f32 %v469_v29, %v468_v31  ;;  %v5606_v29 = vunpack.c.h.bf16 %v3362_v61  ;;  %v485_v31 = vsel %vm427_vm0, %v5612_v8, 0.0 }
  0x3e   : > { %v472_v43 = vadd.f32 %v471_v35, %v470_v38  ;;  %v5605_v38 = vunpack.c.l.bf16 %v3373_v22 }
  0x40   : > { %v474_v50 = vadd.f32 %v473_v42, %v472_v43  ;;  %v487_v42 = vsel %vm427_vm0, %v5609_v17, 0.0  ;;  %v3384_v43 = vld [vmem:[%s3204_s17 + $0x88] sm:$0xff]  }
  0x42   : > { %v476_v56 = vadd.f32 %v475_v47, %v474_v50  ;;  %v5607_v50 = vunpack.c.h.bf16 %v3373_v22 }
  0x44   : > { %v478_v63 = vadd.f32 %v477_v54, %v476_v56  ;;  %v489_v54 = vsel %vm427_vm0, %v5606_v29, 0.0 }
  0x46   : > { %v480_v14 = vadd.f32 %v479_v59, %v478_v63  ;;  %v5608_v59 = vunpack.c.l.bf16 %v3384_v43  ;;  %v491_v63 = vsel %vm427_vm0, %v5605_v38, 0.0 }
  0x48   : > { %v482_v26 = vadd.f32 %v481_v10, %v480_v14  ;;  %v3395_v10 = vld [vmem:[%s3204_s17 + $0x90] sm:$0xff]  }
  0x49   : > { %v5613_v29 = vunpack.c.h.bf16 %v3395_v10 }
  0x4a   : > { %v484_v35 = vadd.f32 %v483_v19, %v482_v26  ;;  %v5610_v19 = vunpack.c.h.bf16 %v3384_v43  ;;  %v493_v26 = vsel %vm427_vm0, %v5607_v50, 0.0 }
  0x4c   : > { %v486_v47 = vadd.f32 %v485_v31, %v484_v35  ;;  %v5611_v35 = vunpack.c.l.bf16 %v3395_v10 }
  0x4e   : > { %v488_v56 = vadd.f32 %v487_v42, %v486_v47  ;;  %v495_v42 = vsel %vm427_vm0, %v5608_v59, 0.0  ;;  %v3406_v47 = vld [vmem:[%s3204_s17 + $0x98] sm:$0xff]  }
  0x4f   : > { %v5614_v50 = vunpack.c.l.bf16 %v3406_v47  ;;  %v5616_v17 = vunpack.c.h.bf16 %v3406_v47 }
  0x50   : > { %v490_v14 = vadd.f32 %v489_v54, %v488_v56  ;;  %v497_v54 = vsel %vm427_vm0, %v5610_v19, 0.0 }
  0x52   : > { %v492_v31 = vadd.f32 %v491_v63, %v490_v14  ;;  %v499_v63 = vsel %vm427_vm0, %v5611_v35, 0.0  ;;  %v3417_v14 = vld [vmem:[%s3204_s17 + $0xa0] sm:$0xff]  }
  0x53   : > { %v5617_v19 = vunpack.c.l.bf16 %v3417_v14  ;;  %v5619_v8 = vunpack.c.h.bf16 %v3417_v14 }
  0x54   : > { %v494_v38 = vadd.f32 %v493_v26, %v492_v31  ;;  %v501_v26 = vsel %vm427_vm0, %v5613_v29, 0.0 }
  0x56   : > { %v496_v56 = vadd.f32 %v495_v42, %v494_v38  ;;  %v503_v38 = vsel %vm427_vm0, %v5614_v50, 0.0  ;;  %v3428_v42 = vld [vmem:[%s3204_s17 + $0xa8] sm:$0xff]  }
  0x57   : > { %v5620_v29 = vunpack.c.l.bf16 %v3428_v42  ;;  %v5622_v57 = vunpack.c.h.bf16 %v3428_v42 }
  0x58   : > { %v498_v59 = vadd.f32 %v497_v54, %v496_v56  ;;  %v505_v54 = vsel %vm427_vm0, %v5616_v17, 0.0 }
  0x5a   : > { %v500_v31 = vadd.f32 %v499_v63, %v498_v59  ;;  %v507_v59 = vsel %vm427_vm0, %v5617_v19, 0.0  ;;  %v3439_v63 = vld [vmem:[%s3204_s17 + $0xb0] sm:$0xff]  }
  0x5b   : > { %v5623_v17 = vunpack.c.l.bf16 %v3439_v63  ;;  %v5625_v52 = vunpack.c.h.bf16 %v3439_v63 }
  0x5c   : > { %v502_v35 = vadd.f32 %v501_v26, %v500_v31  ;;  %v509_v26 = vsel %vm427_vm0, %v5619_v8, 0.0 }
  0x5e   : > { %v504_v56 = vadd.f32 %v503_v38, %v502_v35  ;;  %v511_v35 = vsel %vm427_vm0, %v5620_v29, 0.0  ;;  %v3450_v38 = vld [vmem:[%s3204_s17 + $0xb8] sm:$0xff]  }
  0x5f   : > { %v5626_v8 = vunpack.c.l.bf16 %v3450_v38  ;;  %v5628_v45 = vunpack.c.h.bf16 %v3450_v38 }
  0x60   : > { %v506_v50 = vadd.f32 %v505_v54, %v504_v56  ;;  %v513_v54 = vsel %vm427_vm0, %v5622_v57, 0.0 }
  0x62   : > { %v508_v31 = vadd.f32 %v507_v59, %v506_v50  ;;  %v515_v50 = vsel %vm427_vm0, %v5623_v17, 0.0  ;;  %v3461_v59 = vld [vmem:[%s3204_s17 + $0xc0] sm:$0xff]  }
  0x63   : > { %v5629_v57 = vunpack.c.l.bf16 %v3461_v59  ;;  %v5631_v40 = vunpack.c.h.bf16 %v3461_v59 }
  0x64   : > { %v510_v19 = vadd.f32 %v509_v26, %v508_v31  ;;  %v517_v26 = vsel %vm427_vm0, %v5625_v52, 0.0 }
  0x66   : > { %v512_v56 = vadd.f32 %v511_v35, %v510_v19  ;;  %v519_v19 = vsel %vm427_vm0, %v5626_v8, 0.0  ;;  %v3472_v35 = vld [vmem:[%s3204_s17 + $0xc8] sm:$0xff]  }
  0x67   : > { %v5632_v52 = vunpack.c.l.bf16 %v3472_v35  ;;  %v5634_v33 = vunpack.c.h.bf16 %v3472_v35 }
  0x68   : > { %v514_v29 = vadd.f32 %v513_v54, %v512_v56  ;;  %v521_v54 = vsel %vm427_vm0, %v5628_v45, 0.0 }
  0x6a   : > { %v516_v31 = vadd.f32 %v515_v50, %v514_v29  ;;  %v523_v29 = vsel %vm427_vm0, %v5629_v57, 0.0  ;;  %v3483_v50 = vld [vmem:[%s3204_s17 + $0xd0] sm:$0xff]  }
  0x6b   : > { %v5635_v45 = vunpack.c.l.bf16 %v3483_v50  ;;  %v5637_v28 = vunpack.c.h.bf16 %v3483_v50 }
  0x6c   : > { %v518_v17 = vadd.f32 %v517_v26, %v516_v31  ;;  %v525_v26 = vsel %vm427_vm0, %v5631_v40, 0.0 }
  0x6e   : > { %v520_v56 = vadd.f32 %v519_v19, %v518_v17  ;;  %v527_v17 = vsel %vm427_vm0, %v5632_v52, 0.0  ;;  %v3494_v19 = vld [vmem:[%s3204_s17 + $0xd8] sm:$0xff]  }
  0x6f   : > { %v5638_v40 = vunpack.c.l.bf16 %v3494_v19  ;;  %v5640_v21 = vunpack.c.h.bf16 %v3494_v19 }
  0x70   : > { %v522_v8 = vadd.f32 %v521_v54, %v520_v56  ;;  %v529_v54 = vsel %vm427_vm0, %v5634_v33, 0.0 }
  0x72   : > { %v524_v31 = vadd.f32 %v523_v29, %v522_v8  ;;  %v531_v8 = vsel %vm427_vm0, %v5635_v45, 0.0  ;;  %v3505_v29 = vld [vmem:[%s3204_s17 + $0xe0] sm:$0xff]  }
  0x73   : > { %v5641_v33 = vunpack.c.l.bf16 %v3505_v29  ;;  %v5643_v15 = vunpack.c.h.bf16 %v3505_v29 }
  0x74   : > { %v526_v57 = vadd.f32 %v525_v26, %v524_v31  ;;  %v533_v26 = vsel %vm427_vm0, %v5637_v28, 0.0 }
  0x76   : > { %v528_v56 = vadd.f32 %v527_v17, %v526_v57  ;;  %v535_v57 = vsel %vm427_vm0, %v5638_v40, 0.0  ;;  %v3516_v17 = vld [vmem:[%s3204_s17 + $0xe8] sm:$0xff]  }
  0x77   : > { %v5644_v28 = vunpack.c.l.bf16 %v3516_v17  ;;  %v5646_v9 = vunpack.c.h.bf16 %v3516_v17 }
  0x78   : > { %v530_v52 = vadd.f32 %v529_v54, %v528_v56  ;;  %v537_v54 = vsel %vm427_vm0, %v5640_v21, 0.0 }
  0x7a   : > { %v532_v31 = vadd.f32 %v531_v8, %v530_v52  ;;  %v539_v52 = vsel %vm427_vm0, %v5641_v33, 0.0  ;;  %v3527_v8 = vld [vmem:[%s3204_s17 + $0xf0] sm:$0xff]  }
  0x7b   : > { %v5647_v21 = vunpack.c.l.bf16 %v3527_v8  ;;  %v5649_v62 = vunpack.c.h.bf16 %v3527_v8 }
  0x7c   : > { %v534_v45 = vadd.f32 %v533_v26, %v532_v31  ;;  %v541_v26 = vsel %vm427_vm0, %v5643_v15, 0.0 }
  0x7e   : > { %v536_v56 = vadd.f32 %v535_v57, %v534_v45  ;;  %v543_v45 = vsel %vm427_vm0, %v5644_v28, 0.0  ;;  %v3538_v57 = vld [vmem:[%s3204_s17 + $0xf8] sm:$0xff]  }
  0x7f   : > { %v5650_v15 = vunpack.c.l.bf16 %v3538_v57  ;;  %v5652_v58 = vunpack.c.h.bf16 %v3538_v57 }
  0x80   : > { %v538_v40 = vadd.f32 %v537_v54, %v536_v56  ;;  %v545_v54 = vsel %vm427_vm0, %v5646_v9, 0.0 }
  0x82   : > { %v540_v31 = vadd.f32 %v539_v52, %v538_v40  ;;  %v547_v40 = vsel %vm427_vm0, %v5647_v21, 0.0  ;;  %v3549_v52 = vld [vmem:[%s3204_s17 + $0x100] sm:$0xff]  }
  0x83   : > { %v5653_v9 = vunpack.c.l.bf16 %v3549_v52  ;;  %v5655_v55 = vunpack.c.h.bf16 %v3549_v52 }
  0x84   : > { %v542_v33 = vadd.f32 %v541_v26, %v540_v31  ;;  %v549_v26 = vsel %vm427_vm0, %v5649_v62, 0.0 }
  0x86   : > { %v544_v56 = vadd.f32 %v543_v45, %v542_v33  ;;  %v551_v33 = vsel %vm427_vm0, %v5650_v15, 0.0  ;;  %v3560_v45 = vld [vmem:[%s3204_s17 + $0x108] sm:$0xff]  }
  0x87   : > { %v5656_v62 = vunpack.c.l.bf16 %v3560_v45  ;;  %v5658_v51 = vunpack.c.h.bf16 %v3560_v45 }
  0x88   : > { %v546_v28 = vadd.f32 %v545_v54, %v544_v56  ;;  %v553_v54 = vsel %vm427_vm0, %v5652_v58, 0.0 }
  0x8a   : > { %v548_v31 = vadd.f32 %v547_v40, %v546_v28  ;;  %v555_v28 = vsel %vm427_vm0, %v5653_v9, 0.0  ;;  %v3571_v40 = vld [vmem:[%s3204_s17 + $0x110] sm:$0xff]  }
  0x8b   : > { %v5659_v58 = vunpack.c.l.bf16 %v3571_v40  ;;  %v5661_v48 = vunpack.c.h.bf16 %v3571_v40 }
  0x8c   : > { %v550_v21 = vadd.f32 %v549_v26, %v548_v31  ;;  %v557_v26 = vsel %vm427_vm0, %v5655_v55, 0.0 }
  0x8e   : > { %v552_v56 = vadd.f32 %v551_v33, %v550_v21  ;;  %v559_v21 = vsel %vm427_vm0, %v5656_v62, 0.0  ;;  %v3582_v33 = vld [vmem:[%s3204_s17 + $0x118] sm:$0xff]  }
  0x8f   : > { %v5662_v55 = vunpack.c.l.bf16 %v3582_v33  ;;  %v5664_v44 = vunpack.c.h.bf16 %v3582_v33 }
  0x90   : > { %v554_v15 = vadd.f32 %v553_v54, %v552_v56  ;;  %v561_v54 = vsel %vm427_vm0, %v5658_v51, 0.0 }
  0x92   : > { %v556_v31 = vadd.f32 %v555_v28, %v554_v15  ;;  %v563_v15 = vsel %vm427_vm0, %v5659_v58, 0.0  ;;  %v3593_v28 = vld [vmem:[%s3204_s17 + $0x120] sm:$0xff]  }
  0x93   : > { %v5665_v51 = vunpack.c.l.bf16 %v3593_v28  ;;  %v5667_v41 = vunpack.c.h.bf16 %v3593_v28 }
  0x94   : > { %v558_v9 = vadd.f32 %v557_v26, %v556_v31  ;;  %v565_v26 = vsel %vm427_vm0, %v5661_v48, 0.0 }
  0x96   : > { %v560_v56 = vadd.f32 %v559_v21, %v558_v9  ;;  %v567_v9 = vsel %vm427_vm0, %v5662_v55, 0.0  ;;  %v3604_v21 = vld [vmem:[%s3204_s17 + $0x128] sm:$0xff]  }
  0x97   : > { %v5668_v48 = vunpack.c.l.bf16 %v3604_v21  ;;  %v5670_v37 = vunpack.c.h.bf16 %v3604_v21 }
  0x98   : > { %v562_v62 = vadd.f32 %v561_v54, %v560_v56  ;;  %v569_v54 = vsel %vm427_vm0, %v5664_v44, 0.0 }
  0x9a   : > { %v564_v31 = vadd.f32 %v563_v15, %v562_v62  ;;  %v571_v62 = vsel %vm427_vm0, %v5665_v51, 0.0  ;;  %v3615_v15 = vld [vmem:[%s3204_s17 + $0x130] sm:$0xff]  }
  0x9b   : > { %v5671_v44 = vunpack.c.l.bf16 %v3615_v15  ;;  %v5673_v34 = vunpack.c.h.bf16 %v3615_v15 }
  0x9c   : > { %v566_v58 = vadd.f32 %v565_v26, %v564_v31  ;;  %v573_v26 = vsel %vm427_vm0, %v5667_v41, 0.0 }
  0x9e   : > { %v568_v56 = vadd.f32 %v567_v9, %v566_v58  ;;  %v575_v58 = vsel %vm427_vm0, %v5668_v48, 0.0  ;;  %v3626_v9 = vld [vmem:[%s3204_s17 + $0x138] sm:$0xff]  }
  0x9f   : > { %v5674_v41 = vunpack.c.l.bf16 %v3626_v9  ;;  %v5676_v30 = vunpack.c.h.bf16 %v3626_v9 }
  0xa0   : > { %v570_v55 = vadd.f32 %v569_v54, %v568_v56  ;;  %v577_v54 = vsel %vm427_vm0, %v5670_v37, 0.0 }
  0xa2   : > { %v572_v31 = vadd.f32 %v571_v62, %v570_v55  ;;  %v579_v55 = vsel %vm427_vm0, %v5671_v44, 0.0  ;;  %v3637_v62 = vld [vmem:[%s3204_s17 + $0x140] sm:$0xff]  }
  0xa3   : > { %v5677_v37 = vunpack.c.l.bf16 %v3637_v62  ;;  %v5679_v27 = vunpack.c.h.bf16 %v3637_v62 }
  0xa4   : > { %v574_v51 = vadd.f32 %v573_v26, %v572_v31  ;;  %v581_v26 = vsel %vm427_vm0, %v5673_v34, 0.0 }
  0xa6   : > { %v576_v56 = vadd.f32 %v575_v58, %v574_v51  ;;  %v583_v51 = vsel %vm427_vm0, %v5674_v41, 0.0  ;;  %v3648_v58 = vld [vmem:[%s3204_s17 + $0x148] sm:$0xff]  }
  0xa7   : > { %v5680_v34 = vunpack.c.l.bf16 %v3648_v58  ;;  %v5682_v23 = vunpack.c.h.bf16 %v3648_v58 }
  0xa8   : > { %v578_v48 = vadd.f32 %v577_v54, %v576_v56  ;;  %v585_v54 = vsel %vm427_vm0, %v5676_v30, 0.0 }
  0xaa   : > { %v580_v31 = vadd.f32 %v579_v55, %v578_v48  ;;  %v587_v48 = vsel %vm427_vm0, %v5677_v37, 0.0  ;;  %v3659_v55 = vld [vmem:[%s3204_s17 + $0x150] sm:$0xff]  }
  0xab   : > { %v5683_v30 = vunpack.c.l.bf16 %v3659_v55  ;;  %v5685_v20 = vunpack.c.h.bf16 %v3659_v55 }
  0xac   : > { %v582_v44 = vadd.f32 %v581_v26, %v580_v31  ;;  %v589_v26 = vsel %vm427_vm0, %v5679_v27, 0.0 }
  0xae   : > { %v584_v56 = vadd.f32 %v583_v51, %v582_v44  ;;  %v591_v44 = vsel %vm427_vm0, %v5680_v34, 0.0  ;;  %v3670_v51 = vld [vmem:[%s3204_s17 + $0x158] sm:$0xff]  }
  0xaf   : > { %v5686_v27 = vunpack.c.l.bf16 %v3670_v51  ;;  %v5688_v16 = vunpack.c.h.bf16 %v3670_v51 }
  0xb0   : > { %v586_v41 = vadd.f32 %v585_v54, %v584_v56  ;;  %v593_v54 = vsel %vm427_vm0, %v5682_v23, 0.0 }
  0xb2   : > { %v588_v31 = vadd.f32 %v587_v48, %v586_v41  ;;  %v595_v41 = vsel %vm427_vm0, %v5683_v30, 0.0  ;;  %v3681_v48 = vld [vmem:[%s3204_s17 + $0x160] sm:$0xff]  }
  0xb3   : > { %v5689_v23 = vunpack.c.l.bf16 %v3681_v48  ;;  %v5691_v13 = vunpack.c.h.bf16 %v3681_v48 }
  0xb4   : > { %v590_v37 = vadd.f32 %v589_v26, %v588_v31  ;;  %v597_v26 = vsel %vm427_vm0, %v5685_v20, 0.0 }
  0xb6   : > { %v592_v56 = vadd.f32 %v591_v44, %v590_v37  ;;  %v599_v37 = vsel %vm427_vm0, %v5686_v27, 0.0  ;;  %v3692_v44 = vld [vmem:[%s3204_s17 + $0x168] sm:$0xff]  }
  0xb7   : > { %v5692_v20 = vunpack.c.l.bf16 %v3692_v44  ;;  %v5694_v7 = vunpack.c.h.bf16 %v3692_v44 }
  0xb8   : > { %v594_v34 = vadd.f32 %v593_v54, %v592_v56  ;;  %v601_v54 = vsel %vm427_vm0, %v5688_v16, 0.0 }
  0xba   : > { %v596_v31 = vadd.f32 %v595_v41, %v594_v34  ;;  %v603_v34 = vsel %vm427_vm0, %v5689_v23, 0.0  ;;  %v3703_v41 = vld [vmem:[%s3204_s17 + $0x170] sm:$0xff]  }
  0xbb   : > { %v5695_v16 = vunpack.c.l.bf16 %v3703_v41  ;;  %v5697_v6 = vunpack.c.h.bf16 %v3703_v41 }
  0xbc   : > { %v598_v30 = vadd.f32 %v597_v26, %v596_v31  ;;  %v605_v26 = vsel %vm427_vm0, %v5691_v13, 0.0 }
  0xbe   : > { %v600_v56 = vadd.f32 %v599_v37, %v598_v30  ;;  %v607_v30 = vsel %vm427_vm0, %v5692_v20, 0.0  ;;  %v3714_v37 = vld [vmem:[%s3204_s17 + $0x178] sm:$0xff]  }
  0xbf   : > { %5851 = vst [vmem:[#allocation2_spill] sm:$0xff] %v3714_v37  ;;  %v5698_v13 = vunpack.c.l.bf16 %v3714_v37  ;;  %v5700_v4 = vunpack.c.h.bf16 %v3714_v37 }
  0xc0   : > { %v602_v27 = vadd.f32 %v601_v54, %v600_v56  ;;  %v609_v54 = vsel %vm427_vm0, %v5694_v7, 0.0 }
  0xc2   : > { %v604_v31 = vadd.f32 %v603_v34, %v602_v27  ;;  %v611_v27 = vsel %vm427_vm0, %v5695_v16, 0.0  ;;  %v3725_v34 = vld [vmem:[%s3204_s17 + $0x180] sm:$0xff]  }
  0xc3   : > { %5852 = vst [vmem:[#allocation3_spill] sm:$0xff] %v3725_v34  ;;  %v5701_v7 = vunpack.c.l.bf16 %v3725_v34  ;;  %v5704_v3 = vunpack.c.h.bf16 %v3725_v34 }
  0xc4   : > { %v606_v23 = vadd.f32 %v605_v26, %v604_v31  ;;  %v613_v26 = vsel %vm427_vm0, %v5697_v6, 0.0 }
  0xc6   : > { %v608_v56 = vadd.f32 %v607_v30, %v606_v23  ;;  %v615_v23 = vsel %vm427_vm0, %v5698_v13, 0.0  ;;  %v3736_v30 = vld [vmem:[%s3204_s17 + $0x188] sm:$0xff]  }
  0xc7   : > { %5853 = vst [vmem:[#allocation4_spill] sm:$0xff] %v3736_v30  ;;  %v5707_v6 = vunpack.c.l.bf16 %v3736_v30  ;;  %v5708_v2 = vunpack.c.h.bf16 %v3736_v30 }
  0xc8   : > { %v610_v20 = vadd.f32 %v609_v54, %v608_v56  ;;  %v617_v54 = vsel %vm427_vm0, %v5700_v4, 0.0 }
  0xca   : > { %v612_v31 = vadd.f32 %v611_v27, %v610_v20  ;;  %v619_v20 = vsel %vm427_vm0, %v5701_v7, 0.0  ;;  %v3747_v27 = vld [vmem:[%s3204_s17 + $0x190] sm:$0xff]  }
  0xcb   : > { %5854 = vst [vmem:[#allocation5_spill] sm:$0xff] %v3747_v27  ;;  %v5709_v4 = vunpack.c.l.bf16 %v3747_v27  ;;  %v5712_v37 = vunpack.c.h.bf16 %v3747_v27 }
  0xcc   : > { %v614_v16 = vadd.f32 %v613_v26, %v612_v31  ;;  %v621_v26 = vsel %vm427_vm0, %v5704_v3, 0.0 }
  0xce   : > { %v616_v56 = vadd.f32 %v615_v23, %v614_v16  ;;  %v623_v16 = vsel %vm427_vm0, %v5707_v6, 0.0  ;;  %v3758_v23 = vld [vmem:[%s3204_s17 + $0x198] sm:$0xff]  }
  0xcf   : > { %5855 = vst [vmem:[#allocation6_spill] sm:$0xff] %v3758_v23  ;;  %v5713_v3 = vunpack.c.l.bf16 %v3758_v23  ;;  %v5716_v6 = vunpack.c.h.bf16 %v3758_v23 }
  0xd0   : > { %v618_v13 = vadd.f32 %v617_v54, %v616_v56  ;;  %v625_v54 = vsel %vm427_vm0, %v5708_v2, 0.0 }
  0xd2   : > { %v620_v31 = vadd.f32 %v619_v20, %v618_v13  ;;  %v627_v13 = vsel %vm427_vm0, %v5709_v4, 0.0  ;;  %v3769_v20 = vld [vmem:[%s3204_s17 + $0x1a0] sm:$0xff]  }
  0xd3   : > { %5856 = vst [vmem:[#allocation7_spill] sm:$0xff] %v3769_v20  ;;  %v5717_v2 = vunpack.c.l.bf16 %v3769_v20  ;;  %v5720_v30 = vunpack.c.h.bf16 %v3769_v20 }
  0xd4   : > { %v622_v7 = vadd.f32 %v621_v26, %v620_v31  ;;  %v629_v26 = vsel %vm427_vm0, %v5712_v37, 0.0 }
  0xd6   : > { %v624_v56 = vadd.f32 %v623_v16, %v622_v7  ;;  %v631_v7 = vsel %vm427_vm0, %v5713_v3, 0.0  ;;  %v3780_v16 = vld [vmem:[%s3204_s17 + $0x1a8] sm:$0xff]  }
  0xd7   : > { %5857 = vst [vmem:[#allocation8_spill] sm:$0xff] %v3780_v16  ;;  %v5721_v37 = vunpack.c.l.bf16 %v3780_v16  ;;  %v5725_v3 = vunpack.c.h.bf16 %v3780_v16 }
  0xd8   : > { %v626_v34 = vadd.f32 %v625_v54, %v624_v56  ;;  %v633_v54 = vsel %vm427_vm0, %v5716_v6, 0.0 }
  0xda   : > { %v628_v31 = vadd.f32 %v627_v13, %v626_v34  ;;  %v635_v34 = vsel %vm427_vm0, %v5717_v2, 0.0 }
  0xdc   : > { %v630_v4 = vadd.f32 %v629_v26, %v628_v31  ;;  %v637_v26 = vsel %vm427_vm0, %v5720_v30, 0.0  ;;  %v3795_v31 = vld [vmem:[%s3204_s17 + $0x1b0] sm:$0xff]  }
  0xdd   : > { %5858 = vst [vmem:[#allocation9_spill] sm:$0xff] %v3795_v31  ;;  %v5722_v6 = vunpack.c.l.bf16 %v3795_v31  ;;  %v5723_v20 = vunpack.c.h.bf16 %v3795_v31 }
  0xde   : > { %v632_v56 = vadd.f32 %v631_v7, %v630_v4  ;;  %v639_v4 = vsel %vm427_vm0, %v5721_v37, 0.0 }
  0xe0   : > { %v634_v13 = vadd.f32 %v633_v54, %v632_v56  ;;  %v641_v54 = vsel %vm427_vm0, %v5725_v3, 0.0 }
  0xe2   : > { %v636_v23 = vadd.f32 %v635_v34, %v634_v13  ;;  %v643_v34 = vsel %vm427_vm0, %v5722_v6, 0.0  ;;  %v3809_v13 = vld [vmem:[%s3204_s17 + $0x1b8] sm:$0xff]  }
  0xe3   : > { %5859 = vst [vmem:[#allocation10_spill] sm:$0xff] %v3809_v13 }
  0xe4   : > { %v638_v7 = vadd.f32 %v637_v26, %v636_v23  ;;  %v5724_v23 = vunpack.c.l.bf16 %v3809_v13  ;;  %v645_v26 = vsel %vm427_vm0, %v5723_v20, 0.0 }
  0xe6   : > { %v640_v56 = vadd.f32 %v639_v4, %v638_v7  ;;  %v5726_v4 = vunpack.c.h.bf16 %v3809_v13  ;;  %v647_v7 = vsel %vm427_vm0, %v5724_v23, 0.0 }
  0xe8   : > { %v642_v2 = vadd.f32 %v641_v54, %v640_v56  ;;  %v3820_v54 = vld [vmem:[%s3204_s17 + $0x1c0] sm:$0xff]  }
  0xe9   : > { %5860 = vst [vmem:[#allocation11_spill] sm:$0xff] %v3820_v54  ;;  %v5727_v6 = vunpack.c.l.bf16 %v3820_v54  ;;  %v5730_v20 = vunpack.c.h.bf16 %v3820_v54 }
  0xea   : > { %v644_v30 = vadd.f32 %v643_v34, %v642_v2  ;;  %v649_v2 = vsel %vm427_vm0, %v5726_v4, 0.0 }
  0xec   : > { %v646_v37 = vadd.f32 %v645_v26, %v644_v30  ;;  %v651_v30 = vsel %vm427_vm0, %v5727_v6, 0.0  ;;  %v3831_v26 = vld [vmem:[%s3204_s17 + $0x1c8] sm:$0xff]  }
  0xed   : > { %5861 = vst [vmem:[#allocation12_spill] sm:$0xff] %v3831_v26  ;;  %v5731_v3 = vunpack.c.l.bf16 %v3831_v26  ;;  %v5734_v4 = vunpack.c.h.bf16 %v3831_v26 }
  0xee   : > { %v648_v56 = vadd.f32 %v647_v7, %v646_v37  ;;  %v653_v37 = vsel %vm427_vm0, %v5730_v20, 0.0 }
  0xf0   : > { %v650_v34 = vadd.f32 %v649_v2, %v648_v56  ;;  %v655_v56 = vsel %vm427_vm0, %v5731_v3, 0.0  ;;  %v3842_v2 = vld [vmem:[%s3204_s17 + $0x1d0] sm:$0xff]  }
  0xf1   : > { %5862 = vst [vmem:[#allocation13_spill] sm:$0xff] %v3842_v2  ;;  %v5735_v13 = vunpack.c.l.bf16 %v3842_v2  ;;  %v5738_v20 = vunpack.c.h.bf16 %v3842_v2 }
  0xf2   : > { %v652_v23 = vadd.f32 %v651_v30, %v650_v34  ;;  %v657_v34 = vsel %vm427_vm0, %v5734_v4, 0.0 }
  0xf4   : > { %v654_v7 = vadd.f32 %v653_v37, %v652_v23  ;;  %v659_v23 = vsel %vm427_vm0, %v5735_v13, 0.0  ;;  %v3853_v37 = vld [vmem:[%s3204_s17 + $0x1d8] sm:$0xff]  }
  0xf5   : > { %5863 = vst [vmem:[#allocation14_spill] sm:$0xff] %v3853_v37  ;;  %v5739_v54 = vunpack.c.l.bf16 %v3853_v37  ;;  %v5742_v4 = vunpack.c.h.bf16 %v3853_v37 }
  0xf6   : > { %v656_v6 = vadd.f32 %v655_v56, %v654_v7  ;;  %v661_v7 = vsel %vm427_vm0, %v5738_v20, 0.0 }
  0xf8   : > { %v658_v30 = vadd.f32 %v657_v34, %v656_v6  ;;  %v663_v6 = vsel %vm427_vm0, %v5739_v54, 0.0  ;;  %v3864_v34 = vld [vmem:[%s3204_s17 + $0x1e0] sm:$0xff]  }
  0xf9   : > { %5864 = vst [vmem:[#allocation15_spill] sm:$0xff] %v3864_v34  ;;  %v5745_v26 = vunpack.c.l.bf16 %v3864_v34  ;;  %v5748_v20 = vunpack.c.h.bf16 %v3864_v34 }
  0xfa   : > { %v660_v3 = vadd.f32 %v659_v23, %v658_v30  ;;  %v665_v30 = vsel %vm427_vm0, %v5742_v4, 0.0 }
  0xfc   : > { %v662_v56 = vadd.f32 %v661_v7, %v660_v3  ;;  %v667_v3 = vsel %vm427_vm0, %v5745_v26, 0.0  ;;  %v3875_v7 = vld [vmem:[%s3204_s17 + $0x1e8] sm:$0xff]  }
  0xfd   : > { %5865 = vst [vmem:[#allocation16_spill] sm:$0xff] %v3875_v7  ;;  %v5749_v2 = vunpack.c.l.bf16 %v3875_v7  ;;  %v5753_v4 = vunpack.c.h.bf16 %v3875_v7 }
  0xfe   : > { %v664_v13 = vadd.f32 %v663_v6, %v662_v56  ;;  %v669_v56 = vsel %vm427_vm0, %v5748_v20, 0.0 }
 0x100   : > { %v666_v23 = vadd.f32 %v665_v30, %v664_v13  ;;  %v671_v13 = vsel %vm427_vm0, %v5749_v2, 0.0  ;;  %v3886_v30 = vld [vmem:[%s3204_s17 + $0x1f0] sm:$0xff]  }
 0x101   : > { %5866 = vst [vmem:[#allocation17_spill] sm:$0xff] %v3886_v30  ;;  %v5752_v26 = vunpack.c.l.bf16 %v3886_v30  ;;  %v5762_v34 = vunpack.c.h.bf16 %v3886_v30 }
 0x102   : > { %v668_v54 = vadd.f32 %v667_v3, %v666_v23  ;;  %v673_v23 = vsel %vm427_vm0, %v5753_v4, 0.0 }
 0x104   : > { %v670_v6 = vadd.f32 %v669_v56, %v668_v54  ;;  %v675_v54 = vsel %vm427_vm0, %v5752_v26, 0.0  ;;  %v3897_v56 = vld [vmem:[%s3204_s17 + $0x1f8] sm:$0xff]  }
 0x105   : > { %v5764_v2 = vunpack.c.l.bf16 %v3897_v56  ;;  %v5763_v7 = vunpack.c.h.bf16 %v3897_v56 }
 0x106   : > { %v672_v37 = vadd.f32 %v671_v13, %v670_v6  ;;  %v677_v6 = vsel %vm427_vm0, %v5762_v34, 0.0 }
 0x107   : > { %v681_v26 = vsel %vm427_vm0, %v5763_v7, 0.0 }
 0x108   : > { %v674_v3 = vadd.f32 %v673_v23, %v672_v37  ;;  %v679_v37 = vsel %vm427_vm0, %v5764_v2, 0.0 }
 0x10a   : > { %v676_v20 = vadd.f32 %v675_v54, %v674_v3 }
 0x10c   : > { %v678_v13 = vadd.f32 %v677_v6, %v676_v20  ;;  %v5867_v20 = vunpack.c.l.bf16 %v3207_v0 }
 0x10e   : > { %v680_v23 = vadd.f32 %v679_v37, %v678_v13  ;;  %v5868_v13 = vunpack.c.h.bf16 %v3207_v0 }
 0x110   : > { %v682_v4 = vadd.f32 %v681_v26, %v680_v23  ;;  %v5870_v26 = vunpack.c.l.bf16 %v3210_v1 }
 0x112   : > { %v683_v3 = vrot.slane %v682_v4, 4 }
 0x114   : > { %v684_v54 = vadd.f32 %v683_v3, %v682_v4 }
 0x116   : > { %v685_v31 = vrot.slane %v684_v54, 2 }
 0x118   : > { %v686_v16 = vadd.f32 %v685_v31, %v684_v54  ;;  %v5874_v31 = vunpack.c.l.bf16 %v3216_v5  ;;  %v5876_v54 = vunpack.c.h.bf16 %v3216_v5 }
 0x11a   : > { %v687_v30 = vrot.slane %v686_v16, 1 }
 0x11c   : > { %v688_v27 = vadd.f32 %v687_v30, %v686_v16  ;;  %v5872_v16 = vunpack.c.h.bf16 %v3210_v1 }
 0x11e   : > { %v3910_v34 = vmul.f32 0.0009765625, %v688_v27 }
 0x120   : > { %v3915_v6 = vsub.f32 %v5867_v20, %v3910_v34  ;;  %v3920_v37 = vsub.f32 %v5868_v13, %v3910_v34  ;;  %v3925_v4 = vsub.f32 %v5870_v26, %v3910_v34  ;;  %v3930_v27 = vsub.f32 %v5872_v16, %v3910_v34 }
 0x121   : > { %v3935_v30 = vsub.f32 %v5874_v31, %v3910_v34  ;;  %v3946_v1 = vsub.f32 %v5876_v54, %v3910_v34  ;;  %v5877_v13 = vunpack.c.l.bf16 %v3230_v11  ;;  %v5878_v54 = vunpack.c.h.bf16 %v3230_v11 }
 0x122   : > { %5869 = vst [vmem:[#allocation18_spill] sm:$0xff] %v3920_v37  ;;  %5871 = vst [vmem:[#allocation19_spill] sm:$0xff] %v3925_v4  ;;  %v819_v0 = vmul.f32 %v3915_v6, %v3915_v6  ;;  %v820_v23 = vmul.f32 %v3920_v37, %v3920_v37  ;;  %v821_v3 = vmul.f32 %v3925_v4, %v3925_v4  ;;  %v5881_v11 = vunpack.c.h.bf16 %v3241_v18 }
 0x123   : > { %5873 = vst [vmem:[#allocation20_spill] sm:$0xff] %v3930_v27  ;;  %5875 = vst [vmem:[#allocation21_spill] sm:$0xff] %v3935_v30  ;;  %v822_v20 = vmul.f32 %v3930_v27, %v3930_v27  ;;  %v3953_v26 = vsub.f32 %v5877_v13, %v3910_v34  ;;  %v823_v16 = vmul.f32 %v3935_v30, %v3935_v30  ;;  %v5880_v30 = vunpack.c.l.bf16 %v3241_v18 }
 0x124   : > { %v947_v31 = vsel %vm427_vm0, %v819_v0, 0.0  ;;  %v948_v7 = vsel %vm427_vm0, %v820_v23, 0.0  ;;  %v950_v2 = vsel %vm427_vm0, %v821_v3, 0.0  ;;  %v3963_v4 = vsub.f32 %v5878_v54, %v3910_v34 }
 0x125   : > { %v949_v5 = vadd.f32 %v948_v7, %v947_v31  ;;  %v824_v27 = vmul.f32 %v3946_v1, %v3946_v1  ;;  %v952_v13 = vsel %vm427_vm0, %v822_v20, 0.0  ;;  %v3971_v0 = vsub.f32 %v5880_v30, %v3910_v34 }
 0x126   : > { %5879 = vst [vmem:[#allocation22_spill] sm:$0xff] %v3963_v4  ;;  %v825_v23 = vmul.f32 %v3953_v26, %v3953_v26  ;;  %v954_v7 = vsel %vm427_vm0, %v823_v16, 0.0  ;;  %v3979_v31 = vsub.f32 %v5881_v11, %v3910_v34  ;;  %v826_v20 = vmul.f32 %v3963_v4, %v3963_v4 }
 0x127   : > { %v951_v37 = vadd.f32 %v950_v2, %v949_v5  ;;  %v956_v2 = vsel %vm427_vm0, %v824_v27, 0.0  ;;  %v5883_v30 = vunpack.c.l.bf16 %v3252_v25  ;;  %v827_v16 = vmul.f32 %v3971_v0, %v3971_v0 }
 0x128   : > { %5882 = vst [vmem:[#allocation23_spill] sm:$0xff] %v3979_v31  ;;  %v5884_v18 = vunpack.c.h.bf16 %v3252_v25  ;;  %v828_v27 = vmul.f32 %v3979_v31, %v3979_v31  ;;  %v5887_v25 = vunpack.c.h.bf16 %v3263_v32 }
 0x129   : > { %v953_v3 = vadd.f32 %v952_v13, %v951_v37  ;;  %v3987_v54 = vsub.f32 %v5883_v30, %v3910_v34  ;;  %v958_v37 = vsel %vm427_vm0, %v825_v23, 0.0  ;;  %v5886_v30 = vunpack.c.l.bf16 %v3263_v32 }
 0x12a   : > { %v3995_v11 = vsub.f32 %v5884_v18, %v3910_v34  ;;  %v4011_v18 = vsub.f32 %v5887_v25, %v3910_v34  ;;  %v5890_v32 = vunpack.c.h.bf16 %v3274_v39 }
 0x12b   : > { %v955_v5 = vadd.f32 %v954_v7, %v953_v3  ;;  %v960_v7 = vsel %vm427_vm0, %v826_v20, 0.0  ;;  %v4003_v4 = vsub.f32 %v5886_v30, %v3910_v34  ;;  %v829_v23 = vmul.f32 %v3987_v54, %v3987_v54 }
 0x12c   : > { %5885 = vst [vmem:[#allocation24_spill] sm:$0xff] %v3995_v11  ;;  %5888 = vst [vmem:[#allocation25_spill] sm:$0xff] %v4011_v18  ;;  %v830_v20 = vmul.f32 %v3995_v11, %v3995_v11  ;;  %v5889_v30 = vunpack.c.l.bf16 %v3274_v39  ;;  %v4027_v25 = vsub.f32 %v5890_v32, %v3910_v34  ;;  %v5893_v39 = vunpack.c.h.bf16 %v3285_v46 }
 0x12d   : > { %v957_v13 = vadd.f32 %v956_v2, %v955_v5  ;;  %v962_v2 = vsel %vm427_vm0, %v827_v16, 0.0  ;;  %v831_v16 = vmul.f32 %v4003_v4, %v4003_v4 }
 0x12e   : > { %v4019_v31 = vsub.f32 %v5889_v30, %v3910_v34  ;;  %5891 = vst [vmem:[#allocation26_spill] sm:$0xff] %v4027_v25  ;;  %v5892_v30 = vunpack.c.l.bf16 %v3285_v46  ;;  %v4043_v32 = vsub.f32 %v5893_v39, %v3910_v34  ;;  %v5896_v46 = vunpack.c.h.bf16 %v3296_v53 }
 0x12f   : > { %v959_v3 = vadd.f32 %v958_v37, %v957_v13  ;;  %v964_v37 = vsel %vm427_vm0, %v828_v27, 0.0  ;;  %v832_v27 = vmul.f32 %v4011_v18, %v4011_v18 }
 0x130   : > { %v4035_v11 = vsub.f32 %v5892_v30, %v3910_v34  ;;  %5894 = vst [vmem:[#allocation27_spill] sm:$0xff] %v4043_v32  ;;  %v5895_v30 = vunpack.c.l.bf16 %v3296_v53  ;;  %v4059_v39 = vsub.f32 %v5896_v46, %v3910_v34  ;;  %v5899_v53 = vunpack.c.h.bf16 %v3307_v60 }
 0x131   : > { %v961_v5 = vadd.f32 %v960_v7, %v959_v3  ;;  %v966_v7 = vsel %vm427_vm0, %v829_v23, 0.0  ;;  %v833_v23 = vmul.f32 %v4019_v31, %v4019_v31 }
 0x132   : > { %v4051_v18 = vsub.f32 %v5895_v30, %v3910_v34  ;;  %5897 = vst [vmem:[#allocation28_spill] sm:$0xff] %v4059_v39  ;;  %v5898_v30 = vunpack.c.l.bf16 %v3307_v60  ;;  %v4075_v46 = vsub.f32 %v5899_v53, %v3910_v34  ;;  %v5902_v60 = vunpack.c.h.bf16 %v3318_v12 }
 0x133   : > { %v963_v13 = vadd.f32 %v962_v2, %v961_v5  ;;  %v968_v2 = vsel %vm427_vm0, %v830_v20, 0.0  ;;  %v834_v20 = vmul.f32 %v4027_v25, %v4027_v25 }
 0x134   : > { %v4067_v25 = vsub.f32 %v5898_v30, %v3910_v34  ;;  %5900 = vst [vmem:[#allocation29_spill] sm:$0xff] %v4075_v46  ;;  %v5901_v30 = vunpack.c.l.bf16 %v3318_v12  ;;  %v4091_v53 = vsub.f32 %v5902_v60, %v3910_v34  ;;  %v5905_v12 = vunpack.c.h.bf16 %v3329_v24 }
 0x135   : > { %v965_v3 = vadd.f32 %v964_v37, %v963_v13  ;;  %v970_v37 = vsel %vm427_vm0, %v831_v16, 0.0  ;;  %v835_v16 = vmul.f32 %v4035_v11, %v4035_v11 }
 0x136   : > { %5903 = vst [vmem:[#allocation30_spill] sm:$0xff] %v4091_v53  ;;  %v4107_v60 = vsub.f32 %v5905_v12, %v3910_v34 }
 0x137   : > { %v967_v5 = vadd.f32 %v966_v7, %v965_v3  ;;  %v972_v7 = vsel %vm427_vm0, %v832_v27, 0.0  ;;  %v836_v27 = vmul.f32 %v4043_v32, %v4043_v32  ;;  %v4083_v32 = vsub.f32 %v5901_v30, %v3910_v34 }
 0x138   : > { %v5904_v30 = vunpack.c.l.bf16 %v3329_v24  ;;  %5906 = vst [vmem:[#allocation31_spill] sm:$0xff] %v4107_v60  ;;  %v5908_v24 = vunpack.c.h.bf16 %v3340_v36 }
 0x139   : > { %v969_v13 = vadd.f32 %v968_v2, %v967_v5  ;;  %v974_v2 = vsel %vm427_vm0, %v833_v23, 0.0  ;;  %v837_v23 = vmul.f32 %v4051_v18, %v4051_v18 }
 0x13a   : > { %v4123_v12 = vsub.f32 %v5908_v24, %v3910_v34 }
 0x13b   : > { %v971_v3 = vadd.f32 %v970_v37, %v969_v13  ;;  %v976_v37 = vsel %vm427_vm0, %v834_v20, 0.0  ;;  %v838_v20 = vmul.f32 %v4059_v39, %v4059_v39  ;;  %v4099_v39 = vsub.f32 %v5904_v30, %v3910_v34 }
 0x13c   : > { %v5907_v30 = vunpack.c.l.bf16 %v3340_v36  ;;  %5909 = vst [vmem:[#allocation32_spill] sm:$0xff] %v4123_v12  ;;  %v5911_v36 = vunpack.c.h.bf16 %v3351_v49 }
 0x13d   : > { %v973_v5 = vadd.f32 %v972_v7, %v971_v3  ;;  %v978_v7 = vsel %vm427_vm0, %v835_v16, 0.0  ;;  %v839_v16 = vmul.f32 %v4067_v25, %v4067_v25 }
 0x13e   : > { %v4139_v24 = vsub.f32 %v5911_v36, %v3910_v34 }
 0x13f   : > { %v975_v13 = vadd.f32 %v974_v2, %v973_v5  ;;  %v980_v2 = vsel %vm427_vm0, %v836_v27, 0.0  ;;  %v840_v27 = vmul.f32 %v4075_v46, %v4075_v46  ;;  %v4115_v46 = vsub.f32 %v5907_v30, %v3910_v34 }
 0x140   : > { %v5910_v30 = vunpack.c.l.bf16 %v3351_v49  ;;  %5912 = vst [vmem:[#allocation33_spill] sm:$0xff] %v4139_v24  ;;  %v5914_v49 = vunpack.c.h.bf16 %v3362_v61 }
 0x141   : > { %v977_v3 = vadd.f32 %v976_v37, %v975_v13  ;;  %v982_v37 = vsel %vm427_vm0, %v837_v23, 0.0  ;;  %v841_v23 = vmul.f32 %v4083_v32, %v4083_v32 }
 0x142   : > { %v4155_v36 = vsub.f32 %v5914_v49, %v3910_v34 }
 0x143   : > { %v979_v5 = vadd.f32 %v978_v7, %v977_v3  ;;  %v984_v7 = vsel %vm427_vm0, %v838_v20, 0.0  ;;  %v842_v20 = vmul.f32 %v4091_v53, %v4091_v53  ;;  %v4131_v53 = vsub.f32 %v5910_v30, %v3910_v34 }
 0x144   : > { %v5913_v30 = vunpack.c.l.bf16 %v3362_v61  ;;  %5915 = vst [vmem:[#allocation34_spill] sm:$0xff] %v4155_v36  ;;  %v5917_v61 = vunpack.c.h.bf16 %v3373_v22 }
 0x145   : > { %v981_v13 = vadd.f32 %v980_v2, %v979_v5  ;;  %v986_v2 = vsel %vm427_vm0, %v839_v16, 0.0  ;;  %v843_v16 = vmul.f32 %v4099_v39, %v4099_v39 }
 0x146   : > { %v4171_v49 = vsub.f32 %v5917_v61, %v3910_v34 }
 0x147   : > { %v983_v3 = vadd.f32 %v982_v37, %v981_v13  ;;  %v988_v37 = vsel %vm427_vm0, %v840_v27, 0.0  ;;  %v844_v27 = vmul.f32 %v4107_v60, %v4107_v60  ;;  %v4147_v60 = vsub.f32 %v5913_v30, %v3910_v34 }
 0x148   : > { %v5916_v30 = vunpack.c.l.bf16 %v3373_v22  ;;  %5918 = vst [vmem:[#allocation35_spill] sm:$0xff] %v4171_v49  ;;  %v5920_v22 = vunpack.c.h.bf16 %v3384_v43 }
 0x149   : > { %v985_v5 = vadd.f32 %v984_v7, %v983_v3  ;;  %v990_v7 = vsel %vm427_vm0, %v841_v23, 0.0  ;;  %v845_v23 = vmul.f32 %v4115_v46, %v4115_v46 }
 0x14a   : > { %v4187_v61 = vsub.f32 %v5920_v22, %v3910_v34 }
 0x14b   : > { %v987_v13 = vadd.f32 %v986_v2, %v985_v5  ;;  %v992_v2 = vsel %vm427_vm0, %v842_v20, 0.0  ;;  %v846_v20 = vmul.f32 %v4123_v12, %v4123_v12  ;;  %v4163_v12 = vsub.f32 %v5916_v30, %v3910_v34 }
 0x14c   : > { %v5919_v30 = vunpack.c.l.bf16 %v3384_v43  ;;  %5921 = vst [vmem:[#allocation36_spill] sm:$0xff] %v4187_v61  ;;  %v5923_v43 = vunpack.c.h.bf16 %v3395_v10 }
 0x14d   : > { %v989_v3 = vadd.f32 %v988_v37, %v987_v13  ;;  %v994_v37 = vsel %vm427_vm0, %v843_v16, 0.0  ;;  %v847_v16 = vmul.f32 %v4131_v53, %v4131_v53 }
 0x14e   : > { %v4203_v22 = vsub.f32 %v5923_v43, %v3910_v34 }
 0x14f   : > { %v991_v5 = vadd.f32 %v990_v7, %v989_v3  ;;  %v996_v7 = vsel %vm427_vm0, %v844_v27, 0.0  ;;  %v848_v27 = vmul.f32 %v4139_v24, %v4139_v24  ;;  %v4179_v24 = vsub.f32 %v5919_v30, %v3910_v34 }
 0x150   : > { %v5922_v30 = vunpack.c.l.bf16 %v3395_v10  ;;  %5924 = vst [vmem:[#allocation37_spill] sm:$0xff] %v4203_v22  ;;  %v5926_v10 = vunpack.c.h.bf16 %v3406_v47 }
 0x151   : > { %v993_v13 = vadd.f32 %v992_v2, %v991_v5  ;;  %v998_v2 = vsel %vm427_vm0, %v845_v23, 0.0  ;;  %v849_v23 = vmul.f32 %v4147_v60, %v4147_v60 }
 0x152   : > { %v4219_v43 = vsub.f32 %v5926_v10, %v3910_v34 }
 0x153   : > { %v995_v3 = vadd.f32 %v994_v37, %v993_v13  ;;  %v1000_v37 = vsel %vm427_vm0, %v846_v20, 0.0  ;;  %v850_v20 = vmul.f32 %v4155_v36, %v4155_v36  ;;  %v4195_v36 = vsub.f32 %v5922_v30, %v3910_v34 }
 0x154   : > { %v5925_v30 = vunpack.c.l.bf16 %v3406_v47  ;;  %5927 = vst [vmem:[#allocation38_spill] sm:$0xff] %v4219_v43  ;;  %v5929_v47 = vunpack.c.h.bf16 %v3417_v14 }
 0x155   : > { %v997_v5 = vadd.f32 %v996_v7, %v995_v3  ;;  %v1002_v7 = vsel %vm427_vm0, %v847_v16, 0.0  ;;  %v851_v16 = vmul.f32 %v4163_v12, %v4163_v12 }
 0x156   : > { %v4235_v10 = vsub.f32 %v5929_v47, %v3910_v34 }
 0x157   : > { %v999_v13 = vadd.f32 %v998_v2, %v997_v5  ;;  %v1004_v2 = vsel %vm427_vm0, %v848_v27, 0.0  ;;  %v852_v27 = vmul.f32 %v4171_v49, %v4171_v49  ;;  %v4211_v49 = vsub.f32 %v5925_v30, %v3910_v34 }
 0x158   : > { %v5928_v30 = vunpack.c.l.bf16 %v3417_v14  ;;  %5930 = vst [vmem:[#allocation39_spill] sm:$0xff] %v4235_v10  ;;  %v5932_v14 = vunpack.c.h.bf16 %v3428_v42 }
 0x159   : > { %v1001_v3 = vadd.f32 %v1000_v37, %v999_v13  ;;  %v1006_v37 = vsel %vm427_vm0, %v849_v23, 0.0  ;;  %v853_v23 = vmul.f32 %v4179_v24, %v4179_v24 }
 0x15a   : > { %v4251_v47 = vsub.f32 %v5932_v14, %v3910_v34 }
 0x15b   : > { %v1003_v5 = vadd.f32 %v1002_v7, %v1001_v3  ;;  %v1008_v7 = vsel %vm427_vm0, %v850_v20, 0.0  ;;  %v854_v20 = vmul.f32 %v4187_v61, %v4187_v61  ;;  %v4227_v61 = vsub.f32 %v5928_v30, %v3910_v34 }
 0x15c   : > { %v5931_v30 = vunpack.c.l.bf16 %v3428_v42  ;;  %5933 = vst [vmem:[#allocation40_spill] sm:$0xff] %v4251_v47  ;;  %v5935_v42 = vunpack.c.h.bf16 %v3439_v63 }
 0x15d   : > { %v1005_v13 = vadd.f32 %v1004_v2, %v1003_v5  ;;  %v1010_v2 = vsel %vm427_vm0, %v851_v16, 0.0  ;;  %v855_v16 = vmul.f32 %v4195_v36, %v4195_v36 }
 0x15e   : > { %v4267_v14 = vsub.f32 %v5935_v42, %v3910_v34 }
 0x15f   : > { %v1007_v3 = vadd.f32 %v1006_v37, %v1005_v13  ;;  %v1012_v37 = vsel %vm427_vm0, %v852_v27, 0.0  ;;  %v856_v27 = vmul.f32 %v4203_v22, %v4203_v22  ;;  %v4243_v22 = vsub.f32 %v5931_v30, %v3910_v34 }
 0x160   : > { %v5934_v30 = vunpack.c.l.bf16 %v3439_v63  ;;  %5936 = vst [vmem:[#allocation41_spill] sm:$0xff] %v4267_v14  ;;  %v5938_v63 = vunpack.c.h.bf16 %v3450_v38 }
 0x161   : > { %v1009_v5 = vadd.f32 %v1008_v7, %v1007_v3  ;;  %v1014_v7 = vsel %vm427_vm0, %v853_v23, 0.0  ;;  %v857_v23 = vmul.f32 %v4211_v49, %v4211_v49 }
 0x162   : > { %v4283_v42 = vsub.f32 %v5938_v63, %v3910_v34 }
 0x163   : > { %v1011_v13 = vadd.f32 %v1010_v2, %v1009_v5  ;;  %v1016_v2 = vsel %vm427_vm0, %v854_v20, 0.0  ;;  %v858_v20 = vmul.f32 %v4219_v43, %v4219_v43  ;;  %v4259_v43 = vsub.f32 %v5934_v30, %v3910_v34 }
 0x164   : > { %v5937_v30 = vunpack.c.l.bf16 %v3450_v38  ;;  %5939 = vst [vmem:[#allocation42_spill] sm:$0xff] %v4283_v42  ;;  %v5941_v38 = vunpack.c.h.bf16 %v3461_v59 }
 0x165   : > { %v1013_v3 = vadd.f32 %v1012_v37, %v1011_v13  ;;  %v1018_v37 = vsel %vm427_vm0, %v855_v16, 0.0  ;;  %v859_v16 = vmul.f32 %v4227_v61, %v4227_v61 }
 0x166   : > { %v4299_v63 = vsub.f32 %v5941_v38, %v3910_v34 }
 0x167   : > { %v1015_v5 = vadd.f32 %v1014_v7, %v1013_v3  ;;  %v1020_v7 = vsel %vm427_vm0, %v856_v27, 0.0  ;;  %v860_v27 = vmul.f32 %v4235_v10, %v4235_v10  ;;  %v4275_v10 = vsub.f32 %v5937_v30, %v3910_v34 }
 0x168   : > { %v5940_v30 = vunpack.c.l.bf16 %v3461_v59  ;;  %5942 = vst [vmem:[#allocation43_spill] sm:$0xff] %v4299_v63  ;;  %v5944_v59 = vunpack.c.h.bf16 %v3472_v35 }
 0x169   : > { %v1017_v13 = vadd.f32 %v1016_v2, %v1015_v5  ;;  %v1022_v2 = vsel %vm427_vm0, %v857_v23, 0.0  ;;  %v861_v23 = vmul.f32 %v4243_v22, %v4243_v22 }
 0x16a   : > { %v4315_v38 = vsub.f32 %v5944_v59, %v3910_v34 }
 0x16b   : > { %v1019_v3 = vadd.f32 %v1018_v37, %v1017_v13  ;;  %v1024_v37 = vsel %vm427_vm0, %v858_v20, 0.0  ;;  %v862_v20 = vmul.f32 %v4251_v47, %v4251_v47  ;;  %v4291_v47 = vsub.f32 %v5940_v30, %v3910_v34 }
 0x16c   : > { %v5943_v30 = vunpack.c.l.bf16 %v3472_v35  ;;  %5945 = vst [vmem:[#allocation44_spill] sm:$0xff] %v4315_v38  ;;  %v5947_v35 = vunpack.c.h.bf16 %v3483_v50 }
 0x16d   : > { %v1021_v5 = vadd.f32 %v1020_v7, %v1019_v3  ;;  %v1026_v7 = vsel %vm427_vm0, %v859_v16, 0.0  ;;  %v863_v16 = vmul.f32 %v4259_v43, %v4259_v43 }
 0x16e   : > { %v4331_v59 = vsub.f32 %v5947_v35, %v3910_v34 }
 0x16f   : > { %v1023_v13 = vadd.f32 %v1022_v2, %v1021_v5  ;;  %v1028_v2 = vsel %vm427_vm0, %v860_v27, 0.0  ;;  %v864_v27 = vmul.f32 %v4267_v14, %v4267_v14  ;;  %v4307_v14 = vsub.f32 %v5943_v30, %v3910_v34 }
 0x170   : > { %v5946_v30 = vunpack.c.l.bf16 %v3483_v50  ;;  %5948 = vst [vmem:[#allocation45_spill] sm:$0xff] %v4331_v59  ;;  %v5950_v50 = vunpack.c.h.bf16 %v3494_v19 }
 0x171   : > { %v1025_v3 = vadd.f32 %v1024_v37, %v1023_v13  ;;  %v1030_v37 = vsel %vm427_vm0, %v861_v23, 0.0  ;;  %v865_v23 = vmul.f32 %v4275_v10, %v4275_v10 }
 0x172   : > { %v4347_v35 = vsub.f32 %v5950_v50, %v3910_v34 }
 0x173   : > { %v1027_v5 = vadd.f32 %v1026_v7, %v1025_v3  ;;  %v1032_v7 = vsel %vm427_vm0, %v862_v20, 0.0  ;;  %v866_v20 = vmul.f32 %v4283_v42, %v4283_v42  ;;  %v4323_v42 = vsub.f32 %v5946_v30, %v3910_v34 }
 0x174   : > { %v5949_v30 = vunpack.c.l.bf16 %v3494_v19  ;;  %5951 = vst [vmem:[#allocation46_spill] sm:$0xff] %v4347_v35  ;;  %v5953_v19 = vunpack.c.h.bf16 %v3505_v29 }
 0x175   : > { %v1029_v13 = vadd.f32 %v1028_v2, %v1027_v5  ;;  %v1034_v2 = vsel %vm427_vm0, %v863_v16, 0.0  ;;  %v867_v16 = vmul.f32 %v4291_v47, %v4291_v47 }
 0x176   : > { %v4363_v50 = vsub.f32 %v5953_v19, %v3910_v34 }
 0x177   : > { %v1031_v3 = vadd.f32 %v1030_v37, %v1029_v13  ;;  %v1036_v37 = vsel %vm427_vm0, %v864_v27, 0.0  ;;  %v868_v27 = vmul.f32 %v4299_v63, %v4299_v63  ;;  %v4339_v63 = vsub.f32 %v5949_v30, %v3910_v34 }
 0x178   : > { %v5952_v30 = vunpack.c.l.bf16 %v3505_v29  ;;  %5954 = vst [vmem:[#allocation47_spill] sm:$0xff] %v4363_v50  ;;  %v5956_v29 = vunpack.c.h.bf16 %v3516_v17 }
 0x179   : > { %v1033_v5 = vadd.f32 %v1032_v7, %v1031_v3  ;;  %v1038_v7 = vsel %vm427_vm0, %v865_v23, 0.0  ;;  %v869_v23 = vmul.f32 %v4307_v14, %v4307_v14 }
 0x17a   : > { %v4379_v19 = vsub.f32 %v5956_v29, %v3910_v34 }
 0x17b   : > { %v1035_v13 = vadd.f32 %v1034_v2, %v1033_v5  ;;  %v1040_v2 = vsel %vm427_vm0, %v866_v20, 0.0  ;;  %v870_v20 = vmul.f32 %v4315_v38, %v4315_v38  ;;  %v4355_v38 = vsub.f32 %v5952_v30, %v3910_v34 }
 0x17c   : > { %v5955_v30 = vunpack.c.l.bf16 %v3516_v17  ;;  %5957 = vst [vmem:[#allocation48_spill] sm:$0xff] %v4379_v19  ;;  %v5959_v17 = vunpack.c.h.bf16 %v3527_v8 }
 0x17d   : > { %v1037_v3 = vadd.f32 %v1036_v37, %v1035_v13  ;;  %v1042_v37 = vsel %vm427_vm0, %v867_v16, 0.0  ;;  %v871_v16 = vmul.f32 %v4323_v42, %v4323_v42 }
 0x17e   : > { %v4395_v29 = vsub.f32 %v5959_v17, %v3910_v34 }
 0x17f   : > { %v1039_v5 = vadd.f32 %v1038_v7, %v1037_v3  ;;  %v1044_v7 = vsel %vm427_vm0, %v868_v27, 0.0  ;;  %v872_v27 = vmul.f32 %v4331_v59, %v4331_v59  ;;  %v4371_v59 = vsub.f32 %v5955_v30, %v3910_v34 }
 0x180   : > { %v5958_v30 = vunpack.c.l.bf16 %v3527_v8  ;;  %5960 = vst [vmem:[#allocation49_spill] sm:$0xff] %v4395_v29  ;;  %v5962_v8 = vunpack.c.h.bf16 %v3538_v57 }
 0x181   : > { %v1041_v13 = vadd.f32 %v1040_v2, %v1039_v5  ;;  %v1046_v2 = vsel %vm427_vm0, %v869_v23, 0.0  ;;  %v873_v23 = vmul.f32 %v4339_v63, %v4339_v63 }
 0x182   : > { %v4411_v17 = vsub.f32 %v5962_v8, %v3910_v34 }
 0x183   : > { %v1043_v3 = vadd.f32 %v1042_v37, %v1041_v13  ;;  %v1048_v37 = vsel %vm427_vm0, %v870_v20, 0.0  ;;  %v874_v20 = vmul.f32 %v4347_v35, %v4347_v35  ;;  %v4387_v35 = vsub.f32 %v5958_v30, %v3910_v34 }
 0x184   : > { %v5961_v30 = vunpack.c.l.bf16 %v3538_v57  ;;  %5963 = vst [vmem:[#allocation50_spill] sm:$0xff] %v4411_v17  ;;  %v5965_v57 = vunpack.c.h.bf16 %v3549_v52 }
 0x185   : > { %v1045_v5 = vadd.f32 %v1044_v7, %v1043_v3  ;;  %v1050_v7 = vsel %vm427_vm0, %v871_v16, 0.0  ;;  %v875_v16 = vmul.f32 %v4355_v38, %v4355_v38 }
 0x186   : > { %v4427_v8 = vsub.f32 %v5965_v57, %v3910_v34 }
 0x187   : > { %v1047_v13 = vadd.f32 %v1046_v2, %v1045_v5  ;;  %v1052_v2 = vsel %vm427_vm0, %v872_v27, 0.0  ;;  %v876_v27 = vmul.f32 %v4363_v50, %v4363_v50  ;;  %v4403_v50 = vsub.f32 %v5961_v30, %v3910_v34 }
 0x188   : > { %v5964_v30 = vunpack.c.l.bf16 %v3549_v52  ;;  %5966 = vst [vmem:[#allocation51_spill] sm:$0xff] %v4427_v8  ;;  %v5968_v52 = vunpack.c.h.bf16 %v3560_v45 }
 0x189   : > { %v1049_v3 = vadd.f32 %v1048_v37, %v1047_v13  ;;  %v1054_v37 = vsel %vm427_vm0, %v873_v23, 0.0  ;;  %v877_v23 = vmul.f32 %v4371_v59, %v4371_v59 }
 0x18a   : > { %v4443_v57 = vsub.f32 %v5968_v52, %v3910_v34 }
 0x18b   : > { %v1051_v5 = vadd.f32 %v1050_v7, %v1049_v3  ;;  %v1056_v7 = vsel %vm427_vm0, %v874_v20, 0.0  ;;  %v878_v20 = vmul.f32 %v4379_v19, %v4379_v19  ;;  %v4419_v19 = vsub.f32 %v5964_v30, %v3910_v34 }
 0x18c   : > { %v5967_v30 = vunpack.c.l.bf16 %v3560_v45  ;;  %5969 = vst [vmem:[#allocation52_spill] sm:$0xff] %v4443_v57  ;;  %v5971_v45 = vunpack.c.h.bf16 %v3571_v40 }
 0x18d   : > { %v1053_v13 = vadd.f32 %v1052_v2, %v1051_v5  ;;  %v1058_v2 = vsel %vm427_vm0, %v875_v16, 0.0  ;;  %v879_v16 = vmul.f32 %v4387_v35, %v4387_v35 }
 0x18e   : > { %v4459_v52 = vsub.f32 %v5971_v45, %v3910_v34 }
 0x18f   : > { %v1055_v3 = vadd.f32 %v1054_v37, %v1053_v13  ;;  %v1060_v37 = vsel %vm427_vm0, %v876_v27, 0.0  ;;  %v880_v27 = vmul.f32 %v4395_v29, %v4395_v29  ;;  %v4435_v29 = vsub.f32 %v5967_v30, %v3910_v34 }
 0x190   : > { %v5970_v30 = vunpack.c.l.bf16 %v3571_v40  ;;  %5972 = vst [vmem:[#allocation53_spill] sm:$0xff] %v4459_v52  ;;  %v5974_v40 = vunpack.c.h.bf16 %v3582_v33 }
 0x191   : > { %v1057_v5 = vadd.f32 %v1056_v7, %v1055_v3  ;;  %v1062_v7 = vsel %vm427_vm0, %v877_v23, 0.0  ;;  %v881_v23 = vmul.f32 %v4403_v50, %v4403_v50 }
 0x192   : > { %v4475_v45 = vsub.f32 %v5974_v40, %v3910_v34 }
 0x193   : > { %v1059_v13 = vadd.f32 %v1058_v2, %v1057_v5  ;;  %v1064_v2 = vsel %vm427_vm0, %v878_v20, 0.0  ;;  %v882_v20 = vmul.f32 %v4411_v17, %v4411_v17  ;;  %v4451_v17 = vsub.f32 %v5970_v30, %v3910_v34 }
 0x194   : > { %v5973_v30 = vunpack.c.l.bf16 %v3582_v33  ;;  %5975 = vst [vmem:[#allocation54_spill] sm:$0xff] %v4475_v45  ;;  %v5977_v33 = vunpack.c.h.bf16 %v3593_v28 }
 0x195   : > { %v1061_v3 = vadd.f32 %v1060_v37, %v1059_v13  ;;  %v1066_v37 = vsel %vm427_vm0, %v879_v16, 0.0  ;;  %v883_v16 = vmul.f32 %v4419_v19, %v4419_v19 }
 0x196   : > { %v4491_v40 = vsub.f32 %v5977_v33, %v3910_v34 }
 0x197   : > { %v1063_v5 = vadd.f32 %v1062_v7, %v1061_v3  ;;  %v1068_v7 = vsel %vm427_vm0, %v880_v27, 0.0  ;;  %v884_v27 = vmul.f32 %v4427_v8, %v4427_v8  ;;  %v4467_v8 = vsub.f32 %v5973_v30, %v3910_v34 }
 0x198   : > { %v5976_v30 = vunpack.c.l.bf16 %v3593_v28  ;;  %5978 = vst [vmem:[#allocation55_spill] sm:$0xff] %v4491_v40  ;;  %v5980_v28 = vunpack.c.h.bf16 %v3604_v21 }
 0x199   : > { %v1065_v13 = vadd.f32 %v1064_v2, %v1063_v5  ;;  %v1070_v2 = vsel %vm427_vm0, %v881_v23, 0.0  ;;  %v885_v23 = vmul.f32 %v4435_v29, %v4435_v29 }
 0x19a   : > { %v4507_v33 = vsub.f32 %v5980_v28, %v3910_v34 }
 0x19b   : > { %v1067_v3 = vadd.f32 %v1066_v37, %v1065_v13  ;;  %v1072_v37 = vsel %vm427_vm0, %v882_v20, 0.0  ;;  %v886_v20 = vmul.f32 %v4443_v57, %v4443_v57  ;;  %v4483_v57 = vsub.f32 %v5976_v30, %v3910_v34 }
 0x19c   : > { %v5979_v30 = vunpack.c.l.bf16 %v3604_v21  ;;  %5981 = vst [vmem:[#allocation56_spill] sm:$0xff] %v4507_v33  ;;  %v5983_v21 = vunpack.c.h.bf16 %v3615_v15 }
 0x19d   : > { %v1069_v5 = vadd.f32 %v1068_v7, %v1067_v3  ;;  %v1074_v7 = vsel %vm427_vm0, %v883_v16, 0.0  ;;  %v887_v16 = vmul.f32 %v4451_v17, %v4451_v17 }
 0x19e   : > { %v4523_v28 = vsub.f32 %v5983_v21, %v3910_v34 }
 0x19f   : > { %v1071_v13 = vadd.f32 %v1070_v2, %v1069_v5  ;;  %v1076_v2 = vsel %vm427_vm0, %v884_v27, 0.0  ;;  %v888_v27 = vmul.f32 %v4459_v52, %v4459_v52  ;;  %v4499_v52 = vsub.f32 %v5979_v30, %v3910_v34 }
 0x1a0   : > { %v5982_v30 = vunpack.c.l.bf16 %v3615_v15  ;;  %5984 = vst [vmem:[#allocation57_spill] sm:$0xff] %v4523_v28  ;;  %v5986_v15 = vunpack.c.h.bf16 %v3626_v9 }
 0x1a1   : > { %v1073_v3 = vadd.f32 %v1072_v37, %v1071_v13  ;;  %v1078_v37 = vsel %vm427_vm0, %v885_v23, 0.0  ;;  %v889_v23 = vmul.f32 %v4467_v8, %v4467_v8 }
 0x1a2   : > { %v4539_v21 = vsub.f32 %v5986_v15, %v3910_v34 }
 0x1a3   : > { %v1075_v5 = vadd.f32 %v1074_v7, %v1073_v3  ;;  %v1080_v7 = vsel %vm427_vm0, %v886_v20, 0.0  ;;  %v890_v20 = vmul.f32 %v4475_v45, %v4475_v45  ;;  %v4515_v45 = vsub.f32 %v5982_v30, %v3910_v34 }
 0x1a4   : > { %v5985_v30 = vunpack.c.l.bf16 %v3626_v9  ;;  %5987 = vst [vmem:[#allocation58_spill] sm:$0xff] %v4539_v21  ;;  %v5989_v9 = vunpack.c.h.bf16 %v3637_v62 }
 0x1a5   : > { %v1077_v13 = vadd.f32 %v1076_v2, %v1075_v5  ;;  %v1082_v2 = vsel %vm427_vm0, %v887_v16, 0.0  ;;  %v891_v16 = vmul.f32 %v4483_v57, %v4483_v57 }
 0x1a6   : > { %v4555_v15 = vsub.f32 %v5989_v9, %v3910_v34 }
 0x1a7   : > { %v1079_v3 = vadd.f32 %v1078_v37, %v1077_v13  ;;  %v1084_v37 = vsel %vm427_vm0, %v888_v27, 0.0  ;;  %v892_v27 = vmul.f32 %v4491_v40, %v4491_v40  ;;  %v4531_v40 = vsub.f32 %v5985_v30, %v3910_v34 }
 0x1a8   : > { %v5988_v30 = vunpack.c.l.bf16 %v3637_v62  ;;  %5990 = vst [vmem:[#allocation59_spill] sm:$0xff] %v4555_v15  ;;  %v5992_v62 = vunpack.c.h.bf16 %v3648_v58 }
 0x1a9   : > { %v1081_v5 = vadd.f32 %v1080_v7, %v1079_v3  ;;  %v1086_v7 = vsel %vm427_vm0, %v889_v23, 0.0  ;;  %v893_v23 = vmul.f32 %v4499_v52, %v4499_v52 }
 0x1aa   : > { %v4571_v9 = vsub.f32 %v5992_v62, %v3910_v34 }
 0x1ab   : > { %v1083_v13 = vadd.f32 %v1082_v2, %v1081_v5  ;;  %v1088_v2 = vsel %vm427_vm0, %v890_v20, 0.0  ;;  %v894_v20 = vmul.f32 %v4507_v33, %v4507_v33  ;;  %v4547_v33 = vsub.f32 %v5988_v30, %v3910_v34 }
 0x1ac   : > { %v5991_v30 = vunpack.c.l.bf16 %v3648_v58  ;;  %5993 = vst [vmem:[#allocation60_spill] sm:$0xff] %v4571_v9  ;;  %v5995_v58 = vunpack.c.h.bf16 %v3659_v55 }
 0x1ad   : > { %v1085_v3 = vadd.f32 %v1084_v37, %v1083_v13  ;;  %v1090_v37 = vsel %vm427_vm0, %v891_v16, 0.0  ;;  %v895_v16 = vmul.f32 %v4515_v45, %v4515_v45 }
 0x1ae   : > { %v4587_v62 = vsub.f32 %v5995_v58, %v3910_v34 }
 0x1af   : > { %v1087_v5 = vadd.f32 %v1086_v7, %v1085_v3  ;;  %v1092_v7 = vsel %vm427_vm0, %v892_v27, 0.0  ;;  %v896_v27 = vmul.f32 %v4523_v28, %v4523_v28  ;;  %v4563_v28 = vsub.f32 %v5991_v30, %v3910_v34 }
 0x1b0   : > { %v5994_v30 = vunpack.c.l.bf16 %v3659_v55  ;;  %5996 = vst [vmem:[#allocation61_spill] sm:$0xff] %v4587_v62  ;;  %v5999_v55 = vunpack.c.h.bf16 %v3670_v51 }
 0x1b1   : > { %v1089_v13 = vadd.f32 %v1088_v2, %v1087_v5  ;;  %v1094_v2 = vsel %vm427_vm0, %v893_v23, 0.0  ;;  %v897_v23 = vmul.f32 %v4531_v40, %v4531_v40 }
 0x1b2   : > { %v4603_v58 = vsub.f32 %v5999_v55, %v3910_v34 }
 0x1b3   : > { %v1091_v3 = vadd.f32 %v1090_v37, %v1089_v13  ;;  %v1096_v37 = vsel %vm427_vm0, %v894_v20, 0.0  ;;  %v898_v20 = vmul.f32 %v4539_v21, %v4539_v21  ;;  %v4579_v21 = vsub.f32 %v5994_v30, %v3910_v34 }
 0x1b4   : > { %v5997_v30 = vunpack.c.l.bf16 %v3670_v51  ;;  %6000 = vst [vmem:[#allocation63_spill] sm:$0xff] %v4603_v58  ;;  %v6003_v51 = vunpack.c.h.bf16 %v3681_v48 }
 0x1b5   : > { %v1093_v5 = vadd.f32 %v1092_v7, %v1091_v3  ;;  %v1098_v7 = vsel %vm427_vm0, %v895_v16, 0.0  ;;  %v899_v16 = vmul.f32 %v4547_v33, %v4547_v33 }
 0x1b6   : > { %v4619_v55 = vsub.f32 %v6003_v51, %v3910_v34 }
 0x1b7   : > { %v1095_v13 = vadd.f32 %v1094_v2, %v1093_v5  ;;  %v1100_v2 = vsel %vm427_vm0, %v896_v27, 0.0  ;;  %v900_v27 = vmul.f32 %v4555_v15, %v4555_v15  ;;  %v4595_v15 = vsub.f32 %v5997_v30, %v3910_v34 }
 0x1b8   : > { %v6001_v30 = vunpack.c.l.bf16 %v3681_v48  ;;  %6004 = vst [vmem:[#allocation65_spill] sm:$0xff] %v4619_v55  ;;  %v6007_v48 = vunpack.c.h.bf16 %v3692_v44 }
 0x1b9   : > { %v1097_v3 = vadd.f32 %v1096_v37, %v1095_v13  ;;  %v1102_v37 = vsel %vm427_vm0, %v897_v23, 0.0  ;;  %v901_v23 = vmul.f32 %v4563_v28, %v4563_v28  ;;  %5998 = vst [vmem:[#allocation62_spill] sm:$0xff] %v4595_v15 }
 0x1ba   : > { %v4635_v51 = vsub.f32 %v6007_v48, %v3910_v34 }
 0x1bb   : > { %v1099_v5 = vadd.f32 %v1098_v7, %v1097_v3  ;;  %v1104_v7 = vsel %vm427_vm0, %v898_v20, 0.0  ;;  %v902_v20 = vmul.f32 %v4571_v9, %v4571_v9  ;;  %v4611_v9 = vsub.f32 %v6001_v30, %v3910_v34 }
 0x1bc   : > { %v6005_v30 = vunpack.c.l.bf16 %v3692_v44  ;;  %6008 = vst [vmem:[#allocation67_spill] sm:$0xff] %v4635_v51  ;;  %v6011_v44 = vunpack.c.h.bf16 %v3703_v41 }
 0x1bd   : > { %v1101_v13 = vadd.f32 %v1100_v2, %v1099_v5  ;;  %v1106_v2 = vsel %vm427_vm0, %v899_v16, 0.0  ;;  %v903_v16 = vmul.f32 %v4579_v21, %v4579_v21  ;;  %6002 = vst [vmem:[#allocation64_spill] sm:$0xff] %v4611_v9 }
 0x1be   : > { %v4651_v48 = vsub.f32 %v6011_v44, %v3910_v34 }
 0x1bf   : > { %v1103_v3 = vadd.f32 %v1102_v37, %v1101_v13  ;;  %v1108_v37 = vsel %vm427_vm0, %v900_v27, 0.0  ;;  %v904_v27 = vmul.f32 %v4587_v62, %v4587_v62  ;;  %v4627_v62 = vsub.f32 %v6005_v30, %v3910_v34 }
 0x1c0   : > { %v6009_v30 = vunpack.c.l.bf16 %v3703_v41  ;;  %6012 = vst [vmem:[#allocation69_spill] sm:$0xff] %v4651_v48 }
 0x1c1   : > { %v1105_v5 = vadd.f32 %v1104_v7, %v1103_v3  ;;  %v1110_v7 = vsel %vm427_vm0, %v901_v23, 0.0  ;;  %v905_v23 = vmul.f32 %v4595_v15, %v4595_v15  ;;  %6006 = vst [vmem:[#allocation66_spill] sm:$0xff] %v4627_v62 }
 0x1c3   : > { %v1107_v13 = vadd.f32 %v1106_v2, %v1105_v5  ;;  %v1112_v2 = vsel %vm427_vm0, %v902_v20, 0.0  ;;  %v906_v20 = vmul.f32 %v4603_v58, %v4603_v58  ;;  %v4643_v58 = vsub.f32 %v6009_v30, %v3910_v34  ;;  %v6013_v30 = vld [vmem:[#allocation2_spill] sm:$0xff] }
 0x1c4   : > { %v6016_v41 = vunpack.c.h.bf16 %v6013_v30 }
 0x1c5   : > { %v1109_v3 = vadd.f32 %v1108_v37, %v1107_v13  ;;  %v1114_v37 = vsel %vm427_vm0, %v903_v16, 0.0  ;;  %v907_v16 = vmul.f32 %v4611_v9, %v4611_v9  ;;  %6010 = vst [vmem:[#allocation68_spill] sm:$0xff] %v4643_v58 }
 0x1c6   : > { %v4667_v44 = vsub.f32 %v6016_v41, %v3910_v34 }
 0x1c7   : > { %v1111_v5 = vadd.f32 %v1110_v7, %v1109_v3  ;;  %v1116_v7 = vsel %vm427_vm0, %v904_v27, 0.0  ;;  %v908_v27 = vmul.f32 %v4619_v55, %v4619_v55  ;;  %v6014_v55 = vunpack.c.l.bf16 %v6013_v30 }
 0x1c8   : > { %6017 = vst [vmem:[#allocation70_spill] sm:$0xff] %v4667_v44 }
 0x1c9   : > { %v1113_v13 = vadd.f32 %v1112_v2, %v1111_v5  ;;  %v1118_v2 = vsel %vm427_vm0, %v905_v23, 0.0  ;;  %v909_v23 = vmul.f32 %v4627_v62, %v4627_v62  ;;  %v4659_v9 = vsub.f32 %v6014_v55, %v3910_v34  ;;  %v6018_v55 = vld [vmem:[#allocation3_spill] sm:$0xff] }
 0x1ca   : > { %v6021_v30 = vunpack.c.h.bf16 %v6018_v55 }
 0x1cb   : > { %v1115_v3 = vadd.f32 %v1114_v37, %v1113_v13  ;;  %v1120_v37 = vsel %vm427_vm0, %v906_v20, 0.0  ;;  %v910_v20 = vmul.f32 %v4635_v51, %v4635_v51  ;;  %6015 = vst [vmem:[#allocation2_spill] sm:$0xff] %v4659_v9  ;;  %v6019_v51 = vunpack.c.l.bf16 %v6018_v55 }
 0x1cc   : > { %v4683_v41 = vsub.f32 %v6021_v30, %v3910_v34 }
 0x1cd   : > { %v1117_v5 = vadd.f32 %v1116_v7, %v1115_v3  ;;  %v1122_v7 = vsel %vm427_vm0, %v907_v16, 0.0  ;;  %v911_v16 = vmul.f32 %v4643_v58, %v4643_v58  ;;  %v4675_v62 = vsub.f32 %v6019_v51, %v3910_v34  ;;  %v6023_v51 = vld [vmem:[#allocation4_spill] sm:$0xff] }
 0x1ce   : > { %6022 = vst [vmem:[#allocation71_spill] sm:$0xff] %v4683_v41  ;;  %v6026_v55 = vunpack.c.h.bf16 %v6023_v51 }
 0x1cf   : > { %v1119_v13 = vadd.f32 %v1118_v2, %v1117_v5  ;;  %v1124_v2 = vsel %vm427_vm0, %v908_v27, 0.0  ;;  %v912_v27 = vmul.f32 %v4651_v48, %v4651_v48  ;;  %6020 = vst [vmem:[#allocation3_spill] sm:$0xff] %v4675_v62  ;;  %v6024_v48 = vunpack.c.l.bf16 %v6023_v51 }
 0x1d0   : > { %v4699_v30 = vsub.f32 %v6026_v55, %v3910_v34 }
 0x1d1   : > { %v1121_v3 = vadd.f32 %v1120_v37, %v1119_v13  ;;  %v1126_v37 = vsel %vm427_vm0, %v909_v23, 0.0  ;;  %v913_v23 = vmul.f32 %v4659_v9, %v4659_v9  ;;  %v4691_v58 = vsub.f32 %v6024_v48, %v3910_v34  ;;  %v6028_v48 = vld [vmem:[#allocation5_spill] sm:$0xff] }
 0x1d2   : > { %6027 = vst [vmem:[#allocation72_spill] sm:$0xff] %v4699_v30  ;;  %v6031_v51 = vunpack.c.h.bf16 %v6028_v48 }
 0x1d3   : > { %v1123_v5 = vadd.f32 %v1122_v7, %v1121_v3  ;;  %v1128_v7 = vsel %vm427_vm0, %v910_v20, 0.0  ;;  %v914_v20 = vmul.f32 %v4667_v44, %v4667_v44  ;;  %6025 = vst [vmem:[#allocation4_spill] sm:$0xff] %v4691_v58  ;;  %v6029_v44 = vunpack.c.l.bf16 %v6028_v48 }
 0x1d4   : > { %v4715_v55 = vsub.f32 %v6031_v51, %v3910_v34 }
 0x1d5   : > { %v1125_v13 = vadd.f32 %v1124_v2, %v1123_v5  ;;  %v1130_v2 = vsel %vm427_vm0, %v911_v16, 0.0  ;;  %v915_v16 = vmul.f32 %v4675_v62, %v4675_v62  ;;  %v4707_v9 = vsub.f32 %v6029_v44, %v3910_v34  ;;  %v6033_v44 = vld [vmem:[#allocation6_spill] sm:$0xff] }
 0x1d6   : > { %6032 = vst [vmem:[#allocation73_spill] sm:$0xff] %v4715_v55  ;;  %v6036_v48 = vunpack.c.h.bf16 %v6033_v44 }
 0x1d7   : > { %v1127_v3 = vadd.f32 %v1126_v37, %v1125_v13  ;;  %v1132_v37 = vsel %vm427_vm0, %v912_v27, 0.0  ;;  %v916_v27 = vmul.f32 %v4683_v41, %v4683_v41  ;;  %6030 = vst [vmem:[#allocation5_spill] sm:$0xff] %v4707_v9  ;;  %v6034_v41 = vunpack.c.l.bf16 %v6033_v44 }
 0x1d8   : > { %v4731_v51 = vsub.f32 %v6036_v48, %v3910_v34 }
 0x1d9   : > { %v1129_v5 = vadd.f32 %v1128_v7, %v1127_v3  ;;  %v1134_v7 = vsel %vm427_vm0, %v913_v23, 0.0  ;;  %v917_v23 = vmul.f32 %v4691_v58, %v4691_v58  ;;  %v4723_v62 = vsub.f32 %v6034_v41, %v3910_v34  ;;  %v6038_v41 = vld [vmem:[#allocation7_spill] sm:$0xff] }
 0x1da   : > { %6037 = vst [vmem:[#allocation74_spill] sm:$0xff] %v4731_v51  ;;  %v6041_v44 = vunpack.c.h.bf16 %v6038_v41 }
 0x1db   : > { %v1131_v13 = vadd.f32 %v1130_v2, %v1129_v5  ;;  %v1136_v2 = vsel %vm427_vm0, %v914_v20, 0.0  ;;  %v918_v20 = vmul.f32 %v4699_v30, %v4699_v30  ;;  %6035 = vst [vmem:[#allocation6_spill] sm:$0xff] %v4723_v62  ;;  %v6039_v30 = vunpack.c.l.bf16 %v6038_v41 }
 0x1dc   : > { %v4747_v48 = vsub.f32 %v6041_v44, %v3910_v34 }
 0x1dd   : > { %v1133_v3 = vadd.f32 %v1132_v37, %v1131_v13  ;;  %v1138_v37 = vsel %vm427_vm0, %v915_v16, 0.0  ;;  %v919_v16 = vmul.f32 %v4707_v9, %v4707_v9  ;;  %v4739_v58 = vsub.f32 %v6039_v30, %v3910_v34  ;;  %v6043_v30 = vld [vmem:[#allocation8_spill] sm:$0xff] }
 0x1de   : > { %6042 = vst [vmem:[#allocation75_spill] sm:$0xff] %v4747_v48  ;;  %v6046_v41 = vunpack.c.h.bf16 %v6043_v30 }
 0x1df   : > { %v1135_v5 = vadd.f32 %v1134_v7, %v1133_v3  ;;  %v1140_v7 = vsel %vm427_vm0, %v916_v27, 0.0  ;;  %v920_v27 = vmul.f32 %v4715_v55, %v4715_v55  ;;  %6040 = vst [vmem:[#allocation7_spill] sm:$0xff] %v4739_v58  ;;  %v6044_v55 = vunpack.c.l.bf16 %v6043_v30 }
 0x1e0   : > { %v4763_v44 = vsub.f32 %v6046_v41, %v3910_v34 }
 0x1e1   : > { %v1137_v13 = vadd.f32 %v1136_v2, %v1135_v5  ;;  %v1142_v2 = vsel %vm427_vm0, %v917_v23, 0.0  ;;  %v921_v23 = vmul.f32 %v4723_v62, %v4723_v62  ;;  %v4755_v9 = vsub.f32 %v6044_v55, %v3910_v34  ;;  %v6048_v55 = vld [vmem:[#allocation9_spill] sm:$0xff] }
 0x1e2   : > { %6047 = vst [vmem:[#allocation76_spill] sm:$0xff] %v4763_v44  ;;  %v6051_v30 = vunpack.c.h.bf16 %v6048_v55 }
 0x1e3   : > { %v1139_v3 = vadd.f32 %v1138_v37, %v1137_v13  ;;  %v1144_v37 = vsel %vm427_vm0, %v918_v20, 0.0  ;;  %v922_v20 = vmul.f32 %v4731_v51, %v4731_v51  ;;  %6045 = vst [vmem:[#allocation8_spill] sm:$0xff] %v4755_v9  ;;  %v6049_v51 = vunpack.c.l.bf16 %v6048_v55 }
 0x1e4   : > { %v4779_v41 = vsub.f32 %v6051_v30, %v3910_v34 }
 0x1e5   : > { %v1141_v5 = vadd.f32 %v1140_v7, %v1139_v3  ;;  %v1146_v7 = vsel %vm427_vm0, %v919_v16, 0.0  ;;  %v923_v16 = vmul.f32 %v4739_v58, %v4739_v58  ;;  %v4771_v62 = vsub.f32 %v6049_v51, %v3910_v34  ;;  %v6053_v51 = vld [vmem:[#allocation10_spill] sm:$0xff] }
 0x1e6   : > { %6052 = vst [vmem:[#allocation77_spill] sm:$0xff] %v4779_v41  ;;  %v6056_v55 = vunpack.c.h.bf16 %v6053_v51 }
 0x1e7   : > { %v1143_v13 = vadd.f32 %v1142_v2, %v1141_v5  ;;  %v1148_v2 = vsel %vm427_vm0, %v920_v27, 0.0  ;;  %v924_v27 = vmul.f32 %v4747_v48, %v4747_v48  ;;  %6050 = vst [vmem:[#allocation9_spill] sm:$0xff] %v4771_v62  ;;  %v6054_v48 = vunpack.c.l.bf16 %v6053_v51 }
 0x1e8   : > { %v4795_v30 = vsub.f32 %v6056_v55, %v3910_v34 }
 0x1e9   : > { %v1145_v3 = vadd.f32 %v1144_v37, %v1143_v13  ;;  %v1150_v37 = vsel %vm427_vm0, %v921_v23, 0.0  ;;  %v925_v23 = vmul.f32 %v4755_v9, %v4755_v9  ;;  %v4787_v58 = vsub.f32 %v6054_v48, %v3910_v34  ;;  %v6058_v48 = vld [vmem:[#allocation11_spill] sm:$0xff] }
 0x1ea   : > { %6057 = vst [vmem:[#allocation78_spill] sm:$0xff] %v4795_v30  ;;  %v6061_v51 = vunpack.c.h.bf16 %v6058_v48 }
 0x1eb   : > { %v1147_v5 = vadd.f32 %v1146_v7, %v1145_v3  ;;  %v1152_v7 = vsel %vm427_vm0, %v922_v20, 0.0  ;;  %v926_v20 = vmul.f32 %v4763_v44, %v4763_v44  ;;  %6055 = vst [vmem:[#allocation10_spill] sm:$0xff] %v4787_v58  ;;  %v6059_v44 = vunpack.c.l.bf16 %v6058_v48 }
 0x1ec   : > { %v4811_v55 = vsub.f32 %v6061_v51, %v3910_v34 }
 0x1ed   : > { %v1149_v13 = vadd.f32 %v1148_v2, %v1147_v5  ;;  %v1154_v2 = vsel %vm427_vm0, %v923_v16, 0.0  ;;  %v927_v16 = vmul.f32 %v4771_v62, %v4771_v62  ;;  %v4803_v9 = vsub.f32 %v6059_v44, %v3910_v34  ;;  %v6063_v44 = vld [vmem:[#allocation12_spill] sm:$0xff] }
 0x1ee   : > { %6062 = vst [vmem:[#allocation79_spill] sm:$0xff] %v4811_v55  ;;  %v6066_v48 = vunpack.c.h.bf16 %v6063_v44 }
 0x1ef   : > { %v1151_v3 = vadd.f32 %v1150_v37, %v1149_v13  ;;  %v1156_v37 = vsel %vm427_vm0, %v924_v27, 0.0  ;;  %v928_v27 = vmul.f32 %v4779_v41, %v4779_v41  ;;  %6060 = vst [vmem:[#allocation11_spill] sm:$0xff] %v4803_v9  ;;  %v6064_v41 = vunpack.c.l.bf16 %v6063_v44 }
 0x1f0   : > { %v4827_v51 = vsub.f32 %v6066_v48, %v3910_v34 }
 0x1f1   : > { %v1153_v5 = vadd.f32 %v1152_v7, %v1151_v3  ;;  %v1158_v7 = vsel %vm427_vm0, %v925_v23, 0.0  ;;  %v929_v23 = vmul.f32 %v4787_v58, %v4787_v58  ;;  %v4819_v62 = vsub.f32 %v6064_v41, %v3910_v34  ;;  %v6068_v41 = vld [vmem:[#allocation13_spill] sm:$0xff] }
 0x1f2   : > { %6067 = vst [vmem:[#allocation80_spill] sm:$0xff] %v4827_v51  ;;  %v6071_v44 = vunpack.c.h.bf16 %v6068_v41 }
 0x1f3   : > { %v1155_v13 = vadd.f32 %v1154_v2, %v1153_v5  ;;  %v1160_v2 = vsel %vm427_vm0, %v926_v20, 0.0  ;;  %v930_v20 = vmul.f32 %v4795_v30, %v4795_v30  ;;  %6065 = vst [vmem:[#allocation12_spill] sm:$0xff] %v4819_v62  ;;  %v6069_v30 = vunpack.c.l.bf16 %v6068_v41 }
 0x1f4   : > { %v4843_v48 = vsub.f32 %v6071_v44, %v3910_v34 }
 0x1f5   : > { %v1157_v3 = vadd.f32 %v1156_v37, %v1155_v13  ;;  %v1162_v37 = vsel %vm427_vm0, %v927_v16, 0.0  ;;  %v931_v16 = vmul.f32 %v4803_v9, %v4803_v9  ;;  %v4835_v58 = vsub.f32 %v6069_v30, %v3910_v34  ;;  %v6073_v30 = vld [vmem:[#allocation14_spill] sm:$0xff] }
 0x1f6   : > { %6072 = vst [vmem:[#allocation81_spill] sm:$0xff] %v4843_v48  ;;  %v6076_v41 = vunpack.c.h.bf16 %v6073_v30 }
 0x1f7   : > { %v1159_v5 = vadd.f32 %v1158_v7, %v1157_v3  ;;  %v1164_v7 = vsel %vm427_vm0, %v928_v27, 0.0  ;;  %v932_v27 = vmul.f32 %v4811_v55, %v4811_v55  ;;  %6070 = vst [vmem:[#allocation13_spill] sm:$0xff] %v4835_v58  ;;  %v6074_v55 = vunpack.c.l.bf16 %v6073_v30 }
 0x1f8   : > { %v4859_v44 = vsub.f32 %v6076_v41, %v3910_v34 }
 0x1f9   : > { %v1161_v13 = vadd.f32 %v1160_v2, %v1159_v5  ;;  %v1166_v2 = vsel %vm427_vm0, %v929_v23, 0.0  ;;  %v933_v23 = vmul.f32 %v4819_v62, %v4819_v62  ;;  %v4851_v9 = vsub.f32 %v6074_v55, %v3910_v34  ;;  %v6078_v55 = vld [vmem:[#allocation15_spill] sm:$0xff] }
 0x1fa   : > { %6077 = vst [vmem:[#allocation82_spill] sm:$0xff] %v4859_v44  ;;  %v6081_v30 = vunpack.c.h.bf16 %v6078_v55 }
 0x1fb   : > { %v1163_v3 = vadd.f32 %v1162_v37, %v1161_v13  ;;  %v1168_v37 = vsel %vm427_vm0, %v930_v20, 0.0  ;;  %v934_v20 = vmul.f32 %v4827_v51, %v4827_v51  ;;  %6075 = vst [vmem:[#allocation14_spill] sm:$0xff] %v4851_v9  ;;  %v6079_v51 = vunpack.c.l.bf16 %v6078_v55 }
 0x1fc   : > { %v4875_v41 = vsub.f32 %v6081_v30, %v3910_v34 }
 0x1fd   : > { %v1165_v5 = vadd.f32 %v1164_v7, %v1163_v3  ;;  %v1170_v7 = vsel %vm427_vm0, %v931_v16, 0.0  ;;  %v935_v16 = vmul.f32 %v4835_v58, %v4835_v58  ;;  %v4867_v62 = vsub.f32 %v6079_v51, %v3910_v34  ;;  %v6083_v51 = vld [vmem:[#allocation16_spill] sm:$0xff] }
 0x1fe   : > { %6082 = vst [vmem:[#allocation83_spill] sm:$0xff] %v4875_v41  ;;  %v6086_v55 = vunpack.c.h.bf16 %v6083_v51 }
 0x1ff   : > { %v1167_v13 = vadd.f32 %v1166_v2, %v1165_v5  ;;  %v1172_v2 = vsel %vm427_vm0, %v932_v27, 0.0  ;;  %v936_v27 = vmul.f32 %v4843_v48, %v4843_v48  ;;  %6080 = vst [vmem:[#allocation15_spill] sm:$0xff] %v4867_v62  ;;  %v6084_v48 = vunpack.c.l.bf16 %v6083_v51 }
 0x200   : > { %v4891_v30 = vsub.f32 %v6086_v55, %v3910_v34 }
 0x201   : > { %v1169_v3 = vadd.f32 %v1168_v37, %v1167_v13  ;;  %v1174_v37 = vsel %vm427_vm0, %v933_v23, 0.0  ;;  %v937_v23 = vmul.f32 %v4851_v9, %v4851_v9  ;;  %v4883_v58 = vsub.f32 %v6084_v48, %v3910_v34  ;;  %v6088_v48 = vld [vmem:[#allocation17_spill] sm:$0xff] }
 0x202   : > { %6087 = vst [vmem:[#allocation84_spill] sm:$0xff] %v4891_v30  ;;  %v6091_v51 = vunpack.c.h.bf16 %v6088_v48 }
 0x203   : > { %v1171_v5 = vadd.f32 %v1170_v7, %v1169_v3  ;;  %v1176_v7 = vsel %vm427_vm0, %v934_v20, 0.0  ;;  %v938_v20 = vmul.f32 %v4859_v44, %v4859_v44  ;;  %6085 = vst [vmem:[#allocation16_spill] sm:$0xff] %v4883_v58  ;;  %v6089_v44 = vunpack.c.l.bf16 %v6088_v48 }
 0x204   : > { %v4907_v55 = vsub.f32 %v6091_v51, %v3910_v34  ;;  %v6095_v48 = vunpack.c.h.bf16 %v3897_v56 }
 0x205   : > { %v1173_v13 = vadd.f32 %v1172_v2, %v1171_v5  ;;  %v1178_v2 = vsel %vm427_vm0, %v935_v16, 0.0  ;;  %v939_v16 = vmul.f32 %v4867_v62, %v4867_v62  ;;  %v4899_v9 = vsub.f32 %v6089_v44, %v3910_v34 }
 0x206   : > { %6092 = vst [vmem:[#allocation85_spill] sm:$0xff] %v4907_v55  ;;  %v6093_v44 = vunpack.c.l.bf16 %v3897_v56  ;;  %v4923_v51 = vsub.f32 %v6095_v48, %v3910_v34 }
 0x207   : > { %v1175_v3 = vadd.f32 %v1174_v37, %v1173_v13  ;;  %v1180_v37 = vsel %vm427_vm0, %v936_v27, 0.0  ;;  %v940_v27 = vmul.f32 %v4875_v41, %v4875_v41  ;;  %6090 = vst [vmem:[#allocation17_spill] sm:$0xff] %v4899_v9 }
 0x208   : > { %v4915_v41 = vsub.f32 %v6093_v44, %v3910_v34  ;;  %6096 = vst [vmem:[#allocation87_spill] sm:$0xff] %v4923_v51 }
 0x209   : > { %v1177_v5 = vadd.f32 %v1176_v7, %v1175_v3  ;;  %v1182_v7 = vsel %vm427_vm0, %v937_v23, 0.0  ;;  %v941_v23 = vmul.f32 %v4883_v58, %v4883_v58 }
 0x20a   : > { %6094 = vst [vmem:[#allocation86_spill] sm:$0xff] %v4915_v41  ;;  %v945_v44 = vmul.f32 %v4915_v41, %v4915_v41 }
 0x20b   : > { %v1179_v13 = vadd.f32 %v1178_v2, %v1177_v5  ;;  %v1184_v2 = vsel %vm427_vm0, %v938_v20, 0.0  ;;  %v942_v20 = vmul.f32 %v4891_v30, %v4891_v30 }
 0x20c   : > { %v1198_v34 = vsel %vm427_vm0, %v945_v44, 0.0 }
 0x20d   : > { %v1181_v3 = vadd.f32 %v1180_v37, %v1179_v13  ;;  %v1186_v37 = vsel %vm427_vm0, %v939_v16, 0.0  ;;  %v943_v16 = vmul.f32 %v4899_v9, %v4899_v9 }
 0x20f   : > { %v1183_v5 = vadd.f32 %v1182_v7, %v1181_v3  ;;  %v1188_v7 = vsel %vm427_vm0, %v940_v27, 0.0  ;;  %v944_v27 = vmul.f32 %v4907_v55, %v4907_v55  ;;  %v1194_v30 = vsel %vm427_vm0, %v943_v16, 0.0 }
 0x211   : > { %v1185_v13 = vadd.f32 %v1184_v2, %v1183_v5  ;;  %v1190_v2 = vsel %vm427_vm0, %v941_v23, 0.0  ;;  %v946_v23 = vmul.f32 %v4923_v51, %v4923_v51  ;;  %v1213_v51 = vlaneseq }
 0x213   : > { %v1187_v3 = vadd.f32 %v1186_v37, %v1185_v13  ;;  %v1192_v37 = vsel %vm427_vm0, %v942_v20, 0.0  ;;  %v1200_v48 = vsel %vm427_vm0, %v946_v23, 0.0  ;;  %v1214_v15 = vshrl.u32 %v1213_v51, 7  ;;  %v6098_v51 = vld [vmem:[#allocation19_spill] sm:$0xff] }
 0x215   : > { %v1189_v5 = vadd.f32 %v1188_v7, %v1187_v3  ;;  %v1196_v7 = vsel %vm427_vm0, %v944_v27, 0.0 }
 0x217   : > { %v1191_v13 = vadd.f32 %v1190_v2, %v1189_v5 }
 0x219   : > { %v1193_v9 = vadd.f32 %v1192_v37, %v1191_v13 }
 0x21b   : > { %v1195_v56 = vadd.f32 %v1194_v30, %v1193_v9  ;;  %v1211_v9 = vld [vmem:[%s5602_s1] sm:$0x1]  ;;  %v1215_v30 = vsub.s32 0, %v1214_v15  ;;  %v6099_v15 = vld [vmem:[#allocation20_spill] sm:$0xff] }
 0x21d   : > { %v1197_v3 = vadd.f32 %v1196_v7, %v1195_v56 }
 0x21f   : > { %v1199_v55 = vadd.f32 %v1198_v34, %v1197_v3  ;;  %v6100_v34 = vld [vmem:[#allocation21_spill] sm:$0xff] }
 0x221   : > { %v1201_v20 = vadd.f32 %v1200_v48, %v1199_v55 }
 0x223   : > { %v1202_v2 = vrot.slane %v1201_v20, 4 }
 0x225   : > { %v1203_v5 = vadd.f32 %v1202_v2, %v1201_v20  ;;  %v6101_v2 = vld [vmem:[#allocation22_spill] sm:$0xff] }
 0x227   : > { %v1204_v58 = vrot.slane %v1203_v5, 2 }
 0x229   : > { %v1205_v41 = vadd.f32 %v1204_v58, %v1203_v5  ;;  %v4944_v58 = vld [vmem:[%s5603_s2] ss:$0 sm:$0xff] }
 0x22b   : > { %v1206_v62 = vrot.slane %v1205_v41, 1 }
 0x22d   : > { %v1207_v16 = vadd.f32 %v1206_v62, %v1205_v41  ;;  %v6097_v41 = vld [vmem:[#allocation18_spill] sm:$0xff] }
 0x22f   : > { %v1208_v37 = vmul.f32 0.0009765625, %v1207_v16 }
 0x231   : > { %v1209_v13 = vadd.f32 1e-05, %v1208_v37 }
 0x233   : > { %3157 = vrsqrt.f32 %v1209_v13 }
 0x240   : > { %v3158_v27 = vpop.eup %3157 }
 0x241   : > { %v1212_v44 = vmul.f32 %v3158_v27, %v1211_v9 }
 0x243   : > { %v4939_v23 = vrot.slane %v1212_v44, %v1215_v30 }
 0x245   : > { %v1217_v62 = vmul.f32 %v4939_v23, %v3915_v6  ;;  %v1218_v55 = vmul.f32 %v4939_v23, %v6097_v41  ;;  %v1219_v7 = vmul.f32 %v4939_v23, %v6098_v51  ;;  %v1220_v56 = vmul.f32 %v4939_v23, %v6099_v15 }
 0x246   : > { %v1221_v3 = vmul.f32 %v4939_v23, %v6100_v34  ;;  %v1222_v48 = vmul.f32 %v4939_v23, %v3946_v1  ;;  %v1223_v20 = vmul.f32 %v4939_v23, %v3953_v26  ;;  %v1224_v6 = vmul.f32 %v4939_v23, %v6101_v2 }
 0x247   : > { %v1352_v5 = vadd.f32 %v4944_v58, %v1217_v62  ;;  %v1353_v16 = vadd.f32 %v4944_v58, %v1218_v55  ;;  %v1354_v37 = vadd.f32 %v4944_v58, %v1219_v7  ;;  %v1355_v13 = vadd.f32 %v4944_v58, %v1220_v56 }
 0x248   : > { %v1356_v9 = vadd.f32 %v4944_v58, %v1221_v3  ;;  %v1357_v30 = vadd.f32 %v4944_v58, %v1222_v48  ;;  %v1358_v1 = vadd.f32 %v4944_v58, %v1223_v20  ;;  %v1359_v26 = vadd.f32 %v4944_v58, %v1224_v6 }
 0x249   : > { %vm1480_vm2 = vcmp.ge.f32.partialorder %v1352_v5, 0.0  ;;  %v1608_v27 = vmul.f32 0.2, %v1352_v5  ;;  %vm1481_vm3 = vcmp.ge.f32.partialorder %v1353_v16, 0.0  ;;  %v1609_v44 = vmul.f32 0.2, %v1353_v16 }
 0x24a   : > { %vm1482_vm4 = vcmp.ge.f32.partialorder %v1354_v37, 0.0  ;;  %v1610_v62 = vmul.f32 0.2, %v1354_v37  ;;  %vm1483_vm5 = vcmp.ge.f32.partialorder %v1355_v13, 0.0  ;;  %v1611_v41 = vmul.f32 0.2, %v1355_v13 }
 0x24b   : > { %v1736_v55 = vsel %vm1480_vm2, %v1352_v5, %v1608_v27  ;;  %v1737_v51 = vsel %vm1481_vm3, %v1353_v16, %v1609_v44  ;;  %vm1484_vm6 = vcmp.ge.f32.partialorder %v1356_v9, 0.0  ;;  %v1612_v7 = vmul.f32 0.2, %v1356_v9 }
 0x24c   : > { %v2702_v15 = vpack.c.bf16 %v1736_v55, %v1736_v55  ;;  %v2703_v56 = vpack.c.bf16 %v1737_v51, %v1737_v51  ;;  %v1738_v34 = vsel %vm1482_vm4, %v1354_v37, %v1610_v62  ;;  %v1739_v3 = vsel %vm1483_vm5, %v1355_v13, %v1611_v41  ;;  %v6103_v55 = vld [vmem:[#allocation24_spill] sm:$0xff] }
 0x24d   : > { %v2704_v48 = vpack.c.bf16 %v1738_v34, %v1738_v34  ;;  %v2705_v20 = vpack.c.bf16 %v1739_v3, %v1739_v3  ;;  %v1740_v2 = vsel %vm1484_vm6, %v1356_v9, %v1612_v7  ;;  %vm1485_vm7 = vcmp.ge.f32.partialorder %v1357_v30, 0.0  ;;  %v6102_v9 = vld [vmem:[#allocation23_spill] sm:$0xff] }
 0x24e   : > { %2377 = vst.msk [vmem:[%s4975_s24] sm:$0xf] %vm2376_vm1, %v2702_v15  ;;  %2378 = vst.msk [vmem:[%s4975_s24 + $0x4] sm:$0xf] %vm2376_vm1, %v2703_v56  ;;  %v2706_v6 = vpack.c.bf16 %v1740_v2, %v1740_v2  ;;  %v1613_v5 = vmul.f32 0.2, %v1357_v30  ;;  %v1225_v13 = vmul.f32 %v4939_v23, %v3971_v0  ;;  %v1226_v27 = vmul.f32 %v4939_v23, %v6102_v9 }
 0x24f   : > { %vm1486_vm8 = vcmp.ge.f32.partialorder %v1358_v1, 0.0  ;;  %v1614_v16 = vmul.f32 0.2, %v1358_v1  ;;  %2379 = vst.msk [vmem:[%s4975_s24 + $0x8] sm:$0xf] %vm2376_vm1, %v2704_v48  ;;  %vm1487_vm9 = vcmp.ge.f32.partialorder %v1359_v26, 0.0  ;;  %v1227_v41 = vmul.f32 %v4939_v23, %v3987_v54 }
 0x250   : > { %2380 = vst.msk [vmem:[%s4975_s24 + $0xc] sm:$0xf] %vm2376_vm1, %v2705_v20  ;;  %v1615_v37 = vmul.f32 0.2, %v1359_v26  ;;  %2381 = vst.msk [vmem:[%s4975_s24 + $0x10] sm:$0xf] %vm2376_vm1, %v2706_v6  ;;  %v1741_v44 = vsel %vm1485_vm7, %v1357_v30, %v1613_v5  ;;  %v1228_v51 = vmul.f32 %v4939_v23, %v6103_v55  ;;  %v1360_v0 = vadd.f32 %v4944_v58, %v1225_v13 }
 0x251   : > { %v1742_v62 = vsel %vm1486_vm8, %v1358_v1, %v1614_v16  ;;  %v2707_v7 = vpack.c.bf16 %v1741_v44, %v1741_v44  ;;  %v1361_v3 = vadd.f32 %v4944_v58, %v1226_v27  ;;  %v1362_v48 = vadd.f32 %v4944_v58, %v1227_v41  ;;  %v6104_v20 = vld [vmem:[#allocation25_spill] sm:$0xff] }
 0x252   : > { %v2708_v15 = vpack.c.bf16 %v1742_v62, %v1742_v62  ;;  %v1743_v56 = vsel %vm1487_vm9, %v1359_v26, %v1615_v37  ;;  %v1363_v30 = vadd.f32 %v4944_v58, %v1228_v51  ;;  %vm1488_vm10 = vcmp.ge.f32.partialorder %v1360_v0, 0.0 }
 0x253   : > { %v2709_v34 = vpack.c.bf16 %v1743_v56, %v1743_v56  ;;  %2382 = vst.msk [vmem:[%s4975_s24 + $0x14] sm:$0xf] %vm2376_vm1, %v2707_v7  ;;  %v1616_v54 = vmul.f32 0.2, %v1360_v0  ;;  %v1229_v1 = vmul.f32 %v4939_v23, %v4003_v4  ;;  %v1230_v26 = vmul.f32 %v4939_v23, %v6104_v20  ;;  %v6105_v56 = vld [vmem:[#allocation26_spill] sm:$0xff]  ;;  %v6107_v20 = vld [vmem:[#allocation28_spill] sm:$0xff] }
 0x254   : > { %2383 = vst.msk [vmem:[%s4975_s24 + $0x18] sm:$0xf] %vm2376_vm1, %v2708_v15  ;;  %vm1489_vm11 = vcmp.ge.f32.partialorder %v1361_v3, 0.0  ;;  %v1617_v2 = vmul.f32 0.2, %v1361_v3  ;;  %vm1490_vm12 = vcmp.ge.f32.partialorder %v1362_v48, 0.0  ;;  %v1231_v15 = vmul.f32 %v4939_v23, %v4019_v31 }
 0x255   : > { %2384 = vst.msk [vmem:[%s4975_s24 + $0x1c] sm:$0xf] %vm2376_vm1, %v2709_v34  ;;  %v1618_v6 = vmul.f32 0.2, %v1362_v48  ;;  %v1744_v5 = vsel %vm1488_vm10, %v1360_v0, %v1616_v54  ;;  %vm1491_vm13 = vcmp.ge.f32.partialorder %v1363_v30, 0.0  ;;  %v1364_v37 = vadd.f32 %v4944_v58, %v1229_v1 }
 0x256   : > { %v1619_v16 = vmul.f32 0.2, %v1363_v30  ;;  %v2710_v13 = vpack.c.bf16 %v1744_v5, %v1744_v5  ;;  %v1745_v9 = vsel %vm1489_vm11, %v1361_v3, %v1617_v2  ;;  %v1365_v27 = vadd.f32 %v4944_v58, %v1230_v26  ;;  %v6106_v3 = vld [vmem:[#allocation27_spill] sm:$0xff] }
 0x257   : > { %v1746_v4 = vsel %vm1490_vm12, %v1362_v48, %v1618_v6  ;;  %v2711_v44 = vpack.c.bf16 %v1745_v9, %v1745_v9  ;;  %vm1492_vm14 = vcmp.ge.f32.partialorder %v1364_v37, 0.0  ;;  %v1620_v51 = vmul.f32 0.2, %v1364_v37 }
 0x258   : > { %v2712_v62 = vpack.c.bf16 %v1746_v4, %v1746_v4  ;;  %v1747_v41 = vsel %vm1491_vm13, %v1363_v30, %v1619_v16  ;;  %2385 = vst.msk [vmem:[%s4975_s24 + $0x20] sm:$0xf] %vm2376_vm1, %v2710_v13  ;;  %vm1493_vm15 = vcmp.ge.f32.partialorder %v1365_v27, 0.0  ;;  %v1621_v7 = vmul.f32 0.2, %v1365_v27 }
 0x259   : > { %v2713_v55 = vpack.c.bf16 %v1747_v41, %v1747_v41  ;;  %2386 = vst.msk [vmem:[%s4975_s24 + $0x24] sm:$0xf] %vm2376_vm1, %v2711_v44  ;;  %v1232_v0 = vmul.f32 %v4939_v23, %v6105_v56  ;;  %v1233_v34 = vmul.f32 %v4939_v23, %v4035_v11  ;;  %v1234_v48 = vmul.f32 %v4939_v23, %v6106_v3 }
 0x25a   : > { %2387 = vst.msk [vmem:[%s4975_s24 + $0x28] sm:$0xf] %vm2376_vm1, %v2712_v62  ;;  %v1748_v30 = vsel %vm1492_vm14, %v1364_v37, %v1620_v51  ;;  %v1749_v54 = vsel %vm1493_vm15, %v1365_v27, %v1621_v7  ;;  %v1235_v1 = vmul.f32 %v4939_v23, %v4051_v18  ;;  %v1236_v31 = vmul.f32 %v4939_v23, %v6107_v20 }
 0x25b   : > { %2388 = vst.msk [vmem:[%s4975_s24 + $0x2c] sm:$0xf] %vm2376_vm1, %v2713_v55  ;;  %v2714_v26 = vpack.c.bf16 %v1748_v30, %v1748_v30  ;;  %v2715_v2 = vpack.c.bf16 %v1749_v54, %v1749_v54  ;;  %v1366_v6 = vadd.f32 %v4944_v58, %v1231_v15  ;;  %v1367_v11 = vadd.f32 %v4944_v58, %v1232_v0  ;;  %v6108_v54 = vld [vmem:[#allocation29_spill] sm:$0xff] }
 0x25c   : > { %v1368_v5 = vadd.f32 %v4944_v58, %v1233_v34  ;;  %v1369_v16 = vadd.f32 %v4944_v58, %v1234_v48  ;;  %v1370_v13 = vadd.f32 %v4944_v58, %v1235_v1  ;;  %v1371_v37 = vadd.f32 %v4944_v58, %v1236_v31  ;;  %v6109_v31 = vld [vmem:[#allocation30_spill] sm:$0xff] }
 0x25d   : > { %2389 = vst.msk [vmem:[%s4975_s24 + $0x30] sm:$0xf] %vm2376_vm1, %v2714_v26  ;;  %2390 = vst.msk [vmem:[%s4975_s24 + $0x34] sm:$0xf] %vm2376_vm1, %v2715_v2  ;;  %vm1494_vm0 = vcmp.ge.f32.partialorder %v1366_v6, 0.0  ;;  %vm1495_vm2 = vcmp.ge.f32.partialorder %v1367_v11, 0.0  ;;  %v1237_v30 = vmul.f32 %v4939_v23, %v4067_v25  ;;  %v1238_v1 = vmul.f32 %v4939_v23, %v6108_v54 }
 0x25e   : > { %v1622_v18 = vmul.f32 0.2, %v1366_v6  ;;  %v1623_v9 = vmul.f32 0.2, %v1367_v11  ;;  %vm1496_vm3 = vcmp.ge.f32.partialorder %v1368_v5, 0.0  ;;  %vm1497_vm4 = vcmp.ge.f32.partialorder %v1369_v16, 0.0 }
 0x25f   : > { %v1624_v4 = vmul.f32 0.2, %v1368_v5  ;;  %v1625_v27 = vmul.f32 0.2, %v1369_v16  ;;  %vm1498_vm5 = vcmp.ge.f32.partialorder %v1370_v13, 0.0  ;;  %vm1499_vm6 = vcmp.ge.f32.partialorder %v1371_v37, 0.0 }
 0x260   : > { %v1750_v44 = vsel %vm1494_vm0, %v1366_v6, %v1622_v18  ;;  %v1751_v62 = vsel %vm1495_vm2, %v1367_v11, %v1623_v9  ;;  %v1626_v41 = vmul.f32 0.2, %v1370_v13  ;;  %v1627_v48 = vmul.f32 0.2, %v1371_v37  ;;  %v6110_v6 = vld [vmem:[#allocation31_spill] sm:$0xff]  ;;  %v6111_v54 = vld [vmem:[#allocation32_spill] sm:$0xff] }
 0x261   : > { %v2716_v55 = vpack.c.bf16 %v1750_v44, %v1750_v44  ;;  %v2717_v51 = vpack.c.bf16 %v1751_v62, %v1751_v62  ;;  %v1752_v7 = vsel %vm1496_vm3, %v1368_v5, %v1624_v4  ;;  %v1753_v15 = vsel %vm1497_vm4, %v1369_v16, %v1625_v27 }
 0x262   : > { %v2718_v56 = vpack.c.bf16 %v1752_v7, %v1752_v7  ;;  %v2719_v0 = vpack.c.bf16 %v1753_v15, %v1753_v15  ;;  %v1754_v34 = vsel %vm1498_vm5, %v1370_v13, %v1626_v41  ;;  %v1239_v20 = vmul.f32 %v4939_v23, %v4083_v32 }
 0x263   : > { %2391 = vst.msk [vmem:[%s4975_s24 + $0x38] sm:$0xf] %vm2376_vm1, %v2716_v55  ;;  %2392 = vst.msk [vmem:[%s4975_s24 + $0x3c] sm:$0xf] %vm2376_vm1, %v2717_v51  ;;  %v2720_v3 = vpack.c.bf16 %v1754_v34, %v1754_v34  ;;  %v1240_v26 = vmul.f32 %v4939_v23, %v6109_v31  ;;  %v1241_v2 = vmul.f32 %v4939_v23, %v4099_v39 }
 0x264   : > { %2393 = vst.msk [vmem:[%s4975_s24 + $0x40] sm:$0xf] %vm2376_vm1, %v2718_v56  ;;  %2394 = vst.msk [vmem:[%s4975_s24 + $0x44] sm:$0xf] %vm2376_vm1, %v2719_v0  ;;  %v1242_v25 = vmul.f32 %v4939_v23, %v6110_v6  ;;  %v1755_v11 = vsel %vm1499_vm6, %v1371_v37, %v1627_v48  ;;  %v1372_v5 = vadd.f32 %v4944_v58, %v1237_v30 }
 0x265   : > { %2395 = vst.msk [vmem:[%s4975_s24 + $0x48] sm:$0xf] %vm2376_vm1, %v2720_v3  ;;  %v1373_v16 = vadd.f32 %v4944_v58, %v1238_v1  ;;  %v1243_v32 = vmul.f32 %v4939_v23, %v4115_v46  ;;  %v2721_v13 = vpack.c.bf16 %v1755_v11, %v1755_v11  ;;  %v1374_v18 = vadd.f32 %v4944_v58, %v1239_v20 }
 0x266   : > { %v1375_v9 = vadd.f32 %v4944_v58, %v1240_v26  ;;  %v1376_v39 = vadd.f32 %v4944_v58, %v1241_v2  ;;  %vm1500_vm7 = vcmp.ge.f32.partialorder %v1372_v5, 0.0  ;;  %v1628_v4 = vmul.f32 0.2, %v1372_v5  ;;  %v6112_v26 = vld [vmem:[#allocation33_spill] sm:$0xff] }
 0x267   : > { %vm1501_vm8 = vcmp.ge.f32.partialorder %v1373_v16, 0.0  ;;  %v1629_v27 = vmul.f32 0.2, %v1373_v16  ;;  %2396 = vst.msk [vmem:[%s4975_s24 + $0x4c] sm:$0xf] %vm2376_vm1, %v2721_v13  ;;  %vm1502_vm9 = vcmp.ge.f32.partialorder %v1374_v18, 0.0  ;;  %v1377_v3 = vadd.f32 %v4944_v58, %v1242_v25 }
 0x268   : > { %v1630_v37 = vmul.f32 0.2, %v1374_v18  ;;  %vm1503_vm10 = vcmp.ge.f32.partialorder %v1375_v9, 0.0  ;;  %v1631_v44 = vmul.f32 0.2, %v1375_v9  ;;  %v1756_v46 = vsel %vm1500_vm7, %v1372_v5, %v1628_v4  ;;  %v6113_v13 = vld [vmem:[#allocation34_spill] sm:$0xff] }
 0x269   : > { %v1757_v62 = vsel %vm1501_vm8, %v1373_v16, %v1629_v27  ;;  %vm1504_vm11 = vcmp.ge.f32.partialorder %v1376_v39, 0.0  ;;  %v1632_v41 = vmul.f32 0.2, %v1376_v39  ;;  %v2722_v55 = vpack.c.bf16 %v1756_v46, %v1756_v46 }
 0x26a   : > { %v2723_v51 = vpack.c.bf16 %v1757_v62, %v1757_v62  ;;  %v1758_v7 = vsel %vm1502_vm9, %v1374_v18, %v1630_v37  ;;  %v1759_v15 = vsel %vm1503_vm10, %v1375_v9, %v1631_v44  ;;  %v1378_v30 = vadd.f32 %v4944_v58, %v1243_v32 }
 0x26b   : > { %v2724_v56 = vpack.c.bf16 %v1758_v7, %v1758_v7  ;;  %v2725_v0 = vpack.c.bf16 %v1759_v15, %v1759_v15  ;;  %v1760_v34 = vsel %vm1504_vm11, %v1376_v39, %v1632_v41  ;;  %2397 = vst.msk [vmem:[%s4975_s24 + $0x50] sm:$0xf] %vm2376_vm1, %v2722_v55  ;;  %v1244_v1 = vmul.f32 %v4939_v23, %v6111_v54 }
 0x26c   : > { %2398 = vst.msk [vmem:[%s4975_s24 + $0x54] sm:$0xf] %vm2376_vm1, %v2723_v51  ;;  %v2726_v48 = vpack.c.bf16 %v1760_v34, %v1760_v34  ;;  %v1245_v20 = vmul.f32 %v4939_v23, %v4131_v53  ;;  %vm1505_vm12 = vcmp.ge.f32.partialorder %v1377_v3, 0.0  ;;  %v1633_v31 = vmul.f32 0.2, %v1377_v3 }
 0x26d   : > { %2399 = vst.msk [vmem:[%s4975_s24 + $0x58] sm:$0xf] %vm2376_vm1, %v2724_v56  ;;  %2400 = vst.msk [vmem:[%s4975_s24 + $0x5c] sm:$0xf] %vm2376_vm1, %v2725_v0  ;;  %v1246_v2 = vmul.f32 %v4939_v23, %v6112_v26  ;;  %v1247_v6 = vmul.f32 %v4939_v23, %v4147_v60  ;;  %vm1506_vm13 = vcmp.ge.f32.partialorder %v1378_v30, 0.0  ;;  %v1379_v11 = vadd.f32 %v4944_v58, %v1244_v1  ;;  %v6114_v0 = vld [vmem:[#allocation35_spill] sm:$0xff] }
 0x26e   : > { %2401 = vst.msk [vmem:[%s4975_s24 + $0x60] sm:$0xf] %vm2376_vm1, %v2726_v48  ;;  %v1634_v25 = vmul.f32 0.2, %v1378_v30  ;;  %v1380_v53 = vadd.f32 %v4944_v58, %v1245_v20  ;;  %v1761_v5 = vsel %vm1505_vm12, %v1377_v3, %v1633_v31  ;;  %v1248_v18 = vmul.f32 %v4939_v23, %v6113_v13  ;;  %v6115_v20 = vld [vmem:[#allocation36_spill] sm:$0xff] }
 0x26f   : > { %v1381_v16 = vadd.f32 %v4944_v58, %v1246_v2  ;;  %v1382_v32 = vadd.f32 %v4944_v58, %v1247_v6  ;;  %v2727_v9 = vpack.c.bf16 %v1761_v5, %v1761_v5  ;;  %vm1507_vm14 = vcmp.ge.f32.partialorder %v1379_v11, 0.0  ;;  %v6116_v6 = vld [vmem:[#allocation37_spill] sm:$0xff] }
 0x270   : > { %v1762_v60 = vsel %vm1506_vm13, %v1378_v30, %v1634_v25  ;;  %v1635_v39 = vmul.f32 0.2, %v1379_v11  ;;  %vm1508_vm15 = vcmp.ge.f32.partialorder %v1380_v53, 0.0  ;;  %v1636_v27 = vmul.f32 0.2, %v1380_v53 }
 0x271   : > { %v2728_v4 = vpack.c.bf16 %v1762_v60, %v1762_v60  ;;  %vm1509_vm0 = vcmp.ge.f32.partialorder %v1381_v16, 0.0  ;;  %2402 = vst.msk [vmem:[%s4975_s24 + $0x64] sm:$0xf] %vm2376_vm1, %v2727_v9  ;;  %v1637_v44 = vmul.f32 0.2, %v1381_v16  ;;  %vm1510_vm2 = vcmp.ge.f32.partialorder %v1382_v32, 0.0 }
 0x272   : > { %v1763_v37 = vsel %vm1507_vm14, %v1379_v11, %v1635_v39  ;;  %v1638_v46 = vmul.f32 0.2, %v1382_v32  ;;  %v1764_v41 = vsel %vm1508_vm15, %v1380_v53, %v1636_v27  ;;  %v1383_v55 = vadd.f32 %v4944_v58, %v1248_v18  ;;  %v6117_v9 = vld [vmem:[#allocation38_spill] sm:$0xff] }
 0x273   : > { %2403 = vst.msk [vmem:[%s4975_s24 + $0x68] sm:$0xf] %vm2376_vm1, %v2728_v4  ;;  %v2729_v62 = vpack.c.bf16 %v1763_v37, %v1763_v37  ;;  %v1249_v51 = vmul.f32 %v4939_v23, %v4163_v12  ;;  %v2730_v7 = vpack.c.bf16 %v1764_v41, %v1764_v41  ;;  %v1765_v15 = vsel %vm1509_vm0, %v1381_v16, %v1637_v44 }
 0x274   : > { %v1766_v56 = vsel %vm1510_vm2, %v1382_v32, %v1638_v46  ;;  %v1250_v34 = vmul.f32 %v4939_v23, %v6114_v0  ;;  %v2731_v3 = vpack.c.bf16 %v1765_v15, %v1765_v15  ;;  %vm1511_vm3 = vcmp.ge.f32.partialorder %v1383_v55, 0.0 }
 0x275   : > { %2404 = vst.msk [vmem:[%s4975_s24 + $0x6c] sm:$0xf] %vm2376_vm1, %v2729_v62  ;;  %v2732_v48 = vpack.c.bf16 %v1766_v56, %v1766_v56  ;;  %v1639_v30 = vmul.f32 0.2, %v1383_v55  ;;  %2405 = vst.msk [vmem:[%s4975_s24 + $0x70] sm:$0xf] %vm2376_vm1, %v2730_v7  ;;  %v1384_v54 = vadd.f32 %v4944_v58, %v1249_v51  ;;  %v1251_v12 = vmul.f32 %v4939_v23, %v4179_v24 }
 0x276   : > { %v1385_v1 = vadd.f32 %v4944_v58, %v1250_v34  ;;  %v1252_v31 = vmul.f32 %v4939_v23, %v6115_v20  ;;  %2406 = vst.msk [vmem:[%s4975_s24 + $0x74] sm:$0xf] %vm2376_vm1, %v2731_v3  ;;  %v1253_v2 = vmul.f32 %v4939_v23, %v4195_v36  ;;  %v1254_v25 = vmul.f32 %v4939_v23, %v6116_v6  ;;  %v6118_v20 = vld [vmem:[#allocation39_spill] sm:$0xff]  ;;  %v6119_v6 = vld [vmem:[#allocation40_spill] sm:$0xff] }
 0x277   : > { %2407 = vst.msk [vmem:[%s4975_s24 + $0x78] sm:$0xf] %vm2376_vm1, %v2732_v48  ;;  %v1767_v26 = vsel %vm1511_vm3, %v1383_v55, %v1639_v30  ;;  %v1255_v11 = vmul.f32 %v4939_v23, %v4211_v49  ;;  %vm1512_vm4 = vcmp.ge.f32.partialorder %v1384_v54, 0.0  ;;  %v1640_v24 = vmul.f32 0.2, %v1384_v54 }
 0x278   : > { %v2733_v53 = vpack.c.bf16 %v1767_v26, %v1767_v26  ;;  %vm1513_vm5 = vcmp.ge.f32.partialorder %v1385_v1, 0.0  ;;  %v1641_v5 = vmul.f32 0.2, %v1385_v1  ;;  %v1386_v16 = vadd.f32 %v4944_v58, %v1251_v12 }
 0x279   : > { %v1387_v32 = vadd.f32 %v4944_v58, %v1252_v31  ;;  %v1388_v13 = vadd.f32 %v4944_v58, %v1253_v2  ;;  %v1768_v36 = vsel %vm1512_vm4, %v1384_v54, %v1640_v24  ;;  %v1389_v18 = vadd.f32 %v4944_v58, %v1254_v25  ;;  %v6120_v24 = vld [vmem:[#allocation41_spill] sm:$0xff] }
 0x27a   : > { %2408 = vst.msk [vmem:[%s4975_s24 + $0x7c] sm:$0xf] %vm2376_vm1, %v2733_v53  ;;  %v1390_v49 = vadd.f32 %v4944_v58, %v1255_v11  ;;  %v1256_v60 = vmul.f32 %v4939_v23, %v6117_v9  ;;  %v2734_v39 = vpack.c.bf16 %v1768_v36, %v1768_v36  ;;  %v1769_v4 = vsel %vm1513_vm5, %v1385_v1, %v1641_v5 }
 0x27b   : > { %vm1514_vm6 = vcmp.ge.f32.partialorder %v1386_v16, 0.0  ;;  %v1642_v27 = vmul.f32 0.2, %v1386_v16  ;;  %v2735_v37 = vpack.c.bf16 %v1769_v4, %v1769_v4  ;;  %vm1515_vm7 = vcmp.ge.f32.partialorder %v1387_v32, 0.0 }
 0x27c   : > { %v1643_v44 = vmul.f32 0.2, %v1387_v32  ;;  %vm1516_vm8 = vcmp.ge.f32.partialorder %v1388_v13, 0.0  ;;  %2409 = vst.msk [vmem:[%s4975_s24 + $0x80] sm:$0xf] %vm2376_vm1, %v2734_v39  ;;  %vm1517_vm9 = vcmp.ge.f32.partialorder %v1389_v18, 0.0  ;;  %v1391_v34 = vadd.f32 %v4944_v58, %v1256_v60 }
 0x27d   : > { %v1770_v46 = vsel %vm1514_vm6, %v1386_v16, %v1642_v27  ;;  %v1644_v62 = vmul.f32 0.2, %v1388_v13  ;;  %v1645_v41 = vmul.f32 0.2, %v1389_v18  ;;  %2410 = vst.msk [vmem:[%s4975_s24 + $0x84] sm:$0xf] %vm2376_vm1, %v2735_v37  ;;  %v1257_v54 = vmul.f32 %v4939_v23, %v4227_v61 }
 0x27e   : > { %v2736_v55 = vpack.c.bf16 %v1770_v46, %v1770_v46  ;;  %v1771_v51 = vsel %vm1515_vm7, %v1387_v32, %v1643_v44  ;;  %vm1518_vm10 = vcmp.ge.f32.partialorder %v1390_v49, 0.0  ;;  %v1646_v7 = vmul.f32 0.2, %v1390_v49 }
 0x27f   : > { %v2737_v15 = vpack.c.bf16 %v1771_v51, %v1771_v51  ;;  %v1772_v56 = vsel %vm1516_vm8, %v1388_v13, %v1644_v62  ;;  %v1773_v0 = vsel %vm1517_vm9, %v1389_v18, %v1645_v41  ;;  %vm1519_vm11 = vcmp.ge.f32.partialorder %v1391_v34, 0.0 }
 0x280   : > { %2411 = vst.msk [vmem:[%s4975_s24 + $0x88] sm:$0xf] %vm2376_vm1, %v2736_v55  ;;  %v2738_v3 = vpack.c.bf16 %v1772_v56, %v1772_v56  ;;  %v2739_v48 = vpack.c.bf16 %v1773_v0, %v1773_v0  ;;  %v1774_v30 = vsel %vm1518_vm10, %v1390_v49, %v1646_v7  ;;  %v1647_v12 = vmul.f32 0.2, %v1391_v34 }
 0x281   : > { %2412 = vst.msk [vmem:[%s4975_s24 + $0x8c] sm:$0xf] %vm2376_vm1, %v2737_v15  ;;  %v2740_v1 = vpack.c.bf16 %v1774_v30, %v1774_v30  ;;  %v1258_v31 = vmul.f32 %v4939_v23, %v6118_v20  ;;  %v1392_v26 = vadd.f32 %v4944_v58, %v1257_v54  ;;  %v1259_v2 = vmul.f32 %v4939_v23, %v4243_v22  ;;  %v6121_v15 = vld [vmem:[#allocation42_spill] sm:$0xff] }
 0x282   : > { %2413 = vst.msk [vmem:[%s4975_s24 + $0x90] sm:$0xf] %vm2376_vm1, %v2738_v3  ;;  %2414 = vst.msk [vmem:[%s4975_s24 + $0x94] sm:$0xf] %vm2376_vm1, %v2739_v48  ;;  %v1260_v61 = vmul.f32 %v4939_v23, %v6119_v6  ;;  %v1261_v25 = vmul.f32 %v4939_v23, %v4259_v43  ;;  %v1775_v11 = vsel %vm1519_vm11, %v1391_v34, %v1647_v12  ;;  %v6122_v48 = vld [vmem:[#allocation43_spill] sm:$0xff] }
 0x283   : > { %2415 = vst.msk [vmem:[%s4975_s24 + $0x98] sm:$0xf] %vm2376_vm1, %v2740_v1  ;;  %v1393_v53 = vadd.f32 %v4944_v58, %v1258_v31  ;;  %v1262_v5 = vmul.f32 %v4939_v23, %v6120_v24  ;;  %v1263_v16 = vmul.f32 %v4939_v23, %v4275_v10  ;;  %v2741_v32 = vpack.c.bf16 %v1775_v11, %v1775_v11 }
 0x284   : > { %vm1520_vm12 = vcmp.ge.f32.partialorder %v1392_v26, 0.0  ;;  %v1648_v22 = vmul.f32 0.2, %v1392_v26  ;;  %v1394_v13 = vadd.f32 %v4944_v58, %v1259_v2  ;;  %v1395_v43 = vadd.f32 %v4944_v58, %v1260_v61 }
 0x285   : > { %vm1521_vm13 = vcmp.ge.f32.partialorder %v1393_v53, 0.0  ;;  %v1649_v36 = vmul.f32 0.2, %v1393_v53  ;;  %v1396_v18 = vadd.f32 %v4944_v58, %v1261_v25  ;;  %2416 = vst.msk [vmem:[%s4975_s24 + $0x9c] sm:$0xf] %vm2376_vm1, %v2741_v32  ;;  %v1397_v10 = vadd.f32 %v4944_v58, %v1262_v5 }
 0x286   : > { %v1776_v49 = vsel %vm1520_vm12, %v1392_v26, %v1648_v22  ;;  %vm1522_vm14 = vcmp.ge.f32.partialorder %v1394_v13, 0.0  ;;  %v1650_v9 = vmul.f32 0.2, %v1394_v13  ;;  %vm1523_vm15 = vcmp.ge.f32.partialorder %v1395_v43, 0.0  ;;  %v6123_v26 = vld [vmem:[#allocation44_spill] sm:$0xff] }
 0x287   : > { %v2742_v60 = vpack.c.bf16 %v1776_v49, %v1776_v49  ;;  %v1777_v39 = vsel %vm1521_vm13, %v1393_v53, %v1649_v36  ;;  %v1651_v4 = vmul.f32 0.2, %v1395_v43  ;;  %vm1524_vm0 = vcmp.ge.f32.partialorder %v1396_v18, 0.0  ;;  %v6124_v36 = vld [vmem:[#allocation45_spill] sm:$0xff] }
 0x288   : > { %v2743_v27 = vpack.c.bf16 %v1777_v39, %v1777_v39  ;;  %v1778_v37 = vsel %vm1522_vm14, %v1394_v13, %v1650_v9  ;;  %v1652_v44 = vmul.f32 0.2, %v1396_v18  ;;  %vm1525_vm2 = vcmp.ge.f32.partialorder %v1397_v10, 0.0 }
 0x289   : > { %2417 = vst.msk [vmem:[%s4975_s24 + $0xa0] sm:$0xf] %vm2376_vm1, %v2742_v60  ;;  %v2744_v46 = vpack.c.bf16 %v1778_v37, %v1778_v37  ;;  %v1779_v62 = vsel %vm1523_vm15, %v1395_v43, %v1651_v4  ;;  %v1653_v41 = vmul.f32 0.2, %v1397_v10  ;;  %v1398_v7 = vadd.f32 %v4944_v58, %v1263_v16 }
 0x28a   : > { %2418 = vst.msk [vmem:[%s4975_s24 + $0xa4] sm:$0xf] %vm2376_vm1, %v2743_v27  ;;  %v2745_v55 = vpack.c.bf16 %v1779_v62, %v1779_v62  ;;  %v1780_v51 = vsel %vm1524_vm0, %v1396_v18, %v1652_v44  ;;  %v1264_v56 = vmul.f32 %v4939_v23, %v6121_v15  ;;  %v1265_v3 = vmul.f32 %v4939_v23, %v4291_v47 }
 0x28b   : > { %2419 = vst.msk [vmem:[%s4975_s24 + $0xa8] sm:$0xf] %vm2376_vm1, %v2744_v46  ;;  %v2746_v0 = vpack.c.bf16 %v1780_v51, %v1780_v51  ;;  %v1781_v34 = vsel %vm1525_vm2, %v1397_v10, %v1653_v41  ;;  %v1266_v30 = vmul.f32 %v4939_v23, %v6122_v48  ;;  %vm1526_vm3 = vcmp.ge.f32.partialorder %v1398_v7, 0.0  ;;  %v6125_v46 = vld [vmem:[#allocation46_spill] sm:$0xff] }
 0x28c   : > { %2420 = vst.msk [vmem:[%s4975_s24 + $0xac] sm:$0xf] %vm2376_vm1, %v2745_v55  ;;  %v2747_v54 = vpack.c.bf16 %v1781_v34, %v1781_v34  ;;  %v1654_v1 = vmul.f32 0.2, %v1398_v7  ;;  %v1399_v12 = vadd.f32 %v4944_v58, %v1264_v56  ;;  %v1400_v20 = vadd.f32 %v4944_v58, %v1265_v3  ;;  %v6126_v3 = vld [vmem:[#allocation47_spill] sm:$0xff] }
 0x28d   : > { %2421 = vst.msk [vmem:[%s4975_s24 + $0xb0] sm:$0xf] %vm2376_vm1, %v2746_v0  ;;  %v1401_v31 = vadd.f32 %v4944_v58, %v1266_v30  ;;  %v1267_v47 = vmul.f32 %v4939_v23, %v4307_v14  ;;  %v1268_v2 = vmul.f32 %v4939_v23, %v6123_v26  ;;  %v1269_v25 = vmul.f32 %v4939_v23, %v4323_v42  ;;  %v6127_v30 = vld [vmem:[#allocation48_spill] sm:$0xff] }
 0x28e   : > { %2422 = vst.msk [vmem:[%s4975_s24 + $0xb4] sm:$0xf] %vm2376_vm1, %v2747_v54  ;;  %v1782_v6 = vsel %vm1526_vm3, %v1398_v7, %v1654_v1  ;;  %vm1527_vm4 = vcmp.ge.f32.partialorder %v1399_v12, 0.0  ;;  %v1655_v61 = vmul.f32 0.2, %v1399_v12  ;;  %vm1528_vm5 = vcmp.ge.f32.partialorder %v1400_v20, 0.0 }
 0x28f   : > { %v2748_v11 = vpack.c.bf16 %v1782_v6, %v1782_v6  ;;  %v1656_v53 = vmul.f32 0.2, %v1400_v20  ;;  %vm1529_vm6 = vcmp.ge.f32.partialorder %v1401_v31, 0.0  ;;  %v1657_v5 = vmul.f32 0.2, %v1401_v31 }
 0x290   : > { %v1783_v24 = vsel %vm1527_vm4, %v1399_v12, %v1655_v61  ;;  %v1402_v14 = vadd.f32 %v4944_v58, %v1267_v47  ;;  %v1403_v16 = vadd.f32 %v4944_v58, %v1268_v2  ;;  %v1404_v13 = vadd.f32 %v4944_v58, %v1269_v25 }
 0x291   : > { %2423 = vst.msk [vmem:[%s4975_s24 + $0xb8] sm:$0xf] %vm2376_vm1, %v2748_v11  ;;  %v2749_v32 = vpack.c.bf16 %v1783_v24, %v1783_v24  ;;  %v1784_v22 = vsel %vm1528_vm5, %v1400_v20, %v1656_v53  ;;  %v1270_v42 = vmul.f32 %v4939_v23, %v6124_v36  ;;  %v1785_v18 = vsel %vm1529_vm6, %v1401_v31, %v1657_v5 }
 0x292   : > { %v2750_v43 = vpack.c.bf16 %v1784_v22, %v1784_v22  ;;  %vm1530_vm7 = vcmp.ge.f32.partialorder %v1402_v14, 0.0  ;;  %v1658_v49 = vmul.f32 0.2, %v1402_v14  ;;  %v2751_v9 = vpack.c.bf16 %v1785_v18, %v1785_v18  ;;  %v6128_v22 = vld [vmem:[#allocation49_spill] sm:$0xff] }
 0x293   : > { %2424 = vst.msk [vmem:[%s4975_s24 + $0xbc] sm:$0xf] %vm2376_vm1, %v2749_v32  ;;  %vm1531_vm8 = vcmp.ge.f32.partialorder %v1403_v16, 0.0  ;;  %v1659_v10 = vmul.f32 0.2, %v1403_v16  ;;  %vm1532_vm9 = vcmp.ge.f32.partialorder %v1404_v13, 0.0  ;;  %v1405_v4 = vadd.f32 %v4944_v58, %v1270_v42 }
 0x294   : > { %2425 = vst.msk [vmem:[%s4975_s24 + $0xc0] sm:$0xf] %vm2376_vm1, %v2750_v43  ;;  %v1786_v60 = vsel %vm1530_vm7, %v1402_v14, %v1658_v49  ;;  %v1660_v39 = vmul.f32 0.2, %v1404_v13  ;;  %v1271_v27 = vmul.f32 %v4939_v23, %v4339_v63  ;;  %2426 = vst.msk [vmem:[%s4975_s24 + $0xc4] sm:$0xf] %vm2376_vm1, %v2751_v9  ;;  %v1272_v62 = vmul.f32 %v4939_v23, %v6125_v46 }
 0x295   : > { %v2752_v37 = vpack.c.bf16 %v1786_v60, %v1786_v60  ;;  %v1787_v44 = vsel %vm1531_vm8, %v1403_v16, %v1659_v10  ;;  %v1273_v41 = vmul.f32 %v4939_v23, %v4355_v38  ;;  %vm1533_vm10 = vcmp.ge.f32.partialorder %v1405_v4, 0.0  ;;  %v6129_v42 = vld [vmem:[#allocation50_spill] sm:$0xff] }
 0x296   : > { %v2753_v55 = vpack.c.bf16 %v1787_v44, %v1787_v44  ;;  %v1788_v51 = vsel %vm1532_vm9, %v1404_v13, %v1660_v39  ;;  %v1661_v7 = vmul.f32 0.2, %v1405_v4  ;;  %v1406_v63 = vadd.f32 %v4944_v58, %v1271_v27  ;;  %v6130_v44 = vld [vmem:[#allocation51_spill] sm:$0xff] }
 0x297   : > { %2427 = vst.msk [vmem:[%s4975_s24 + $0xc8] sm:$0xf] %vm2376_vm1, %v2752_v37  ;;  %v2754_v15 = vpack.c.bf16 %v1788_v51, %v1788_v51  ;;  %v1407_v56 = vadd.f32 %v4944_v58, %v1272_v62  ;;  %v1408_v0 = vadd.f32 %v4944_v58, %v1273_v41  ;;  %v1274_v38 = vmul.f32 %v4939_v23, %v6126_v3 }
 0x298   : > { %2428 = vst.msk [vmem:[%s4975_s24 + $0xcc] sm:$0xf] %vm2376_vm1, %v2753_v55  ;;  %v1789_v34 = vsel %vm1533_vm10, %v1405_v4, %v1661_v7  ;;  %v1275_v48 = vmul.f32 %v4939_v23, %v4371_v59  ;;  %v1276_v54 = vmul.f32 %v4939_v23, %v6127_v30  ;;  %vm1534_vm11 = vcmp.ge.f32.partialorder %v1406_v63, 0.0 }
 0x299   : > { %2429 = vst.msk [vmem:[%s4975_s24 + $0xd0] sm:$0xf] %vm2376_vm1, %v2754_v15  ;;  %v2755_v1 = vpack.c.bf16 %v1789_v34, %v1789_v34  ;;  %v1662_v12 = vmul.f32 0.2, %v1406_v63  ;;  %vm1535_vm12 = vcmp.ge.f32.partialorder %v1407_v56, 0.0  ;;  %vm1536_vm13 = vcmp.ge.f32.partialorder %v1408_v0, 0.0 }
 0x29a   : > { %v1663_v20 = vmul.f32 0.2, %v1407_v56  ;;  %v1664_v31 = vmul.f32 0.2, %v1408_v0  ;;  %v1409_v47 = vadd.f32 %v4944_v58, %v1274_v38  ;;  %v1410_v59 = vadd.f32 %v4944_v58, %v1275_v48  ;;  %v6131_v38 = vld [vmem:[#allocation52_spill] sm:$0xff] }
 0x29b   : > { %2430 = vst.msk [vmem:[%s4975_s24 + $0xd4] sm:$0xf] %vm2376_vm1, %v2755_v1  ;;  %v1790_v26 = vsel %vm1534_vm11, %v1406_v63, %v1662_v12  ;;  %v1411_v2 = vadd.f32 %v4944_v58, %v1276_v54  ;;  %v1277_v6 = vmul.f32 %v4939_v23, %v4387_v35  ;;  %v1278_v13 = vmul.f32 %v4939_v23, %v6128_v22 }
 0x29c   : > { %v2756_v61 = vpack.c.bf16 %v1790_v26, %v1790_v26  ;;  %v1791_v25 = vsel %vm1535_vm12, %v1407_v56, %v1663_v20  ;;  %v1792_v11 = vsel %vm1536_vm13, %v1408_v0, %v1664_v31  ;;  %vm1537_vm14 = vcmp.ge.f32.partialorder %v1409_v47, 0.0 }
 0x29d   : > { %v2757_v53 = vpack.c.bf16 %v1791_v25, %v1791_v25  ;;  %v2758_v24 = vpack.c.bf16 %v1792_v11, %v1792_v11  ;;  %v1665_v5 = vmul.f32 0.2, %v1409_v47  ;;  %vm1538_vm15 = vcmp.ge.f32.partialorder %v1410_v59, 0.0 }
 0x29e   : > { %2431 = vst.msk [vmem:[%s4975_s24 + $0xd8] sm:$0xf] %vm2376_vm1, %v2756_v61  ;;  %v1666_v14 = vmul.f32 0.2, %v1410_v59  ;;  %vm1539_vm0 = vcmp.ge.f32.partialorder %v1411_v2, 0.0  ;;  %v1412_v32 = vadd.f32 %v4944_v58, %v1277_v6  ;;  %v1279_v36 = vmul.f32 %v4939_v23, %v4403_v50  ;;  %v6132_v6 = vld [vmem:[#allocation53_spill] sm:$0xff] }
 0x29f   : > { %v1667_v16 = vmul.f32 0.2, %v1411_v2  ;;  %2432 = vst.msk [vmem:[%s4975_s24 + $0xdc] sm:$0xf] %vm2376_vm1, %v2757_v53  ;;  %2433 = vst.msk [vmem:[%s4975_s24 + $0xe0] sm:$0xf] %vm2376_vm1, %v2758_v24  ;;  %v1793_v35 = vsel %vm1537_vm14, %v1409_v47, %v1665_v5  ;;  %v1280_v43 = vmul.f32 %v4939_v23, %v6129_v42  ;;  %v1413_v4 = vadd.f32 %v4944_v58, %v1278_v13 }
 0x2a0   : > { %v2759_v18 = vpack.c.bf16 %v1793_v35, %v1793_v35  ;;  %v1794_v49 = vsel %vm1538_vm15, %v1410_v59, %v1666_v14  ;;  %vm1540_vm2 = vcmp.ge.f32.partialorder %v1412_v32, 0.0  ;;  %v1668_v39 = vmul.f32 0.2, %v1412_v32  ;;  %v6133_v35 = vld [vmem:[#allocation54_spill] sm:$0xff]  ;;  %v6134_v13 = vld [vmem:[#allocation55_spill] sm:$0xff] }
 0x2a1   : > { %v1795_v9 = vsel %vm1539_vm0, %v1411_v2, %v1667_v16  ;;  %v2760_v10 = vpack.c.bf16 %v1794_v49, %v1794_v49  ;;  %v1414_v27 = vadd.f32 %v4944_v58, %v1279_v36  ;;  %v1415_v37 = vadd.f32 %v4944_v58, %v1280_v43 }
 0x2a2   : > { %v2761_v60 = vpack.c.bf16 %v1795_v9, %v1795_v9  ;;  %2434 = vst.msk [vmem:[%s4975_s24 + $0xe4] sm:$0xf] %vm2376_vm1, %v2759_v18  ;;  %v1281_v50 = vmul.f32 %v4939_v23, %v4419_v19  ;;  %v1282_v46 = vmul.f32 %v4939_v23, %v6130_v44  ;;  %v1796_v62 = vsel %vm1540_vm2, %v1412_v32, %v1668_v39 }
 0x2a3   : > { %2435 = vst.msk [vmem:[%s4975_s24 + $0xe8] sm:$0xf] %vm2376_vm1, %v2760_v10  ;;  %vm1541_vm3 = vcmp.ge.f32.partialorder %v1413_v4, 0.0  ;;  %v1669_v41 = vmul.f32 0.2, %v1413_v4  ;;  %v1283_v55 = vmul.f32 %v4939_v23, %v4435_v29  ;;  %v2762_v51 = vpack.c.bf16 %v1796_v62, %v1796_v62 }
 0x2a4   : > { %2436 = vst.msk [vmem:[%s4975_s24 + $0xec] sm:$0xf] %vm2376_vm1, %v2761_v60  ;;  %vm1542_vm4 = vcmp.ge.f32.partialorder %v1414_v27, 0.0  ;;  %v1670_v7 = vmul.f32 0.2, %v1414_v27  ;;  %vm1543_vm5 = vcmp.ge.f32.partialorder %v1415_v37, 0.0  ;;  %v1416_v63 = vadd.f32 %v4944_v58, %v1281_v50 }
 0x2a5   : > { %v1797_v19 = vsel %vm1541_vm3, %v1413_v4, %v1669_v41  ;;  %v1671_v15 = vmul.f32 0.2, %v1415_v37  ;;  %v1417_v56 = vadd.f32 %v4944_v58, %v1282_v46  ;;  %2437 = vst.msk [vmem:[%s4975_s24 + $0xf0] sm:$0xf] %vm2376_vm1, %v2762_v51  ;;  %v1418_v3 = vadd.f32 %v4944_v58, %v1283_v55  ;;  %v6135_v51 = vld [vmem:[#allocation56_spill] sm:$0xff] }
 0x2a6   : > { %v2763_v0 = vpack.c.bf16 %v1797_v19, %v1797_v19  ;;  %v1798_v34 = vsel %vm1542_vm4, %v1414_v27, %v1670_v7  ;;  %v1284_v29 = vmul.f32 %v4939_v23, %v6131_v38  ;;  %vm1544_vm6 = vcmp.ge.f32.partialorder %v1416_v63, 0.0 }
 0x2a7   : > { %v2764_v48 = vpack.c.bf16 %v1798_v34, %v1798_v34  ;;  %v1799_v30 = vsel %vm1543_vm5, %v1415_v37, %v1671_v15  ;;  %v1672_v54 = vmul.f32 0.2, %v1416_v63  ;;  %vm1545_vm7 = vcmp.ge.f32.partialorder %v1417_v56, 0.0  ;;  %v6136_v15 = vld [vmem:[#allocation57_spill] sm:$0xff] }
 0x2a8   : > { %2438 = vst.msk [vmem:[%s4975_s24 + $0xf4] sm:$0xf] %vm2376_vm1, %v2763_v0  ;;  %v2765_v1 = vpack.c.bf16 %v1799_v30, %v1799_v30  ;;  %v1673_v12 = vmul.f32 0.2, %v1417_v56  ;;  %vm1546_vm8 = vcmp.ge.f32.partialorder %v1418_v3, 0.0  ;;  %v1419_v47 = vadd.f32 %v4944_v58, %v1284_v29 }
 0x2a9   : > { %2439 = vst.msk [vmem:[%s4975_s24 + $0xf8] sm:$0xf] %vm2376_vm1, %v2764_v48  ;;  %v1800_v20 = vsel %vm1544_vm6, %v1416_v63, %v1672_v54  ;;  %v1674_v31 = vmul.f32 0.2, %v1418_v3  ;;  %v1285_v26 = vmul.f32 %v4939_v23, %v4451_v17  ;;  %v1286_v61 = vmul.f32 %v4939_v23, %v6132_v6  ;;  %v5329_v29 = vld [vmem:[%s5603_s2] ss:$0 sm:$0xff] }
 0x2aa   : > { %2440 = vst.msk [vmem:[%s4975_s24 + $0xfc] sm:$0xf] %vm2376_vm1, %v2765_v1  ;;  %v2766_v59 = vpack.c.bf16 %v1800_v20, %v1800_v20  ;;  %v1801_v2 = vsel %vm1545_vm7, %v1417_v56, %v1673_v12  ;;  %v1287_v25 = vmul.f32 %v4939_v23, %v4467_v8  ;;  %vm1547_vm9 = vcmp.ge.f32.partialorder %v1419_v47, 0.0  ;;  %v6137_v1 = vld [vmem:[#allocation58_spill] sm:$0xff] }
 0x2ab   : > { %v2767_v11 = vpack.c.bf16 %v1801_v2, %v1801_v2  ;;  %v1802_v53 = vsel %vm1546_vm8, %v1418_v3, %v1674_v31  ;;  %v1675_v24 = vmul.f32 0.2, %v1419_v47  ;;  %v1420_v17 = vadd.f32 %v4944_v58, %v1285_v26 }
 0x2ac   : > { %2441 = vst.msk [vmem:[%s4975_s24 + $0x100] sm:$0xf] %vm2376_vm1, %v2766_v59  ;;  %v2768_v5 = vpack.c.bf16 %v1802_v53, %v1802_v53  ;;  %v1421_v14 = vadd.f32 %v4944_v58, %v1286_v61  ;;  %v1422_v16 = vadd.f32 %v4944_v58, %v1287_v25  ;;  %v1288_v8 = vmul.f32 %v4939_v23, %v6133_v35 }
 0x2ad   : > { %2442 = vst.msk [vmem:[%s4975_s24 + $0x104] sm:$0xf] %vm2376_vm1, %v2767_v11  ;;  %v1803_v32 = vsel %vm1547_vm9, %v1419_v47, %v1675_v24  ;;  %v1289_v22 = vmul.f32 %v4939_v23, %v4483_v57  ;;  %v1290_v36 = vmul.f32 %v4939_v23, %v6134_v13  ;;  %vm1548_vm10 = vcmp.ge.f32.partialorder %v1420_v17, 0.0  ;;  %v6138_v24 = vld [vmem:[#allocation59_spill] sm:$0xff] }
 0x2ae   : > { %2443 = vst.msk [vmem:[%s4975_s24 + $0x108] sm:$0xf] %vm2376_vm1, %v2768_v5  ;;  %v2769_v42 = vpack.c.bf16 %v1803_v32, %v1803_v32  ;;  %v1676_v43 = vmul.f32 0.2, %v1420_v17  ;;  %vm1549_vm11 = vcmp.ge.f32.partialorder %v1421_v14, 0.0  ;;  %vm1550_vm12 = vcmp.ge.f32.partialorder %v1422_v16, 0.0 }
 0x2af   : > { %v1677_v18 = vmul.f32 0.2, %v1421_v14  ;;  %v1678_v49 = vmul.f32 0.2, %v1422_v16  ;;  %v1423_v9 = vadd.f32 %v4944_v58, %v1288_v8  ;;  %v1424_v57 = vadd.f32 %v4944_v58, %v1289_v22 }
 0x2b0   : > { %2444 = vst.msk [vmem:[%s4975_s24 + $0x10c] sm:$0xf] %vm2376_vm1, %v2769_v42  ;;  %v1804_v10 = vsel %vm1548_vm10, %v1420_v17, %v1676_v43  ;;  %v1425_v60 = vadd.f32 %v4944_v58, %v1290_v36  ;;  %v1291_v39 = vmul.f32 %v4939_v23, %v4499_v52  ;;  %v1292_v7 = vmul.f32 %v4939_v23, %v6135_v51  ;;  %v6139_v43 = vld [vmem:[#allocation60_spill] sm:$0xff] }
 0x2b1   : > { %v2770_v4 = vpack.c.bf16 %v1804_v10, %v1804_v10  ;;  %v1805_v27 = vsel %vm1549_vm11, %v1421_v14, %v1677_v18  ;;  %v1806_v37 = vsel %vm1550_vm12, %v1422_v16, %v1678_v49  ;;  %vm1551_vm13 = vcmp.ge.f32.partialorder %v1423_v9, 0.0 }
 0x2b2   : > { %v2771_v50 = vpack.c.bf16 %v1805_v27, %v1805_v27  ;;  %v2772_v44 = vpack.c.bf16 %v1806_v37, %v1806_v37  ;;  %v1679_v46 = vmul.f32 0.2, %v1423_v9  ;;  %vm1552_vm14 = vcmp.ge.f32.partialorder %v1424_v57, 0.0  ;;  %v6140_v37 = vld [vmem:[#allocation61_spill] sm:$0xff] }
 0x2b3   : > { %2445 = vst.msk [vmem:[%s4975_s24 + $0x110] sm:$0xf] %vm2376_vm1, %v2770_v4  ;;  %v1680_v62 = vmul.f32 0.2, %v1424_v57  ;;  %vm1553_vm15 = vcmp.ge.f32.partialorder %v1425_v60, 0.0  ;;  %v1426_v55 = vadd.f32 %v4944_v58, %v1291_v39  ;;  %v1293_v19 = vmul.f32 %v4939_v23, %v4515_v45 }
 0x2b4   : > { %v1681_v41 = vmul.f32 0.2, %v1425_v60  ;;  %2446 = vst.msk [vmem:[%s4975_s24 + $0x114] sm:$0xf] %vm2376_vm1, %v2771_v50  ;;  %2447 = vst.msk [vmem:[%s4975_s24 + $0x118] sm:$0xf] %vm2376_vm1, %v2772_v44  ;;  %v1807_v52 = vsel %vm1551_vm13, %v1423_v9, %v1679_v46  ;;  %v1294_v63 = vmul.f32 %v4939_v23, %v6136_v15  ;;  %v1427_v48 = vadd.f32 %v5329_v29, %v1292_v7 }
 0x2b5   : > { %v2773_v56 = vpack.c.bf16 %v1807_v52, %v1807_v52  ;;  %v1808_v0 = vsel %vm1552_vm14, %v1424_v57, %v1680_v62  ;;  %vm1554_vm0 = vcmp.ge.f32.partialorder %v1426_v55, 0.0  ;;  %v1682_v38 = vmul.f32 0.2, %v1426_v55  ;;  %v6141_v50 = vld [vmem:[#allocation62_spill] sm:$0xff]  ;;  %v6142_v46 = vld [vmem:[#allocation63_spill] sm:$0xff] }
 0x2b6   : > { %v1809_v58 = vsel %vm1553_vm15, %v1425_v60, %v1681_v41  ;;  %v2774_v34 = vpack.c.bf16 %v1808_v0, %v1808_v0  ;;  %v1428_v45 = vadd.f32 %v5329_v29, %v1293_v19  ;;  %v1429_v30 = vadd.f32 %v5329_v29, %v1294_v63 }
 0x2b7   : > { %v2775_v3 = vpack.c.bf16 %v1809_v58, %v1809_v58  ;;  %2448 = vst.msk [vmem:[%s4975_s24 + $0x11c] sm:$0xf] %vm2376_vm1, %v2773_v56  ;;  %v1295_v54 = vmul.f32 %v4939_v23, %v4531_v40  ;;  %v1296_v12 = vmul.f32 %v4939_v23, %v6137_v1  ;;  %v1810_v20 = vsel %vm1554_vm0, %v1426_v55, %v1682_v38  ;;  %v6143_v56 = vld [vmem:[#allocation64_spill] sm:$0xff] }
 0x2b8   : > { %2449 = vst.msk [vmem:[%s4975_s24 + $0x120] sm:$0xf] %vm2376_vm1, %v2774_v34  ;;  %vm1555_vm2 = vcmp.ge.f32.partialorder %v1427_v48, 0.0  ;;  %v1683_v31 = vmul.f32 0.2, %v1427_v48  ;;  %v1297_v47 = vmul.f32 %v4939_v23, %v4547_v33  ;;  %v2776_v26 = vpack.c.bf16 %v1810_v20, %v1810_v20  ;;  %v6144_v20 = vld [vmem:[#allocation65_spill] sm:$0xff] }
 0x2b9   : > { %2450 = vst.msk [vmem:[%s4975_s24 + $0x124] sm:$0xf] %vm2376_vm1, %v2775_v3  ;;  %vm1556_vm3 = vcmp.ge.f32.partialorder %v1428_v45, 0.0  ;;  %v1684_v59 = vmul.f32 0.2, %v1428_v45  ;;  %vm1557_vm4 = vcmp.ge.f32.partialorder %v1429_v30, 0.0  ;;  %v1430_v6 = vadd.f32 %v5329_v29, %v1295_v54 }
 0x2ba   : > { %v1811_v40 = vsel %vm1555_vm2, %v1427_v48, %v1683_v31  ;;  %v1685_v2 = vmul.f32 0.2, %v1429_v30  ;;  %v1431_v61 = vadd.f32 %v5329_v29, %v1296_v12  ;;  %2451 = vst.msk [vmem:[%s4975_s24 + $0x128] sm:$0xf] %vm2376_vm1, %v2776_v26  ;;  %v1432_v53 = vadd.f32 %v5329_v29, %v1297_v47  ;;  %v6145_v47 = vld [vmem:[#allocation66_spill] sm:$0xff] }
 0x2bb   : > { %v2777_v25 = vpack.c.bf16 %v1811_v40, %v1811_v40  ;;  %v1812_v11 = vsel %vm1556_vm3, %v1428_v45, %v1684_v59  ;;  %v1298_v33 = vmul.f32 %v4939_v23, %v6138_v24  ;;  %vm1558_vm5 = vcmp.ge.f32.partialorder %v1430_v6, 0.0  ;;  %v6146_v59 = vld [vmem:[#allocation67_spill] sm:$0xff] }
 0x2bc   : > { %v2778_v5 = vpack.c.bf16 %v1812_v11, %v1812_v11  ;;  %v1813_v17 = vsel %vm1557_vm4, %v1429_v30, %v1685_v2  ;;  %v1686_v14 = vmul.f32 0.2, %v1430_v6  ;;  %vm1559_vm6 = vcmp.ge.f32.partialorder %v1431_v61, 0.0 }
 0x2bd   : > { %2452 = vst.msk [vmem:[%s4975_s24 + $0x12c] sm:$0xf] %vm2376_vm1, %v2777_v25  ;;  %v2779_v16 = vpack.c.bf16 %v1813_v17, %v1813_v17  ;;  %v1687_v32 = vmul.f32 0.2, %v1431_v61  ;;  %vm1560_vm7 = vcmp.ge.f32.partialorder %v1432_v53, 0.0  ;;  %v1433_v22 = vadd.f32 %v5329_v29, %v1298_v33  ;;  %v6147_v17 = vld [vmem:[#allocation68_spill] sm:$0xff] }
 0x2be   : > { %2453 = vst.msk [vmem:[%s4975_s24 + $0x130] sm:$0xf] %vm2376_vm1, %v2778_v5  ;;  %v1814_v35 = vsel %vm1558_vm5, %v1430_v6, %v1686_v14  ;;  %v1688_v8 = vmul.f32 0.2, %v1432_v53  ;;  %v1299_v13 = vmul.f32 %v4939_v23, %v4563_v28  ;;  %v1300_v18 = vmul.f32 %v4939_v23, %v6139_v43 }
 0x2bf   : > { %2454 = vst.msk [vmem:[%s4975_s24 + $0x134] sm:$0xf] %vm2376_vm1, %v2779_v16  ;;  %v2780_v36 = vpack.c.bf16 %v1814_v35, %v1814_v35  ;;  %v1815_v42 = vsel %vm1559_vm6, %v1431_v61, %v1687_v32  ;;  %v1301_v49 = vmul.f32 %v4939_v23, %v4579_v21  ;;  %vm1561_vm8 = vcmp.ge.f32.partialorder %v1433_v22, 0.0  ;;  %v6148_v16 = vld [vmem:[#allocation69_spill] sm:$0xff] }
 0x2c0   : > { %v2781_v9 = vpack.c.bf16 %v1815_v42, %v1815_v42  ;;  %v1816_v10 = vsel %vm1560_vm7, %v1432_v53, %v1688_v8  ;;  %v1689_v57 = vmul.f32 0.2, %v1433_v22  ;;  %v1434_v28 = vadd.f32 %v5329_v29, %v1299_v13 }
 0x2c1   : > { %2455 = vst.msk [vmem:[%s4975_s24 + $0x138] sm:$0xf] %vm2376_vm1, %v2780_v36  ;;  %v2782_v60 = vpack.c.bf16 %v1816_v10, %v1816_v10  ;;  %v1435_v39 = vadd.f32 %v5329_v29, %v1300_v18  ;;  %v1436_v4 = vadd.f32 %v5329_v29, %v1301_v49  ;;  %v1302_v21 = vmul.f32 %v4939_v23, %v6140_v37 }
 0x2c2   : > { %2456 = vst.msk [vmem:[%s4975_s24 + $0x13c] sm:$0xf] %vm2376_vm1, %v2781_v9  ;;  %v1817_v27 = vsel %vm1561_vm8, %v1433_v22, %v1689_v57  ;;  %v1303_v44 = vmul.f32 %v4939_v23, %v6141_v50  ;;  %v1304_v62 = vmul.f32 %v4939_v23, %v6142_v46  ;;  %vm1562_vm9 = vcmp.ge.f32.partialorder %v1434_v28, 0.0  ;;  %v6149_v22 = vld [vmem:[#allocation2_spill] sm:$0xff] }
 0x2c3   : > { %2457 = vst.msk [vmem:[%s4975_s24 + $0x140] sm:$0xf] %vm2376_vm1, %v2782_v60  ;;  %v2783_v41 = vpack.c.bf16 %v1817_v27, %v1817_v27  ;;  %v1690_v55 = vmul.f32 0.2, %v1434_v28  ;;  %vm1563_vm10 = vcmp.ge.f32.partialorder %v1435_v39, 0.0  ;;  %vm1564_vm11 = vcmp.ge.f32.partialorder %v1436_v4, 0.0 }
 0x2c4   : > { %v1691_v52 = vmul.f32 0.2, %v1435_v39  ;;  %v1692_v51 = vmul.f32 0.2, %v1436_v4  ;;  %v1437_v7 = vadd.f32 %v5329_v29, %v1302_v21  ;;  %v1438_v15 = vadd.f32 %v5329_v29, %v1303_v44 }
 0x2c5   : > { %2458 = vst.msk [vmem:[%s4975_s24 + $0x144] sm:$0xf] %vm2376_vm1, %v2783_v41  ;;  %v1818_v19 = vsel %vm1562_vm9, %v1434_v28, %v1690_v55  ;;  %v1439_v63 = vadd.f32 %v5329_v29, %v1304_v62  ;;  %v1305_v0 = vmul.f32 %v4939_v23, %v6143_v56  ;;  %v1306_v31 = vmul.f32 %v4939_v23, %v6144_v20  ;;  %v6150_v28 = vld [vmem:[#allocation70_spill] sm:$0xff]  ;;  %v6151_v41 = vld [vmem:[#allocation3_spill] sm:$0xff]  ;;  %v6156_v20 = vld [vmem:[#allocation73_spill] sm:$0xff] }
 0x2c6   : > { %v2784_v58 = vpack.c.bf16 %v1818_v19, %v1818_v19  ;;  %v1819_v34 = vsel %vm1563_vm10, %v1435_v39, %v1691_v52  ;;  %v1820_v3 = vsel %vm1564_vm11, %v1436_v4, %v1692_v51  ;;  %vm1565_vm12 = vcmp.ge.f32.partialorder %v1437_v7, 0.0 }
 0x2c7   : > { %v2785_v38 = vpack.c.bf16 %v1819_v34, %v1819_v34  ;;  %v2786_v48 = vpack.c.bf16 %v1820_v3, %v1820_v3  ;;  %v1693_v45 = vmul.f32 0.2, %v1437_v7  ;;  %vm1566_vm13 = vcmp.ge.f32.partialorder %v1438_v15, 0.0 }
 0x2c8   : > { %2459 = vst.msk [vmem:[%s4975_s24 + $0x148] sm:$0xf] %vm2376_vm1, %v2784_v58  ;;  %v1694_v30 = vmul.f32 0.2, %v1438_v15  ;;  %vm1567_vm14 = vcmp.ge.f32.partialorder %v1439_v63, 0.0  ;;  %v1440_v1 = vadd.f32 %v5329_v29, %v1305_v0  ;;  %v1307_v26 = vmul.f32 %v4939_v23, %v6145_v47 }
 0x2c9   : > { %v1695_v54 = vmul.f32 0.2, %v1439_v63  ;;  %2460 = vst.msk [vmem:[%s4975_s24 + $0x14c] sm:$0xf] %vm2376_vm1, %v2785_v38  ;;  %2461 = vst.msk [vmem:[%s4975_s24 + $0x150] sm:$0xf] %vm2376_vm1, %v2786_v48  ;;  %v1821_v12 = vsel %vm1565_vm12, %v1437_v7, %v1693_v45  ;;  %v1308_v40 = vmul.f32 %v4939_v23, %v6146_v59  ;;  %v1441_v24 = vadd.f32 %v5329_v29, %v1306_v31 }
 0x2ca   : > { %v2787_v2 = vpack.c.bf16 %v1821_v12, %v1821_v12  ;;  %v1822_v6 = vsel %vm1566_vm13, %v1438_v15, %v1694_v30  ;;  %vm1568_vm15 = vcmp.ge.f32.partialorder %v1440_v1, 0.0  ;;  %v1696_v53 = vmul.f32 0.2, %v1440_v1  ;;  %v6152_v7 = vld [vmem:[#allocation71_spill] sm:$0xff]  ;;  %v6153_v15 = vld [vmem:[#allocation4_spill] sm:$0xff] }
 0x2cb   : > { %v1823_v61 = vsel %vm1567_vm14, %v1439_v63, %v1695_v54  ;;  %v2788_v25 = vpack.c.bf16 %v1822_v6, %v1822_v6  ;;  %v1442_v33 = vadd.f32 %v5329_v29, %v1307_v26  ;;  %v1443_v5 = vadd.f32 %v5329_v29, %v1308_v40  ;;  %v6154_v30 = vld [vmem:[#allocation72_spill] sm:$0xff] }
 0x2cc   : > { %v2789_v11 = vpack.c.bf16 %v1823_v61, %v1823_v61  ;;  %2462 = vst.msk [vmem:[%s4975_s24 + $0x154] sm:$0xf] %vm2376_vm1, %v2787_v2  ;;  %v1309_v14 = vmul.f32 %v4939_v23, %v6147_v17  ;;  %v1310_v32 = vmul.f32 %v4939_v23, %v6148_v16  ;;  %v1824_v35 = vsel %vm1568_vm15, %v1440_v1, %v1696_v53  ;;  %v6155_v1 = vld [vmem:[#allocation5_spill] sm:$0xff] }
 0x2cd   : > { %2463 = vst.msk [vmem:[%s4975_s24 + $0x158] sm:$0xf] %vm2376_vm1, %v2788_v25  ;;  %vm1569_vm0 = vcmp.ge.f32.partialorder %v1441_v24, 0.0  ;;  %v1697_v8 = vmul.f32 0.2, %v1441_v24  ;;  %v1311_v13 = vmul.f32 %v4939_v23, %v6149_v22  ;;  %v2790_v36 = vpack.c.bf16 %v1824_v35, %v1824_v35 }
 0x2ce   : > { %2464 = vst.msk [vmem:[%s4975_s24 + $0x15c] sm:$0xf] %vm2376_vm1, %v2789_v11  ;;  %vm1570_vm2 = vcmp.ge.f32.partialorder %v1442_v33, 0.0  ;;  %v1698_v42 = vmul.f32 0.2, %v1442_v33  ;;  %vm1571_vm3 = vcmp.ge.f32.partialorder %v1443_v5, 0.0  ;;  %v1444_v49 = vadd.f32 %v5329_v29, %v1309_v14 }
 0x2cf   : > { %v1825_v43 = vsel %vm1569_vm0, %v1441_v24, %v1697_v8  ;;  %v1699_v18 = vmul.f32 0.2, %v1443_v5  ;;  %v1445_v9 = vadd.f32 %v5329_v29, %v1310_v32  ;;  %2465 = vst.msk [vmem:[%s4975_s24 + $0x160] sm:$0xf] %vm2376_vm1, %v2790_v36  ;;  %v1446_v60 = vadd.f32 %v5329_v29, %v1311_v13  ;;  %v6157_v11 = vld [vmem:[#allocation6_spill] sm:$0xff] }
 0x2d0   : > { %v2791_v10 = vpack.c.bf16 %v1825_v43, %v1825_v43  ;;  %v1826_v57 = vsel %vm1570_vm2, %v1442_v33, %v1698_v42  ;;  %v1312_v39 = vmul.f32 %v4939_v23, %v6150_v28  ;;  %vm1572_vm4 = vcmp.ge.f32.partialorder %v1444_v49, 0.0  ;;  %v6158_v13 = vld [vmem:[#allocation74_spill] sm:$0xff]  ;;  %v6159_v42 = vld [vmem:[#allocation7_spill] sm:$0xff] }
 0x2d1   : > { %v2792_v4 = vpack.c.bf16 %v1826_v57, %v1826_v57  ;;  %v1827_v27 = vsel %vm1571_vm3, %v1443_v5, %v1699_v18  ;;  %v1700_v37 = vmul.f32 0.2, %v1444_v49  ;;  %vm1573_vm5 = vcmp.ge.f32.partialorder %v1445_v9, 0.0  ;;  %v6160_v18 = vld [vmem:[#allocation75_spill] sm:$0xff] }
 0x2d2   : > { %2466 = vst.msk [vmem:[%s4975_s24 + $0x164] sm:$0xf] %vm2376_vm1, %v2791_v10  ;;  %v2793_v21 = vpack.c.bf16 %v1827_v27, %v1827_v27  ;;  %v1701_v50 = vmul.f32 0.2, %v1445_v9  ;;  %vm1574_vm6 = vcmp.ge.f32.partialorder %v1446_v60, 0.0  ;;  %v1447_v62 = vadd.f32 %v5329_v29, %v1312_v39 }
 0x2d3   : > { %2467 = vst.msk [vmem:[%s4975_s24 + $0x168] sm:$0xf] %vm2376_vm1, %v2792_v4  ;;  %v1828_v44 = vsel %vm1572_vm4, %v1444_v49, %v1700_v37  ;;  %v1702_v46 = vmul.f32 0.2, %v1446_v60  ;;  %v1313_v55 = vmul.f32 %v4939_v23, %v6151_v41  ;;  %v1314_v19 = vmul.f32 %v4939_v23, %v6152_v7 }
 0x2d4   : > { %2468 = vst.msk [vmem:[%s4975_s24 + $0x16c] sm:$0xf] %vm2376_vm1, %v2793_v21  ;;  %v2794_v52 = vpack.c.bf16 %v1828_v44, %v1828_v44  ;;  %v1829_v51 = vsel %vm1573_vm5, %v1445_v9, %v1701_v50  ;;  %v1315_v63 = vmul.f32 %v4939_v23, %v6153_v15  ;;  %vm1575_vm7 = vcmp.ge.f32.partialorder %v1447_v62, 0.0  ;;  %v6161_v21 = vld [vmem:[#allocation8_spill] sm:$0xff] }
 0x2d5   : > { %v2795_v56 = vpack.c.bf16 %v1829_v51, %v1829_v51  ;;  %v1830_v0 = vsel %vm1574_vm6, %v1446_v60, %v1702_v46  ;;  %v1703_v58 = vmul.f32 0.2, %v1447_v62  ;;  %v1448_v3 = vadd.f32 %v5329_v29, %v1313_v55  ;;  %v6162_v44 = vld [vmem:[#allocation76_spill] sm:$0xff]  ;;  %v6163_v55 = vld [vmem:[#allocation9_spill] sm:$0xff] }
 0x2d6   : > { %2469 = vst.msk [vmem:[%s4975_s24 + $0x170] sm:$0xf] %vm2376_vm1, %v2794_v52  ;;  %v2796_v34 = vpack.c.bf16 %v1830_v0, %v1830_v0  ;;  %v1449_v38 = vadd.f32 %v5329_v29, %v1314_v19  ;;  %v1450_v48 = vadd.f32 %v5329_v29, %v1315_v63  ;;  %v1316_v54 = vmul.f32 %v4939_v23, %v6154_v30 }
 0x2d7   : > { %2470 = vst.msk [vmem:[%s4975_s24 + $0x174] sm:$0xf] %vm2376_vm1, %v2795_v56  ;;  %v1831_v45 = vsel %vm1575_vm7, %v1447_v62, %v1703_v58  ;;  %v1317_v12 = vmul.f32 %v4939_v23, %v6155_v1  ;;  %v1318_v31 = vmul.f32 %v4939_v23, %v6156_v20  ;;  %vm1576_vm8 = vcmp.ge.f32.partialorder %v1448_v3, 0.0 }
 0x2d8   : > { %2471 = vst.msk [vmem:[%s4975_s24 + $0x178] sm:$0xf] %vm2376_vm1, %v2796_v34  ;;  %v2797_v47 = vpack.c.bf16 %v1831_v45, %v1831_v45  ;;  %v1704_v26 = vmul.f32 0.2, %v1448_v3  ;;  %vm1577_vm9 = vcmp.ge.f32.partialorder %v1449_v38, 0.0  ;;  %vm1578_vm10 = vcmp.ge.f32.partialorder %v1450_v48, 0.0 }
 0x2d9   : > { %v1705_v59 = vmul.f32 0.2, %v1449_v38  ;;  %v1706_v40 = vmul.f32 0.2, %v1450_v48  ;;  %v1451_v2 = vadd.f32 %v5329_v29, %v1316_v54  ;;  %v1452_v61 = vadd.f32 %v5329_v29, %v1317_v12 }
 0x2da   : > { %2472 = vst.msk [vmem:[%s4975_s24 + $0x17c] sm:$0xf] %vm2376_vm1, %v2797_v47  ;;  %v1832_v6 = vsel %vm1576_vm8, %v1448_v3, %v1704_v26  ;;  %v1453_v25 = vadd.f32 %v5329_v29, %v1318_v31  ;;  %v1319_v53 = vmul.f32 %v4939_v23, %v6157_v11  ;;  %v1320_v36 = vmul.f32 %v4939_v23, %v6158_v13  ;;  %v6164_v3 = vld [vmem:[#allocation77_spill] sm:$0xff]  ;;  %v6165_v47 = vld [vmem:[#allocation10_spill] sm:$0xff]  ;;  %v6170_v13 = vld [vmem:[#allocation80_spill] sm:$0xff] }
 0x2db   : > { %v2798_v24 = vpack.c.bf16 %v1832_v6, %v1832_v6  ;;  %v1833_v33 = vsel %vm1577_vm9, %v1449_v38, %v1705_v59  ;;  %v1834_v5 = vsel %vm1578_vm10, %v1450_v48, %v1706_v40  ;;  %vm1579_vm11 = vcmp.ge.f32.partialorder %v1451_v2, 0.0 }
 0x2dc   : > { %v2799_v17 = vpack.c.bf16 %v1833_v33, %v1833_v33  ;;  %v2800_v14 = vpack.c.bf16 %v1834_v5, %v1834_v5  ;;  %v1707_v16 = vmul.f32 0.2, %v1451_v2  ;;  %vm1580_vm12 = vcmp.ge.f32.partialorder %v1452_v61, 0.0 }
 0x2dd   : > { %2473 = vst.msk [vmem:[%s4975_s24 + $0x180] sm:$0xf] %vm2376_vm1, %v2798_v24  ;;  %v1708_v32 = vmul.f32 0.2, %v1452_v61  ;;  %vm1581_vm13 = vcmp.ge.f32.partialorder %v1453_v25, 0.0  ;;  %v1454_v8 = vadd.f32 %v5329_v29, %v1319_v53  ;;  %v1321_v43 = vmul.f32 %v4939_v23, %v6159_v42 }
 0x2de   : > { %v1709_v35 = vmul.f32 0.2, %v1453_v25  ;;  %2474 = vst.msk [vmem:[%s4975_s24 + $0x184] sm:$0xf] %vm2376_vm1, %v2799_v17  ;;  %2475 = vst.msk [vmem:[%s4975_s24 + $0x188] sm:$0xf] %vm2376_vm1, %v2800_v14  ;;  %v1835_v22 = vsel %vm1579_vm11, %v1451_v2, %v1707_v16  ;;  %v1322_v49 = vmul.f32 %v4939_v23, %v6160_v18  ;;  %v1455_v4 = vadd.f32 %v5329_v29, %v1320_v36 }
 0x2df   : > { %v2801_v9 = vpack.c.bf16 %v1835_v22, %v1835_v22  ;;  %v1836_v10 = vsel %vm1580_vm12, %v1452_v61, %v1708_v32  ;;  %vm1582_vm14 = vcmp.ge.f32.partialorder %v1454_v8, 0.0  ;;  %v1710_v39 = vmul.f32 0.2, %v1454_v8  ;;  %v6166_v2 = vld [vmem:[#allocation78_spill] sm:$0xff]  ;;  %v6167_v61 = vld [vmem:[#allocation11_spill] sm:$0xff] }
 0x2e0   : > { %v1837_v57 = vsel %vm1581_vm13, %v1453_v25, %v1709_v35  ;;  %v2802_v60 = vpack.c.bf16 %v1836_v10, %v1836_v10  ;;  %v1456_v27 = vadd.f32 %v5329_v29, %v1321_v43  ;;  %v1457_v37 = vadd.f32 %v5329_v29, %v1322_v49  ;;  %v6168_v32 = vld [vmem:[#allocation79_spill] sm:$0xff] }
 0x2e1   : > { %v2803_v28 = vpack.c.bf16 %v1837_v57, %v1837_v57  ;;  %2476 = vst.msk [vmem:[%s4975_s24 + $0x18c] sm:$0xf] %vm2376_vm1, %v2801_v9  ;;  %v1323_v50 = vmul.f32 %v4939_v23, %v6161_v21  ;;  %v1324_v46 = vmul.f32 %v4939_v23, %v6162_v44  ;;  %v1838_v62 = vsel %vm1582_vm14, %v1454_v8, %v1710_v39  ;;  %v6169_v8 = vld [vmem:[#allocation12_spill] sm:$0xff] }
 0x2e2   : > { %2477 = vst.msk [vmem:[%s4975_s24 + $0x190] sm:$0xf] %vm2376_vm1, %v2802_v60  ;;  %vm1583_vm15 = vcmp.ge.f32.partialorder %v1455_v4, 0.0  ;;  %v1711_v41 = vmul.f32 0.2, %v1455_v4  ;;  %v1325_v52 = vmul.f32 %v4939_v23, %v6163_v55  ;;  %v2804_v51 = vpack.c.bf16 %v1838_v62, %v1838_v62 }
 0x2e3   : > { %2478 = vst.msk [vmem:[%s4975_s24 + $0x194] sm:$0xf] %vm2376_vm1, %v2803_v28  ;;  %vm1584_vm0 = vcmp.ge.f32.partialorder %v1456_v27, 0.0  ;;  %v1712_v7 = vmul.f32 0.2, %v1456_v27  ;;  %vm1585_vm2 = vcmp.ge.f32.partialorder %v1457_v37, 0.0  ;;  %v1458_v63 = vadd.f32 %v5329_v29, %v1323_v50 }
 0x2e4   : > { %v1839_v19 = vsel %vm1583_vm15, %v1455_v4, %v1711_v41  ;;  %v1713_v15 = vmul.f32 0.2, %v1457_v37  ;;  %v1459_v56 = vadd.f32 %v5329_v29, %v1324_v46  ;;  %2479 = vst.msk [vmem:[%s4975_s24 + $0x198] sm:$0xf] %vm2376_vm1, %v2804_v51  ;;  %v1460_v34 = vadd.f32 %v5329_v29, %v1325_v52  ;;  %v6171_v28 = vld [vmem:[#allocation13_spill] sm:$0xff] }
 0x2e5   : > { %v2805_v0 = vpack.c.bf16 %v1839_v19, %v1839_v19  ;;  %v1840_v58 = vsel %vm1584_vm0, %v1456_v27, %v1712_v7  ;;  %v1326_v38 = vmul.f32 %v4939_v23, %v6164_v3  ;;  %vm1586_vm3 = vcmp.ge.f32.partialorder %v1458_v63, 0.0  ;;  %v6172_v52 = vld [vmem:[#allocation81_spill] sm:$0xff]  ;;  %v6173_v7 = vld [vmem:[#allocation14_spill] sm:$0xff] }
 0x2e6   : > { %v2806_v48 = vpack.c.bf16 %v1840_v58, %v1840_v58  ;;  %v1841_v45 = vsel %vm1585_vm2, %v1457_v37, %v1713_v15  ;;  %v1714_v30 = vmul.f32 0.2, %v1458_v63  ;;  %vm1587_vm4 = vcmp.ge.f32.partialorder %v1459_v56, 0.0  ;;  %v6174_v15 = vld [vmem:[#allocation82_spill] sm:$0xff] }
 0x2e7   : > { %2480 = vst.msk [vmem:[%s4975_s24 + $0x19c] sm:$0xf] %vm2376_vm1, %v2805_v0  ;;  %v2807_v54 = vpack.c.bf16 %v1841_v45, %v1841_v45  ;;  %v1715_v1 = vmul.f32 0.2, %v1459_v56  ;;  %vm1588_vm5 = vcmp.ge.f32.partialorder %v1460_v34, 0.0  ;;  %v1461_v31 = vadd.f32 %v5329_v29, %v1326_v38 }
 0x2e8   : > { %2481 = vst.msk [vmem:[%s4975_s24 + $0x1a0] sm:$0xf] %vm2376_vm1, %v2806_v48  ;;  %v1842_v12 = vsel %vm1586_vm3, %v1458_v63, %v1714_v30  ;;  %v1716_v20 = vmul.f32 0.2, %v1460_v34  ;;  %v1327_v26 = vmul.f32 %v4939_v23, %v6165_v47  ;;  %v1328_v6 = vmul.f32 %v4939_v23, %v6166_v2 }
 0x2e9   : > { %2482 = vst.msk [vmem:[%s4975_s24 + $0x1a4] sm:$0xf] %vm2376_vm1, %v2807_v54  ;;  %v2808_v59 = vpack.c.bf16 %v1842_v12, %v1842_v12  ;;  %v1843_v40 = vsel %vm1587_vm4, %v1459_v56, %v1715_v1  ;;  %v1329_v25 = vmul.f32 %v4939_v23, %v6167_v61  ;;  %vm1589_vm6 = vcmp.ge.f32.partialorder %v1461_v31, 0.0  ;;  %v6175_v54 = vld [vmem:[#allocation15_spill] sm:$0xff] }
 0x2ea   : > { %v2809_v11 = vpack.c.bf16 %v1843_v40, %v1843_v40  ;;  %v1844_v53 = vsel %vm1588_vm5, %v1460_v34, %v1716_v20  ;;  %v1717_v24 = vmul.f32 0.2, %v1461_v31  ;;  %v1462_v5 = vadd.f32 %v5329_v29, %v1327_v26  ;;  %v6176_v12 = vld [vmem:[#allocation83_spill] sm:$0xff]  ;;  %v6177_v26 = vld [vmem:[#allocation16_spill] sm:$0xff] }
 0x2eb   : > { %2483 = vst.msk [vmem:[%s4975_s24 + $0x1a8] sm:$0xf] %vm2376_vm1, %v2808_v59  ;;  %v2810_v33 = vpack.c.bf16 %v1844_v53, %v1844_v53  ;;  %v1463_v17 = vadd.f32 %v5329_v29, %v1328_v6  ;;  %v1464_v14 = vadd.f32 %v5329_v29, %v1329_v25  ;;  %v1330_v35 = vmul.f32 %v4939_v23, %v6168_v32 }
 0x2ec   : > { %2484 = vst.msk [vmem:[%s4975_s24 + $0x1ac] sm:$0xf] %vm2376_vm1, %v2809_v11  ;;  %v1845_v16 = vsel %vm1589_vm6, %v1461_v31, %v1717_v24  ;;  %v1331_v22 = vmul.f32 %v4939_v23, %v6169_v8  ;;  %v1332_v36 = vmul.f32 %v4939_v23, %v6170_v13  ;;  %vm1590_vm7 = vcmp.ge.f32.partialorder %v1462_v5, 0.0 }
 0x2ed   : > { %2485 = vst.msk [vmem:[%s4975_s24 + $0x1b0] sm:$0xf] %vm2376_vm1, %v2810_v33  ;;  %v2811_v42 = vpack.c.bf16 %v1845_v16, %v1845_v16  ;;  %v1718_v43 = vmul.f32 0.2, %v1462_v5  ;;  %vm1591_vm8 = vcmp.ge.f32.partialorder %v1463_v17, 0.0  ;;  %vm1592_vm9 = vcmp.ge.f32.partialorder %v1464_v14, 0.0 }
 0x2ee   : > { %v1719_v18 = vmul.f32 0.2, %v1463_v17  ;;  %v1720_v49 = vmul.f32 0.2, %v1464_v14  ;;  %v1465_v9 = vadd.f32 %v5329_v29, %v1330_v35  ;;  %v1466_v57 = vadd.f32 %v5329_v29, %v1331_v22 }
 0x2ef   : > { %2486 = vst.msk [vmem:[%s4975_s24 + $0x1b4] sm:$0xf] %vm2376_vm1, %v2811_v42  ;;  %v1846_v10 = vsel %vm1590_vm7, %v1462_v5, %v1718_v43  ;;  %v1467_v60 = vadd.f32 %v5329_v29, %v1332_v36  ;;  %v1333_v39 = vmul.f32 %v4939_v23, %v6171_v28  ;;  %v1334_v51 = vmul.f32 %v4939_v23, %v6172_v52  ;;  %v6178_v5 = vld [vmem:[#allocation84_spill] sm:$0xff]  ;;  %v6179_v42 = vld [vmem:[#allocation17_spill] sm:$0xff] }
 0x2f0   : > { %v2812_v4 = vpack.c.bf16 %v1846_v10, %v1846_v10  ;;  %v1847_v27 = vsel %vm1591_vm8, %v1463_v17, %v1719_v18  ;;  %v1848_v37 = vsel %vm1592_vm9, %v1464_v14, %v1720_v49  ;;  %vm1593_vm10 = vcmp.ge.f32.partialorder %v1465_v9, 0.0 }
 0x2f1   : > { %v2813_v21 = vpack.c.bf16 %v1847_v27, %v1847_v27  ;;  %v2814_v50 = vpack.c.bf16 %v1848_v37, %v1848_v37  ;;  %v1721_v44 = vmul.f32 0.2, %v1465_v9  ;;  %vm1594_vm11 = vcmp.ge.f32.partialorder %v1466_v57, 0.0 }
 0x2f2   : > { %2487 = vst.msk [vmem:[%s4975_s24 + $0x1b8] sm:$0xf] %vm2376_vm1, %v2812_v4  ;;  %v1722_v46 = vmul.f32 0.2, %v1466_v57  ;;  %vm1595_vm12 = vcmp.ge.f32.partialorder %v1467_v60, 0.0  ;;  %v1468_v41 = vadd.f32 %v5329_v29, %v1333_v39  ;;  %v1335_v19 = vmul.f32 %v4939_v23, %v6173_v7 }
 0x2f3   : > { %v1723_v62 = vmul.f32 0.2, %v1467_v60  ;;  %2488 = vst.msk [vmem:[%s4975_s24 + $0x1bc] sm:$0xf] %vm2376_vm1, %v2813_v21  ;;  %2489 = vst.msk [vmem:[%s4975_s24 + $0x1c0] sm:$0xf] %vm2376_vm1, %v2814_v50  ;;  %v1849_v55 = vsel %vm1593_vm10, %v1465_v9, %v1721_v44  ;;  %v1336_v63 = vmul.f32 %v4939_v23, %v6174_v15  ;;  %v1469_v48 = vadd.f32 %v5329_v29, %v1334_v51 }
 0x2f4   : > { %v2815_v56 = vpack.c.bf16 %v1849_v55, %v1849_v55  ;;  %v1850_v0 = vsel %vm1594_vm11, %v1466_v57, %v1722_v46  ;;  %vm1596_vm13 = vcmp.ge.f32.partialorder %v1468_v41, 0.0  ;;  %v1724_v38 = vmul.f32 0.2, %v1468_v41  ;;  %v6180_v9 = vld [vmem:[#allocation85_spill] sm:$0xff]  ;;  %v6181_v57 = vld [vmem:[#allocation86_spill] sm:$0xff]  ;;  %v6182_v46 = vld [vmem:[#allocation87_spill] sm:$0xff] }
 0x2f5   : > { %v1851_v58 = vsel %vm1595_vm12, %v1467_v60, %v1723_v62  ;;  %v2816_v34 = vpack.c.bf16 %v1850_v0, %v1850_v0  ;;  %v1470_v45 = vadd.f32 %v5329_v29, %v1335_v19  ;;  %v1471_v30 = vadd.f32 %v5329_v29, %v1336_v63 }
 0x2f6   : > { %v2817_v3 = vpack.c.bf16 %v1851_v58, %v1851_v58  ;;  %2490 = vst.msk [vmem:[%s4975_s24 + $0x1c4] sm:$0xf] %vm2376_vm1, %v2815_v56  ;;  %v1337_v1 = vmul.f32 %v4939_v23, %v6175_v54  ;;  %v1338_v20 = vmul.f32 %v4939_v23, %v6176_v12  ;;  %v1852_v31 = vsel %vm1596_vm13, %v1468_v41, %v1724_v38 }
 0x2f7   : > { %2491 = vst.msk [vmem:[%s4975_s24 + $0x1c8] sm:$0xf] %vm2376_vm1, %v2816_v34  ;;  %vm1597_vm14 = vcmp.ge.f32.partialorder %v1469_v48, 0.0  ;;  %v1725_v47 = vmul.f32 0.2, %v1469_v48  ;;  %v1339_v59 = vmul.f32 %v4939_v23, %v6177_v26  ;;  %v2818_v40 = vpack.c.bf16 %v1852_v31, %v1852_v31 }
 0x2f8   : > { %2492 = vst.msk [vmem:[%s4975_s24 + $0x1cc] sm:$0xf] %vm2376_vm1, %v2817_v3  ;;  %vm1598_vm15 = vcmp.ge.f32.partialorder %v1470_v45, 0.0  ;;  %v1726_v2 = vmul.f32 0.2, %v1470_v45  ;;  %vm1599_vm0 = vcmp.ge.f32.partialorder %v1471_v30, 0.0  ;;  %v1472_v25 = vadd.f32 %v5329_v29, %v1337_v1 }
 0x2f9   : > { %v1853_v6 = vsel %vm1597_vm14, %v1469_v48, %v1725_v47  ;;  %v1727_v61 = vmul.f32 0.2, %v1471_v30  ;;  %v1473_v11 = vadd.f32 %v5329_v29, %v1338_v20  ;;  %2493 = vst.msk [vmem:[%s4975_s24 + $0x1d0] sm:$0xf] %vm2376_vm1, %v2818_v40  ;;  %v1474_v33 = vadd.f32 %v5329_v29, %v1339_v59 }
 0x2fa   : > { %v2819_v53 = vpack.c.bf16 %v1853_v6, %v1853_v6  ;;  %v1854_v24 = vsel %vm1598_vm15, %v1470_v45, %v1726_v2  ;;  %v1340_v17 = vmul.f32 %v4939_v23, %v6178_v5  ;;  %vm1600_vm2 = vcmp.ge.f32.partialorder %v1472_v25, 0.0 }
 0x2fb   : > { %v2820_v14 = vpack.c.bf16 %v1854_v24, %v1854_v24  ;;  %v1855_v16 = vsel %vm1599_vm0, %v1471_v30, %v1727_v61  ;;  %v1728_v32 = vmul.f32 0.2, %v1472_v25  ;;  %vm1601_vm3 = vcmp.ge.f32.partialorder %v1473_v11, 0.0 }
 0x2fc   : > { %2494 = vst.msk [vmem:[%s4975_s24 + $0x1d4] sm:$0xf] %vm2376_vm1, %v2819_v53  ;;  %v2821_v35 = vpack.c.bf16 %v1855_v16, %v1855_v16  ;;  %v1729_v8 = vmul.f32 0.2, %v1473_v11  ;;  %vm1602_vm4 = vcmp.ge.f32.partialorder %v1474_v33, 0.0  ;;  %v1475_v36 = vadd.f32 %v5329_v29, %v1340_v17 }
 0x2fd   : > { %2495 = vst.msk [vmem:[%s4975_s24 + $0x1d8] sm:$0xf] %vm2376_vm1, %v2820_v14  ;;  %v1856_v22 = vsel %vm1600_vm2, %v1472_v25, %v1728_v32  ;;  %v1730_v13 = vmul.f32 0.2, %v1474_v33  ;;  %v1341_v43 = vmul.f32 %v4939_v23, %v6179_v42  ;;  %v1342_v10 = vmul.f32 %v4939_v23, %v6180_v9 }
 0x2fe   : > { %2496 = vst.msk [vmem:[%s4975_s24 + $0x1dc] sm:$0xf] %vm2376_vm1, %v2821_v35  ;;  %v2822_v18 = vpack.c.bf16 %v1856_v22, %v1856_v22  ;;  %v1857_v49 = vsel %vm1601_vm3, %v1473_v11, %v1729_v8  ;;  %v1343_v60 = vmul.f32 %v4939_v23, %v6181_v57  ;;  %vm1603_vm5 = vcmp.ge.f32.partialorder %v1475_v36, 0.0 }
 0x2ff   : > { %v2823_v28 = vpack.c.bf16 %v1857_v49, %v1857_v49  ;;  %v1858_v39 = vsel %vm1602_vm4, %v1474_v33, %v1730_v13  ;;  %v1731_v4 = vmul.f32 0.2, %v1475_v36  ;;  %v1476_v37 = vadd.f32 %v5329_v29, %v1341_v43 }
 0x300   : > { %2497 = vst.msk [vmem:[%s4975_s24 + $0x1e0] sm:$0xf] %vm2376_vm1, %v2822_v18  ;;  %v2824_v27 = vpack.c.bf16 %v1858_v39, %v1858_v39  ;;  %v1477_v21 = vadd.f32 %v5329_v29, %v1342_v10  ;;  %v1478_v50 = vadd.f32 %v5329_v29, %v1343_v60  ;;  %v1344_v62 = vmul.f32 %v4939_v23, %v6182_v46 }
 0x301   : > { %2498 = vst.msk [vmem:[%s4975_s24 + $0x1e4] sm:$0xf] %vm2376_vm1, %v2823_v28  ;;  %v1859_v44 = vsel %vm1603_vm5, %v1475_v36, %v1731_v4  ;;  %vm1604_vm6 = vcmp.ge.f32.partialorder %v1476_v37, 0.0  ;;  %v1732_v55 = vmul.f32 0.2, %v1476_v37 }
 0x302   : > { %2499 = vst.msk [vmem:[%s4975_s24 + $0x1e8] sm:$0xf] %vm2376_vm1, %v2824_v27  ;;  %v2825_v41 = vpack.c.bf16 %v1859_v44, %v1859_v44  ;;  %vm1605_vm7 = vcmp.ge.f32.partialorder %v1477_v21, 0.0  ;;  %v1733_v52 = vmul.f32 0.2, %v1477_v21  ;;  %vm1606_vm8 = vcmp.ge.f32.partialorder %v1478_v50, 0.0 }
 0x303   : > { %v1734_v51 = vmul.f32 0.2, %v1478_v50  ;;  %v1479_v7 = vadd.f32 %v5329_v29, %v1344_v62  ;;  %v1860_v19 = vsel %vm1604_vm6, %v1476_v37, %v1732_v55 }
 0x304   : > { %2500 = vst.msk [vmem:[%s4975_s24 + $0x1ec] sm:$0xf] %vm2376_vm1, %v2825_v41  ;;  %v2826_v15 = vpack.c.bf16 %v1860_v19, %v1860_v19  ;;  %v1861_v23 = vsel %vm1605_vm7, %v1477_v21, %v1733_v52 }
 0x305   : > { %v1862_v63 = vsel %vm1606_vm8, %v1478_v50, %v1734_v51  ;;  %vm1607_vm9 = vcmp.ge.f32.partialorder %v1479_v7, 0.0  ;;  %v2827_v56 = vpack.c.bf16 %v1861_v23, %v1861_v23  ;;  %v1735_v58 = vmul.f32 0.2, %v1479_v7 }
 0x306   : > { %v2828_v0 = vpack.c.bf16 %v1862_v63, %v1862_v63  ;;  %2501 = vst.msk [vmem:[%s4975_s24 + $0x1f0] sm:$0xf] %vm2376_vm1, %v2826_v15 }
 0x307   : > { %2502 = vst.msk [vmem:[%s4975_s24 + $0x1f4] sm:$0xf] %vm2376_vm1, %v2827_v56  ;;  %v1863_v34 = vsel %vm1607_vm9, %v1479_v7, %v1735_v58 }
 0x308   : > { %2503 = vst.msk [vmem:[%s4975_s24 + $0x1f8] sm:$0xf] %vm2376_vm1, %v2828_v0  ;;  %v2829_v3 = vpack.c.bf16 %v1863_v34, %v1863_v34 }
 0x30a   : > { %2504 = vst.msk [vmem:[%s4975_s24 + $0x1fc] sm:$0xf] %vm2376_vm1, %v2829_v3 }
 0x30b PF: > { %s13_s12 = sadd.s32 1, %s3166_s12  }
 0x30c   : > { %p10_p4 = scmp.ge.s32.totalorder %s13_s12, 4  }
 0x30e   :  { %12 = sbr.rel (!%p10_p4) target bundleno = 1 (0x1), region = 62 }

// kernel: confnet_forward.16
= control target key start
LH: loop header
LB: loop body
LE: loop exit
PB: predicated region body
PF: predicated region fallthrough
CT: control target
= control target key end

     0   :  { %s1197_s9 = smov 0   ;;  %s1366_s0 = inlined_call_operand.vmem [shape: bf16[512,256], index: 0, kind: input, shape index: {}]   ;;  %s1367_s1 = inlined_call_operand.vmem [shape: bf16[256,32], index: 1, kind: input, shape index: {}]   ;;  %s1368_s2 = inlined_call_operand.vmem [shape: bf16[512,32], index: 2, kind: output, shape index: {}]  }
   0x1 LB: > { %s849_s10 = sadd.s32 4294967295, %s1180_s9   ;;  %p853_p0 = scmp.ge.s32.totalorder %s1180_s9, 1  ;;  %s1180_s9 = sphi %s1197_s9, %s12_s9  }
   0x2   : > { %p114_p1 = scmp.lt.s32.totalorder %s1180_s9, 3 }
   0x4   : > { %p115_p2 = pnand %p853_p0, %p114_p1 }
   0x5   : > { %s854_s13 = sshll.u32 (!%p115_p2), %s849_s10, 5 }
   0x6   : > { %118 = sbr.rel (%p115_p2) target bundleno = 304 (0x130), region = 28  ;;  %p138_p3 = scmp.lt.s32.totalorder (!%p115_p2), %s854_s13, 63 }
   0xb   : > { %v1110_v0 = vld [vmem:[%s1367_s1 + $0x78] sm:$0xff]   ;;  %v1112_v2 = vld [vmem:[%s1367_s1 + $0x70] sm:$0xff]   ;;  %v1114_v4 = vld [vmem:[%s1367_s1 + $0x68] sm:$0xff]   ;;  %s1370_s13 = smov (!%p138_p3, %s854_s13), 63  ;;  %vm760_vm0 = vcmask 257024  }
   0xc   : > { %v1111_v1 = vld [vmem:[%s1367_s1 + $0x38] sm:$0xff]   ;;  %974 = vmatprep.subr.bf16.mxu0 %v1110_v0  ;;  %1086 = vmatprep.subr.bf16.mxu1 %v1110_v0  ;;  %v1113_v3 = vld [vmem:[%s1367_s1 + $0x30] sm:$0xff]   ;;  %v1115_v5 = vld [vmem:[%s1367_s1 + $0x28] sm:$0xff]   ;;  %s941_s28 = sshll.u32 %s1370_s13, 3  ;;  %s858_s22 = sshll.u32 %s1370_s13, 2 }
   0xd   : > { %975 = vmatpush3.bf16.msra.mxu0 %v1111_v1  ;;  %1094 = vmatpush3.bf16.msra.mxu1 %v1111_v1  ;;  %v1116_v6 = vld [vmem:[%s1367_s1 + $0x60] sm:$0xff]   ;;  %v1118_v8 = vld [vmem:[%s1367_s1 + $0x58] sm:$0xff]   ;;  %s1238_s5 = scalar_lea.vmem %s1366_s0, %s941_s28  ;;  %v1120_v10 = vld [vmem:[%s1367_s1 + $0x50] sm:$0xff]   ;;  %s1297_s25 = scalar_lea.vmem %s1368_s2, %s858_s22 }
   0xe   : > { %976 = vmatprep.subr.bf16.mxu0 %v1112_v2  ;;  %1087 = vmatprep.subr.bf16.mxu1 %v1112_v2  ;;  %v1117_v7 = vld [vmem:[%s1367_s1 + $0x20] sm:$0xff]   ;;  %v1119_v9 = vld [vmem:[%s1367_s1 + $0x18] sm:$0xff]   ;;  %v1121_v13 = vld [vmem:[%s1367_s1 + $0x10] sm:$0xff]  }
   0xf   : > { %v1128_v11 = vld [vmem:[%s1238_s5 + $0x4] ss:$8 sps:$4 sm:$0xff]   ;;  %v1126_v18 = vld [vmem:[%s1238_s5] ss:$8 sps:$4 sm:$0xff]   ;;  %v1132_v20 = vld [vmem:[%s1238_s5 + $0x14] ss:$8 sps:$4 sm:$0xff]  }
  0x10   : > { %v1131_v12 = vld [vmem:[%s1238_s5 + $0x84] ss:$8 sps:$4 sm:$0xff]   ;;  %503 = vmatprep.mubr.bf16.mxu0 %v1128_v11  ;;  %v1129_v19 = vld [vmem:[%s1238_s5 + $0x80] ss:$8 sps:$4 sm:$0xff]   ;;  %v1134_v21 = vld [vmem:[%s1238_s5 + $0x94] ss:$8 sps:$4 sm:$0xff]  }
  0x11   : > { %977 = vmatpush3.bf16.msra.mxu0 %v1113_v3  ;;  %1095 = vmatpush3.bf16.msra.mxu1 %v1113_v3  ;;  %v1122_v14 = vld [vmem:[%s1367_s1 + $0x48] sm:$0xff]   ;;  %v1124_v16 = vld [vmem:[%s1367_s1 + $0x40] sm:$0xff]   ;;  %v1136_v22 = vld [vmem:[%s1238_s5 + $0x10] ss:$8 sps:$4 sm:$0xff]  }
  0x12   : > { %978 = vmatprep.subr.bf16.mxu0 %v1114_v4  ;;  %1088 = vmatprep.subr.bf16.mxu1 %v1114_v4  ;;  %v1123_v15 = vld [vmem:[%s1367_s1 + $0x8] sm:$0xff]   ;;  %v1125_v17 = vld [vmem:[%s1367_s1] sm:$0xff]   ;;  %v1137_v23 = vld [vmem:[%s1238_s5 + $0x90] ss:$8 sps:$4 sm:$0xff]  }
  0x13   : > { %567 = vmatprep.mubr.bf16.mxu1 %v1131_v12  ;;  %v1138_v24 = vld [vmem:[%s1238_s5 + $0x24] ss:$8 sps:$4 sm:$0xff]   ;;  %v1142_v26 = vld [vmem:[%s1238_s5 + $0x20] ss:$8 sps:$4 sm:$0xff]   ;;  %v1144_v28 = vld [vmem:[%s1238_s5 + $0x34] ss:$8 sps:$4 sm:$0xff]  }
  0x14   : > { %v1140_v25 = vld [vmem:[%s1238_s5 + $0xa4] ss:$8 sps:$4 sm:$0xff]   ;;  %v1143_v27 = vld [vmem:[%s1238_s5 + $0xa0] ss:$8 sps:$4 sm:$0xff]   ;;  %v1146_v29 = vld [vmem:[%s1238_s5 + $0xb4] ss:$8 sps:$4 sm:$0xff]  }
  0x15   : > { %979 = vmatpush3.bf16.msra.mxu0 %v1115_v5  ;;  %1096 = vmatpush3.bf16.msra.mxu1 %v1115_v5  ;;  %v1148_v30 = vld [vmem:[%s1238_s5 + $0x30] ss:$8 sps:$4 sm:$0xff]   ;;  %v1150_v32 = vld [vmem:[%s1238_s5 + $0x44] ss:$8 sps:$4 sm:$0xff]   ;;  %v1154_v34 = vld [vmem:[%s1238_s5 + $0x40] ss:$8 sps:$4 sm:$0xff]  }
  0x16   : > { %980 = vmatprep.subr.bf16.mxu0 %v1116_v6  ;;  %1089 = vmatprep.subr.bf16.mxu1 %v1116_v6  ;;  %v1149_v31 = vld [vmem:[%s1238_s5 + $0xb0] ss:$8 sps:$4 sm:$0xff]   ;;  %v1152_v33 = vld [vmem:[%s1238_s5 + $0xc4] ss:$8 sps:$4 sm:$0xff]   ;;  %v1155_v35 = vld [vmem:[%s1238_s5 + $0xc0] ss:$8 sps:$4 sm:$0xff]  }
  0x17   : > { %v1156_v36 = vld [vmem:[%s1238_s5 + $0x54] ss:$8 sps:$4 sm:$0xff]   ;;  %v1160_v38 = vld [vmem:[%s1238_s5 + $0x50] ss:$8 sps:$4 sm:$0xff]   ;;  %v1162_v40 = vld [vmem:[%s1238_s5 + $0x64] ss:$8 sps:$4 sm:$0xff]  }
  0x18   : > { %v1158_v37 = vld [vmem:[%s1238_s5 + $0xd4] ss:$8 sps:$4 sm:$0xff]   ;;  %v1161_v39 = vld [vmem:[%s1238_s5 + $0xd0] ss:$8 sps:$4 sm:$0xff]   ;;  %v1164_v41 = vld [vmem:[%s1238_s5 + $0xe4] ss:$8 sps:$4 sm:$0xff]  }
  0x19   : > { %981 = vmatpush3.bf16.msra.mxu0 %v1117_v7  ;;  %1097 = vmatpush3.bf16.msra.mxu1 %v1117_v7  ;;  %v1166_v42 = vld [vmem:[%s1238_s5 + $0x60] ss:$8 sps:$4 sm:$0xff]   ;;  %v1168_v44 = vld [vmem:[%s1238_s5 + $0x74] ss:$8 sps:$4 sm:$0xff]   ;;  %v1172_v46 = vld [vmem:[%s1238_s5 + $0x70] ss:$8 sps:$4 sm:$0xff]  }
  0x1a   : > { %982 = vmatprep.subr.bf16.mxu0 %v1118_v8  ;;  %1090 = vmatprep.subr.bf16.mxu1 %v1118_v8  ;;  %v1167_v43 = vld [vmem:[%s1238_s5 + $0xe0] ss:$8 sps:$4 sm:$0xff]   ;;  %v1170_v45 = vld [vmem:[%s1238_s5 + $0xf4] ss:$8 sps:$4 sm:$0xff]   ;;  %v1173_v47 = vld [vmem:[%s1238_s5 + $0xf0] ss:$8 sps:$4 sm:$0xff]  }
  0x1d   : > { %983 = vmatpush3.bf16.msra.mxu0 %v1119_v9  ;;  %1098 = vmatpush3.bf16.msra.mxu1 %v1119_v9 }
  0x1e   : > { %984 = vmatprep.subr.bf16.mxu0 %v1120_v10  ;;  %1091 = vmatprep.subr.bf16.mxu1 %v1120_v10 }
  0x21   : > { %985 = vmatpush3.bf16.msra.mxu0 %v1121_v13  ;;  %1099 = vmatpush3.bf16.msra.mxu1 %v1121_v13 }
  0x22   : > { %986 = vmatprep.subr.bf16.mxu0 %v1122_v14  ;;  %1092 = vmatprep.subr.bf16.mxu1 %v1122_v14 }
  0x25   : > { %987 = vmatpush3.bf16.msra.mxu0 %v1123_v15  ;;  %1100 = vmatpush3.bf16.msra.mxu1 %v1123_v15 }
  0x26   : > { %988 = vmatprep.subr.bf16.mxu0 %v1124_v16  ;;  %1093 = vmatprep.subr.bf16.mxu1 %v1124_v16 }
  0x29   : > { %989 = vmatpush3.bf16.msra.mxu0 %v1125_v17  ;;  %1101 = vmatpush3.bf16.msra.mxu1 %v1125_v17 }
  0x2c   : > { %504 = vmatmul.mubr.bf16.vlgmr.msra.gmra.mxu0 %v1126_v18  ;;  %568 = vmatmul.mubr.bf16.vlgmr.msra.gmra.mxu1 %v1129_v19 }
  0x2d   : > { %511 = vmatprep.mubr.bf16.mxu0 %v1132_v20  ;;  %575 = vmatprep.mubr.bf16.mxu1 %v1134_v21 }
  0x34   : > { %512 = vmatmul.mubr.bf16.gmra.mxu0 %v1136_v22  ;;  %576 = vmatmul.mubr.bf16.gmra.mxu1 %v1137_v23 }
  0x35   : > { %519 = vmatprep.mubr.bf16.mxu0 %v1138_v24  ;;  %583 = vmatprep.mubr.bf16.mxu1 %v1140_v25 }
  0x3c   : > { %520 = vmatmul.mubr.bf16.gmra.mxu0 %v1142_v26  ;;  %584 = vmatmul.mubr.bf16.gmra.mxu1 %v1143_v27 }
  0x3d   : > { %527 = vmatprep.mubr.bf16.mxu0 %v1144_v28  ;;  %591 = vmatprep.mubr.bf16.mxu1 %v1146_v29 }
  0x44   : > { %528 = vmatmul.mubr.bf16.gmra.mxu0 %v1148_v30  ;;  %592 = vmatmul.mubr.bf16.gmra.mxu1 %v1149_v31 }
  0x45   : > { %535 = vmatprep.mubr.bf16.mxu0 %v1150_v32  ;;  %599 = vmatprep.mubr.bf16.mxu1 %v1152_v33 }
  0x4c   : > { %536 = vmatmul.mubr.bf16.gmra.mxu0 %v1154_v34  ;;  %600 = vmatmul.mubr.bf16.gmra.mxu1 %v1155_v35 }
  0x4d   : > { %543 = vmatprep.mubr.bf16.mxu0 %v1156_v36  ;;  %607 = vmatprep.mubr.bf16.mxu1 %v1158_v37 }
  0x54   : > { %544 = vmatmul.mubr.bf16.gmra.mxu0 %v1160_v38  ;;  %608 = vmatmul.mubr.bf16.gmra.mxu1 %v1161_v39 }
  0x55   : > { %551 = vmatprep.mubr.bf16.mxu0 %v1162_v40  ;;  %615 = vmatprep.mubr.bf16.mxu1 %v1164_v41 }
  0x5c   : > { %552 = vmatmul.mubr.bf16.gmra.mxu0 %v1166_v42  ;;  %616 = vmatmul.mubr.bf16.gmra.mxu1 %v1167_v43 }
  0x5d   : > { %559 = vmatprep.mubr.bf16.mxu0 %v1168_v44  ;;  %623 = vmatprep.mubr.bf16.mxu1 %v1170_v45 }
  0x64   : > { %560 = vmatmul.mubr.bf16.gmra.mxu0 %v1172_v46  ;;  %624 = vmatmul.mubr.bf16.gmra.mxu1 %v1173_v47 }
  0xec   : > { %v990_v48 = vpop.f32.mrf.mxu0  ;;  %v1038_v49 = vpop.f32.mrf.mxu1 }
  0xee   : > { %v991_v50 = vpop.f32.mrf.mxu0  ;;  %v1039_v51 = vpop.f32.mrf.mxu1 }
  0xef   : > { %v992_v52 = vadd.f32 %v991_v50, %v990_v48  ;;  %v1040_v53 = vadd.f32 %v1039_v51, %v1038_v49 }
  0xf0   : > { %v993_v54 = vpop.f32.mrf.mxu0  ;;  %v1041_v55 = vpop.f32.mrf.mxu1 }
  0xf1   : > { %v942_v56 = vpack.c.bf16 %v992_v52, %v992_v52  ;;  %v958_v57 = vpack.c.bf16 %v1040_v53, %v1040_v53 }
  0xf2   : > { %v994_v58 = vpop.f32.mrf.mxu0  ;;  %v1042_v59 = vpop.f32.mrf.mxu1 }
  0xf3   : > { %761 = vst.msk [vmem:[%s1297_s25] sm:$0xf] %vm760_vm0, %v942_v56  ;;  %777 = vst.msk [vmem:[%s1297_s25 + $0x40] sm:$0xf] %vm760_vm0, %v958_v57  ;;  %v995_v60 = vadd.f32 %v994_v58, %v993_v54  ;;  %v1043_v61 = vadd.f32 %v1042_v59, %v1041_v55 }
  0xf4   : > { %v996_v62 = vpop.f32.mrf.mxu0  ;;  %v1044_v63 = vpop.f32.mrf.mxu1 }
  0xf5   : > { %v943_v0 = vpack.c.bf16 %v995_v60, %v995_v60  ;;  %v959_v1 = vpack.c.bf16 %v1043_v61, %v1043_v61 }
  0xf6   : > { %v997_v2 = vpop.f32.mrf.mxu0  ;;  %v1045_v3 = vpop.f32.mrf.mxu1 }
  0xf7   : > { %762 = vst.msk [vmem:[%s1297_s25 + $0x4] sm:$0xf] %vm760_vm0, %v943_v0  ;;  %778 = vst.msk [vmem:[%s1297_s25 + $0x44] sm:$0xf] %vm760_vm0, %v959_v1  ;;  %v998_v4 = vadd.f32 %v997_v2, %v996_v62  ;;  %v1046_v5 = vadd.f32 %v1045_v3, %v1044_v63 }
  0xf8   : > { %v999_v6 = vpop.f32.mrf.mxu0  ;;  %v1047_v7 = vpop.f32.mrf.mxu1 }
  0xf9   : > { %v944_v8 = vpack.c.bf16 %v998_v4, %v998_v4  ;;  %v960_v9 = vpack.c.bf16 %v1046_v5, %v1046_v5 }
  0xfa   : > { %v1000_v10 = vpop.f32.mrf.mxu0  ;;  %v1048_v11 = vpop.f32.mrf.mxu1 }
  0xfb   : > { %763 = vst.msk [vmem:[%s1297_s25 + $0x8] sm:$0xf] %vm760_vm0, %v944_v8  ;;  %779 = vst.msk [vmem:[%s1297_s25 + $0x48] sm:$0xf] %vm760_vm0, %v960_v9  ;;  %v1001_v12 = vadd.f32 %v1000_v10, %v999_v6  ;;  %v1049_v13 = vadd.f32 %v1048_v11, %v1047_v7 }
  0xfc   : > { %v1002_v14 = vpop.f32.mrf.mxu0  ;;  %v1050_v15 = vpop.f32.mrf.mxu1 }
  0xfd   : > { %v945_v16 = vpack.c.bf16 %v1001_v12, %v1001_v12  ;;  %v961_v17 = vpack.c.bf16 %v1049_v13, %v1049_v13 }
  0xfe   : > { %v1003_v18 = vpop.f32.mrf.mxu0  ;;  %v1051_v19 = vpop.f32.mrf.mxu1 }
  0xff   : > { %764 = vst.msk [vmem:[%s1297_s25 + $0xc] sm:$0xf] %vm760_vm0, %v945_v16  ;;  %780 = vst.msk [vmem:[%s1297_s25 + $0x4c] sm:$0xf] %vm760_vm0, %v961_v17  ;;  %v1004_v20 = vadd.f32 %v1003_v18, %v1002_v14  ;;  %v1052_v21 = vadd.f32 %v1051_v19, %v1050_v15 }
 0x100   : > { %v1005_v22 = vpop.f32.mrf.mxu0  ;;  %v1053_v23 = vpop.f32.mrf.mxu1 }
 0x101   : > { %v946_v24 = vpack.c.bf16 %v1004_v20, %v1004_v20  ;;  %v962_v25 = vpack.c.bf16 %v1052_v21, %v1052_v21 }
 0x102   : > { %v1006_v26 = vpop.f32.mrf.mxu0  ;;  %v1054_v27 = vpop.f32.mrf.mxu1 }
 0x103   : > { %765 = vst.msk [vmem:[%s1297_s25 + $0x10] sm:$0xf] %vm760_vm0, %v946_v24  ;;  %781 = vst.msk [vmem:[%s1297_s25 + $0x50] sm:$0xf] %vm760_vm0, %v962_v25  ;;  %v1007_v28 = vadd.f32 %v1006_v26, %v1005_v22  ;;  %v1055_v29 = vadd.f32 %v1054_v27, %v1053_v23 }
 0x104   : > { %v1008_v30 = vpop.f32.mrf.mxu0  ;;  %v1056_v31 = vpop.f32.mrf.mxu1 }
 0x105   : > { %v947_v32 = vpack.c.bf16 %v1007_v28, %v1007_v28  ;;  %v963_v33 = vpack.c.bf16 %v1055_v29, %v1055_v29 }
 0x106   : > { %v1009_v34 = vpop.f32.mrf.mxu0  ;;  %v1057_v35 = vpop.f32.mrf.mxu1 }
 0x107   : > { %766 = vst.msk [vmem:[%s1297_s25 + $0x14] sm:$0xf] %vm760_vm0, %v947_v32  ;;  %782 = vst.msk [vmem:[%s1297_s25 + $0x54] sm:$0xf] %vm760_vm0, %v963_v33  ;;  %v1010_v36 = vadd.f32 %v1009_v34, %v1008_v30  ;;  %v1058_v37 = vadd.f32 %v1057_v35, %v1056_v31 }
 0x108   : > { %v1011_v38 = vpop.f32.mrf.mxu0  ;;  %v1059_v39 = vpop.f32.mrf.mxu1 }
 0x109   : > { %v948_v40 = vpack.c.bf16 %v1010_v36, %v1010_v36  ;;  %v964_v41 = vpack.c.bf16 %v1058_v37, %v1058_v37 }
 0x10a   : > { %v1012_v42 = vpop.f32.mrf.mxu0  ;;  %v1060_v43 = vpop.f32.mrf.mxu1 }
 0x10b   : > { %767 = vst.msk [vmem:[%s1297_s25 + $0x18] sm:$0xf] %vm760_vm0, %v948_v40  ;;  %783 = vst.msk [vmem:[%s1297_s25 + $0x58] sm:$0xf] %vm760_vm0, %v964_v41  ;;  %v1013_v44 = vadd.f32 %v1012_v42, %v1011_v38  ;;  %v1061_v45 = vadd.f32 %v1060_v43, %v1059_v39 }
 0x10c   : > { %v1014_v46 = vpop.f32.mrf.mxu0  ;;  %v1062_v47 = vpop.f32.mrf.mxu1 }
 0x10d   : > { %v949_v48 = vpack.c.bf16 %v1013_v44, %v1013_v44  ;;  %v965_v49 = vpack.c.bf16 %v1061_v45, %v1061_v45 }
 0x10e   : > { %v1015_v50 = vpop.f32.mrf.mxu0  ;;  %v1063_v51 = vpop.f32.mrf.mxu1 }
 0x10f   : > { %768 = vst.msk [vmem:[%s1297_s25 + $0x1c] sm:$0xf] %vm760_vm0, %v949_v48  ;;  %784 = vst.msk [vmem:[%s1297_s25 + $0x5c] sm:$0xf] %vm760_vm0, %v965_v49  ;;  %v1016_v52 = vadd.f32 %v1015_v50, %v1014_v46  ;;  %v1064_v53 = vadd.f32 %v1063_v51, %v1062_v47 }
 0x110   : > { %v1017_v54 = vpop.f32.mrf.mxu0  ;;  %v1065_v55 = vpop.f32.mrf.mxu1 }
 0x111   : > { %v950_v56 = vpack.c.bf16 %v1016_v52, %v1016_v52  ;;  %v966_v57 = vpack.c.bf16 %v1064_v53, %v1064_v53 }
 0x112   : > { %v1018_v58 = vpop.f32.mrf.mxu0  ;;  %v1066_v59 = vpop.f32.mrf.mxu1 }
 0x113   : > { %769 = vst.msk [vmem:[%s1297_s25 + $0x20] sm:$0xf] %vm760_vm0, %v950_v56  ;;  %785 = vst.msk [vmem:[%s1297_s25 + $0x60] sm:$0xf] %vm760_vm0, %v966_v57  ;;  %v1019_v60 = vadd.f32 %v1018_v58, %v1017_v54  ;;  %v1067_v61 = vadd.f32 %v1066_v59, %v1065_v55 }
 0x114   : > { %v1020_v62 = vpop.f32.mrf.mxu0  ;;  %v1068_v63 = vpop.f32.mrf.mxu1 }
 0x115   : > { %v951_v0 = vpack.c.bf16 %v1019_v60, %v1019_v60  ;;  %v967_v1 = vpack.c.bf16 %v1067_v61, %v1067_v61 }
 0x116   : > { %v1021_v2 = vpop.f32.mrf.mxu0  ;;  %v1069_v3 = vpop.f32.mrf.mxu1 }
 0x117   : > { %770 = vst.msk [vmem:[%s1297_s25 + $0x24] sm:$0xf] %vm760_vm0, %v951_v0  ;;  %786 = vst.msk [vmem:[%s1297_s25 + $0x64] sm:$0xf] %vm760_vm0, %v967_v1  ;;  %v1022_v4 = vadd.f32 %v1021_v2, %v1020_v62  ;;  %v1070_v5 = vadd.f32 %v1069_v3, %v1068_v63 }
 0x118   : > { %v1023_v6 = vpop.f32.mrf.mxu0  ;;  %v1071_v7 = vpop.f32.mrf.mxu1 }
 0x119   : > { %v952_v8 = vpack.c.bf16 %v1022_v4, %v1022_v4  ;;  %v968_v9 = vpack.c.bf16 %v1070_v5, %v1070_v5 }
 0x11a   : > { %v1024_v10 = vpop.f32.mrf.mxu0  ;;  %v1072_v11 = vpop.f32.mrf.mxu1 }
 0x11b   : > { %771 = vst.msk [vmem:[%s1297_s25 + $0x28] sm:$0xf] %vm760_vm0, %v952_v8  ;;  %787 = vst.msk [vmem:[%s1297_s25 + $0x68] sm:$0xf] %vm760_vm0, %v968_v9  ;;  %v1025_v12 = vadd.f32 %v1024_v10, %v1023_v6  ;;  %v1073_v13 = vadd.f32 %v1072_v11, %v1071_v7 }
 0x11c   : > { %v1026_v14 = vpop.f32.mrf.mxu0  ;;  %v1074_v15 = vpop.f32.mrf.mxu1 }
 0x11d   : > { %v953_v16 = vpack.c.bf16 %v1025_v12, %v1025_v12  ;;  %v969_v17 = vpack.c.bf16 %v1073_v13, %v1073_v13 }
 0x11e   : > { %v1027_v18 = vpop.f32.mrf.mxu0  ;;  %v1075_v19 = vpop.f32.mrf.mxu1 }
 0x11f   : > { %772 = vst.msk [vmem:[%s1297_s25 + $0x2c] sm:$0xf] %vm760_vm0, %v953_v16  ;;  %788 = vst.msk [vmem:[%s1297_s25 + $0x6c] sm:$0xf] %vm760_vm0, %v969_v17  ;;  %v1028_v20 = vadd.f32 %v1027_v18, %v1026_v14  ;;  %v1076_v21 = vadd.f32 %v1075_v19, %v1074_v15 }
 0x120   : > { %v1029_v22 = vpop.f32.mrf.mxu0  ;;  %v1077_v23 = vpop.f32.mrf.mxu1 }
 0x121   : > { %v954_v24 = vpack.c.bf16 %v1028_v20, %v1028_v20  ;;  %v970_v25 = vpack.c.bf16 %v1076_v21, %v1076_v21 }
 0x122   : > { %v1030_v26 = vpop.f32.mrf.mxu0  ;;  %v1078_v27 = vpop.f32.mrf.mxu1 }
 0x123   : > { %773 = vst.msk [vmem:[%s1297_s25 + $0x30] sm:$0xf] %vm760_vm0, %v954_v24  ;;  %789 = vst.msk [vmem:[%s1297_s25 + $0x70] sm:$0xf] %vm760_vm0, %v970_v25  ;;  %v1031_v28 = vadd.f32 %v1030_v26, %v1029_v22  ;;  %v1079_v29 = vadd.f32 %v1078_v27, %v1077_v23 }
 0x124   : > { %v1032_v30 = vpop.f32.mrf.mxu0  ;;  %v1080_v31 = vpop.f32.mrf.mxu1 }
 0x125   : > { %v955_v32 = vpack.c.bf16 %v1031_v28, %v1031_v28  ;;  %v971_v33 = vpack.c.bf16 %v1079_v29, %v1079_v29 }
 0x126   : > { %v1033_v34 = vpop.f32.mrf.mxu0  ;;  %v1081_v35 = vpop.f32.mrf.mxu1 }
 0x127   : > { %774 = vst.msk [vmem:[%s1297_s25 + $0x34] sm:$0xf] %vm760_vm0, %v955_v32  ;;  %790 = vst.msk [vmem:[%s1297_s25 + $0x74] sm:$0xf] %vm760_vm0, %v971_v33  ;;  %v1034_v36 = vadd.f32 %v1033_v34, %v1032_v30  ;;  %v1082_v37 = vadd.f32 %v1081_v35, %v1080_v31 }
 0x128   : > { %v1035_v38 = vpop.f32.mrf.mxu0  ;;  %v1083_v39 = vpop.f32.mrf.mxu1 }
 0x129   : > { %v956_v40 = vpack.c.bf16 %v1034_v36, %v1034_v36  ;;  %v972_v41 = vpack.c.bf16 %v1082_v37, %v1082_v37 }
 0x12a   : > { %v1036_v42 = vpop.f32.mrf.mxu0  ;;  %v1084_v43 = vpop.f32.mrf.mxu1 }
 0x12b   : > { %775 = vst.msk [vmem:[%s1297_s25 + $0x38] sm:$0xf] %vm760_vm0, %v956_v40  ;;  %791 = vst.msk [vmem:[%s1297_s25 + $0x78] sm:$0xf] %vm760_vm0, %v972_v41  ;;  %v1037_v44 = vadd.f32 %v1036_v42, %v1035_v38  ;;  %v1085_v45 = vadd.f32 %v1084_v43, %v1083_v39 }
 0x12d   : > { %v957_v46 = vpack.c.bf16 %v1037_v44, %v1037_v44  ;;  %v973_v47 = vpack.c.bf16 %v1085_v45, %v1085_v45 }
 0x12f   : > { %776 = vst.msk [vmem:[%s1297_s25 + $0x3c] sm:$0xf] %vm760_vm0, %v957_v46  ;;  %792 = vst.msk [vmem:[%s1297_s25 + $0x7c] sm:$0xf] %vm760_vm0, %v973_v47 }
 0x130 PF: > { %s12_s9 = sadd.s32 1, %s1180_s9  }
 0x131   : > { %p9_p4 = scmp.ge.s32.totalorder %s12_s9, 4  }
 0x133   :  { %11 = sbr.rel (!%p9_p4) target bundleno = 1 (0x1), region = 58 }

// kernel: confnet_forward.17
= control target key start
LH: loop header
LB: loop body
LE: loop exit
PB: predicated region body
PF: predicated region fallthrough
CT: control target
= control target key end

     0   :  { %s1027_s12 = smov 0   ;;  %s1659_s0 = inlined_call_operand.vmem [shape: bf16[2,256,32], index: 0, kind: input, shape index: {}]   ;;  %s1660_s1 = inlined_call_operand.vmem [shape: f32[1,32], index: 1, kind: input, shape index: {}]   ;;  %s1661_s2 = inlined_call_operand.vmem [shape: f32[1,32], index: 2, kind: input, shape index: {}]   ;;  %s1662_s3 = inlined_call_operand.vmem [shape: bf16[2,256,32], index: 3, kind: output, shape index: {}]  }
   0x1 LB: > { %s832_s13 = sadd.s32 4294967295, %s1005_s12   ;;  %p836_p0 = scmp.ge.s32.totalorder %s1005_s12, 1  ;;  %s1005_s12 = sphi %s1027_s12, %s13_s12  }
   0x2   : > { %p137_p1 = scmp.lt.s32.totalorder %s1005_s12, 3 }
   0x4   : > { %p138_p2 = pnand %p836_p0, %p137_p1 }
   0x5   : > { %p161_p3 = scmp.lt.s32.totalorder (!%p138_p2), %s832_s13, 1 }
   0x6   : > { %141 = sbr.rel (%p138_p2) target bundleno = 248 (0xf8), region = 32 }
   0xb   : > { %s1664_s13 = smov (!%p161_p3, %s832_s13), 1  ;;  %vm235_vm0 = vcmask 261120   ;;  %vm744_vm1 = vcmask 257024  }
   0xc   : > { %s876_s14 = sshll.u32 %s1664_s13, 7 }
   0xd   : > { %s1043_s17 = scalar_lea.vmem %s1659_s0, %s876_s14  ;;  %s1518_s24 = scalar_lea.vmem %s1662_s3, %s876_s14 }
   0xe   : > { %v1046_v0 = vld [vmem:[%s1043_s17] sm:$0xff]   ;;  %v1049_v1 = vld [vmem:[%s1043_s17 + $0x8] sm:$0xff]   ;;  %v1055_v5 = vld [vmem:[%s1043_s17 + $0x10] sm:$0xff]  }
   0xf   : > { %v912_v2 = vunpack.c.l.bf16 %v1046_v0  ;;  %v913_v3 = vunpack.c.h.bf16 %v1046_v0  ;;  %v916_v4 = vunpack.c.l.bf16 %v1049_v1  ;;  %v917_v6 = vunpack.c.h.bf16 %v1049_v1  ;;  %v1069_v11 = vld [vmem:[%s1043_s17 + $0x18] sm:$0xff]   ;;  %v1080_v18 = vld [vmem:[%s1043_s17 + $0x20] sm:$0xff]   ;;  %v1091_v25 = vld [vmem:[%s1043_s17 + $0x28] sm:$0xff]  }
  0x10   : > { %v920_v7 = vunpack.c.l.bf16 %v1055_v5  ;;  %v921_v13 = vunpack.c.h.bf16 %v1055_v5  ;;  %v924_v16 = vunpack.c.l.bf16 %v1069_v11  ;;  %v925_v20 = vunpack.c.h.bf16 %v1069_v11  ;;  %v1102_v32 = vld [vmem:[%s1043_s17 + $0x30] sm:$0xff]   ;;  %v1113_v39 = vld [vmem:[%s1043_s17 + $0x38] sm:$0xff]   ;;  %v1124_v46 = vld [vmem:[%s1043_s17 + $0x40] sm:$0xff]  }
  0x11   : > { %v236_v8 = vsel %vm235_vm0, %v912_v2, 0.0  ;;  %v237_v9 = vsel %vm235_vm0, %v913_v3, 0.0  ;;  %v239_v10 = vsel %vm235_vm0, %v916_v4, 0.0  ;;  %v241_v14 = vsel %vm235_vm0, %v917_v6, 0.0  ;;  %v1135_v53 = vld [vmem:[%s1043_s17 + $0x48] sm:$0xff]   ;;  %v1146_v60 = vld [vmem:[%s1043_s17 + $0x50] sm:$0xff]  }
  0x12   : > { %v238_v12 = vadd.f32 %v237_v9, %v236_v8  ;;  %v243_v17 = vsel %vm235_vm0, %v920_v7, 0.0  ;;  %v245_v21 = vsel %vm235_vm0, %v921_v13, 0.0  ;;  %v928_v23 = vunpack.c.l.bf16 %v1080_v18 }
  0x13   : > { %v247_v24 = vsel %vm235_vm0, %v924_v16, 0.0  ;;  %v929_v27 = vunpack.c.h.bf16 %v1080_v18  ;;  %v249_v28 = vsel %vm235_vm0, %v925_v20, 0.0  ;;  %v932_v30 = vunpack.c.l.bf16 %v1091_v25 }
  0x14   : > { %v240_v15 = vadd.f32 %v239_v10, %v238_v12  ;;  %v251_v31 = vsel %vm235_vm0, %v928_v23, 0.0  ;;  %v933_v34 = vunpack.c.h.bf16 %v1091_v25  ;;  %v936_v37 = vunpack.c.l.bf16 %v1102_v32  ;;  %v1157_v12 = vld [vmem:[%s1043_s17 + $0x58] sm:$0xff]  }
  0x15   : > { %v253_v35 = vsel %vm235_vm0, %v929_v27, 0.0  ;;  %v255_v38 = vsel %vm235_vm0, %v932_v30, 0.0  ;;  %v937_v41 = vunpack.c.h.bf16 %v1102_v32  ;;  %v940_v44 = vunpack.c.l.bf16 %v1113_v39 }
  0x16   : > { %v242_v19 = vadd.f32 %v241_v14, %v240_v15  ;;  %v257_v42 = vsel %vm235_vm0, %v933_v34, 0.0  ;;  %v259_v45 = vsel %vm235_vm0, %v936_v37, 0.0  ;;  %v941_v48 = vunpack.c.h.bf16 %v1113_v39 }
  0x17   : > { %v261_v49 = vsel %vm235_vm0, %v937_v41, 0.0  ;;  %v944_v51 = vunpack.c.l.bf16 %v1124_v46  ;;  %v263_v52 = vsel %vm235_vm0, %v940_v44, 0.0  ;;  %v945_v55 = vunpack.c.h.bf16 %v1124_v46 }
  0x18   : > { %v244_v22 = vadd.f32 %v243_v17, %v242_v19  ;;  %v265_v56 = vsel %vm235_vm0, %v941_v48, 0.0  ;;  %v948_v58 = vunpack.c.l.bf16 %v1135_v53  ;;  %v949_v62 = vunpack.c.h.bf16 %v1135_v53 }
  0x19   : > { %v267_v59 = vsel %vm235_vm0, %v944_v51, 0.0  ;;  %v269_v63 = vsel %vm235_vm0, %v945_v55, 0.0  ;;  %v952_v9 = vunpack.c.l.bf16 %v1146_v60  ;;  %v953_v15 = vunpack.c.h.bf16 %v1146_v60 }
  0x1a   : > { %v246_v26 = vadd.f32 %v245_v21, %v244_v22  ;;  %v271_v10 = vsel %vm235_vm0, %v948_v58, 0.0  ;;  %v273_v17 = vsel %vm235_vm0, %v949_v62, 0.0  ;;  %v956_v21 = vunpack.c.l.bf16 %v1157_v12 }
  0x1b   : > { %v275_v22 = vsel %vm235_vm0, %v952_v9, 0.0 }
  0x1c   : > { %v248_v29 = vadd.f32 %v247_v24, %v246_v26  ;;  %v1168_v24 = vld [vmem:[%s1043_s17 + $0x60] sm:$0xff]  }
  0x1e   : > { %v250_v33 = vadd.f32 %v249_v28, %v248_v29  ;;  %v957_v28 = vunpack.c.h.bf16 %v1157_v12  ;;  %v277_v29 = vsel %vm235_vm0, %v953_v15, 0.0 }
  0x20   : > { %v252_v36 = vadd.f32 %v251_v31, %v250_v33  ;;  %v960_v33 = vunpack.c.l.bf16 %v1168_v24 }
  0x22   : > { %v254_v40 = vadd.f32 %v253_v35, %v252_v36  ;;  %v279_v35 = vsel %vm235_vm0, %v956_v21, 0.0  ;;  %v1179_v36 = vld [vmem:[%s1043_s17 + $0x68] sm:$0xff]  }
  0x24   : > { %v256_v43 = vadd.f32 %v255_v38, %v254_v40  ;;  %v961_v40 = vunpack.c.h.bf16 %v1168_v24 }
  0x26   : > { %v258_v47 = vadd.f32 %v257_v42, %v256_v43  ;;  %v281_v42 = vsel %vm235_vm0, %v957_v28, 0.0 }
  0x28   : > { %v260_v50 = vadd.f32 %v259_v45, %v258_v47  ;;  %v964_v45 = vunpack.c.l.bf16 %v1179_v36  ;;  %v283_v47 = vsel %vm235_vm0, %v960_v33, 0.0 }
  0x2a   : > { %v262_v54 = vadd.f32 %v261_v49, %v260_v50  ;;  %v1190_v49 = vld [vmem:[%s1043_s17 + $0x70] sm:$0xff]  }
  0x2c   : > { %v264_v57 = vadd.f32 %v263_v52, %v262_v54  ;;  %v965_v52 = vunpack.c.h.bf16 %v1179_v36  ;;  %v285_v54 = vsel %vm235_vm0, %v961_v40, 0.0 }
  0x2e   : > { %v266_v61 = vadd.f32 %v265_v56, %v264_v57  ;;  %v968_v57 = vunpack.c.l.bf16 %v1190_v49 }
  0x30   : > { %v268_v8 = vadd.f32 %v267_v59, %v266_v61  ;;  %v287_v59 = vsel %vm235_vm0, %v964_v45, 0.0  ;;  %v1201_v61 = vld [vmem:[%s1043_s17 + $0x78] sm:$0xff]  }
  0x32   : > { %v270_v14 = vadd.f32 %v269_v63, %v268_v8  ;;  %v969_v8 = vunpack.c.h.bf16 %v1190_v49 }
  0x34   : > { %v272_v19 = vadd.f32 %v271_v10, %v270_v14  ;;  %v289_v10 = vsel %vm235_vm0, %v965_v52, 0.0 }
  0x36   : > { %v274_v26 = vadd.f32 %v273_v17, %v272_v19  ;;  %v972_v17 = vunpack.c.l.bf16 %v1201_v61  ;;  %v291_v19 = vsel %vm235_vm0, %v968_v57, 0.0 }
  0x38   : > { %v276_v31 = vadd.f32 %v275_v22, %v274_v26  ;;  %v973_v26 = vunpack.c.h.bf16 %v1201_v61 }
  0x3a   : > { %v278_v38 = vadd.f32 %v277_v29, %v276_v31  ;;  %v293_v29 = vsel %vm235_vm0, %v969_v8, 0.0 }
  0x3c   : > { %v280_v43 = vadd.f32 %v279_v35, %v278_v38  ;;  %v295_v35 = vsel %vm235_vm0, %v972_v17, 0.0 }
  0x3e   : > { %v282_v50 = vadd.f32 %v281_v42, %v280_v43  ;;  %v297_v42 = vsel %vm235_vm0, %v973_v26, 0.0 }
  0x40   : > { %v284_v56 = vadd.f32 %v283_v47, %v282_v50 }
  0x42   : > { %v286_v63 = vadd.f32 %v285_v54, %v284_v56 }
  0x44   : > { %v288_v14 = vadd.f32 %v287_v59, %v286_v63 }
  0x46   : > { %v290_v22 = vadd.f32 %v289_v10, %v288_v14 }
  0x48   : > { %v292_v31 = vadd.f32 %v291_v19, %v290_v22 }
  0x4a   : > { %v294_v38 = vadd.f32 %v293_v29, %v292_v31 }
  0x4c   : > { %v296_v43 = vadd.f32 %v295_v35, %v294_v38 }
  0x4e   : > { %v298_v47 = vadd.f32 %v297_v42, %v296_v43 }
  0x50   : > { %v299_v50 = vrot.slane %v298_v47, 4 }
  0x52   : > { %v300_v54 = vadd.f32 %v299_v50, %v298_v47 }
  0x54   : > { %v301_v56 = vrot.slane %v300_v54, 2 }
  0x56   : > { %v302_v59 = vadd.f32 %v301_v56, %v300_v54 }
  0x58   : > { %v303_v63 = vrot.slane %v302_v59, 1 }
  0x5a   : > { %v304_v10 = vadd.f32 %v303_v63, %v302_v59 }
  0x5c   : > { %v1221_v14 = vmul.f32 0.00390625, %v304_v10 }
  0x5e   : > { %v1226_v19 = vsub.f32 %v912_v2, %v1221_v14  ;;  %v1231_v22 = vsub.f32 %v913_v3, %v1221_v14  ;;  %v1236_v29 = vsub.f32 %v916_v4, %v1221_v14  ;;  %v1241_v31 = vsub.f32 %v917_v6, %v1221_v14 }
  0x5f   : > { %v1246_v2 = vsub.f32 %v920_v7, %v1221_v14  ;;  %v1257_v1 = vsub.f32 %v921_v13, %v1221_v14  ;;  %v1264_v7 = vsub.f32 %v924_v16, %v1221_v14  ;;  %v1274_v13 = vsub.f32 %v925_v20, %v1221_v14 }
  0x60   : > { %v339_v0 = vmul.f32 %v1226_v19, %v1226_v19  ;;  %v340_v3 = vmul.f32 %v1231_v22, %v1231_v22  ;;  %v341_v4 = vmul.f32 %v1236_v29, %v1236_v29  ;;  %v342_v6 = vmul.f32 %v1241_v31, %v1241_v31 }
  0x61   : > { %v343_v35 = vmul.f32 %v1246_v2, %v1246_v2  ;;  %v344_v47 = vmul.f32 %v1257_v1, %v1257_v1  ;;  %v1282_v54 = vsub.f32 %v928_v23, %v1221_v14  ;;  %v345_v56 = vmul.f32 %v1264_v7, %v1264_v7 }
  0x62   : > { %v371_v38 = vsel %vm235_vm0, %v339_v0, 0.0  ;;  %v372_v42 = vsel %vm235_vm0, %v340_v3, 0.0  ;;  %v374_v43 = vsel %vm235_vm0, %v341_v4, 0.0  ;;  %v376_v16 = vsel %vm235_vm0, %v342_v6, 0.0 }
  0x63   : > { %v373_v5 = vadd.f32 %v372_v42, %v371_v38  ;;  %v378_v59 = vsel %vm235_vm0, %v343_v35, 0.0  ;;  %v1290_v11 = vsub.f32 %v929_v27, %v1221_v14  ;;  %v346_v20 = vmul.f32 %v1274_v13, %v1274_v13 }
  0x64   : > { %v380_v10 = vsel %vm235_vm0, %v344_v47, 0.0  ;;  %v1298_v23 = vsub.f32 %v932_v30, %v1221_v14  ;;  %v347_v3 = vmul.f32 %v1282_v54, %v1282_v54  ;;  %v382_v4 = vsel %vm235_vm0, %v345_v56, 0.0 }
  0x65   : > { %v375_v50 = vadd.f32 %v374_v43, %v373_v5  ;;  %v1306_v18 = vsub.f32 %v933_v34, %v1221_v14  ;;  %v348_v27 = vmul.f32 %v1290_v11, %v1290_v11  ;;  %v384_v35 = vsel %vm235_vm0, %v346_v20, 0.0 }
  0x66   : > { %v1314_v30 = vsub.f32 %v936_v37, %v1221_v14  ;;  %v349_v42 = vmul.f32 %v1298_v23, %v1298_v23  ;;  %v386_v43 = vsel %vm235_vm0, %v347_v3, 0.0  ;;  %v1322_v25 = vsub.f32 %v937_v41, %v1221_v14 }
  0x67   : > { %v377_v63 = vadd.f32 %v376_v16, %v375_v50  ;;  %v350_v34 = vmul.f32 %v1306_v18, %v1306_v18  ;;  %v388_v47 = vsel %vm235_vm0, %v348_v27, 0.0  ;;  %v1330_v37 = vsub.f32 %v940_v44, %v1221_v14 }
  0x68   : > { %v351_v50 = vmul.f32 %v1314_v30, %v1314_v30  ;;  %v390_v56 = vsel %vm235_vm0, %v349_v42, 0.0  ;;  %v1338_v32 = vsub.f32 %v941_v48, %v1221_v14  ;;  %v352_v41 = vmul.f32 %v1322_v25, %v1322_v25 }
  0x69   : > { %v379_v0 = vadd.f32 %v378_v59, %v377_v63  ;;  %v392_v63 = vsel %vm235_vm0, %v350_v34, 0.0  ;;  %v1346_v44 = vsub.f32 %v944_v51, %v1221_v14  ;;  %v1354_v39 = vsub.f32 %v945_v55, %v1221_v14 }
  0x6a   : > { %v354_v48 = vmul.f32 %v1338_v32, %v1338_v32  ;;  %v1362_v51 = vsub.f32 %v948_v58, %v1221_v14  ;;  %v1370_v46 = vsub.f32 %v949_v62, %v1221_v14  ;;  %v1378_v58 = vsub.f32 %v952_v9, %v1221_v14 }
  0x6b   : > { %v381_v6 = vadd.f32 %v380_v10, %v379_v0  ;;  %v353_v10 = vmul.f32 %v1330_v37, %v1330_v37  ;;  %v394_v0 = vsel %vm235_vm0, %v351_v50, 0.0  ;;  %v355_v27 = vmul.f32 %v1346_v44, %v1346_v44 }
  0x6c   : > { %v356_v55 = vmul.f32 %v1354_v39, %v1354_v39  ;;  %v400_v42 = vsel %vm235_vm0, %v354_v48, 0.0  ;;  %v1386_v53 = vsub.f32 %v953_v15, %v1221_v14  ;;  %v358_v62 = vmul.f32 %v1370_v46, %v1370_v46 }
  0x6d   : > { %v383_v38 = vadd.f32 %v382_v4, %v381_v6  ;;  %v396_v4 = vsel %vm235_vm0, %v352_v41, 0.0  ;;  %v402_v34 = vsel %vm235_vm0, %v355_v27, 0.0  ;;  %v1394_v9 = vsub.f32 %v956_v21, %v1221_v14 }
  0x6e   : > { %v1402_v60 = vsub.f32 %v957_v28, %v1221_v14  ;;  %v360_v15 = vmul.f32 %v1386_v53, %v1386_v53  ;;  %v1410_v21 = vsub.f32 %v960_v33, %v1221_v14  ;;  %v1418_v12 = vsub.f32 %v961_v40, %v1221_v14 }
  0x6f   : > { %v385_v5 = vadd.f32 %v384_v35, %v383_v38  ;;  %v398_v35 = vsel %vm235_vm0, %v353_v10, 0.0  ;;  %v361_v10 = vmul.f32 %v1394_v9, %v1394_v9  ;;  %v1426_v33 = vsub.f32 %v964_v45, %v1221_v14 }
  0x70   : > { %v362_v28 = vmul.f32 %v1402_v60, %v1402_v60  ;;  %v412_v48 = vsel %vm235_vm0, %v360_v15, 0.0  ;;  %v1434_v24 = vsub.f32 %v965_v52, %v1221_v14  ;;  %v364_v40 = vmul.f32 %v1418_v12, %v1418_v12 }
  0x71   : > { %v387_v16 = vadd.f32 %v386_v43, %v385_v5  ;;  %v357_v5 = vmul.f32 %v1362_v51, %v1362_v51  ;;  %v414_v27 = vsel %vm235_vm0, %v361_v10, 0.0  ;;  %v1442_v45 = vsub.f32 %v968_v57, %v1221_v14 }
  0x72   : > { %v1450_v36 = vsub.f32 %v969_v8, %v1221_v14  ;;  %v366_v52 = vmul.f32 %v1434_v24, %v1434_v24  ;;  %v1458_v57 = vsub.f32 %v972_v17, %v1221_v14  ;;  %v1466_v49 = vsub.f32 %v973_v26, %v1221_v14 }
  0x73   : > { %v389_v59 = vadd.f32 %v388_v47, %v387_v16  ;;  %v404_v16 = vsel %vm235_vm0, %v356_v55, 0.0 }
  0x74   : > { %v368_v8 = vmul.f32 %v1450_v36, %v1450_v36  ;;  %v369_v17 = vmul.f32 %v1458_v57, %v1458_v57 }
  0x75   : > { %v391_v20 = vadd.f32 %v390_v56, %v389_v59  ;;  %v359_v56 = vmul.f32 %v1378_v58, %v1378_v58  ;;  %v406_v59 = vsel %vm235_vm0, %v357_v5, 0.0 }
  0x76   : > { %v430_v26 = vsel %vm235_vm0, %v369_v17, 0.0 }
  0x77   : > { %v393_v3 = vadd.f32 %v392_v63, %v391_v20  ;;  %v408_v63 = vsel %vm235_vm0, %v358_v62, 0.0  ;;  %v367_v62 = vmul.f32 %v1442_v45, %v1442_v45 }
  0x79   : > { %v395_v6 = vadd.f32 %v394_v0, %v393_v3  ;;  %v410_v0 = vsel %vm235_vm0, %v359_v56, 0.0  ;;  %v424_v56 = vsel %vm235_vm0, %v366_v52, 0.0 }
  0x7b   : > { %v397_v38 = vadd.f32 %v396_v4, %v395_v6  ;;  %v363_v6 = vmul.f32 %v1410_v21, %v1410_v21 }
  0x7d   : > { %v399_v43 = vadd.f32 %v398_v35, %v397_v38  ;;  %v416_v38 = vsel %vm235_vm0, %v362_v28, 0.0 }
  0x7f   : > { %v401_v47 = vadd.f32 %v400_v42, %v399_v43  ;;  %v365_v42 = vmul.f32 %v1426_v33, %v1426_v33  ;;  %v418_v43 = vsel %vm235_vm0, %v363_v6, 0.0 }
  0x81   : > { %v403_v50 = vadd.f32 %v402_v34, %v401_v47  ;;  %v420_v34 = vsel %vm235_vm0, %v364_v40, 0.0 }
  0x83   : > { %v405_v41 = vadd.f32 %v404_v16, %v403_v50  ;;  %v422_v16 = vsel %vm235_vm0, %v365_v42, 0.0 }
  0x85   : > { %v407_v20 = vadd.f32 %v406_v59, %v405_v41  ;;  %v426_v41 = vsel %vm235_vm0, %v367_v62, 0.0  ;;  %v1487_v62 = vld [vmem:[%s1661_s2] ss:$0 sm:$0xff] }
  0x87   : > { %v409_v3 = vadd.f32 %v408_v63, %v407_v20  ;;  %v370_v63 = vmul.f32 %v1466_v49, %v1466_v49  ;;  %v428_v20 = vsel %vm235_vm0, %v368_v8, 0.0 }
  0x89   : > { %v411_v4 = vadd.f32 %v410_v0, %v409_v3  ;;  %v432_v10 = vsel %vm235_vm0, %v370_v63, 0.0 }
  0x8b   : > { %v413_v35 = vadd.f32 %v412_v48, %v411_v4 }
  0x8d   : > { %v415_v55 = vadd.f32 %v414_v27, %v413_v35 }
  0x8f   : > { %v417_v5 = vadd.f32 %v416_v38, %v415_v55  ;;  %v445_v55 = vlaneseq }
  0x91   : > { %v419_v47 = vadd.f32 %v418_v43, %v417_v5  ;;  %v446_v42 = vshrl.u32 %v445_v55, 7  ;;  %v443_v43 = vld [vmem:[%s1660_s1] sm:$0x1] }
  0x93   : > { %v421_v50 = vadd.f32 %v420_v34, %v419_v47  ;;  %v447_v5 = vsub.s32 0, %v446_v42 }
  0x95   : > { %v423_v59 = vadd.f32 %v422_v16, %v421_v50 }
  0x97   : > { %v425_v15 = vadd.f32 %v424_v56, %v423_v59 }
  0x99   : > { %v427_v61 = vadd.f32 %v426_v41, %v425_v15 }
  0x9b   : > { %v429_v14 = vadd.f32 %v428_v20, %v427_v61 }
  0x9d   : > { %v431_v0 = vadd.f32 %v430_v26, %v429_v14 }
  0x9f   : > { %v433_v3 = vadd.f32 %v432_v10, %v431_v0 }
  0xa1   : > { %v434_v28 = vrot.slane %v433_v3, 4 }
  0xa3   : > { %v435_v48 = vadd.f32 %v434_v28, %v433_v3 }
  0xa5   : > { %v436_v4 = vrot.slane %v435_v48, 2 }
  0xa7   : > { %v437_v6 = vadd.f32 %v436_v4, %v435_v48 }
  0xa9   : > { %v438_v27 = vrot.slane %v437_v6, 1 }
  0xab   : > { %v439_v35 = vadd.f32 %v438_v27, %v437_v6 }
  0xad   : > { %v440_v40 = vmul.f32 0.00390625, %v439_v35 }
  0xaf   : > { %v441_v38 = vadd.f32 1e-05, %v440_v40 }
  0xb1   : > { %997 = vrsqrt.f32 %v441_v38 }
  0xbe   : > { %v998_v52 = vpop.eup %997 }
  0xbf   : > { %v444_v34 = vmul.f32 %v998_v52, %v443_v43 }
  0xc1   : > { %v1482_v47 = vrot.slane %v444_v34, %v447_v5 }
  0xc3   : > { %v449_v16 = vmul.f32 %v1482_v47, %v1226_v19  ;;  %v450_v50 = vmul.f32 %v1482_v47, %v1231_v22  ;;  %v451_v8 = vmul.f32 %v1482_v47, %v1236_v29  ;;  %v452_v56 = vmul.f32 %v1482_v47, %v1241_v31 }
  0xc4   : > { %v453_v59 = vmul.f32 %v1482_v47, %v1246_v2  ;;  %v454_v17 = vmul.f32 %v1482_v47, %v1257_v1  ;;  %v455_v41 = vmul.f32 %v1482_v47, %v1264_v7  ;;  %v456_v19 = vmul.f32 %v1482_v47, %v1274_v13 }
  0xc5   : > { %v488_v22 = vadd.f32 %v1487_v62, %v449_v16  ;;  %v489_v29 = vadd.f32 %v1487_v62, %v450_v50  ;;  %v490_v15 = vadd.f32 %v1487_v62, %v451_v8  ;;  %v491_v31 = vadd.f32 %v1487_v62, %v452_v56 }
  0xc6   : > { %v492_v2 = vadd.f32 %v1487_v62, %v453_v59  ;;  %v493_v63 = vadd.f32 %v1487_v62, %v454_v17  ;;  %v494_v1 = vadd.f32 %v1487_v62, %v455_v41  ;;  %v495_v7 = vadd.f32 %v1487_v62, %v456_v19 }
  0xc7   : > { %vm520_vm2 = vcmp.ge.f32.partialorder %v488_v22, 0.0  ;;  %v552_v20 = vmul.f32 0.2, %v488_v22  ;;  %vm521_vm3 = vcmp.ge.f32.partialorder %v489_v29, 0.0  ;;  %v553_v13 = vmul.f32 0.2, %v489_v29 }
  0xc8   : > { %vm522_vm4 = vcmp.ge.f32.partialorder %v490_v15, 0.0  ;;  %v554_v61 = vmul.f32 0.2, %v490_v15  ;;  %vm523_vm5 = vcmp.ge.f32.partialorder %v491_v31, 0.0  ;;  %v555_v26 = vmul.f32 0.2, %v491_v31 }
  0xc9   : > { %v584_v14 = vsel %vm520_vm2, %v488_v22, %v552_v20  ;;  %v585_v10 = vsel %vm521_vm3, %v489_v29, %v553_v13  ;;  %vm524_vm6 = vcmp.ge.f32.partialorder %v492_v2, 0.0  ;;  %v556_v0 = vmul.f32 0.2, %v492_v2 }
  0xca   : > { %v878_v3 = vpack.c.bf16 %v584_v14, %v584_v14  ;;  %v879_v28 = vpack.c.bf16 %v585_v10, %v585_v10  ;;  %v586_v48 = vsel %vm522_vm4, %v490_v15, %v554_v61  ;;  %v587_v4 = vsel %vm523_vm5, %v491_v31, %v555_v26 }
  0xcb   : > { %v880_v6 = vpack.c.bf16 %v586_v48, %v586_v48  ;;  %v881_v27 = vpack.c.bf16 %v587_v4, %v587_v4  ;;  %v588_v35 = vsel %vm524_vm6, %v492_v2, %v556_v0  ;;  %vm525_vm7 = vcmp.ge.f32.partialorder %v493_v63, 0.0 }
  0xcc   : > { %745 = vst.msk [vmem:[%s1518_s24] sm:$0xf] %vm744_vm1, %v878_v3  ;;  %746 = vst.msk [vmem:[%s1518_s24 + $0x4] sm:$0xf] %vm744_vm1, %v879_v28  ;;  %v882_v40 = vpack.c.bf16 %v588_v35, %v588_v35  ;;  %v557_v38 = vmul.f32 0.2, %v493_v63  ;;  %v457_v43 = vmul.f32 %v1482_v47, %v1282_v54  ;;  %v458_v5 = vmul.f32 %v1482_v47, %v1290_v11 }
  0xcd   : > { %vm526_vm8 = vcmp.ge.f32.partialorder %v494_v1, 0.0  ;;  %v558_v55 = vmul.f32 0.2, %v494_v1  ;;  %747 = vst.msk [vmem:[%s1518_s24 + $0x8] sm:$0xf] %vm744_vm1, %v880_v6  ;;  %vm527_vm9 = vcmp.ge.f32.partialorder %v495_v7, 0.0  ;;  %v459_v16 = vmul.f32 %v1482_v47, %v1298_v23 }
  0xce   : > { %748 = vst.msk [vmem:[%s1518_s24 + $0xc] sm:$0xf] %vm744_vm1, %v881_v27  ;;  %v559_v42 = vmul.f32 0.2, %v495_v7  ;;  %749 = vst.msk [vmem:[%s1518_s24 + $0x10] sm:$0xf] %vm744_vm1, %v882_v40  ;;  %v589_v52 = vsel %vm525_vm7, %v493_v63, %v557_v38  ;;  %v460_v50 = vmul.f32 %v1482_v47, %v1306_v18  ;;  %v496_v54 = vadd.f32 %v1487_v62, %v457_v43 }
  0xcf   : > { %v590_v34 = vsel %vm526_vm8, %v494_v1, %v558_v55  ;;  %v883_v8 = vpack.c.bf16 %v589_v52, %v589_v52  ;;  %v497_v41 = vadd.f32 %v1487_v62, %v458_v5  ;;  %v498_v11 = vadd.f32 %v1487_v62, %v459_v16 }
  0xd0   : > { %v884_v56 = vpack.c.bf16 %v590_v34, %v590_v34  ;;  %v591_v59 = vsel %vm527_vm9, %v495_v7, %v559_v42  ;;  %v499_v19 = vadd.f32 %v1487_v62, %v460_v50  ;;  %vm528_vm10 = vcmp.ge.f32.partialorder %v496_v54, 0.0 }
  0xd1   : > { %v885_v17 = vpack.c.bf16 %v591_v59, %v591_v59  ;;  %750 = vst.msk [vmem:[%s1518_s24 + $0x14] sm:$0xf] %vm744_vm1, %v883_v8  ;;  %v560_v23 = vmul.f32 0.2, %v496_v54  ;;  %v461_v18 = vmul.f32 %v1482_v47, %v1314_v30  ;;  %v462_v22 = vmul.f32 %v1482_v47, %v1322_v25 }
  0xd2   : > { %751 = vst.msk [vmem:[%s1518_s24 + $0x18] sm:$0xf] %vm744_vm1, %v884_v56  ;;  %vm529_vm11 = vcmp.ge.f32.partialorder %v497_v41, 0.0  ;;  %v561_v29 = vmul.f32 0.2, %v497_v41  ;;  %vm530_vm12 = vcmp.ge.f32.partialorder %v498_v11, 0.0  ;;  %v463_v0 = vmul.f32 %v1482_v47, %v1330_v37 }
  0xd3   : > { %752 = vst.msk [vmem:[%s1518_s24 + $0x1c] sm:$0xf] %vm744_vm1, %v885_v17  ;;  %v562_v15 = vmul.f32 0.2, %v498_v11  ;;  %v592_v31 = vsel %vm528_vm10, %v496_v54, %v560_v23  ;;  %vm531_vm13 = vcmp.ge.f32.partialorder %v499_v19, 0.0  ;;  %v500_v63 = vadd.f32 %v1487_v62, %v461_v18 }
  0xd4   : > { %v563_v2 = vmul.f32 0.2, %v499_v19  ;;  %v886_v1 = vpack.c.bf16 %v592_v31, %v592_v31  ;;  %v593_v7 = vsel %vm529_vm11, %v497_v41, %v561_v29  ;;  %v501_v20 = vadd.f32 %v1487_v62, %v462_v22 }
  0xd5   : > { %v594_v30 = vsel %vm530_vm12, %v498_v11, %v562_v15  ;;  %v887_v25 = vpack.c.bf16 %v593_v7, %v593_v7  ;;  %vm532_vm14 = vcmp.ge.f32.partialorder %v500_v63, 0.0  ;;  %v564_v14 = vmul.f32 0.2, %v500_v63 }
  0xd6   : > { %v888_v13 = vpack.c.bf16 %v594_v30, %v594_v30  ;;  %v595_v61 = vsel %vm531_vm13, %v499_v19, %v563_v2  ;;  %753 = vst.msk [vmem:[%s1518_s24 + $0x20] sm:$0xf] %vm744_vm1, %v886_v1  ;;  %vm533_vm15 = vcmp.ge.f32.partialorder %v501_v20, 0.0  ;;  %v565_v10 = vmul.f32 0.2, %v501_v20 }
  0xd7   : > { %v889_v26 = vpack.c.bf16 %v595_v61, %v595_v61  ;;  %754 = vst.msk [vmem:[%s1518_s24 + $0x24] sm:$0xf] %vm744_vm1, %v887_v25  ;;  %v464_v3 = vmul.f32 %v1482_v47, %v1338_v32  ;;  %v465_v28 = vmul.f32 %v1482_v47, %v1346_v44  ;;  %v466_v48 = vmul.f32 %v1482_v47, %v1354_v39 }
  0xd8   : > { %755 = vst.msk [vmem:[%s1518_s24 + $0x28] sm:$0xf] %vm744_vm1, %v888_v13  ;;  %v596_v4 = vsel %vm532_vm14, %v500_v63, %v564_v14  ;;  %v597_v6 = vsel %vm533_vm15, %v501_v20, %v565_v10  ;;  %v467_v27 = vmul.f32 %v1482_v47, %v1362_v51  ;;  %v468_v37 = vmul.f32 %v1482_v47, %v1370_v46 }
  0xd9   : > { %756 = vst.msk [vmem:[%s1518_s24 + $0x2c] sm:$0xf] %vm744_vm1, %v889_v26  ;;  %v890_v35 = vpack.c.bf16 %v596_v4, %v596_v4  ;;  %v891_v32 = vpack.c.bf16 %v597_v6, %v597_v6  ;;  %v502_v40 = vadd.f32 %v1487_v62, %v463_v0  ;;  %v503_v44 = vadd.f32 %v1487_v62, %v464_v3 }
  0xda   : > { %v504_v38 = vadd.f32 %v1487_v62, %v465_v28  ;;  %v505_v39 = vadd.f32 %v1487_v62, %v466_v48  ;;  %v506_v55 = vadd.f32 %v1487_v62, %v467_v27  ;;  %v507_v42 = vadd.f32 %v1487_v62, %v468_v37 }
  0xdb   : > { %757 = vst.msk [vmem:[%s1518_s24 + $0x30] sm:$0xf] %vm744_vm1, %v890_v35  ;;  %758 = vst.msk [vmem:[%s1518_s24 + $0x34] sm:$0xf] %vm744_vm1, %v891_v32  ;;  %vm534_vm0 = vcmp.ge.f32.partialorder %v502_v40, 0.0  ;;  %vm535_vm2 = vcmp.ge.f32.partialorder %v503_v44, 0.0  ;;  %v469_v23 = vmul.f32 %v1482_v47, %v1378_v58  ;;  %v470_v18 = vmul.f32 %v1482_v47, %v1386_v53 }
  0xdc   : > { %v566_v51 = vmul.f32 0.2, %v502_v40  ;;  %v567_v46 = vmul.f32 0.2, %v503_v44  ;;  %vm536_vm3 = vcmp.ge.f32.partialorder %v504_v38, 0.0  ;;  %vm537_vm4 = vcmp.ge.f32.partialorder %v505_v39, 0.0 }
  0xdd   : > { %v568_v43 = vmul.f32 0.2, %v504_v38  ;;  %v569_v5 = vmul.f32 0.2, %v505_v39  ;;  %vm538_vm5 = vcmp.ge.f32.partialorder %v506_v55, 0.0  ;;  %vm539_vm6 = vcmp.ge.f32.partialorder %v507_v42, 0.0 }
  0xde   : > { %v598_v52 = vsel %vm534_vm0, %v502_v40, %v566_v51  ;;  %v599_v34 = vsel %vm535_vm2, %v503_v44, %v567_v46  ;;  %v570_v16 = vmul.f32 0.2, %v506_v55  ;;  %v571_v19 = vmul.f32 0.2, %v507_v42 }
  0xdf   : > { %v892_v50 = vpack.c.bf16 %v598_v52, %v598_v52  ;;  %v893_v8 = vpack.c.bf16 %v599_v34, %v599_v34  ;;  %v600_v56 = vsel %vm536_vm3, %v504_v38, %v568_v43  ;;  %v601_v59 = vsel %vm537_vm4, %v505_v39, %v569_v5 }
  0xe0   : > { %v894_v54 = vpack.c.bf16 %v600_v56, %v600_v56  ;;  %v895_v17 = vpack.c.bf16 %v601_v59, %v601_v59  ;;  %v602_v41 = vsel %vm538_vm5, %v506_v55, %v570_v16  ;;  %v471_v22 = vmul.f32 %v1482_v47, %v1394_v9 }
  0xe1   : > { %759 = vst.msk [vmem:[%s1518_s24 + $0x38] sm:$0xf] %vm744_vm1, %v892_v50  ;;  %760 = vst.msk [vmem:[%s1518_s24 + $0x3c] sm:$0xf] %vm744_vm1, %v893_v8  ;;  %v896_v11 = vpack.c.bf16 %v602_v41, %v602_v41  ;;  %v472_v29 = vmul.f32 %v1482_v47, %v1402_v60  ;;  %v473_v15 = vmul.f32 %v1482_v47, %v1410_v21 }
  0xe2   : > { %761 = vst.msk [vmem:[%s1518_s24 + $0x40] sm:$0xf] %vm744_vm1, %v894_v54  ;;  %762 = vst.msk [vmem:[%s1518_s24 + $0x44] sm:$0xf] %vm744_vm1, %v895_v17  ;;  %v474_v58 = vmul.f32 %v1482_v47, %v1418_v12  ;;  %v603_v53 = vsel %vm539_vm6, %v507_v42, %v571_v19  ;;  %v508_v31 = vadd.f32 %v1487_v62, %v469_v23 }
  0xe3   : > { %763 = vst.msk [vmem:[%s1518_s24 + $0x48] sm:$0xf] %vm744_vm1, %v896_v11  ;;  %v509_v2 = vadd.f32 %v1487_v62, %v470_v18  ;;  %v475_v9 = vmul.f32 %v1482_v47, %v1426_v33  ;;  %v897_v63 = vpack.c.bf16 %v603_v53, %v603_v53  ;;  %v510_v60 = vadd.f32 %v1487_v62, %v471_v22 }
  0xe4   : > { %v511_v1 = vadd.f32 %v1487_v62, %v472_v29  ;;  %v512_v21 = vadd.f32 %v1487_v62, %v473_v15  ;;  %vm540_vm7 = vcmp.ge.f32.partialorder %v508_v31, 0.0  ;;  %v572_v7 = vmul.f32 0.2, %v508_v31 }
  0xe5   : > { %vm541_vm8 = vcmp.ge.f32.partialorder %v509_v2, 0.0  ;;  %v573_v12 = vmul.f32 0.2, %v509_v2  ;;  %764 = vst.msk [vmem:[%s1518_s24 + $0x4c] sm:$0xf] %vm744_vm1, %v897_v63  ;;  %vm542_vm9 = vcmp.ge.f32.partialorder %v510_v60, 0.0  ;;  %v513_v48 = vadd.f32 %v1487_v62, %v474_v58 }
  0xe6   : > { %v574_v30 = vmul.f32 0.2, %v510_v60  ;;  %vm543_vm10 = vcmp.ge.f32.partialorder %v511_v1, 0.0  ;;  %v575_v20 = vmul.f32 0.2, %v511_v1  ;;  %v604_v33 = vsel %vm540_vm7, %v508_v31, %v572_v7 }
  0xe7   : > { %v605_v25 = vsel %vm541_vm8, %v509_v2, %v573_v12  ;;  %vm544_vm11 = vcmp.ge.f32.partialorder %v512_v21, 0.0  ;;  %v576_v13 = vmul.f32 0.2, %v512_v21  ;;  %v898_v61 = vpack.c.bf16 %v604_v33, %v604_v33 }
  0xe8   : > { %v899_v26 = vpack.c.bf16 %v605_v25, %v605_v25  ;;  %v606_v14 = vsel %vm542_vm9, %v510_v60, %v574_v30  ;;  %v607_v10 = vsel %vm543_vm10, %v511_v1, %v575_v20  ;;  %v514_v6 = vadd.f32 %v1487_v62, %v475_v9 }
  0xe9   : > { %v900_v0 = vpack.c.bf16 %v606_v14, %v606_v14  ;;  %v901_v3 = vpack.c.bf16 %v607_v10, %v607_v10  ;;  %v608_v28 = vsel %vm544_vm11, %v512_v21, %v576_v13  ;;  %765 = vst.msk [vmem:[%s1518_s24 + $0x50] sm:$0xf] %vm744_vm1, %v898_v61  ;;  %v476_v27 = vmul.f32 %v1482_v47, %v1434_v24 }
  0xea   : > { %766 = vst.msk [vmem:[%s1518_s24 + $0x54] sm:$0xf] %vm744_vm1, %v899_v26  ;;  %v902_v4 = vpack.c.bf16 %v608_v28, %v608_v28  ;;  %v477_v37 = vmul.f32 %v1482_v47, %v1442_v45  ;;  %vm545_vm12 = vcmp.ge.f32.partialorder %v513_v48, 0.0  ;;  %v577_v35 = vmul.f32 0.2, %v513_v48 }
  0xeb   : > { %767 = vst.msk [vmem:[%s1518_s24 + $0x58] sm:$0xf] %vm744_vm1, %v900_v0  ;;  %768 = vst.msk [vmem:[%s1518_s24 + $0x5c] sm:$0xf] %vm744_vm1, %v901_v3  ;;  %v478_v32 = vmul.f32 %v1482_v47, %v1450_v36  ;;  %v479_v40 = vmul.f32 %v1482_v47, %v1458_v57  ;;  %vm546_vm13 = vcmp.ge.f32.partialorder %v514_v6, 0.0  ;;  %v515_v44 = vadd.f32 %v1487_v62, %v476_v27 }
  0xec   : > { %769 = vst.msk [vmem:[%s1518_s24 + $0x60] sm:$0xf] %vm744_vm1, %v902_v4  ;;  %v578_v24 = vmul.f32 0.2, %v514_v6  ;;  %v516_v45 = vadd.f32 %v1487_v62, %v477_v37  ;;  %v609_v38 = vsel %vm545_vm12, %v513_v48, %v577_v35  ;;  %v480_v36 = vmul.f32 %v1482_v47, %v1466_v49 }
  0xed   : > { %v517_v39 = vadd.f32 %v1487_v62, %v478_v32  ;;  %v518_v55 = vadd.f32 %v1487_v62, %v479_v40  ;;  %v903_v42 = vpack.c.bf16 %v609_v38, %v609_v38  ;;  %vm547_vm14 = vcmp.ge.f32.partialorder %v515_v44, 0.0 }
  0xee   : > { %v610_v57 = vsel %vm546_vm13, %v514_v6, %v578_v24  ;;  %v579_v51 = vmul.f32 0.2, %v515_v44  ;;  %vm548_vm15 = vcmp.ge.f32.partialorder %v516_v45, 0.0  ;;  %v580_v43 = vmul.f32 0.2, %v516_v45 }
  0xef   : > { %v904_v46 = vpack.c.bf16 %v610_v57, %v610_v57  ;;  %vm549_vm0 = vcmp.ge.f32.partialorder %v517_v39, 0.0  ;;  %770 = vst.msk [vmem:[%s1518_s24 + $0x64] sm:$0xf] %vm744_vm1, %v903_v42  ;;  %v581_v52 = vmul.f32 0.2, %v517_v39  ;;  %vm550_vm2 = vcmp.ge.f32.partialorder %v518_v55, 0.0 }
  0xf0   : > { %v611_v5 = vsel %vm547_vm14, %v515_v44, %v579_v51  ;;  %v582_v34 = vmul.f32 0.2, %v518_v55  ;;  %v612_v47 = vsel %vm548_vm15, %v516_v45, %v580_v43  ;;  %v519_v16 = vadd.f32 %v1487_v62, %v480_v36 }
  0xf1   : > { %771 = vst.msk [vmem:[%s1518_s24 + $0x68] sm:$0xf] %vm744_vm1, %v904_v46  ;;  %v905_v49 = vpack.c.bf16 %v611_v5, %v611_v5  ;;  %v906_v50 = vpack.c.bf16 %v612_v47, %v612_v47  ;;  %v613_v8 = vsel %vm549_vm0, %v517_v39, %v581_v52 }
  0xf2   : > { %v614_v56 = vsel %vm550_vm2, %v518_v55, %v582_v34  ;;  %v907_v59 = vpack.c.bf16 %v613_v8, %v613_v8  ;;  %vm551_vm3 = vcmp.ge.f32.partialorder %v519_v16, 0.0  ;;  %v583_v17 = vmul.f32 0.2, %v519_v16 }
  0xf3   : > { %772 = vst.msk [vmem:[%s1518_s24 + $0x6c] sm:$0xf] %vm744_vm1, %v905_v49  ;;  %v908_v54 = vpack.c.bf16 %v614_v56, %v614_v56  ;;  %773 = vst.msk [vmem:[%s1518_s24 + $0x70] sm:$0xf] %vm744_vm1, %v906_v50 }
  0xf4   : > { %774 = vst.msk [vmem:[%s1518_s24 + $0x74] sm:$0xf] %vm744_vm1, %v907_v59  ;;  %v615_v41 = vsel %vm551_vm3, %v519_v16, %v583_v17 }
  0xf5   : > { %775 = vst.msk [vmem:[%s1518_s24 + $0x78] sm:$0xf] %vm744_vm1, %v908_v54  ;;  %v909_v11 = vpack.c.bf16 %v615_v41, %v615_v41 }
  0xf7   : > { %776 = vst.msk [vmem:[%s1518_s24 + $0x7c] sm:$0xf] %vm744_vm1, %v909_v11 }
  0xf8 PF: > { %s13_s12 = sadd.s32 1, %s1005_s12  }
  0xf9   : > { %p10_p4 = scmp.ge.s32.totalorder %s13_s12, 4  }
  0xfb   :  { %12 = sbr.rel (!%p10_p4) target bundleno = 1 (0x1), region = 62 }

// kernel: confnet_forward.18
= control target key start
LH: loop header
LB: loop body
LE: loop exit
PB: predicated region body
PF: predicated region fallthrough
CT: control target
= control target key end

     0   :  { %s974_s9 = smov 0   ;;  %s1129_s0 = inlined_call_operand.vmem [shape: bf16[128,512], index: 0, kind: input, shape index: {}]   ;;  %s1130_s1 = inlined_call_operand.vmem [shape: bf16[512,64], index: 1, kind: input, shape index: {}]   ;;  %s1131_s2 = inlined_call_operand.vmem [shape: bf16[128,64], index: 2, kind: output, shape index: {}]  }
   0x1 LB: > { %s730_s10 = sadd.s32 4294967295, %s957_s9   ;;  %p734_p0 = scmp.ge.s32.totalorder %s957_s9, 1  ;;  %s957_s9 = sphi %s974_s9, %s12_s9  }
   0x2   : > { %p114_p1 = scmp.lt.s32.totalorder %s957_s9, 3 }
   0x4   : > { %p115_p2 = pnand %p734_p0, %p114_p1 }
   0x5   : > { %s735_s17 = sshll.u32 (!%p115_p2), %s730_s10, 3 }
   0x6   : > { %118 = sbr.rel (%p115_p2) target bundleno = 276 (0x114), region = 28  ;;  %p138_p3 = scmp.lt.s32.totalorder (!%p115_p2), %s735_s17, 15 }
   0xb   : > { %v895_v0 = vld [vmem:[%s1130_s1 + $0x78] sm:$0xff]   ;;  %v899_v4 = vld [vmem:[%s1130_s1 + $0x70] sm:$0xff]   ;;  %v903_v8 = vld [vmem:[%s1130_s1 + $0x68] sm:$0xff]   ;;  %s1133_s17 = smov (!%p138_p3, %s735_s17), 15  ;;  %vm665_vm0 = vcmask 519168  }
   0xc   : > { %v896_v1 = vld [vmem:[%s1130_s1 + $0xf8] sm:$0xff]   ;;  %807 = vmatprep.subr.bf16.mxu0 %v895_v0  ;;  %v900_v5 = vld [vmem:[%s1130_s1 + $0xf0] sm:$0xff]   ;;  %v904_v9 = vld [vmem:[%s1130_s1 + $0xe8] sm:$0xff]   ;;  %s798_s13 = sshll.u32 %s1133_s17, 4  ;;  %s739_s27 = sshll.u32 %s1133_s17, 2 }
   0xd   : > { %v897_v2 = vld [vmem:[%s1130_s1 + $0x38] sm:$0xff]   ;;  %847 = vmatprep.subr.bf16.mxu1 %v896_v1  ;;  %v901_v6 = vld [vmem:[%s1130_s1 + $0x30] sm:$0xff]   ;;  %v905_v10 = vld [vmem:[%s1130_s1 + $0x28] sm:$0xff]   ;;  %s1080_s23 = scalar_lea.vmem %s1129_s0, %s798_s13  ;;  %s1108_s30 = scalar_lea.vmem %s1131_s2, %s739_s27 }
   0xe   : > { %v898_v3 = vld [vmem:[%s1130_s1 + $0xb8] sm:$0xff]   ;;  %808 = vmatpush3.bf16.msra.mxu0 %v897_v2  ;;  %v902_v7 = vld [vmem:[%s1130_s1 + $0xb0] sm:$0xff]   ;;  %v906_v11 = vld [vmem:[%s1130_s1 + $0xa8] sm:$0xff]  }
   0xf   : > { %848 = vmatpush3.bf16.msra.mxu1 %v898_v3  ;;  %809 = vmatprep.subr.bf16.mxu0 %v899_v4  ;;  %v907_v12 = vld [vmem:[%s1130_s1 + $0x60] sm:$0xff]   ;;  %v911_v16 = vld [vmem:[%s1130_s1 + $0x58] sm:$0xff]   ;;  %v915_v20 = vld [vmem:[%s1130_s1 + $0x50] sm:$0xff]  }
  0x10   : > { %849 = vmatprep.subr.bf16.mxu1 %v900_v5  ;;  %v908_v13 = vld [vmem:[%s1130_s1 + $0xe0] sm:$0xff]   ;;  %v912_v17 = vld [vmem:[%s1130_s1 + $0xd8] sm:$0xff]   ;;  %v916_v21 = vld [vmem:[%s1130_s1 + $0xd0] sm:$0xff]  }
  0x11   : > { %v909_v14 = vld [vmem:[%s1130_s1 + $0x20] sm:$0xff]   ;;  %v913_v18 = vld [vmem:[%s1130_s1 + $0x18] sm:$0xff]   ;;  %v917_v22 = vld [vmem:[%s1130_s1 + $0x10] sm:$0xff]  }
  0x12   : > { %810 = vmatpush3.bf16.msra.mxu0 %v901_v6  ;;  %v910_v15 = vld [vmem:[%s1130_s1 + $0xa0] sm:$0xff]   ;;  %v914_v19 = vld [vmem:[%s1130_s1 + $0x98] sm:$0xff]   ;;  %v918_v23 = vld [vmem:[%s1130_s1 + $0x90] sm:$0xff]  }
  0x13   : > { %850 = vmatpush3.bf16.msra.mxu1 %v902_v7  ;;  %811 = vmatprep.subr.bf16.mxu0 %v903_v8  ;;  %v919_v24 = vld [vmem:[%s1130_s1 + $0x48] sm:$0xff]   ;;  %v923_v28 = vld [vmem:[%s1130_s1 + $0x40] sm:$0xff]  }
  0x14   : > { %851 = vmatprep.subr.bf16.mxu1 %v904_v9  ;;  %v920_v25 = vld [vmem:[%s1130_s1 + $0xc8] sm:$0xff]   ;;  %v924_v29 = vld [vmem:[%s1130_s1 + $0xc0] sm:$0xff]  }
  0x15   : > { %v921_v26 = vld [vmem:[%s1130_s1 + $0x8] sm:$0xff]   ;;  %v925_v30 = vld [vmem:[%s1130_s1] sm:$0xff]  }
  0x16   : > { %812 = vmatpush3.bf16.msra.mxu0 %v905_v10  ;;  %v922_v27 = vld [vmem:[%s1130_s1 + $0x88] sm:$0xff]   ;;  %v926_v31 = vld [vmem:[%s1130_s1 + $0x80] sm:$0xff]  }
  0x17   : > { %852 = vmatpush3.bf16.msra.mxu1 %v906_v11  ;;  %813 = vmatprep.subr.bf16.mxu0 %v907_v12  ;;  %v927_v32 = vld [vmem:[%s1080_s23] ss:$16 sps:$4 sm:$0xff]   ;;  %v929_v33 = vld [vmem:[%s1080_s23 + $0x4] ss:$16 sps:$4 sm:$0xff]   ;;  %v930_v34 = vld [vmem:[%s1080_s23 + $0x8] ss:$16 sps:$4 sm:$0xff]  }
  0x18   : > { %853 = vmatprep.subr.bf16.mxu1 %v908_v13  ;;  %v932_v35 = vld [vmem:[%s1080_s23 + $0xc] ss:$16 sps:$4 sm:$0xff]   ;;  %535 = vmatprep.mubr.bf16.mxu0 %v929_v33  ;;  %v933_v36 = vld [vmem:[%s1080_s23 + $0x24] ss:$16 sps:$4 sm:$0xff]   ;;  %v937_v38 = vld [vmem:[%s1080_s23 + $0x20] ss:$16 sps:$4 sm:$0xff]  }
  0x19   : > { %600 = vmatprep.mubr.bf16.mxu1 %v932_v35  ;;  %v935_v37 = vld [vmem:[%s1080_s23 + $0x2c] ss:$16 sps:$4 sm:$0xff]   ;;  %v938_v39 = vld [vmem:[%s1080_s23 + $0x28] ss:$16 sps:$4 sm:$0xff]   ;;  %v939_v40 = vld [vmem:[%s1080_s23 + $0x44] ss:$16 sps:$4 sm:$0xff]  }
  0x1a   : > { %814 = vmatpush3.bf16.msra.mxu0 %v909_v14  ;;  %v941_v41 = vld [vmem:[%s1080_s23 + $0x4c] ss:$16 sps:$4 sm:$0xff]   ;;  %v943_v42 = vld [vmem:[%s1080_s23 + $0x40] ss:$16 sps:$4 sm:$0xff]   ;;  %v944_v43 = vld [vmem:[%s1080_s23 + $0x48] ss:$16 sps:$4 sm:$0xff]  }
  0x1b   : > { %854 = vmatpush3.bf16.msra.mxu1 %v910_v15  ;;  %815 = vmatprep.subr.bf16.mxu0 %v911_v16  ;;  %v945_v44 = vld [vmem:[%s1080_s23 + $0x64] ss:$16 sps:$4 sm:$0xff]   ;;  %v947_v45 = vld [vmem:[%s1080_s23 + $0x6c] ss:$16 sps:$4 sm:$0xff]   ;;  %v949_v46 = vld [vmem:[%s1080_s23 + $0x60] ss:$16 sps:$4 sm:$0xff]  }
  0x1c   : > { %855 = vmatprep.subr.bf16.mxu1 %v912_v17  ;;  %v950_v47 = vld [vmem:[%s1080_s23 + $0x68] ss:$16 sps:$4 sm:$0xff]  }
  0x1e   : > { %816 = vmatpush3.bf16.msra.mxu0 %v913_v18 }
  0x1f   : > { %856 = vmatpush3.bf16.msra.mxu1 %v914_v19  ;;  %817 = vmatprep.subr.bf16.mxu0 %v915_v20 }
  0x20   : > { %857 = vmatprep.subr.bf16.mxu1 %v916_v21 }
  0x22   : > { %818 = vmatpush3.bf16.msra.mxu0 %v917_v22 }
  0x23   : > { %858 = vmatpush3.bf16.msra.mxu1 %v918_v23  ;;  %819 = vmatprep.subr.bf16.mxu0 %v919_v24 }
  0x24   : > { %859 = vmatprep.subr.bf16.mxu1 %v920_v25 }
  0x26   : > { %820 = vmatpush3.bf16.msra.mxu0 %v921_v26 }
  0x27   : > { %860 = vmatpush3.bf16.msra.mxu1 %v922_v27  ;;  %821 = vmatprep.subr.bf16.mxu0 %v923_v28 }
  0x28   : > { %861 = vmatprep.subr.bf16.mxu1 %v924_v29 }
  0x2a   : > { %822 = vmatpush3.bf16.msra.mxu0 %v925_v30 }
  0x2b   : > { %862 = vmatpush3.bf16.msra.mxu1 %v926_v31 }
  0x2d   : > { %536 = vmatmul.mubr.bf16.vlgmr.msra.gmra.mxu0 %v927_v32 }
  0x2e   : > { %601 = vmatmul.mubr.bf16.vlgmr.msra.gmra.mxu1 %v930_v34  ;;  %543 = vmatprep.mubr.bf16.mxu0 %v933_v36 }
  0x2f   : > { %608 = vmatprep.mubr.bf16.mxu1 %v935_v37 }
  0x35   : > { %544 = vmatmul.mubr.bf16.gmra.mxu0 %v937_v38 }
  0x36   : > { %609 = vmatmul.mubr.bf16.gmra.mxu1 %v938_v39  ;;  %551 = vmatprep.mubr.bf16.mxu0 %v939_v40 }
  0x37   : > { %616 = vmatprep.mubr.bf16.mxu1 %v941_v41 }
  0x3d   : > { %552 = vmatmul.mubr.bf16.gmra.mxu0 %v943_v42 }
  0x3e   : > { %617 = vmatmul.mubr.bf16.gmra.mxu1 %v944_v43  ;;  %559 = vmatprep.mubr.bf16.mxu0 %v945_v44 }
  0x3f   : > { %624 = vmatprep.mubr.bf16.mxu1 %v947_v45 }
  0x45   : > { %560 = vmatmul.mubr.bf16.gmra.mxu0 %v949_v46 }
  0x46   : > { %625 = vmatmul.mubr.bf16.gmra.mxu1 %v950_v47 }
  0xed   : > { %v823_v48 = vpop.f32.mrf.mxu0 }
  0xee   : > { %v863_v49 = vpop.f32.mrf.mxu1 }
  0xef   : > { %v824_v50 = vpop.f32.mrf.mxu0 }
  0xf0   : > { %v825_v51 = vadd.f32 %v824_v50, %v823_v48  ;;  %v864_v52 = vpop.f32.mrf.mxu1 }
  0xf1   : > { %v865_v53 = vadd.f32 %v864_v52, %v863_v49  ;;  %v826_v54 = vpop.f32.mrf.mxu0 }
  0xf2   : > { %v866_v55 = vpop.f32.mrf.mxu1 }
  0xf3   : > { %v603_v56 = vadd.f32 %v865_v53, %v825_v51  ;;  %v827_v57 = vpop.f32.mrf.mxu0 }
  0xf4   : > { %v828_v58 = vadd.f32 %v827_v57, %v826_v54  ;;  %v867_v59 = vpop.f32.mrf.mxu1 }
  0xf5   : > { %v799_v60 = vpack.c.bf16 %v603_v56, %v603_v56  ;;  %v868_v61 = vadd.f32 %v867_v59, %v866_v55  ;;  %v829_v62 = vpop.f32.mrf.mxu0 }
  0xf6   : > { %v869_v63 = vpop.f32.mrf.mxu1 }
  0xf7   : > { %666 = vst.msk [vmem:[%s1108_s30] sm:$0xf] %vm665_vm0, %v799_v60  ;;  %v606_v0 = vadd.f32 %v868_v61, %v828_v58  ;;  %v830_v1 = vpop.f32.mrf.mxu0 }
  0xf8   : > { %v831_v2 = vadd.f32 %v830_v1, %v829_v62  ;;  %v870_v3 = vpop.f32.mrf.mxu1 }
  0xf9   : > { %v800_v4 = vpack.c.bf16 %v606_v0, %v606_v0  ;;  %v871_v5 = vadd.f32 %v870_v3, %v869_v63  ;;  %v832_v6 = vpop.f32.mrf.mxu0 }
  0xfa   : > { %v872_v7 = vpop.f32.mrf.mxu1 }
  0xfb   : > { %667 = vst.msk [vmem:[%s1108_s30 + $0x4] sm:$0xf] %vm665_vm0, %v800_v4  ;;  %v611_v8 = vadd.f32 %v871_v5, %v831_v2  ;;  %v833_v9 = vpop.f32.mrf.mxu0 }
  0xfc   : > { %v834_v10 = vadd.f32 %v833_v9, %v832_v6  ;;  %v873_v11 = vpop.f32.mrf.mxu1 }
  0xfd   : > { %v801_v12 = vpack.c.bf16 %v611_v8, %v611_v8  ;;  %v874_v13 = vadd.f32 %v873_v11, %v872_v7  ;;  %v835_v14 = vpop.f32.mrf.mxu0 }
  0xfe   : > { %v875_v15 = vpop.f32.mrf.mxu1 }
  0xff   : > { %668 = vst.msk [vmem:[%s1108_s30 + $0x8] sm:$0xf] %vm665_vm0, %v801_v12  ;;  %v614_v16 = vadd.f32 %v874_v13, %v834_v10  ;;  %v836_v17 = vpop.f32.mrf.mxu0 }
 0x100   : > { %v837_v18 = vadd.f32 %v836_v17, %v835_v14  ;;  %v876_v19 = vpop.f32.mrf.mxu1 }
 0x101   : > { %v802_v20 = vpack.c.bf16 %v614_v16, %v614_v16  ;;  %v877_v21 = vadd.f32 %v876_v19, %v875_v15  ;;  %v838_v22 = vpop.f32.mrf.mxu0 }
 0x102   : > { %v878_v23 = vpop.f32.mrf.mxu1 }
 0x103   : > { %669 = vst.msk [vmem:[%s1108_s30 + $0xc] sm:$0xf] %vm665_vm0, %v802_v20  ;;  %v619_v24 = vadd.f32 %v877_v21, %v837_v18  ;;  %v839_v25 = vpop.f32.mrf.mxu0 }
 0x104   : > { %v840_v26 = vadd.f32 %v839_v25, %v838_v22  ;;  %v879_v27 = vpop.f32.mrf.mxu1 }
 0x105   : > { %v803_v28 = vpack.c.bf16 %v619_v24, %v619_v24  ;;  %v880_v29 = vadd.f32 %v879_v27, %v878_v23  ;;  %v841_v30 = vpop.f32.mrf.mxu0 }
 0x106   : > { %v881_v31 = vpop.f32.mrf.mxu1 }
 0x107   : > { %670 = vst.msk [vmem:[%s1108_s30 + $0x10] sm:$0xf] %vm665_vm0, %v803_v28  ;;  %v622_v32 = vadd.f32 %v880_v29, %v840_v26  ;;  %v842_v33 = vpop.f32.mrf.mxu0 }
 0x108   : > { %v843_v34 = vadd.f32 %v842_v33, %v841_v30  ;;  %v882_v35 = vpop.f32.mrf.mxu1 }
 0x109   : > { %v804_v36 = vpack.c.bf16 %v622_v32, %v622_v32  ;;  %v883_v37 = vadd.f32 %v882_v35, %v881_v31  ;;  %v844_v38 = vpop.f32.mrf.mxu0 }
 0x10a   : > { %v884_v39 = vpop.f32.mrf.mxu1 }
 0x10b   : > { %671 = vst.msk [vmem:[%s1108_s30 + $0x14] sm:$0xf] %vm665_vm0, %v804_v36  ;;  %v627_v40 = vadd.f32 %v883_v37, %v843_v34  ;;  %v845_v41 = vpop.f32.mrf.mxu0 }
 0x10c   : > { %v846_v42 = vadd.f32 %v845_v41, %v844_v38  ;;  %v885_v43 = vpop.f32.mrf.mxu1 }
 0x10d   : > { %v805_v44 = vpack.c.bf16 %v627_v40, %v627_v40  ;;  %v886_v45 = vadd.f32 %v885_v43, %v884_v39 }
 0x10f   : > { %672 = vst.msk [vmem:[%s1108_s30 + $0x18] sm:$0xf] %vm665_vm0, %v805_v44  ;;  %v630_v46 = vadd.f32 %v886_v45, %v846_v42 }
 0x111   : > { %v806_v47 = vpack.c.bf16 %v630_v46, %v630_v46 }
 0x113   : > { %673 = vst.msk [vmem:[%s1108_s30 + $0x1c] sm:$0xf] %vm665_vm0, %v806_v47 }
 0x114 PF: > { %s12_s9 = sadd.s32 1, %s957_s9  }
 0x115   : > { %p9_p4 = scmp.ge.s32.totalorder %s12_s9, 4  }
 0x117   :  { %11 = sbr.rel (!%p9_p4) target bundleno = 1 (0x1), region = 58 }

// kernel: confnet_forward.19
= control target key start
LH: loop header
LB: loop body
LE: loop exit
PB: predicated region body
PF: predicated region fallthrough
CT: control target
= control target key end

     0   :  { %s487_s12 = smov 0   ;;  %s551_s0 = inlined_call_operand.vmem [shape: bf16[2,64,64], index: 0, kind: input, shape index: {}]   ;;  %s552_s1 = inlined_call_operand.vmem [shape: f32[1,64], index: 1, kind: input, shape index: {}]   ;;  %s553_s2 = inlined_call_operand.vmem [shape: f32[1,64], index: 2, kind: input, shape index: {}]   ;;  %s554_s3 = inlined_call_operand.vmem [shape: bf16[2,64,64], index: 3, kind: output, shape index: {}]  }
   0x1 LB: > { %s400_s13 = sadd.s32 4294967295, %s465_s12   ;;  %p404_p0 = scmp.ge.s32.totalorder %s465_s12, 1  ;;  %s465_s12 = sphi %s487_s12, %s13_s12  }
   0x2   : > { %p137_p1 = scmp.lt.s32.totalorder %s465_s12, 3 }
   0x4   : > { %p138_p2 = pnand %p404_p0, %p137_p1 }
   0x5   : > { %p161_p3 = scmp.lt.s32.totalorder (!%p138_p2), %s400_s13, 1 }
   0x6   : > { %141 = sbr.rel (%p138_p2) target bundleno = 116 (0x74), region = 32 }
   0xb   : > { %s556_s13 = smov (!%p161_p3, %s400_s13), 1  ;;  %vm187_vm0 = vcmask 523264   ;;  %vm336_vm1 = vcmask 519168  }
   0xc   : > { %s420_s14 = sshll.u32 %s556_s13, 5 }
   0xd   : > { %s165_s17 = scalar_lea.vmem %s551_s0, %s420_s14  ;;  %s530_s24 = scalar_lea.vmem %s554_s3, %s420_s14 }
   0xe   : > { %v431_v0 = vld [vmem:[%s165_s17] sm:$0xff]   ;;  %v446_v1 = vld [vmem:[%s165_s17 + $0x8] sm:$0xff]   ;;  %v447_v2 = vld [vmem:[%s165_s17 + $0x10] sm:$0xff]  }
   0xf   : > { %v432_v3 = vunpack.c.l.bf16 %v431_v0  ;;  %v433_v4 = vunpack.c.h.bf16 %v431_v0  ;;  %v436_v5 = vunpack.c.l.bf16 %v446_v1  ;;  %v437_v6 = vunpack.c.h.bf16 %v446_v1  ;;  %v448_v11 = vld [vmem:[%s165_s17 + $0x18] sm:$0xff]  }
  0x10   : > { %v440_v7 = vunpack.c.l.bf16 %v447_v2  ;;  %v441_v13 = vunpack.c.h.bf16 %v447_v2  ;;  %v444_v16 = vunpack.c.l.bf16 %v448_v11  ;;  %v445_v19 = vunpack.c.h.bf16 %v448_v11  ;;  %v251_v11 = vld [vmem:[%s552_s1] sm:$0x1] }
  0x11   : > { %v188_v8 = vsel %vm187_vm0, %v432_v3, 0.0  ;;  %v189_v9 = vsel %vm187_vm0, %v433_v4, 0.0  ;;  %v191_v10 = vsel %vm187_vm0, %v436_v5, 0.0  ;;  %v193_v14 = vsel %vm187_vm0, %v437_v6, 0.0 }
  0x12   : > { %v190_v12 = vadd.f32 %v189_v9, %v188_v8  ;;  %v195_v17 = vsel %vm187_vm0, %v440_v7, 0.0  ;;  %v197_v20 = vsel %vm187_vm0, %v441_v13, 0.0  ;;  %v199_v22 = vsel %vm187_vm0, %v444_v16, 0.0 }
  0x13   : > { %v201_v24 = vsel %vm187_vm0, %v445_v19, 0.0  ;;  %v253_v9 = vlaneseq }
  0x14   : > { %v192_v15 = vadd.f32 %v191_v10, %v190_v12 }
  0x15   : > { %v254_v10 = vshrl.u32 %v253_v9, 7 }
  0x16   : > { %v194_v18 = vadd.f32 %v193_v14, %v192_v15 }
  0x17   : > { %v255_v12 = vsub.s32 0, %v254_v10 }
  0x18   : > { %v196_v21 = vadd.f32 %v195_v17, %v194_v18 }
  0x1a   : > { %v198_v23 = vadd.f32 %v197_v20, %v196_v21 }
  0x1c   : > { %v200_v25 = vadd.f32 %v199_v22, %v198_v23 }
  0x1e   : > { %v202_v26 = vadd.f32 %v201_v24, %v200_v25 }
  0x20   : > { %v203_v27 = vrot.slane %v202_v26, 4 }
  0x22   : > { %v204_v28 = vadd.f32 %v203_v27, %v202_v26 }
  0x24   : > { %v205_v29 = vrot.slane %v204_v28, 2 }
  0x26   : > { %v206_v30 = vadd.f32 %v205_v29, %v204_v28 }
  0x28   : > { %v207_v31 = vrot.slane %v206_v30, 1 }
  0x2a   : > { %v208_v32 = vadd.f32 %v207_v31, %v206_v30 }
  0x2c   : > { %v210_v33 = vmul.f32 0.015625, %v208_v32 }
  0x2e   : > { %v211_v34 = vsub.f32 %v432_v3, %v210_v33  ;;  %v212_v35 = vsub.f32 %v433_v4, %v210_v33  ;;  %v213_v36 = vsub.f32 %v436_v5, %v210_v33  ;;  %v214_v37 = vsub.f32 %v437_v6, %v210_v33 }
  0x2f   : > { %v215_v38 = vsub.f32 %v440_v7, %v210_v33  ;;  %v216_v39 = vsub.f32 %v441_v13, %v210_v33  ;;  %v217_v44 = vsub.f32 %v444_v16, %v210_v33  ;;  %v218_v50 = vsub.f32 %v445_v19, %v210_v33  ;;  %v409_v16 = vld [vmem:[%s553_s2] ss:$0 sm:$0xff] }
  0x30   : > { %v219_v40 = vmul.f32 %v211_v34, %v211_v34  ;;  %v220_v41 = vmul.f32 %v212_v35, %v212_v35  ;;  %v221_v42 = vmul.f32 %v213_v36, %v213_v36  ;;  %v222_v43 = vmul.f32 %v214_v37, %v214_v37 }
  0x31   : > { %v223_v45 = vmul.f32 %v215_v38, %v215_v38  ;;  %v224_v51 = vmul.f32 %v216_v39, %v216_v39  ;;  %v225_v54 = vmul.f32 %v217_v44, %v217_v44  ;;  %v226_v57 = vmul.f32 %v218_v50, %v218_v50 }
  0x32   : > { %v227_v46 = vsel %vm187_vm0, %v219_v40, 0.0  ;;  %v228_v47 = vsel %vm187_vm0, %v220_v41, 0.0  ;;  %v230_v48 = vsel %vm187_vm0, %v221_v42, 0.0  ;;  %v232_v52 = vsel %vm187_vm0, %v222_v43, 0.0 }
  0x33   : > { %v229_v49 = vadd.f32 %v228_v47, %v227_v46  ;;  %v234_v55 = vsel %vm187_vm0, %v223_v45, 0.0  ;;  %v236_v58 = vsel %vm187_vm0, %v224_v51, 0.0  ;;  %v238_v60 = vsel %vm187_vm0, %v225_v54, 0.0 }
  0x34   : > { %v240_v62 = vsel %vm187_vm0, %v226_v57, 0.0 }
  0x35   : > { %v231_v53 = vadd.f32 %v230_v48, %v229_v49 }
  0x37   : > { %v233_v56 = vadd.f32 %v232_v52, %v231_v53 }
  0x39   : > { %v235_v59 = vadd.f32 %v234_v55, %v233_v56 }
  0x3b   : > { %v237_v61 = vadd.f32 %v236_v58, %v235_v59 }
  0x3d   : > { %v239_v63 = vadd.f32 %v238_v60, %v237_v61 }
  0x3f   : > { %v241_v0 = vadd.f32 %v240_v62, %v239_v63 }
  0x41   : > { %v242_v1 = vrot.slane %v241_v0, 4 }
  0x43   : > { %v243_v2 = vadd.f32 %v242_v1, %v241_v0 }
  0x45   : > { %v244_v3 = vrot.slane %v243_v2, 2 }
  0x47   : > { %v245_v4 = vadd.f32 %v244_v3, %v243_v2 }
  0x49   : > { %v246_v5 = vrot.slane %v245_v4, 1 }
  0x4b   : > { %v247_v6 = vadd.f32 %v246_v5, %v245_v4 }
  0x4d   : > { %v248_v7 = vmul.f32 0.015625, %v247_v6 }
  0x4f   : > { %v249_v8 = vadd.f32 1e-05, %v248_v7 }
  0x51   : > { %457 = vrsqrt.f32 %v249_v8 }
  0x5e   : > { %v458_v13 = vpop.eup %457 }
  0x5f   : > { %v252_v14 = vmul.f32 %v458_v13, %v251_v11 }
  0x61   : > { %v256_v15 = vrot.slane %v252_v14, %v255_v12 }
  0x63   : > { %v257_v17 = vmul.f32 %v256_v15, %v211_v34  ;;  %v258_v18 = vmul.f32 %v256_v15, %v212_v35  ;;  %v259_v19 = vmul.f32 %v256_v15, %v213_v36  ;;  %v260_v20 = vmul.f32 %v256_v15, %v214_v37 }
  0x64   : > { %v261_v21 = vmul.f32 %v256_v15, %v215_v38  ;;  %v262_v22 = vmul.f32 %v256_v15, %v216_v39  ;;  %v263_v23 = vmul.f32 %v256_v15, %v217_v44  ;;  %v264_v24 = vmul.f32 %v256_v15, %v218_v50 }
  0x65   : > { %v272_v25 = vadd.f32 %v409_v16, %v257_v17  ;;  %v273_v26 = vadd.f32 %v409_v16, %v258_v18  ;;  %v274_v27 = vadd.f32 %v409_v16, %v259_v19  ;;  %v275_v28 = vadd.f32 %v409_v16, %v260_v20 }
  0x66   : > { %v276_v29 = vadd.f32 %v409_v16, %v261_v21  ;;  %v277_v30 = vadd.f32 %v409_v16, %v262_v22  ;;  %v278_v31 = vadd.f32 %v409_v16, %v263_v23  ;;  %v279_v32 = vadd.f32 %v409_v16, %v264_v24 }
  0x67   : > { %vm280_vm2 = vcmp.ge.f32.partialorder %v272_v25, 0.0  ;;  %v288_v33 = vmul.f32 0.2, %v272_v25  ;;  %vm281_vm3 = vcmp.ge.f32.partialorder %v273_v26, 0.0  ;;  %v289_v34 = vmul.f32 0.2, %v273_v26 }
  0x68   : > { %vm282_vm4 = vcmp.ge.f32.partialorder %v274_v27, 0.0  ;;  %v290_v35 = vmul.f32 0.2, %v274_v27  ;;  %vm283_vm5 = vcmp.ge.f32.partialorder %v275_v28, 0.0  ;;  %v291_v36 = vmul.f32 0.2, %v275_v28 }
  0x69   : > { %v296_v37 = vsel %vm280_vm2, %v272_v25, %v288_v33  ;;  %v297_v38 = vsel %vm281_vm3, %v273_v26, %v289_v34  ;;  %vm284_vm6 = vcmp.ge.f32.partialorder %v276_v29, 0.0  ;;  %v292_v39 = vmul.f32 0.2, %v276_v29 }
  0x6a   : > { %v422_v40 = vpack.c.bf16 %v296_v37, %v296_v37  ;;  %v423_v41 = vpack.c.bf16 %v297_v38, %v297_v38  ;;  %v298_v42 = vsel %vm282_vm4, %v274_v27, %v290_v35  ;;  %v299_v43 = vsel %vm283_vm5, %v275_v28, %v291_v36 }
  0x6b   : > { %v424_v44 = vpack.c.bf16 %v298_v42, %v298_v42  ;;  %v425_v45 = vpack.c.bf16 %v299_v43, %v299_v43  ;;  %v300_v46 = vsel %vm284_vm6, %v276_v29, %v292_v39  ;;  %vm285_vm7 = vcmp.ge.f32.partialorder %v277_v30, 0.0 }
  0x6c   : > { %337 = vst.msk [vmem:[%s530_s24] sm:$0xf] %vm336_vm1, %v422_v40  ;;  %338 = vst.msk [vmem:[%s530_s24 + $0x4] sm:$0xf] %vm336_vm1, %v423_v41  ;;  %v426_v47 = vpack.c.bf16 %v300_v46, %v300_v46  ;;  %v293_v48 = vmul.f32 0.2, %v277_v30 }
  0x6d   : > { %vm286_vm8 = vcmp.ge.f32.partialorder %v278_v31, 0.0  ;;  %v294_v49 = vmul.f32 0.2, %v278_v31  ;;  %339 = vst.msk [vmem:[%s530_s24 + $0x8] sm:$0xf] %vm336_vm1, %v424_v44  ;;  %vm287_vm9 = vcmp.ge.f32.partialorder %v279_v32, 0.0 }
  0x6e   : > { %340 = vst.msk [vmem:[%s530_s24 + $0xc] sm:$0xf] %vm336_vm1, %v425_v45  ;;  %v295_v50 = vmul.f32 0.2, %v279_v32  ;;  %341 = vst.msk [vmem:[%s530_s24 + $0x10] sm:$0xf] %vm336_vm1, %v426_v47  ;;  %v301_v51 = vsel %vm285_vm7, %v277_v30, %v293_v48 }
  0x6f   : > { %v302_v52 = vsel %vm286_vm8, %v278_v31, %v294_v49  ;;  %v427_v53 = vpack.c.bf16 %v301_v51, %v301_v51 }
  0x70   : > { %v428_v54 = vpack.c.bf16 %v302_v52, %v302_v52  ;;  %v303_v55 = vsel %vm287_vm9, %v279_v32, %v295_v50 }
  0x71   : > { %v429_v56 = vpack.c.bf16 %v303_v55, %v303_v55  ;;  %342 = vst.msk [vmem:[%s530_s24 + $0x14] sm:$0xf] %vm336_vm1, %v427_v53 }
  0x72   : > { %343 = vst.msk [vmem:[%s530_s24 + $0x18] sm:$0xf] %vm336_vm1, %v428_v54 }
  0x73   : > { %344 = vst.msk [vmem:[%s530_s24 + $0x1c] sm:$0xf] %vm336_vm1, %v429_v56 }
  0x74 PF: > { %s13_s12 = sadd.s32 1, %s465_s12  }
  0x75   : > { %p10_p4 = scmp.ge.s32.totalorder %s13_s12, 4  }
  0x77   :  { %12 = sbr.rel (!%p10_p4) target bundleno = 1 (0x1), region = 62 }

// kernel: confnet_forward.20
= control target key start
LH: loop header
LB: loop body
LE: loop exit
PB: predicated region body
PF: predicated region fallthrough
CT: control target
= control target key end

     0   :  { %s1224_s9 = smov 0   ;;  %s1449_s0 = inlined_call_operand.vmem [shape: bf16[32,1024], index: 0, kind: input, shape index: {}]   ;;  %s1450_s1 = inlined_call_operand.vmem [shape: bf16[1024,128], index: 1, kind: input, shape index: {}]   ;;  %s1451_s2 = inlined_call_operand.vmem [shape: bf16[32,128], index: 2, kind: output, shape index: {}]  }
   0x1 LB: > { %s947_s10 = sadd.s32 4294967295, %s1207_s9   ;;  %p951_p0 = scmp.ge.s32.totalorder %s1207_s9, 1  ;;  %s1207_s9 = sphi %s1224_s9, %s12_s9  }
   0x2   : > { %p114_p1 = scmp.lt.s32.totalorder %s1207_s9, 3 }
   0x4   : > { %p115_p2 = pnand %p951_p0, %p114_p1 }
   0x5   : > { %s952_s17 = sshll.u32 (!%p115_p2), %s947_s10, 1 }
   0x6   : > { %118 = sbr.rel (%p115_p2) target bundleno = 288 (0x120), region = 28  ;;  %p138_p3 = scmp.lt.s32.totalorder (!%p115_p2), %s952_s17, 3 }
   0xb   : > { %v1137_v0 = vld [vmem:[%s1450_s1 + $0x78] sm:$0xff]   ;;  %v1141_v4 = vld [vmem:[%s1450_s1 + $0x70] sm:$0xff]   ;;  %v1145_v8 = vld [vmem:[%s1450_s1 + $0x68] sm:$0xff]   ;;  %s1453_s17 = smov (!%p138_p3, %s952_s17), 3 }
   0xc   : > { %v1138_v1 = vld [vmem:[%s1450_s1 + $0xf8] sm:$0xff]   ;;  %1041 = vmatprep.subr.bf16.mxu0 %v1137_v0  ;;  %v1142_v5 = vld [vmem:[%s1450_s1 + $0xf0] sm:$0xff]   ;;  %v1146_v9 = vld [vmem:[%s1450_s1 + $0xe8] sm:$0xff]   ;;  %s1033_s13 = sshll.u32 %s1453_s17, 5 }
   0xd   : > { %v1139_v2 = vld [vmem:[%s1450_s1 + $0x38] sm:$0xff]   ;;  %1063 = vmatprep.subr.bf16.mxu1 %v1138_v1  ;;  %v1143_v6 = vld [vmem:[%s1450_s1 + $0x30] sm:$0xff]   ;;  %v1147_v10 = vld [vmem:[%s1450_s1 + $0x28] sm:$0xff]   ;;  %s1330_s23 = scalar_lea.vmem %s1449_s0, %s1033_s13 }
   0xe   : > { %v1140_v3 = vld [vmem:[%s1450_s1 + $0xb8] sm:$0xff]   ;;  %1042 = vmatpush3.bf16.msra.mxu0 %v1139_v2  ;;  %v1144_v7 = vld [vmem:[%s1450_s1 + $0xb0] sm:$0xff]   ;;  %v1148_v11 = vld [vmem:[%s1450_s1 + $0xa8] sm:$0xff]  }
   0xf   : > { %1064 = vmatpush3.bf16.msra.mxu1 %v1140_v3  ;;  %1043 = vmatprep.subr.bf16.mxu0 %v1141_v4  ;;  %v1149_v12 = vld [vmem:[%s1450_s1 + $0x60] sm:$0xff]   ;;  %v1153_v16 = vld [vmem:[%s1450_s1 + $0x58] sm:$0xff]   ;;  %v1157_v20 = vld [vmem:[%s1450_s1 + $0x50] sm:$0xff]  }
  0x10   : > { %1065 = vmatprep.subr.bf16.mxu1 %v1142_v5  ;;  %v1150_v13 = vld [vmem:[%s1450_s1 + $0xe0] sm:$0xff]   ;;  %v1154_v17 = vld [vmem:[%s1450_s1 + $0xd8] sm:$0xff]   ;;  %v1158_v21 = vld [vmem:[%s1450_s1 + $0xd0] sm:$0xff]  }
  0x11   : > { %v1151_v14 = vld [vmem:[%s1450_s1 + $0x20] sm:$0xff]   ;;  %v1155_v18 = vld [vmem:[%s1450_s1 + $0x18] sm:$0xff]   ;;  %v1159_v22 = vld [vmem:[%s1450_s1 + $0x10] sm:$0xff]  }
  0x12   : > { %1044 = vmatpush3.bf16.msra.mxu0 %v1143_v6  ;;  %v1152_v15 = vld [vmem:[%s1450_s1 + $0xa0] sm:$0xff]   ;;  %v1156_v19 = vld [vmem:[%s1450_s1 + $0x98] sm:$0xff]   ;;  %v1160_v23 = vld [vmem:[%s1450_s1 + $0x90] sm:$0xff]  }
  0x13   : > { %1066 = vmatpush3.bf16.msra.mxu1 %v1144_v7  ;;  %1045 = vmatprep.subr.bf16.mxu0 %v1145_v8  ;;  %v1161_v24 = vld [vmem:[%s1450_s1 + $0x48] sm:$0xff]   ;;  %v1165_v28 = vld [vmem:[%s1450_s1 + $0x40] sm:$0xff]   ;;  %v1169_v40 = vld [vmem:[%s1450_s1 + $0x178] sm:$0xff]  }
  0x14   : > { %1067 = vmatprep.subr.bf16.mxu1 %v1146_v9  ;;  %v1162_v25 = vld [vmem:[%s1450_s1 + $0xc8] sm:$0xff]   ;;  %v1166_v29 = vld [vmem:[%s1450_s1 + $0xc0] sm:$0xff]   ;;  %v1170_v41 = vld [vmem:[%s1450_s1 + $0x1f8] sm:$0xff]  }
  0x15   : > { %v1163_v26 = vld [vmem:[%s1450_s1 + $0x8] sm:$0xff]   ;;  %v1167_v30 = vld [vmem:[%s1450_s1] sm:$0xff]   ;;  %v1171_v42 = vld [vmem:[%s1450_s1 + $0x138] sm:$0xff]  }
  0x16   : > { %1046 = vmatpush3.bf16.msra.mxu0 %v1147_v10  ;;  %v1164_v27 = vld [vmem:[%s1450_s1 + $0x88] sm:$0xff]   ;;  %v1168_v31 = vld [vmem:[%s1450_s1 + $0x80] sm:$0xff]   ;;  %v1172_v43 = vld [vmem:[%s1450_s1 + $0x1b8] sm:$0xff]  }
  0x17   : > { %1068 = vmatpush3.bf16.msra.mxu1 %v1148_v11  ;;  %1047 = vmatprep.subr.bf16.mxu0 %v1149_v12  ;;  %v151_v32 = vld [vmem:[%s1330_s23] sm:$0xff]  ;;  %v152_v34 = vld [vmem:[%s1330_s23 + $0x8] sm:$0xff]  ;;  %v1173_v44 = vld [vmem:[%s1450_s1 + $0x170] sm:$0xff]  }
  0x18   : > { %1069 = vmatprep.subr.bf16.mxu1 %v1150_v13  ;;  %v155_v33 = vld [vmem:[%s1330_s23 + $0x20] sm:$0xff]  ;;  %v156_v37 = vld [vmem:[%s1330_s23 + $0x28] sm:$0xff]  ;;  %v1174_v45 = vld [vmem:[%s1450_s1 + $0x1f0] sm:$0xff]  }
  0x19   : > { %v957_v35 = vcombine.low %v151_v32, %v155_v33  ;;  %v958_v36 = vcombine.high %v151_v32, %v155_v33  ;;  %v959_v38 = vcombine.low %v152_v34, %v156_v37  ;;  %v960_v39 = vcombine.high %v152_v34, %v156_v37  ;;  %v1175_v46 = vld [vmem:[%s1450_s1 + $0x130] sm:$0xff]   ;;  %v1177_v48 = vld [vmem:[%s1450_s1 + $0x168] sm:$0xff]   ;;  %v1181_v52 = vld [vmem:[%s1450_s1 + $0x160] sm:$0xff]  }
  0x1a   : > { %1048 = vmatpush3.bf16.msra.mxu0 %v1151_v14  ;;  %v1176_v47 = vld [vmem:[%s1450_s1 + $0x1b0] sm:$0xff]   ;;  %v1178_v49 = vld [vmem:[%s1450_s1 + $0x1e8] sm:$0xff]   ;;  %v1182_v53 = vld [vmem:[%s1450_s1 + $0x1e0] sm:$0xff]  }
  0x1b   : > { %1070 = vmatpush3.bf16.msra.mxu1 %v1152_v15  ;;  %1049 = vmatprep.subr.bf16.mxu0 %v1153_v16  ;;  %v1179_v50 = vld [vmem:[%s1450_s1 + $0x128] sm:$0xff]   ;;  %v1183_v54 = vld [vmem:[%s1450_s1 + $0x120] sm:$0xff]   ;;  %v1185_v56 = vld [vmem:[%s1450_s1 + $0x158] sm:$0xff]  }
  0x1c   : > { %1071 = vmatprep.subr.bf16.mxu1 %v1154_v17  ;;  %743 = vmatprep.mubr.bf16.mxu0 %v958_v36  ;;  %v1180_v51 = vld [vmem:[%s1450_s1 + $0x1a8] sm:$0xff]   ;;  %v1184_v55 = vld [vmem:[%s1450_s1 + $0x1a0] sm:$0xff]   ;;  %v1186_v57 = vld [vmem:[%s1450_s1 + $0x1d8] sm:$0xff]  }
  0x1d   : > { %784 = vmatprep.mubr.bf16.mxu1 %v960_v39  ;;  %v1187_v58 = vld [vmem:[%s1450_s1 + $0x118] sm:$0xff]   ;;  %v1189_v60 = vld [vmem:[%s1450_s1 + $0x150] sm:$0xff]   ;;  %v1193_v0 = vld [vmem:[%s1450_s1 + $0x148] sm:$0xff]  }
  0x1e   : > { %1050 = vmatpush3.bf16.msra.mxu0 %v1155_v18  ;;  %v1188_v59 = vld [vmem:[%s1450_s1 + $0x198] sm:$0xff]   ;;  %v1190_v61 = vld [vmem:[%s1450_s1 + $0x1d0] sm:$0xff]   ;;  %v1194_v1 = vld [vmem:[%s1450_s1 + $0x1c8] sm:$0xff]  }
  0x1f   : > { %1072 = vmatpush3.bf16.msra.mxu1 %v1156_v19  ;;  %1051 = vmatprep.subr.bf16.mxu0 %v1157_v20  ;;  %v1191_v62 = vld [vmem:[%s1450_s1 + $0x110] sm:$0xff]   ;;  %v1195_v2 = vld [vmem:[%s1450_s1 + $0x108] sm:$0xff]   ;;  %v1197_v4 = vld [vmem:[%s1450_s1 + $0x140] sm:$0xff]  }
  0x20   : > { %1073 = vmatprep.subr.bf16.mxu1 %v1158_v21  ;;  %v1192_v63 = vld [vmem:[%s1450_s1 + $0x190] sm:$0xff]   ;;  %v1196_v3 = vld [vmem:[%s1450_s1 + $0x188] sm:$0xff]   ;;  %v1198_v5 = vld [vmem:[%s1450_s1 + $0x1c0] sm:$0xff]  }
  0x21   : > { %v1199_v6 = vld [vmem:[%s1450_s1 + $0x100] sm:$0xff]   ;;  %v153_v8 = vld [vmem:[%s1330_s23 + $0x10] sm:$0xff]  ;;  %v154_v12 = vld [vmem:[%s1330_s23 + $0x18] sm:$0xff] }
  0x22   : > { %1052 = vmatpush3.bf16.msra.mxu0 %v1159_v22  ;;  %v1200_v7 = vld [vmem:[%s1450_s1 + $0x180] sm:$0xff]   ;;  %v157_v9 = vld [vmem:[%s1330_s23 + $0x30] sm:$0xff]  ;;  %v158_v13 = vld [vmem:[%s1330_s23 + $0x38] sm:$0xff]  ;;  %s956_s23 = sshll.u32 %s1453_s17, 2 }
  0x23   : > { %1074 = vmatpush3.bf16.msra.mxu1 %v1160_v23  ;;  %1053 = vmatprep.subr.bf16.mxu0 %v1161_v24  ;;  %v961_v10 = vcombine.low %v153_v8, %v157_v9  ;;  %v962_v11 = vcombine.high %v153_v8, %v157_v9  ;;  %v963_v14 = vcombine.low %v154_v12, %v158_v13  ;;  %s148_s18 = scalar_lea.vmem %s1451_s2, %s956_s23 }
  0x24   : > { %1075 = vmatprep.subr.bf16.mxu1 %v1162_v25  ;;  %v964_v15 = vcombine.high %v154_v12, %v158_v13 }
  0x26   : > { %1054 = vmatpush3.bf16.msra.mxu0 %v1163_v26 }
  0x27   : > { %1076 = vmatpush3.bf16.msra.mxu1 %v1164_v27  ;;  %1055 = vmatprep.subr.bf16.mxu0 %v1165_v28 }
  0x28   : > { %1077 = vmatprep.subr.bf16.mxu1 %v1166_v29 }
  0x2a   : > { %1056 = vmatpush3.bf16.msra.mxu0 %v1167_v30 }
  0x2b   : > { %1078 = vmatpush3.bf16.msra.mxu1 %v1168_v31  ;;  %1085 = vmatprep.subr.bf16.mxu0 %v1169_v40 }
  0x2c   : > { %1107 = vmatprep.subr.bf16.mxu1 %v1170_v41 }
  0x2d   : > { %744 = vmatmul.mubr.bf16.vlgmr.msra.gmra.mxu0 %v957_v35 }
  0x2e   : > { %785 = vmatmul.mubr.bf16.vlgmr.msra.gmra.mxu1 %v959_v38  ;;  %1086 = vmatpush3.bf16.msra.mxu0 %v1171_v42 }
  0x2f   : > { %1108 = vmatpush3.bf16.msra.mxu1 %v1172_v43  ;;  %1087 = vmatprep.subr.bf16.mxu0 %v1173_v44 }
  0x30   : > { %1109 = vmatprep.subr.bf16.mxu1 %v1174_v45  ;;  %825 = vmatprep.mubr.bf16.mxu0 %v962_v11 }
  0x31   : > { %866 = vmatprep.mubr.bf16.mxu1 %v964_v15 }
  0x32   : > { %1088 = vmatpush3.bf16.msra.mxu0 %v1175_v46 }
  0x33   : > { %1110 = vmatpush3.bf16.msra.mxu1 %v1176_v47  ;;  %1089 = vmatprep.subr.bf16.mxu0 %v1177_v48 }
  0x34   : > { %1111 = vmatprep.subr.bf16.mxu1 %v1178_v49 }
  0x36   : > { %1090 = vmatpush3.bf16.msra.mxu0 %v1179_v50 }
  0x37   : > { %1112 = vmatpush3.bf16.msra.mxu1 %v1180_v51  ;;  %1091 = vmatprep.subr.bf16.mxu0 %v1181_v52 }
  0x38   : > { %1113 = vmatprep.subr.bf16.mxu1 %v1182_v53 }
  0x3a   : > { %1092 = vmatpush3.bf16.msra.mxu0 %v1183_v54 }
  0x3b   : > { %1114 = vmatpush3.bf16.msra.mxu1 %v1184_v55  ;;  %1093 = vmatprep.subr.bf16.mxu0 %v1185_v56 }
  0x3c   : > { %1115 = vmatprep.subr.bf16.mxu1 %v1186_v57 }
  0x3e   : > { %1094 = vmatpush3.bf16.msra.mxu0 %v1187_v58 }
  0x3f   : > { %1116 = vmatpush3.bf16.msra.mxu1 %v1188_v59  ;;  %1095 = vmatprep.subr.bf16.mxu0 %v1189_v60 }
  0x40   : > { %1117 = vmatprep.subr.bf16.mxu1 %v1190_v61 }
  0x42   : > { %1096 = vmatpush3.bf16.msra.mxu0 %v1191_v62 }
  0x43   : > { %1118 = vmatpush3.bf16.msra.mxu1 %v1192_v63  ;;  %1097 = vmatprep.subr.bf16.mxu0 %v1193_v0 }
  0x44   : > { %1119 = vmatprep.subr.bf16.mxu1 %v1194_v1 }
  0x46   : > { %1098 = vmatpush3.bf16.msra.mxu0 %v1195_v2 }
  0x47   : > { %1120 = vmatpush3.bf16.msra.mxu1 %v1196_v3  ;;  %1099 = vmatprep.subr.bf16.mxu0 %v1197_v4 }
  0x48   : > { %1121 = vmatprep.subr.bf16.mxu1 %v1198_v5 }
  0x4a   : > { %1100 = vmatpush3.bf16.msra.mxu0 %v1199_v6 }
  0x4b   : > { %1122 = vmatpush3.bf16.msra.mxu1 %v1200_v7 }
  0x4d   : > { %826 = vmatmul.mubr.bf16.vlgmr.msra.gmra.mxu0 %v961_v10 }
  0x4e   : > { %867 = vmatmul.mubr.bf16.vlgmr.msra.gmra.mxu1 %v963_v14 }
  0xed   : > { %v1057_v16 = vpop.f32.mrf.mxu0 }
  0xee   : > { %v1079_v17 = vpop.f32.mrf.mxu1 }
  0xef   : > { %v1058_v18 = vpop.f32.mrf.mxu0 }
  0xf0   : > { %v1080_v19 = vpop.f32.mrf.mxu1  ;;  %v1059_v23 = vadd.f32 %v1058_v18, %v1057_v16 }
  0xf1   : > { %v1060_v20 = vpop.f32.mrf.mxu0  ;;  %v1081_v24 = vadd.f32 %v1080_v19, %v1079_v17 }
  0xf2   : > { %v1082_v21 = vpop.f32.mrf.mxu1 }
  0xf3   : > { %v1061_v22 = vpop.f32.mrf.mxu0  ;;  %v787_v29 = vadd.f32 %v1081_v24, %v1059_v23 }
  0xf4   : > { %v1083_v25 = vpop.f32.mrf.mxu1  ;;  %v1062_v30 = vadd.f32 %v1061_v22, %v1060_v20 }
  0xf5   : > { %v1084_v31 = vadd.f32 %v1083_v25, %v1082_v21 }
  0xf7   : > { %v790_v39 = vadd.f32 %v1084_v31, %v1062_v30 }
 0x10d   : > { %v1101_v26 = vpop.f32.mrf.mxu0 }
 0x10e   : > { %v1123_v27 = vpop.f32.mrf.mxu1 }
 0x10f   : > { %v1102_v28 = vpop.f32.mrf.mxu0 }
 0x110   : > { %v1103_v32 = vadd.f32 %v1102_v28, %v1101_v26  ;;  %v1124_v33 = vpop.f32.mrf.mxu1 }
 0x111   : > { %v1104_v34 = vpop.f32.mrf.mxu0  ;;  %v1125_v36 = vadd.f32 %v1124_v33, %v1123_v27 }
 0x112   : > { %v828_v35 = vadd.f32 %v1103_v32, %v787_v29  ;;  %v1126_v37 = vpop.f32.mrf.mxu1 }
 0x113   : > { %v1105_v38 = vpop.f32.mrf.mxu0 }
 0x114   : > { %v869_v40 = vadd.f32 %v1125_v36, %v828_v35  ;;  %v1106_v41 = vadd.f32 %v1105_v38, %v1104_v34  ;;  %v1127_v42 = vpop.f32.mrf.mxu1 }
 0x115   : > { %v1128_v44 = vadd.f32 %v1127_v42, %v1126_v37 }
 0x116   : > { %v831_v43 = vadd.f32 %v1106_v41, %v790_v39  ;;  %v877_v45 = vmul.f32 0.2, %v869_v40  ;;  %vm875_vm0 = vcmp.ge.f32.partialorder %v869_v40, 0.0 }
 0x118   : > { %v872_v46 = vadd.f32 %v1128_v44, %v831_v43  ;;  %v879_v48 = vsel %vm875_vm0, %v869_v40, %v877_v45 }
 0x11a   : > { %vm876_vm1 = vcmp.ge.f32.partialorder %v872_v46, 0.0  ;;  %v878_v47 = vmul.f32 0.2, %v872_v46 }
 0x11c   : > { %v880_v49 = vsel %vm876_vm1, %v872_v46, %v878_v47 }
 0x11d   : > { %v1039_v50 = vpack.c.bf16 %v880_v49, %v879_v48 }
 0x11f   : > { %1040 = vst [vmem:[%s148_s18] sm:$0xff] %v1039_v50  }
 0x120 PF: > { %s12_s9 = sadd.s32 1, %s1207_s9  }
 0x121   : > { %p9_p4 = scmp.ge.s32.totalorder %s12_s9, 4  }
 0x123   :  { %11 = sbr.rel (!%p9_p4) target bundleno = 1 (0x1), region = 58 }

// kernel: confnet_forward.21
= control target key start
LH: loop header
LB: loop body
LE: loop exit
PB: predicated region body
PF: predicated region fallthrough
CT: control target
= control target key end

     0   :  { %v1917_v22 = vmov 1966171168   ;;  %v276_v24 = vlaneseq  ;;  %vm1476_vm0 = vcmask 253952   ;;  %s2360_s1 = inlined_call_operand.vmem [shape: bf16[2048,32], index: 1, kind: input, shape index: {}]   ;;  %s2361_s0 = inlined_call_operand.vmem [shape: bf16[2,2048], index: 0, kind: input, shape index: {}]   ;;  %s2362_s2 = inlined_call_operand.vmem [shape: bf16[2,32], index: 2, kind: output, shape index: {}]  }
   0x1   :  { %v1787_v0 = vld [vmem:[%s2360_s1 + $0x78] sm:$0xff]   ;;  %v1791_v4 = vld [vmem:[%s2360_s1 + $0x70] sm:$0xff]   ;;  %v1795_v8 = vld [vmem:[%s2360_s1 + $0x68] sm:$0xff]   ;;  %v274_v23 = vunpack.c.l.s4 %v1917_v22 }
   0x2   :  { %v1788_v1 = vld [vmem:[%s2360_s1 + $0xf8] sm:$0xff]   ;;  %1610 = vmatprep.subr.bf16.mxu0 %v1787_v0  ;;  %v1792_v5 = vld [vmem:[%s2360_s1 + $0xf0] sm:$0xff]   ;;  %v1796_v9 = vld [vmem:[%s2360_s1 + $0xe8] sm:$0xff]   ;;  %v277_v30 = vshrl.u32 %v276_v24, 7 }
   0x3   :  { %v1789_v2 = vld [vmem:[%s2360_s1 + $0x38] sm:$0xff]   ;;  %1632 = vmatprep.subr.bf16.mxu1 %v1788_v1  ;;  %v1793_v6 = vld [vmem:[%s2360_s1 + $0x30] sm:$0xff]   ;;  %v1797_v10 = vld [vmem:[%s2360_s1 + $0x28] sm:$0xff]   ;;  %v275_v29 = vunpack.c.0.s8 %v274_v23 }
   0x4   :  { %v1790_v3 = vld [vmem:[%s2360_s1 + $0xb8] sm:$0xff]   ;;  %1611 = vmatpush3.bf16.msra.mxu0 %v1789_v2  ;;  %v1794_v7 = vld [vmem:[%s2360_s1 + $0xb0] sm:$0xff]   ;;  %v1798_v11 = vld [vmem:[%s2360_s1 + $0xa8] sm:$0xff]  }
   0x5   :  { %1633 = vmatpush3.bf16.msra.mxu1 %v1790_v3  ;;  %1612 = vmatprep.subr.bf16.mxu0 %v1791_v4  ;;  %v1799_v12 = vld [vmem:[%s2360_s1 + $0x60] sm:$0xff]   ;;  %v1803_v16 = vld [vmem:[%s2360_s1 + $0x58] sm:$0xff]   ;;  %v1807_v20 = vld [vmem:[%s2360_s1 + $0x50] sm:$0xff]   ;;  %v2023_v35 = vsub.s32 %v275_v29, %v277_v30 }
   0x6   :  { %1634 = vmatprep.subr.bf16.mxu1 %v1792_v5  ;;  %v1800_v13 = vld [vmem:[%s2360_s1 + $0xe0] sm:$0xff]   ;;  %v1804_v17 = vld [vmem:[%s2360_s1 + $0xd8] sm:$0xff]   ;;  %v1808_v21 = vld [vmem:[%s2360_s1 + $0xd0] sm:$0xff]  }
   0x7   :  { %v1801_v14 = vld [vmem:[%s2360_s1 + $0x20] sm:$0xff]   ;;  %v1805_v18 = vld [vmem:[%s2360_s1 + $0x18] sm:$0xff]   ;;  %v1809_v25 = vld [vmem:[%s2360_s1 + $0x10] sm:$0xff]  }
   0x8   :  { %1613 = vmatpush3.bf16.msra.mxu0 %v1793_v6  ;;  %v1802_v15 = vld [vmem:[%s2360_s1 + $0xa0] sm:$0xff]   ;;  %v1806_v19 = vld [vmem:[%s2360_s1 + $0x98] sm:$0xff]   ;;  %v1810_v26 = vld [vmem:[%s2360_s1 + $0x90] sm:$0xff]  }
   0x9   :  { %1635 = vmatpush3.bf16.msra.mxu1 %v1794_v7  ;;  %1614 = vmatprep.subr.bf16.mxu0 %v1795_v8  ;;  %v1811_v27 = vld [vmem:[%s2360_s1 + $0x48] sm:$0xff]   ;;  %v1815_v33 = vld [vmem:[%s2360_s1 + $0x40] sm:$0xff]   ;;  %v1821_v41 = vld [vmem:[%s2360_s1 + $0x178] sm:$0xff]  }
   0xa   :  { %1636 = vmatprep.subr.bf16.mxu1 %v1796_v9  ;;  %v1812_v28 = vld [vmem:[%s2360_s1 + $0xc8] sm:$0xff]   ;;  %v1816_v34 = vld [vmem:[%s2360_s1 + $0xc0] sm:$0xff]   ;;  %v1822_v42 = vld [vmem:[%s2360_s1 + $0x1f8] sm:$0xff]  }
   0xb   :  { %v1813_v31 = vld [vmem:[%s2360_s1 + $0x8] sm:$0xff]   ;;  %v1817_v36 = vld [vmem:[%s2360_s1] sm:$0xff]   ;;  %v1823_v47 = vld [vmem:[%s2360_s1 + $0x138] sm:$0xff]  }
   0xc   :  { %1615 = vmatpush3.bf16.msra.mxu0 %v1797_v10  ;;  %v1814_v32 = vld [vmem:[%s2360_s1 + $0x88] sm:$0xff]   ;;  %v1818_v37 = vld [vmem:[%s2360_s1 + $0x80] sm:$0xff]   ;;  %v1825_v50 = vld [vmem:[%s2360_s1 + $0x170] sm:$0xff]  }
   0xd   :  { %1637 = vmatpush3.bf16.msra.mxu1 %v1798_v11  ;;  %1616 = vmatprep.subr.bf16.mxu0 %v1799_v12  ;;  %v12_v38 = vld [vmem:[%s2361_s0] sm:$0xff]  ;;  %v1824_v52 = vld [vmem:[%s2360_s1 + $0x1b8] sm:$0xff]   ;;  %v1826_v54 = vld [vmem:[%s2360_s1 + $0x1f0] sm:$0xff]  }
   0xe   :  { %1638 = vmatprep.subr.bf16.mxu1 %v1800_v13  ;;  %v272_v39 = vcombine.high %v12_v38, %v12_v38  ;;  %v279_v40 = vrot.slane %v12_v38, %v2023_v35  ;;  %v1827_v55 = vld [vmem:[%s2360_s1 + $0x130] sm:$0xff]   ;;  %v1829_v57 = vld [vmem:[%s2360_s1 + $0x168] sm:$0xff]   ;;  %v1833_v61 = vld [vmem:[%s2360_s1 + $0x160] sm:$0xff]  }
   0xf   :  { %v1828_v58 = vld [vmem:[%s2360_s1 + $0x1b0] sm:$0xff]   ;;  %v1830_v59 = vld [vmem:[%s2360_s1 + $0x1e8] sm:$0xff]   ;;  %v1834_v63 = vld [vmem:[%s2360_s1 + $0x1e0] sm:$0xff]  }
  0x10   :  { %1617 = vmatpush3.bf16.msra.mxu0 %v1801_v14  ;;  %v287_v43 = vcombine.high %v279_v40, %v279_v40  ;;  %v295_v44 = vrot.slane %v279_v40, %v2023_v35  ;;  %v2043_v45 = vrot.slane %v272_v39, %v2023_v35  ;;  %v1831_v60 = vld [vmem:[%s2360_s1 + $0x128] sm:$0xff]   ;;  %v1835_v0 = vld [vmem:[%s2360_s1 + $0x120] sm:$0xff]   ;;  %v1837_v1 = vld [vmem:[%s2360_s1 + $0x158] sm:$0xff]  }
  0x11   :  { %1639 = vmatpush3.bf16.msra.mxu1 %v1802_v15  ;;  %1618 = vmatprep.subr.bf16.mxu0 %v1803_v16  ;;  %v1832_v62 = vld [vmem:[%s2360_s1 + $0x1a8] sm:$0xff]   ;;  %v1836_v2 = vld [vmem:[%s2360_s1 + $0x1a0] sm:$0xff]   ;;  %v1838_v3 = vld [vmem:[%s2360_s1 + $0x1d8] sm:$0xff]  }
  0x12   :  { %1640 = vmatprep.subr.bf16.mxu1 %v1804_v17  ;;  %v309_v46 = vrot.slane %v287_v43, %v2023_v35  ;;  %v288_v48 = vcombine.high %v2043_v45, %v2043_v45  ;;  %v317_v49 = vcombine.high %v295_v44, %v295_v44  ;;  %v1839_v4 = vld [vmem:[%s2360_s1 + $0x118] sm:$0xff]   ;;  %v2103_v5 = vld [vmem:[%s2361_s0 + $0x8] sm:$0xff]  ;;  %v1841_v6 = vld [vmem:[%s2360_s1 + $0x150] sm:$0xff]  }
  0x13   :  { %v1840_v7 = vld [vmem:[%s2360_s1 + $0x198] sm:$0xff]   ;;  %v1842_v8 = vld [vmem:[%s2360_s1 + $0x1d0] sm:$0xff]   ;;  %v1845_v10 = vld [vmem:[%s2360_s1 + $0x148] sm:$0xff]   ;;  %v2125_v12 = vrot.slane %v2103_v5, %v2023_v35 }
  0x14   :  { %1619 = vmatpush3.bf16.msra.mxu0 %v1805_v18  ;;  %1186 = vmatprep.mubr.bf16.mxu0 %v309_v46  ;;  %v319_v51 = vcombine.high %v309_v46, %v309_v46  ;;  %v316_v53 = vrot.slane %v288_v48, %v2023_v35  ;;  %v1843_v9 = vld [vmem:[%s2360_s1 + $0x110] sm:$0xff]   ;;  %v1846_v13 = vld [vmem:[%s2360_s1 + $0x1c8] sm:$0xff]   ;;  %v1849_v15 = vld [vmem:[%s2360_s1 + $0x140] sm:$0xff]   ;;  %v321_v46 = vcombine.high %v2103_v5, %v2103_v5 }
  0x15   :  { %1641 = vmatpush3.bf16.msra.mxu1 %v1806_v19  ;;  %1620 = vmatprep.subr.bf16.mxu0 %v1807_v20  ;;  %v1844_v11 = vld [vmem:[%s2360_s1 + $0x190] sm:$0xff]   ;;  %v1847_v14 = vld [vmem:[%s2360_s1 + $0x108] sm:$0xff]   ;;  %v336_v17 = vcombine.high %v2125_v12, %v2125_v12  ;;  %v1850_v18 = vld [vmem:[%s2360_s1 + $0x1c0] sm:$0xff]   ;;  %v302_v20 = vrot.slane %v2043_v45, %v2023_v35 }
  0x16   :  { %1642 = vmatprep.subr.bf16.mxu1 %v1808_v21  ;;  %1226 = vmatprep.mubr.bf16.mxu1 %v319_v51  ;;  %v320_v56 = vcombine.high %v316_v53, %v316_v53  ;;  %v1848_v16 = vld [vmem:[%s2360_s1 + $0x188] sm:$0xff]   ;;  %v1851_v19 = vld [vmem:[%s2360_s1 + $0x100] sm:$0xff]   ;;  %v1853_v21 = vld [vmem:[%s2360_s1 + $0x278] sm:$0xff]  }
  0x17   :  { %v1852_v22 = vld [vmem:[%s2360_s1 + $0x180] sm:$0xff]   ;;  %v358_v23 = vrot.slane %v336_v17, %v2023_v35  ;;  %v1854_v24 = vld [vmem:[%s2360_s1 + $0x2f8] sm:$0xff]   ;;  %v1858_v30 = vld [vmem:[%s2360_s1 + $0x2f0] sm:$0xff]  }
  0x18   :  { %1621 = vmatpush3.bf16.msra.mxu0 %v1809_v25  ;;  %v1855_v25 = vld [vmem:[%s2360_s1 + $0x238] sm:$0xff]   ;;  %v1864_v38 = vld [vmem:[%s2360_s1 + $0x2a8] sm:$0xff]   ;;  %v1866_v39 = vld [vmem:[%s2360_s1 + $0x2e0] sm:$0xff]  }
  0x19   :  { %1643 = vmatpush3.bf16.msra.mxu1 %v1810_v26  ;;  %1622 = vmatprep.subr.bf16.mxu0 %v1811_v27  ;;  %v318_v26 = vcombine.high %v302_v20, %v302_v20  ;;  %v1857_v27 = vld [vmem:[%s2360_s1 + $0x270] sm:$0xff]   ;;  %v368_v29 = vcombine.high %v358_v23, %v358_v23  ;;  %v1867_v40 = vld [vmem:[%s2360_s1 + $0x220] sm:$0xff]   ;;  %v1870_v43 = vld [vmem:[%s2360_s1 + $0x2d8] sm:$0xff]  }
  0x1a   :  { %1644 = vmatprep.subr.bf16.mxu1 %v1812_v28  ;;  %v1856_v28 = vld [vmem:[%s2360_s1 + $0x2b8] sm:$0xff]   ;;  %v1873_v45 = vld [vmem:[%s2360_s1 + $0x250] sm:$0xff]   ;;  %v1900_v17 = vld [vmem:[%s2360_s1 + $0x3a0] sm:$0xff]  }
  0x1b   :  { %v1874_v48 = vld [vmem:[%s2360_s1 + $0x2d0] sm:$0xff]  }
  0x1c   :  { %1623 = vmatpush3.bf16.msra.mxu0 %v1813_v31  ;;  %v1859_v31 = vld [vmem:[%s2360_s1 + $0x230] sm:$0xff]  }
  0x1d   :  { %1645 = vmatpush3.bf16.msra.mxu1 %v1814_v32  ;;  %1624 = vmatprep.subr.bf16.mxu0 %v1815_v33  ;;  %v1861_v32 = vld [vmem:[%s2360_s1 + $0x268] sm:$0xff]   ;;  %v1860_v33 = vld [vmem:[%s2360_s1 + $0x2b0] sm:$0xff]  }
  0x1e   :  { %1646 = vmatprep.subr.bf16.mxu1 %v1816_v34  ;;  %v1862_v34 = vld [vmem:[%s2360_s1 + $0x2e8] sm:$0xff]   ;;  %v1876_v51 = vld [vmem:[%s2360_s1 + $0x290] sm:$0xff]  }
  0x20   :  { %1625 = vmatpush3.bf16.msra.mxu0 %v1817_v36  ;;  %v1863_v36 = vld [vmem:[%s2360_s1 + $0x228] sm:$0xff]  }
  0x21   :  { %1647 = vmatpush3.bf16.msra.mxu1 %v1818_v37  ;;  %1654 = vmatprep.subr.bf16.mxu0 %v1821_v41  ;;  %v1865_v37 = vld [vmem:[%s2360_s1 + $0x260] sm:$0xff]   ;;  %v1869_v41 = vld [vmem:[%s2360_s1 + $0x258] sm:$0xff]  }
  0x22   :  { %1676 = vmatprep.subr.bf16.mxu1 %v1822_v42  ;;  %v1868_v42 = vld [vmem:[%s2360_s1 + $0x2a0] sm:$0xff]  }
  0x23   :  { %1187 = vmatmul.mubr.bf16.vlgmr.msra.gmra.mxu0 %v295_v44  ;;  %v1871_v44 = vld [vmem:[%s2360_s1 + $0x218] sm:$0xff]  }
  0x24   :  { %1655 = vmatpush3.bf16.msra.mxu0 %v1823_v47  ;;  %1227 = vmatmul.mubr.bf16.vlgmr.msra.gmra.mxu1 %v317_v49  ;;  %v1872_v47 = vld [vmem:[%s2360_s1 + $0x298] sm:$0xff]   ;;  %v1875_v49 = vld [vmem:[%s2360_s1 + $0x210] sm:$0xff]  }
  0x25   :  { %1656 = vmatprep.subr.bf16.mxu0 %v1825_v50  ;;  %1677 = vmatpush3.bf16.msra.mxu1 %v1824_v52  ;;  %v1877_v50 = vld [vmem:[%s2360_s1 + $0x248] sm:$0xff]   ;;  %v2231_v52 = vrot.slane %v321_v46, %v2023_v35 }
  0x26   :  { %1266 = vmatprep.mubr.bf16.mxu0 %v316_v53  ;;  %1678 = vmatprep.subr.bf16.mxu1 %v1826_v54  ;;  %v1878_v53 = vld [vmem:[%s2360_s1 + $0x2c8] sm:$0xff]  }
  0x27   :  { %1306 = vmatprep.mubr.bf16.mxu1 %v320_v56  ;;  %v1879_v54 = vld [vmem:[%s2360_s1 + $0x208] sm:$0xff]  }
  0x28   :  { %1657 = vmatpush3.bf16.msra.mxu0 %v1827_v55  ;;  %v1881_v55 = vld [vmem:[%s2360_s1 + $0x240] sm:$0xff]   ;;  %v1880_v56 = vld [vmem:[%s2360_s1 + $0x288] sm:$0xff]  }
  0x29   :  { %1658 = vmatprep.subr.bf16.mxu0 %v1829_v57  ;;  %1679 = vmatpush3.bf16.msra.mxu1 %v1828_v58  ;;  %v337_v57 = vcombine.high %v2231_v52, %v2231_v52  ;;  %v1882_v58 = vld [vmem:[%s2360_s1 + $0x2c0] sm:$0xff]  }
  0x2a   :  { %1680 = vmatprep.subr.bf16.mxu1 %v1830_v59  ;;  %v1883_v59 = vld [vmem:[%s2360_s1 + $0x200] sm:$0xff]  }
  0x2c   :  { %1659 = vmatpush3.bf16.msra.mxu0 %v1831_v60  ;;  %v344_v60 = vrot.slane %v2125_v12, %v2023_v35  ;;  %v1897_v12 = vld [vmem:[%s2360_s1 + $0x360] sm:$0xff]  }
  0x2d   :  { %1660 = vmatprep.subr.bf16.mxu0 %v1833_v61  ;;  %1681 = vmatpush3.bf16.msra.mxu1 %v1832_v62  ;;  %v1885_v61 = vld [vmem:[%s2360_s1 + $0x378] sm:$0xff]   ;;  %v1884_v62 = vld [vmem:[%s2360_s1 + $0x280] sm:$0xff]  }
  0x2e   :  { %1682 = vmatprep.subr.bf16.mxu1 %v1834_v63  ;;  %v365_v63 = vrot.slane %v337_v57, %v2023_v35 }
  0x30   :  { %1661 = vmatpush3.bf16.msra.mxu0 %v1835_v0  ;;  %v1886_v0 = vld [vmem:[%s2360_s1 + $0x3f8] sm:$0xff]   ;;  %v369_v5 = vcombine.high %v365_v63, %v365_v63 }
  0x31   :  { %1662 = vmatprep.subr.bf16.mxu0 %v1837_v1  ;;  %1683 = vmatpush3.bf16.msra.mxu1 %v1836_v2  ;;  %v1887_v1 = vld [vmem:[%s2360_s1 + $0x338] sm:$0xff]   ;;  %v366_v2 = vcombine.high %v344_v60, %v344_v60 }
  0x32   :  { %1684 = vmatprep.subr.bf16.mxu1 %v1838_v3  ;;  %v1889_v3 = vld [vmem:[%s2360_s1 + $0x370] sm:$0xff]  }
  0x34   :  { %1663 = vmatpush3.bf16.msra.mxu0 %v1839_v4  ;;  %v1888_v4 = vld [vmem:[%s2360_s1 + $0x3b8] sm:$0xff]  }
  0x35   :  { %1664 = vmatprep.subr.bf16.mxu0 %v1841_v6  ;;  %1685 = vmatpush3.bf16.msra.mxu1 %v1840_v7  ;;  %v1890_v6 = vld [vmem:[%s2360_s1 + $0x3f0] sm:$0xff]  }
  0x36   :  { %1686 = vmatprep.subr.bf16.mxu1 %v1842_v8  ;;  %v1891_v7 = vld [vmem:[%s2360_s1 + $0x330] sm:$0xff]   ;;  %v1893_v8 = vld [vmem:[%s2360_s1 + $0x368] sm:$0xff]  }
  0x38   :  { %1665 = vmatpush3.bf16.msra.mxu0 %v1843_v9  ;;  %v1892_v9 = vld [vmem:[%s2360_s1 + $0x3b0] sm:$0xff]  }
  0x39   :  { %1666 = vmatprep.subr.bf16.mxu0 %v1845_v10  ;;  %1687 = vmatpush3.bf16.msra.mxu1 %v1844_v11  ;;  %v1894_v10 = vld [vmem:[%s2360_s1 + $0x3e8] sm:$0xff]  }
  0x3a   :  { %1688 = vmatprep.subr.bf16.mxu1 %v1846_v13  ;;  %v1895_v11 = vld [vmem:[%s2360_s1 + $0x328] sm:$0xff]  }
  0x3b   :  { %v1896_v13 = vld [vmem:[%s2360_s1 + $0x3a8] sm:$0xff]  }
  0x3c   :  { %1667 = vmatpush3.bf16.msra.mxu0 %v1847_v14  ;;  %v1898_v14 = vld [vmem:[%s2360_s1 + $0x3e0] sm:$0xff]  }
  0x3d   :  { %1668 = vmatprep.subr.bf16.mxu0 %v1849_v15  ;;  %1689 = vmatpush3.bf16.msra.mxu1 %v1848_v16  ;;  %v1899_v15 = vld [vmem:[%s2360_s1 + $0x320] sm:$0xff]   ;;  %v1901_v16 = vld [vmem:[%s2360_s1 + $0x358] sm:$0xff]  }
  0x3e   :  { %1690 = vmatprep.subr.bf16.mxu1 %v1850_v18  ;;  %v1902_v18 = vld [vmem:[%s2360_s1 + $0x3d8] sm:$0xff]  }
  0x40   :  { %1669 = vmatpush3.bf16.msra.mxu0 %v1851_v19  ;;  %v1903_v19 = vld [vmem:[%s2360_s1 + $0x318] sm:$0xff]  }
  0x41   :  { %1698 = vmatprep.subr.bf16.mxu0 %v1853_v21  ;;  %1691 = vmatpush3.bf16.msra.mxu1 %v1852_v22  ;;  %v1904_v21 = vld [vmem:[%s2360_s1 + $0x398] sm:$0xff]   ;;  %v1906_v22 = vld [vmem:[%s2360_s1 + $0x3d0] sm:$0xff]  }
  0x42   :  { %1720 = vmatprep.subr.bf16.mxu1 %v1854_v24  ;;  %v1909_v24 = vld [vmem:[%s2360_s1 + $0x348] sm:$0xff]  }
  0x43   :  { %1267 = vmatmul.mubr.bf16.vlgmr.msra.gmra.mxu0 %v302_v20  ;;  %v1905_v20 = vld [vmem:[%s2360_s1 + $0x350] sm:$0xff]  }
  0x44   :  { %1699 = vmatpush3.bf16.msra.mxu0 %v1855_v25  ;;  %1346 = vmatprep.mubr.bf16.mxu0 %v358_v23  ;;  %v1907_v23 = vld [vmem:[%s2360_s1 + $0x310] sm:$0xff]  }
  0x45   :  { %1307 = vmatmul.mubr.bf16.vlgmr.msra.gmra.mxu1 %v318_v26  ;;  %1700 = vmatprep.subr.bf16.mxu0 %v1857_v27  ;;  %v1908_v25 = vld [vmem:[%s2360_s1 + $0x390] sm:$0xff]   ;;  %v1910_v26 = vld [vmem:[%s2360_s1 + $0x3c8] sm:$0xff]  }
  0x46   :  { %1721 = vmatpush3.bf16.msra.mxu1 %v1856_v28  ;;  %1386 = vmatprep.mubr.bf16.mxu1 %v368_v29  ;;  %v1911_v27 = vld [vmem:[%s2360_s1 + $0x308] sm:$0xff]   ;;  %v1913_v28 = vld [vmem:[%s2360_s1 + $0x340] sm:$0xff]  }
  0x47   :  { %1722 = vmatprep.subr.bf16.mxu1 %v1858_v30  ;;  %v1912_v29 = vld [vmem:[%s2360_s1 + $0x388] sm:$0xff]   ;;  %v1914_v30 = vld [vmem:[%s2360_s1 + $0x3c0] sm:$0xff]  }
  0x48   :  { %1701 = vmatpush3.bf16.msra.mxu0 %v1859_v31  ;;  %v1915_v31 = vld [vmem:[%s2360_s1 + $0x300] sm:$0xff]  }
  0x49   :  { %1702 = vmatprep.subr.bf16.mxu0 %v1861_v32  ;;  %v351_v32 = vrot.slane %v2231_v52, %v2023_v35 }
  0x4a   :  { %1723 = vmatpush3.bf16.msra.mxu1 %v1860_v33  ;;  %v1916_v33 = vld [vmem:[%s2360_s1 + $0x380] sm:$0xff]  }
  0x4b   :  { %1724 = vmatprep.subr.bf16.mxu1 %v1862_v34  ;;  %v367_v34 = vcombine.high %v351_v32, %v351_v32 }
  0x4c   :  { %1703 = vmatpush3.bf16.msra.mxu0 %v1863_v36 }
  0x4d   :  { %1704 = vmatprep.subr.bf16.mxu0 %v1865_v37 }
  0x4e   :  { %1725 = vmatpush3.bf16.msra.mxu1 %v1864_v38 }
  0x4f   :  { %1726 = vmatprep.subr.bf16.mxu1 %v1866_v39 }
  0x50   :  { %1705 = vmatpush3.bf16.msra.mxu0 %v1867_v40 }
  0x51   :  { %1706 = vmatprep.subr.bf16.mxu0 %v1869_v41 }
  0x52   :  { %1727 = vmatpush3.bf16.msra.mxu1 %v1868_v42 }
  0x53   :  { %1728 = vmatprep.subr.bf16.mxu1 %v1870_v43 }
  0x54   :  { %1707 = vmatpush3.bf16.msra.mxu0 %v1871_v44 }
  0x55   :  { %1708 = vmatprep.subr.bf16.mxu0 %v1873_v45 }
  0x56   :  { %1729 = vmatpush3.bf16.msra.mxu1 %v1872_v47 }
  0x57   :  { %1730 = vmatprep.subr.bf16.mxu1 %v1874_v48 }
  0x58   :  { %1709 = vmatpush3.bf16.msra.mxu0 %v1875_v49 }
  0x59   :  { %1710 = vmatprep.subr.bf16.mxu0 %v1877_v50 }
  0x5a   :  { %1731 = vmatpush3.bf16.msra.mxu1 %v1876_v51 }
  0x5b   :  { %1732 = vmatprep.subr.bf16.mxu1 %v1878_v53 }
  0x5c   :  { %1711 = vmatpush3.bf16.msra.mxu0 %v1879_v54 }
  0x5d   :  { %1712 = vmatprep.subr.bf16.mxu0 %v1881_v55 }
  0x5e   :  { %1733 = vmatpush3.bf16.msra.mxu1 %v1880_v56 }
  0x5f   :  { %1734 = vmatprep.subr.bf16.mxu1 %v1882_v58 }
  0x60   :  { %1713 = vmatpush3.bf16.msra.mxu0 %v1883_v59 }
  0x61   :  { %1742 = vmatprep.subr.bf16.mxu0 %v1885_v61 }
  0x62   :  { %1735 = vmatpush3.bf16.msra.mxu1 %v1884_v62 }
  0x63   :  { %1347 = vmatmul.mubr.bf16.vlgmr.msra.gmra.mxu0 %v344_v60  ;;  %1764 = vmatprep.subr.bf16.mxu1 %v1886_v0 }
  0x64   :  { %1743 = vmatpush3.bf16.msra.mxu0 %v1887_v1  ;;  %1426 = vmatprep.mubr.bf16.mxu0 %v365_v63 }
  0x65   :  { %1387 = vmatmul.mubr.bf16.vlgmr.msra.gmra.mxu1 %v366_v2  ;;  %1744 = vmatprep.subr.bf16.mxu0 %v1889_v3 }
  0x66   :  { %1765 = vmatpush3.bf16.msra.mxu1 %v1888_v4  ;;  %1466 = vmatprep.mubr.bf16.mxu1 %v369_v5 }
  0x67   :  { %1766 = vmatprep.subr.bf16.mxu1 %v1890_v6 }
  0x68   :  { %1745 = vmatpush3.bf16.msra.mxu0 %v1891_v7 }
  0x69   :  { %1746 = vmatprep.subr.bf16.mxu0 %v1893_v8 }
  0x6a   :  { %1767 = vmatpush3.bf16.msra.mxu1 %v1892_v9 }
  0x6b   :  { %1768 = vmatprep.subr.bf16.mxu1 %v1894_v10 }
  0x6c   :  { %1747 = vmatpush3.bf16.msra.mxu0 %v1895_v11 }
  0x6d   :  { %1748 = vmatprep.subr.bf16.mxu0 %v1897_v12 }
  0x6e   :  { %1769 = vmatpush3.bf16.msra.mxu1 %v1896_v13 }
  0x6f   :  { %1770 = vmatprep.subr.bf16.mxu1 %v1898_v14 }
  0x70   :  { %1749 = vmatpush3.bf16.msra.mxu0 %v1899_v15 }
  0x71   :  { %1750 = vmatprep.subr.bf16.mxu0 %v1901_v16 }
  0x72   :  { %1771 = vmatpush3.bf16.msra.mxu1 %v1900_v17 }
  0x73   :  { %1772 = vmatprep.subr.bf16.mxu1 %v1902_v18 }
  0x74   :  { %1751 = vmatpush3.bf16.msra.mxu0 %v1903_v19 }
  0x75   :  { %1752 = vmatprep.subr.bf16.mxu0 %v1905_v20 }
  0x76   :  { %1773 = vmatpush3.bf16.msra.mxu1 %v1904_v21 }
  0x77   :  { %1774 = vmatprep.subr.bf16.mxu1 %v1906_v22 }
  0x78   :  { %1753 = vmatpush3.bf16.msra.mxu0 %v1907_v23 }
  0x79   :  { %1754 = vmatprep.subr.bf16.mxu0 %v1909_v24 }
  0x7a   :  { %1775 = vmatpush3.bf16.msra.mxu1 %v1908_v25 }
  0x7b   :  { %1776 = vmatprep.subr.bf16.mxu1 %v1910_v26 }
  0x7c   :  { %1755 = vmatpush3.bf16.msra.mxu0 %v1911_v27 }
  0x7d   :  { %1756 = vmatprep.subr.bf16.mxu0 %v1913_v28 }
  0x7e   :  { %1777 = vmatpush3.bf16.msra.mxu1 %v1912_v29 }
  0x7f   :  { %1778 = vmatprep.subr.bf16.mxu1 %v1914_v30 }
  0x80   :  { %1757 = vmatpush3.bf16.msra.mxu0 %v1915_v31 }
  0x82   :  { %1779 = vmatpush3.bf16.msra.mxu1 %v1916_v33 }
  0x83   :  { %1427 = vmatmul.mubr.bf16.vlgmr.msra.gmra.mxu0 %v351_v32 }
  0x85   :  { %1467 = vmatmul.mubr.bf16.vlgmr.msra.gmra.mxu1 %v367_v34 }
  0xe3   :  { %v1626_v36 = vpop.f32.mrf.mxu0 }
  0xe4   :  { %v1648_v37 = vpop.f32.mrf.mxu1 }
  0xe5   :  { %v1627_v38 = vpop.f32.mrf.mxu0 }
  0xe6   :  { %v1628_v39 = vadd.f32 %v1627_v38, %v1626_v36  ;;  %v1649_v40 = vpop.f32.mrf.mxu1 }
  0xe7   :  { %v1629_v41 = vpop.f32.mrf.mxu0  ;;  %v1650_v42 = vadd.f32 %v1649_v40, %v1648_v37 }
  0xe8   :  { %v1651_v43 = vpop.f32.mrf.mxu1 }
  0xe9   :  { %v1630_v35 = vpop.f32.mrf.mxu0  ;;  %v1229_v44 = vadd.f32 %v1650_v42, %v1628_v39 }
  0xea   :  { %v1652_v45 = vpop.f32.mrf.mxu1 }
 0x103   :  { %v1670_v46 = vpop.f32.mrf.mxu0 }
 0x105   :  { %v1692_v47 = vpop.f32.mrf.mxu1  ;;  %v1671_v48 = vpop.f32.mrf.mxu0 }
 0x106   :  { %v1672_v62 = vadd.f32 %v1671_v48, %v1670_v46 }
 0x107   :  { %v1693_v49 = vpop.f32.mrf.mxu1  ;;  %v1673_v50 = vpop.f32.mrf.mxu0 }
 0x108   :  { %v1269_v63 = vadd.f32 %v1672_v62, %v1229_v44  ;;  %v1694_v0 = vadd.f32 %v1693_v49, %v1692_v47 }
 0x109   :  { %v1695_v51 = vpop.f32.mrf.mxu1  ;;  %v1674_v52 = vpop.f32.mrf.mxu0 }
 0x10a   :  { %v1309_v2 = vadd.f32 %v1694_v0, %v1269_v63 }
 0x10b   :  { %v1696_v53 = vpop.f32.mrf.mxu1 }
 0x123   :  { %v1714_v54 = vpop.f32.mrf.mxu0 }
 0x125   :  { %v1736_v55 = vpop.f32.mrf.mxu1  ;;  %v1715_v56 = vpop.f32.mrf.mxu0 }
 0x126   :  { %v1716_v1 = vadd.f32 %v1715_v56, %v1714_v54 }
 0x127   :  { %v1737_v57 = vpop.f32.mrf.mxu1  ;;  %v1717_v58 = vpop.f32.mrf.mxu0 }
 0x128   :  { %v1349_v3 = vadd.f32 %v1716_v1, %v1309_v2  ;;  %v1738_v4 = vadd.f32 %v1737_v57, %v1736_v55 }
 0x129   :  { %v1739_v59 = vpop.f32.mrf.mxu1  ;;  %v1718_v60 = vpop.f32.mrf.mxu0 }
 0x12a   :  { %v1389_v8 = vadd.f32 %v1738_v4, %v1349_v3 }
 0x12b   :  { %v1740_v61 = vpop.f32.mrf.mxu1 }
 0x143   :  { %v1758_v5 = vpop.f32.mrf.mxu0 }
 0x145   :  { %v1780_v6 = vpop.f32.mrf.mxu1  ;;  %v1759_v7 = vpop.f32.mrf.mxu0 }
 0x146   :  { %v1760_v9 = vadd.f32 %v1759_v7, %v1758_v5 }
 0x147   :  { %v1781_v10 = vpop.f32.mrf.mxu1  ;;  %v1761_v11 = vpop.f32.mrf.mxu0 }
 0x148   :  { %v1429_v12 = vadd.f32 %v1760_v9, %v1389_v8  ;;  %v1782_v13 = vadd.f32 %v1781_v10, %v1780_v6 }
 0x149   :  { %v1783_v14 = vpop.f32.mrf.mxu1  ;;  %v1762_v15 = vpop.f32.mrf.mxu0 }
 0x14a   :  { %v1469_v16 = vadd.f32 %v1782_v13, %v1429_v12 }
 0x14b   :  { %v1784_v17 = vpop.f32.mrf.mxu1 }
 0x14c   :  { %v1474_v18 = vmax.f32 %v1469_v16, 0.0 }
 0x14e   :  { %v1475_v19 = vpack.c.bf16 %v1474_v18, %v1474_v18 }
 0x150   :  { %1477 = vst.msk [vmem:[%s2362_s2] sm:$0x1] %vm1476_vm0, %v1475_v19 }

// kernel: confnet_forward.22
= control target key start
LH: loop header
LB: loop body
LE: loop exit
PB: predicated region body
PF: predicated region fallthrough
CT: control target
= control target key end

     0   :  { %s752_s9 = smov 0   ;;  %s871_s0 = inlined_call_operand.vmem [shape: bf16[32,512], index: 0, kind: input, shape index: {}]   ;;  %s872_s1 = inlined_call_operand.vmem [shape: bf16[512,128], index: 1, kind: input, shape index: {}]   ;;  %s873_s2 = inlined_call_operand.vmem [shape: bf16[32,128], index: 2, kind: output, shape index: {}]  }
   0x1 LB: > { %s581_s10 = sadd.s32 4294967295, %s735_s9   ;;  %p585_p0 = scmp.ge.s32.totalorder %s735_s9, 1  ;;  %s735_s9 = sphi %s752_s9, %s12_s9  }
   0x2   : > { %p114_p1 = scmp.lt.s32.totalorder %s735_s9, 3 }
   0x4   : > { %p115_p2 = pnand %p585_p0, %p114_p1 }
   0x5   : > { %s586_s17 = sshll.u32 (!%p115_p2), %s581_s10, 1 }
   0x6   : > { %118 = sbr.rel (%p115_p2) target bundleno = 254 (0xfe), region = 28  ;;  %p138_p3 = scmp.lt.s32.totalorder (!%p115_p2), %s586_s17, 3 }
   0xb   : > { %v691_v0 = vld [vmem:[%s872_s1 + $0x78] sm:$0xff]   ;;  %v695_v4 = vld [vmem:[%s872_s1 + $0x70] sm:$0xff]   ;;  %v699_v8 = vld [vmem:[%s872_s1 + $0x68] sm:$0xff]   ;;  %s875_s17 = smov (!%p138_p3, %s586_s17), 3 }
   0xc   : > { %v692_v1 = vld [vmem:[%s872_s1 + $0xf8] sm:$0xff]   ;;  %639 = vmatprep.subr.bf16.mxu0 %v691_v0  ;;  %v696_v5 = vld [vmem:[%s872_s1 + $0xf0] sm:$0xff]   ;;  %v700_v9 = vld [vmem:[%s872_s1 + $0xe8] sm:$0xff]   ;;  %s631_s13 = sshll.u32 %s875_s17, 4  ;;  %s590_s27 = sshll.u32 %s875_s17, 2 }
   0xd   : > { %v693_v2 = vld [vmem:[%s872_s1 + $0x38] sm:$0xff]   ;;  %661 = vmatprep.subr.bf16.mxu1 %v692_v1  ;;  %v697_v6 = vld [vmem:[%s872_s1 + $0x30] sm:$0xff]   ;;  %v701_v10 = vld [vmem:[%s872_s1 + $0x28] sm:$0xff]   ;;  %s142_s23 = scalar_lea.vmem %s871_s0, %s631_s13  ;;  %s148_s30 = scalar_lea.vmem %s873_s2, %s590_s27 }
   0xe   : > { %v694_v3 = vld [vmem:[%s872_s1 + $0xb8] sm:$0xff]   ;;  %640 = vmatpush3.bf16.msra.mxu0 %v693_v2  ;;  %v698_v7 = vld [vmem:[%s872_s1 + $0xb0] sm:$0xff]   ;;  %v702_v11 = vld [vmem:[%s872_s1 + $0xa8] sm:$0xff]  }
   0xf   : > { %662 = vmatpush3.bf16.msra.mxu1 %v694_v3  ;;  %641 = vmatprep.subr.bf16.mxu0 %v695_v4  ;;  %v703_v12 = vld [vmem:[%s872_s1 + $0x60] sm:$0xff]   ;;  %v707_v16 = vld [vmem:[%s872_s1 + $0x58] sm:$0xff]   ;;  %v711_v20 = vld [vmem:[%s872_s1 + $0x50] sm:$0xff]  }
  0x10   : > { %663 = vmatprep.subr.bf16.mxu1 %v696_v5  ;;  %v704_v13 = vld [vmem:[%s872_s1 + $0xe0] sm:$0xff]   ;;  %v708_v17 = vld [vmem:[%s872_s1 + $0xd8] sm:$0xff]   ;;  %v712_v21 = vld [vmem:[%s872_s1 + $0xd0] sm:$0xff]  }
  0x11   : > { %v705_v14 = vld [vmem:[%s872_s1 + $0x20] sm:$0xff]   ;;  %v709_v18 = vld [vmem:[%s872_s1 + $0x18] sm:$0xff]   ;;  %v713_v22 = vld [vmem:[%s872_s1 + $0x10] sm:$0xff]  }
  0x12   : > { %642 = vmatpush3.bf16.msra.mxu0 %v697_v6  ;;  %v706_v15 = vld [vmem:[%s872_s1 + $0xa0] sm:$0xff]   ;;  %v710_v19 = vld [vmem:[%s872_s1 + $0x98] sm:$0xff]   ;;  %v714_v23 = vld [vmem:[%s872_s1 + $0x90] sm:$0xff]  }
  0x13   : > { %664 = vmatpush3.bf16.msra.mxu1 %v698_v7  ;;  %643 = vmatprep.subr.bf16.mxu0 %v699_v8  ;;  %v715_v24 = vld [vmem:[%s872_s1 + $0x48] sm:$0xff]   ;;  %v719_v28 = vld [vmem:[%s872_s1 + $0x40] sm:$0xff]  }
  0x14   : > { %665 = vmatprep.subr.bf16.mxu1 %v700_v9  ;;  %v716_v25 = vld [vmem:[%s872_s1 + $0xc8] sm:$0xff]   ;;  %v720_v29 = vld [vmem:[%s872_s1 + $0xc0] sm:$0xff]  }
  0x15   : > { %v717_v26 = vld [vmem:[%s872_s1 + $0x8] sm:$0xff]   ;;  %v721_v30 = vld [vmem:[%s872_s1] sm:$0xff]  }
  0x16   : > { %644 = vmatpush3.bf16.msra.mxu0 %v701_v10  ;;  %v718_v27 = vld [vmem:[%s872_s1 + $0x88] sm:$0xff]   ;;  %v722_v31 = vld [vmem:[%s872_s1 + $0x80] sm:$0xff]  }
  0x17   : > { %666 = vmatpush3.bf16.msra.mxu1 %v702_v11  ;;  %645 = vmatprep.subr.bf16.mxu0 %v703_v12  ;;  %v723_v32 = vld [vmem:[%s142_s23] ss:$16 sps:$4 sm:$0xff]   ;;  %v725_v33 = vld [vmem:[%s142_s23 + $0x4] ss:$16 sps:$4 sm:$0xff]   ;;  %v726_v34 = vld [vmem:[%s142_s23 + $0x8] ss:$16 sps:$4 sm:$0xff]  }
  0x18   : > { %667 = vmatprep.subr.bf16.mxu1 %v704_v13  ;;  %v728_v35 = vld [vmem:[%s142_s23 + $0xc] ss:$16 sps:$4 sm:$0xff]   ;;  %463 = vmatprep.mubr.bf16.mxu0 %v725_v33 }
  0x19   : > { %504 = vmatprep.mubr.bf16.mxu1 %v728_v35 }
  0x1a   : > { %646 = vmatpush3.bf16.msra.mxu0 %v705_v14 }
  0x1b   : > { %668 = vmatpush3.bf16.msra.mxu1 %v706_v15  ;;  %647 = vmatprep.subr.bf16.mxu0 %v707_v16 }
  0x1c   : > { %669 = vmatprep.subr.bf16.mxu1 %v708_v17 }
  0x1e   : > { %648 = vmatpush3.bf16.msra.mxu0 %v709_v18 }
  0x1f   : > { %670 = vmatpush3.bf16.msra.mxu1 %v710_v19  ;;  %649 = vmatprep.subr.bf16.mxu0 %v711_v20 }
  0x20   : > { %671 = vmatprep.subr.bf16.mxu1 %v712_v21 }
  0x22   : > { %650 = vmatpush3.bf16.msra.mxu0 %v713_v22 }
  0x23   : > { %672 = vmatpush3.bf16.msra.mxu1 %v714_v23  ;;  %651 = vmatprep.subr.bf16.mxu0 %v715_v24 }
  0x24   : > { %673 = vmatprep.subr.bf16.mxu1 %v716_v25 }
  0x26   : > { %652 = vmatpush3.bf16.msra.mxu0 %v717_v26 }
  0x27   : > { %674 = vmatpush3.bf16.msra.mxu1 %v718_v27  ;;  %653 = vmatprep.subr.bf16.mxu0 %v719_v28 }
  0x28   : > { %675 = vmatprep.subr.bf16.mxu1 %v720_v29 }
  0x2a   : > { %654 = vmatpush3.bf16.msra.mxu0 %v721_v30 }
  0x2b   : > { %676 = vmatpush3.bf16.msra.mxu1 %v722_v31 }
  0x2d   : > { %464 = vmatmul.mubr.bf16.vlgmr.msra.gmra.mxu0 %v723_v32 }
  0x2e   : > { %505 = vmatmul.mubr.bf16.vlgmr.msra.gmra.mxu1 %v726_v34 }
  0xed   : > { %v655_v36 = vpop.f32.mrf.mxu0 }
  0xee   : > { %v677_v37 = vpop.f32.mrf.mxu1 }
  0xef   : > { %v656_v38 = vpop.f32.mrf.mxu0 }
  0xf0   : > { %v678_v39 = vpop.f32.mrf.mxu1  ;;  %v657_v40 = vadd.f32 %v656_v38, %v655_v36 }
  0xf1   : > { %v679_v41 = vadd.f32 %v678_v39, %v677_v37  ;;  %v658_v42 = vpop.f32.mrf.mxu0 }
  0xf2   : > { %v680_v43 = vpop.f32.mrf.mxu1 }
  0xf3   : > { %v659_v44 = vpop.f32.mrf.mxu0  ;;  %v507_v47 = vadd.f32 %v679_v41, %v657_v40 }
  0xf4   : > { %v660_v45 = vadd.f32 %v659_v44, %v658_v42  ;;  %v681_v46 = vpop.f32.mrf.mxu1 }
  0xf5   : > { %v682_v48 = vadd.f32 %v681_v46, %v680_v43  ;;  %v513_v50 = vmax.f32 %v507_v47, 0.0 }
  0xf7   : > { %v510_v49 = vadd.f32 %v682_v48, %v660_v45 }
  0xf9   : > { %v514_v51 = vmax.f32 %v510_v49, 0.0 }
  0xfb   : > { %v637_v52 = vpack.c.bf16 %v514_v51, %v513_v50 }
  0xfd   : > { %638 = vst [vmem:[%s148_s30] sm:$0xff] %v637_v52  }
  0xfe PF: > { %s12_s9 = sadd.s32 1, %s735_s9  }
  0xff   : > { %p9_p4 = scmp.ge.s32.totalorder %s12_s9, 4  }
 0x101   :  { %11 = sbr.rel (!%p9_p4) target bundleno = 1 (0x1), region = 58 }

// kernel: confnet_forward.23
= control target key start
LH: loop header
LB: loop body
LE: loop exit
PB: predicated region body
PF: predicated region fallthrough
CT: control target
= control target key end

     0   :  { %s1162_s1 = inlined_call_operand.vmem [shape: bf16[512,256], index: 1, kind: input, shape index: {}]   ;;  %s1163_s0 = inlined_call_operand.vmem [shape: bf16[50,512], index: 0, kind: input, shape index: {}]   ;;  %s1164_s2 = inlined_call_operand.vmem [shape: bf16[50,256], index: 2, kind: output, shape index: {}]  }
   0x1   :  { %v774_v0 = vld [vmem:[%s1162_s1 + $0x74] ss:$8 sps:$4 sm:$0xff]   ;;  %v778_v2 = vld [vmem:[%s1162_s1 + $0x70] ss:$8 sps:$4 sm:$0xff]   ;;  %v780_v4 = vld [vmem:[%s1162_s1 + $0x64] ss:$8 sps:$4 sm:$0xff]  }
   0x2   :  { %v776_v1 = vld [vmem:[%s1162_s1 + $0x174] ss:$8 sps:$4 sm:$0xff]   ;;  %483 = vmatprep.subr.bf16.mxu0 %v774_v0  ;;  %v779_v3 = vld [vmem:[%s1162_s1 + $0x170] ss:$8 sps:$4 sm:$0xff]   ;;  %v782_v5 = vld [vmem:[%s1162_s1 + $0x164] ss:$8 sps:$4 sm:$0xff]  }
   0x3   :  { %554 = vmatprep.subr.bf16.mxu1 %v776_v1  ;;  %484 = vmatpush1.bf16.msra.mxu0 %v778_v2  ;;  %v784_v6 = vld [vmem:[%s1162_s1 + $0x60] ss:$8 sps:$4 sm:$0xff]   ;;  %v786_v8 = vld [vmem:[%s1162_s1 + $0x54] ss:$8 sps:$4 sm:$0xff]   ;;  %v790_v10 = vld [vmem:[%s1162_s1 + $0x50] ss:$8 sps:$4 sm:$0xff]  }
   0x4   :  { %555 = vmatpush1.bf16.msra.mxu1 %v779_v3  ;;  %485 = vmatprep.subr.bf16.mxu0 %v780_v4  ;;  %v785_v7 = vld [vmem:[%s1162_s1 + $0x160] ss:$8 sps:$4 sm:$0xff]   ;;  %v788_v9 = vld [vmem:[%s1162_s1 + $0x154] ss:$8 sps:$4 sm:$0xff]   ;;  %v791_v11 = vld [vmem:[%s1162_s1 + $0x150] ss:$8 sps:$4 sm:$0xff]  }
   0x5   :  { %556 = vmatprep.subr.bf16.mxu1 %v782_v5  ;;  %v792_v12 = vld [vmem:[%s1162_s1 + $0x44] ss:$8 sps:$4 sm:$0xff]   ;;  %v796_v14 = vld [vmem:[%s1162_s1 + $0x40] ss:$8 sps:$4 sm:$0xff]   ;;  %v798_v16 = vld [vmem:[%s1162_s1 + $0x34] ss:$8 sps:$4 sm:$0xff]  }
   0x6   :  { %v794_v13 = vld [vmem:[%s1162_s1 + $0x144] ss:$8 sps:$4 sm:$0xff]   ;;  %v797_v15 = vld [vmem:[%s1162_s1 + $0x140] ss:$8 sps:$4 sm:$0xff]   ;;  %v800_v17 = vld [vmem:[%s1162_s1 + $0x134] ss:$8 sps:$4 sm:$0xff]  }
   0x7   :  { %486 = vmatpush1.bf16.msra.mxu0 %v784_v6  ;;  %v802_v18 = vld [vmem:[%s1162_s1 + $0x30] ss:$8 sps:$4 sm:$0xff]   ;;  %v804_v20 = vld [vmem:[%s1162_s1 + $0x24] ss:$8 sps:$4 sm:$0xff]   ;;  %v808_v22 = vld [vmem:[%s1162_s1 + $0x20] ss:$8 sps:$4 sm:$0xff]  }
   0x8   :  { %557 = vmatpush1.bf16.msra.mxu1 %v785_v7  ;;  %487 = vmatprep.subr.bf16.mxu0 %v786_v8  ;;  %v803_v19 = vld [vmem:[%s1162_s1 + $0x130] ss:$8 sps:$4 sm:$0xff]   ;;  %v806_v21 = vld [vmem:[%s1162_s1 + $0x124] ss:$8 sps:$4 sm:$0xff]   ;;  %v809_v23 = vld [vmem:[%s1162_s1 + $0x120] ss:$8 sps:$4 sm:$0xff]  }
   0x9   :  { %558 = vmatprep.subr.bf16.mxu1 %v788_v9  ;;  %v810_v24 = vld [vmem:[%s1162_s1 + $0x14] ss:$8 sps:$4 sm:$0xff]   ;;  %v814_v26 = vld [vmem:[%s1162_s1 + $0x10] ss:$8 sps:$4 sm:$0xff]   ;;  %v816_v28 = vld [vmem:[%s1162_s1 + $0x4] ss:$8 sps:$4 sm:$0xff]  }
   0xa   :  { %v812_v25 = vld [vmem:[%s1162_s1 + $0x114] ss:$8 sps:$4 sm:$0xff]   ;;  %v815_v27 = vld [vmem:[%s1162_s1 + $0x110] ss:$8 sps:$4 sm:$0xff]   ;;  %v818_v29 = vld [vmem:[%s1162_s1 + $0x104] ss:$8 sps:$4 sm:$0xff]  }
   0xb   :  { %488 = vmatpush1.bf16.msra.mxu0 %v790_v10  ;;  %v820_v30 = vld [vmem:[%s1162_s1] ss:$8 sps:$4 sm:$0xff]   ;;  %v822_v32 = vld [vmem:[%s1162_s1 + $0xf4] ss:$8 sps:$4 sm:$0xff]   ;;  %v826_v34 = vld [vmem:[%s1162_s1 + $0xf0] ss:$8 sps:$4 sm:$0xff]  }
   0xc   :  { %559 = vmatpush1.bf16.msra.mxu1 %v791_v11  ;;  %489 = vmatprep.subr.bf16.mxu0 %v792_v12  ;;  %v821_v31 = vld [vmem:[%s1162_s1 + $0x100] ss:$8 sps:$4 sm:$0xff]   ;;  %v824_v33 = vld [vmem:[%s1162_s1 + $0x1f4] ss:$8 sps:$4 sm:$0xff]   ;;  %v827_v35 = vld [vmem:[%s1162_s1 + $0x1f0] ss:$8 sps:$4 sm:$0xff]  }
   0xd   :  { %560 = vmatprep.subr.bf16.mxu1 %v794_v13  ;;  %v828_v36 = vld [vmem:[%s1162_s1 + $0xe4] ss:$8 sps:$4 sm:$0xff]   ;;  %v832_v38 = vld [vmem:[%s1162_s1 + $0xe0] ss:$8 sps:$4 sm:$0xff]   ;;  %v834_v40 = vld [vmem:[%s1162_s1 + $0xd4] ss:$8 sps:$4 sm:$0xff]  }
   0xe   :  { %v830_v37 = vld [vmem:[%s1162_s1 + $0x1e4] ss:$8 sps:$4 sm:$0xff]   ;;  %v833_v39 = vld [vmem:[%s1162_s1 + $0x1e0] ss:$8 sps:$4 sm:$0xff]   ;;  %v836_v41 = vld [vmem:[%s1162_s1 + $0x1d4] ss:$8 sps:$4 sm:$0xff]  }
   0xf   :  { %490 = vmatpush1.bf16.msra.mxu0 %v796_v14  ;;  %v838_v42 = vld [vmem:[%s1162_s1 + $0xd0] ss:$8 sps:$4 sm:$0xff]   ;;  %v840_v44 = vld [vmem:[%s1162_s1 + $0xc4] ss:$8 sps:$4 sm:$0xff]   ;;  %v844_v46 = vld [vmem:[%s1162_s1 + $0xc0] ss:$8 sps:$4 sm:$0xff]  }
  0x10   :  { %561 = vmatpush1.bf16.msra.mxu1 %v797_v15  ;;  %491 = vmatprep.subr.bf16.mxu0 %v798_v16  ;;  %v839_v43 = vld [vmem:[%s1162_s1 + $0x1d0] ss:$8 sps:$4 sm:$0xff]   ;;  %v842_v45 = vld [vmem:[%s1162_s1 + $0x1c4] ss:$8 sps:$4 sm:$0xff]   ;;  %v845_v47 = vld [vmem:[%s1162_s1 + $0x1c0] ss:$8 sps:$4 sm:$0xff]  }
  0x11   :  { %562 = vmatprep.subr.bf16.mxu1 %v800_v17  ;;  %v846_v48 = vld [vmem:[%s1162_s1 + $0xb4] ss:$8 sps:$4 sm:$0xff]   ;;  %v850_v52 = vld [vmem:[%s1162_s1 + $0xb0] ss:$8 sps:$4 sm:$0xff]   ;;  %v852_v54 = vld [vmem:[%s1162_s1 + $0xa4] ss:$8 sps:$4 sm:$0xff]  }
  0x12   :  { %v872_v49 = vld [vmem:[%s1163_s0 + $0x4] ss:$16 sps:$4 sm:$0xff]   ;;  %v875_v51 = vld [vmem:[%s1163_s0 + $0xc] ss:$16 sps:$4 sm:$0xff]   ;;  %v851_v53 = vld [vmem:[%s1162_s1 + $0x1b0] ss:$8 sps:$4 sm:$0xff]  }
  0x13   :  { %492 = vmatpush1.bf16.msra.mxu0 %v802_v18  ;;  %v848_v50 = vld [vmem:[%s1162_s1 + $0x1b4] ss:$8 sps:$4 sm:$0xff]   ;;  %515 = vmatprep.mubr.bf16.mxu0 %v872_v49  ;;  %v854_v55 = vld [vmem:[%s1162_s1 + $0x1a4] ss:$8 sps:$4 sm:$0xff]   ;;  %v856_v56 = vld [vmem:[%s1162_s1 + $0xa0] ss:$8 sps:$4 sm:$0xff]  }
  0x14   :  { %563 = vmatpush1.bf16.msra.mxu1 %v803_v19  ;;  %493 = vmatprep.subr.bf16.mxu0 %v804_v20  ;;  %v857_v57 = vld [vmem:[%s1162_s1 + $0x1a0] ss:$8 sps:$4 sm:$0xff]   ;;  %v858_v58 = vld [vmem:[%s1162_s1 + $0x94] ss:$8 sps:$4 sm:$0xff]   ;;  %v862_v60 = vld [vmem:[%s1162_s1 + $0x90] ss:$8 sps:$4 sm:$0xff]  }
  0x15   :  { %564 = vmatprep.subr.bf16.mxu1 %v806_v21  ;;  %586 = vmatprep.mubr.bf16.mxu1 %v875_v51  ;;  %v860_v59 = vld [vmem:[%s1162_s1 + $0x194] ss:$8 sps:$4 sm:$0xff]   ;;  %v863_v61 = vld [vmem:[%s1162_s1 + $0x190] ss:$8 sps:$4 sm:$0xff]   ;;  %v864_v62 = vld [vmem:[%s1162_s1 + $0x84] ss:$8 sps:$4 sm:$0xff]  }
  0x16   :  { %v866_v63 = vld [vmem:[%s1162_s1 + $0x184] ss:$8 sps:$4 sm:$0xff]   ;;  %v868_v0 = vld [vmem:[%s1162_s1 + $0x80] ss:$8 sps:$4 sm:$0xff]  }
  0x17   :  { %494 = vmatpush1.bf16.msra.mxu0 %v808_v22  ;;  %v869_v1 = vld [vmem:[%s1162_s1 + $0x180] ss:$8 sps:$4 sm:$0xff]   ;;  %v876_v4 = vld [vmem:[%s1163_s0 + $0x24] ss:$16 sps:$4 sm:$0xff]   ;;  %v878_v5 = vld [vmem:[%s1163_s0 + $0x2c] ss:$16 sps:$4 sm:$0xff]  }
  0x18   :  { %565 = vmatpush1.bf16.msra.mxu1 %v809_v23  ;;  %495 = vmatprep.subr.bf16.mxu0 %v810_v24  ;;  %v870_v2 = vld [vmem:[%s1163_s0] ss:$16 sps:$4 sm:$0xff]   ;;  %v873_v3 = vld [vmem:[%s1163_s0 + $0x8] ss:$16 sps:$4 sm:$0xff]   ;;  %v882_v8 = vld [vmem:[%s1163_s0 + $0x44] ss:$16 sps:$4 sm:$0xff]  }
  0x19   :  { %566 = vmatprep.subr.bf16.mxu1 %v812_v25  ;;  %v880_v6 = vld [vmem:[%s1163_s0 + $0x20] ss:$16 sps:$4 sm:$0xff]   ;;  %v881_v7 = vld [vmem:[%s1163_s0 + $0x28] ss:$16 sps:$4 sm:$0xff]   ;;  %v884_v9 = vld [vmem:[%s1163_s0 + $0x4c] ss:$16 sps:$4 sm:$0xff]  }
  0x1a   :  { %v23_v10 = vld [vmem:[%s1163_s0 + $0x60] sm:$0x11]  ;;  %v24_v11 = vld [vmem:[%s1163_s0 + $0x68] sm:$0x11] }
  0x1b   :  { %496 = vmatpush1.bf16.msra.mxu0 %v814_v26  ;;  %v886_v12 = vld [vmem:[%s1163_s0 + $0x40] ss:$16 sps:$4 sm:$0xff]   ;;  %v887_v13 = vld [vmem:[%s1163_s0 + $0x48] ss:$16 sps:$4 sm:$0xff]   ;;  %v693_v14 = vcombine.high %v23_v10, %v23_v10  ;;  %v695_v15 = vcombine.high %v24_v11, %v24_v11  ;;  %v692_v16 = vcombine.low %v23_v10, %v23_v10  ;;  %v694_v17 = vcombine.low %v24_v11, %v24_v11 }
  0x1c   :  { %567 = vmatpush1.bf16.msra.mxu1 %v815_v27  ;;  %497 = vmatprep.subr.bf16.mxu0 %v816_v28 }
  0x1d   :  { %568 = vmatprep.subr.bf16.mxu1 %v818_v29 }
  0x1f   :  { %498 = vmatpush1.bf16.msra.mxu0 %v820_v30 }
  0x20   :  { %569 = vmatpush1.bf16.msra.mxu1 %v821_v31  ;;  %499 = vmatprep.subr.bf16.mxu0 %v822_v32 }
  0x21   :  { %570 = vmatprep.subr.bf16.mxu1 %v824_v33 }
  0x23   :  { %500 = vmatpush2.bf16.msra.mxu0 %v826_v34 }
  0x24   :  { %571 = vmatpush2.bf16.msra.mxu1 %v827_v35  ;;  %501 = vmatprep.subr.bf16.mxu0 %v828_v36 }
  0x25   :  { %572 = vmatprep.subr.bf16.mxu1 %v830_v37 }
  0x27   :  { %502 = vmatpush2.bf16.msra.mxu0 %v832_v38 }
  0x28   :  { %573 = vmatpush2.bf16.msra.mxu1 %v833_v39  ;;  %503 = vmatprep.subr.bf16.mxu0 %v834_v40 }
  0x29   :  { %574 = vmatprep.subr.bf16.mxu1 %v836_v41 }
  0x2b   :  { %504 = vmatpush2.bf16.msra.mxu0 %v838_v42 }
  0x2c   :  { %575 = vmatpush2.bf16.msra.mxu1 %v839_v43  ;;  %505 = vmatprep.subr.bf16.mxu0 %v840_v44 }
  0x2d   :  { %576 = vmatprep.subr.bf16.mxu1 %v842_v45 }
  0x2f   :  { %506 = vmatpush2.bf16.msra.mxu0 %v844_v46 }
  0x30   :  { %577 = vmatpush2.bf16.msra.mxu1 %v845_v47  ;;  %507 = vmatprep.subr.bf16.mxu0 %v846_v48 }
  0x31   :  { %578 = vmatprep.subr.bf16.mxu1 %v848_v50 }
  0x33   :  { %508 = vmatpush2.bf16.msra.mxu0 %v850_v52 }
  0x34   :  { %579 = vmatpush2.bf16.msra.mxu1 %v851_v53  ;;  %509 = vmatprep.subr.bf16.mxu0 %v852_v54 }
  0x35   :  { %580 = vmatprep.subr.bf16.mxu1 %v854_v55 }
  0x37   :  { %510 = vmatpush2.bf16.msra.mxu0 %v856_v56 }
  0x38   :  { %581 = vmatpush2.bf16.msra.mxu1 %v857_v57  ;;  %511 = vmatprep.subr.bf16.mxu0 %v858_v58 }
  0x39   :  { %582 = vmatprep.subr.bf16.mxu1 %v860_v59 }
  0x3b   :  { %512 = vmatpush2.bf16.msra.mxu0 %v862_v60 }
  0x3c   :  { %583 = vmatpush2.bf16.msra.mxu1 %v863_v61  ;;  %513 = vmatprep.subr.bf16.mxu0 %v864_v62 }
  0x3d   :  { %584 = vmatprep.subr.bf16.mxu1 %v866_v63 }
  0x3f   :  { %514 = vmatpush2.bf16.msra.mxu0 %v868_v0 }
  0x40   :  { %585 = vmatpush2.bf16.msra.mxu1 %v869_v1 }
  0x42   :  { %516 = vmatmul.mubr.bf16.vlgmr.msra.gmra.mxu0 %v870_v2 }
  0x43   :  { %587 = vmatmul.mubr.bf16.vlgmr.msra.gmra.mxu1 %v873_v3  ;;  %525 = vmatprep.mubr.bf16.mxu0 %v876_v4 }
  0x44   :  { %596 = vmatprep.mubr.bf16.mxu1 %v878_v5 }
  0x4a   :  { %526 = vmatmul.mubr.bf16.gmra.mxu0 %v880_v6 }
  0x4b   :  { %597 = vmatmul.mubr.bf16.gmra.mxu1 %v881_v7  ;;  %535 = vmatprep.mubr.bf16.mxu0 %v882_v8 }
  0x4c   :  { %606 = vmatprep.mubr.bf16.mxu1 %v884_v9 }
  0x52   :  { %536 = vmatmul.mubr.bf16.gmra.mxu0 %v886_v12 }
  0x53   :  { %607 = vmatmul.mubr.bf16.gmra.mxu1 %v887_v13  ;;  %545 = vmatprep.mubr.bf16.mxu0 %v693_v14 }
  0x54   :  { %616 = vmatprep.mubr.bf16.mxu1 %v695_v15 }
  0x5a   :  { %546 = vmatmul.mubr.bf16.gmra.mxu0 %v692_v16 }
  0x5b   :  { %617 = vmatmul.mubr.bf16.gmra.mxu1 %v694_v17 }
 0x102   :  { %v517_v18 = vpop.f32.mrf.mxu0 }
 0x103   :  { %v588_v19 = vpop.f32.mrf.mxu1 }
 0x104   :  { %v519_v20 = vpop.f32.mrf.mxu0  ;;  %v589_v22 = vadd.f32 %v588_v19, %v517_v18 }
 0x105   :  { %v590_v21 = vpop.f32.mrf.mxu1 }
 0x106   :  { %v591_v23 = vadd.f32 %v590_v21, %v519_v20  ;;  %v521_v24 = vpop.f32.mrf.mxu0 }
 0x107   :  { %v592_v25 = vpop.f32.mrf.mxu1 }
 0x108   :  { %v767_v26 = vpack.c.bf16 %v591_v23, %v589_v22  ;;  %v523_v27 = vpop.f32.mrf.mxu0  ;;  %v593_v29 = vadd.f32 %v592_v25, %v521_v24 }
 0x109   :  { %v594_v28 = vpop.f32.mrf.mxu1 }
 0x10a   :  { %669 = vst [vmem:[%s1164_s2] sm:$0xff] %v767_v26  ;;  %v595_v30 = vadd.f32 %v594_v28, %v523_v27  ;;  %v527_v31 = vpop.f32.mrf.mxu0 }
 0x10b   :  { %v598_v32 = vpop.f32.mrf.mxu1 }
 0x10c   :  { %v768_v33 = vpack.c.bf16 %v595_v30, %v593_v29  ;;  %v529_v34 = vpop.f32.mrf.mxu0  ;;  %v599_v36 = vadd.f32 %v598_v32, %v527_v31 }
 0x10d   :  { %v600_v35 = vpop.f32.mrf.mxu1 }
 0x10e   :  { %670 = vst [vmem:[%s1164_s2 + $0x8] sm:$0xff] %v768_v33  ;;  %v601_v37 = vadd.f32 %v600_v35, %v529_v34  ;;  %v531_v38 = vpop.f32.mrf.mxu0 }
 0x10f   :  { %v602_v39 = vpop.f32.mrf.mxu1 }
 0x110   :  { %v769_v40 = vpack.c.bf16 %v601_v37, %v599_v36  ;;  %v533_v41 = vpop.f32.mrf.mxu0  ;;  %v603_v43 = vadd.f32 %v602_v39, %v531_v38 }
 0x111   :  { %v604_v42 = vpop.f32.mrf.mxu1 }
 0x112   :  { %671 = vst [vmem:[%s1164_s2 + $0x10] sm:$0xff] %v769_v40  ;;  %v605_v44 = vadd.f32 %v604_v42, %v533_v41  ;;  %v537_v45 = vpop.f32.mrf.mxu0 }
 0x113   :  { %v608_v46 = vpop.f32.mrf.mxu1 }
 0x114   :  { %v770_v47 = vpack.c.bf16 %v605_v44, %v603_v43  ;;  %v539_v48 = vpop.f32.mrf.mxu0  ;;  %v609_v50 = vadd.f32 %v608_v46, %v537_v45 }
 0x115   :  { %v610_v49 = vpop.f32.mrf.mxu1 }
 0x116   :  { %672 = vst [vmem:[%s1164_s2 + $0x18] sm:$0xff] %v770_v47  ;;  %v611_v51 = vadd.f32 %v610_v49, %v539_v48  ;;  %v541_v52 = vpop.f32.mrf.mxu0 }
 0x117   :  { %v612_v53 = vpop.f32.mrf.mxu1 }
 0x118   :  { %v771_v54 = vpack.c.bf16 %v611_v51, %v609_v50  ;;  %v543_v55 = vpop.f32.mrf.mxu0  ;;  %v613_v57 = vadd.f32 %v612_v53, %v541_v52 }
 0x119   :  { %v614_v56 = vpop.f32.mrf.mxu1 }
 0x11a   :  { %673 = vst [vmem:[%s1164_s2 + $0x20] sm:$0xff] %v771_v54  ;;  %v615_v58 = vadd.f32 %v614_v56, %v543_v55  ;;  %v547_v59 = vpop.f32.mrf.mxu0 }
 0x11b   :  { %v618_v60 = vpop.f32.mrf.mxu1 }
 0x11c   :  { %v772_v61 = vpack.c.bf16 %v615_v58, %v613_v57  ;;  %v549_v62 = vpop.f32.mrf.mxu0  ;;  %v619_v0 = vadd.f32 %v618_v60, %v547_v59 }
 0x11d   :  { %v620_v63 = vpop.f32.mrf.mxu1 }
 0x11e   :  { %674 = vst [vmem:[%s1164_s2 + $0x28] sm:$0xff] %v772_v61  ;;  %v621_v1 = vadd.f32 %v620_v63, %v549_v62  ;;  %v551_v2 = vpop.f32.mrf.mxu0 }
 0x11f   :  { %v622_v3 = vpop.f32.mrf.mxu1 }
 0x120   :  { %v773_v4 = vpack.c.bf16 %v621_v1, %v619_v0  ;;  %v552_v5 = vpop.f32.mrf.mxu0 }
 0x121   :  { %v623_v6 = vpop.f32.mrf.mxu1 }
 0x122   :  { %675 = vst [vmem:[%s1164_s2 + $0x30] sm:$0x11] %v773_v4 }

// kernel: confnet_forward.24
= control target key start
LH: loop header
LB: loop body
LE: loop exit
PB: predicated region body
PF: predicated region fallthrough
CT: control target
= control target key end

     0   :  { %s471_s12 = smov 0   ;;  %s525_s0 = inlined_call_operand.vmem [shape: bf16[2,64,64], index: 0, kind: input, shape index: {}]   ;;  %s526_s1 = inlined_call_operand.vmem [shape: f32[1,64], index: 1, kind: input, shape index: {}]   ;;  %s527_s2 = inlined_call_operand.vmem [shape: f32[1,64], index: 2, kind: input, shape index: {}]   ;;  %s528_s3 = inlined_call_operand.vmem [shape: bf16[2,64,64], index: 3, kind: output, shape index: {}]  }
   0x1 LB: > { %s384_s13 = sadd.s32 4294967295, %s449_s12   ;;  %p388_p0 = scmp.ge.s32.totalorder %s449_s12, 1  ;;  %s449_s12 = sphi %s471_s12, %s13_s12  }
   0x2   : > { %p137_p1 = scmp.lt.s32.totalorder %s449_s12, 3 }
   0x4   : > { %p138_p2 = pnand %p388_p0, %p137_p1 }
   0x5   : > { %p161_p3 = scmp.lt.s32.totalorder (!%p138_p2), %s384_s13, 1 }
   0x6   : > { %141 = sbr.rel (%p138_p2) target bundleno = 111 (0x6f), region = 32 }
   0xb   : > { %s530_s13 = smov (!%p161_p3, %s384_s13), 1  ;;  %vm187_vm0 = vcmask 523264   ;;  %vm320_vm1 = vcmask 519168  }
   0xc   : > { %s404_s14 = sshll.u32 %s530_s13, 5 }
   0xd   : > { %s165_s17 = scalar_lea.vmem %s525_s0, %s404_s14  ;;  %s170_s24 = scalar_lea.vmem %s528_s3, %s404_s14 }
   0xe   : > { %v415_v0 = vld [vmem:[%s165_s17] sm:$0xff]   ;;  %v430_v1 = vld [vmem:[%s165_s17 + $0x8] sm:$0xff]   ;;  %v431_v2 = vld [vmem:[%s165_s17 + $0x10] sm:$0xff]  }
   0xf   : > { %v416_v3 = vunpack.c.l.bf16 %v415_v0  ;;  %v417_v4 = vunpack.c.h.bf16 %v415_v0  ;;  %v420_v5 = vunpack.c.l.bf16 %v430_v1  ;;  %v421_v6 = vunpack.c.h.bf16 %v430_v1  ;;  %v432_v11 = vld [vmem:[%s165_s17 + $0x18] sm:$0xff]  }
  0x10   : > { %v424_v7 = vunpack.c.l.bf16 %v431_v2  ;;  %v425_v13 = vunpack.c.h.bf16 %v431_v2  ;;  %v428_v16 = vunpack.c.l.bf16 %v432_v11  ;;  %v429_v19 = vunpack.c.h.bf16 %v432_v11  ;;  %v251_v11 = vld [vmem:[%s526_s1] sm:$0x1] }
  0x11   : > { %v188_v8 = vsel %vm187_vm0, %v416_v3, 0.0  ;;  %v189_v9 = vsel %vm187_vm0, %v417_v4, 0.0  ;;  %v191_v10 = vsel %vm187_vm0, %v420_v5, 0.0  ;;  %v193_v14 = vsel %vm187_vm0, %v421_v6, 0.0 }
  0x12   : > { %v190_v12 = vadd.f32 %v189_v9, %v188_v8  ;;  %v195_v17 = vsel %vm187_vm0, %v424_v7, 0.0  ;;  %v197_v20 = vsel %vm187_vm0, %v425_v13, 0.0  ;;  %v199_v22 = vsel %vm187_vm0, %v428_v16, 0.0 }
  0x13   : > { %v201_v24 = vsel %vm187_vm0, %v429_v19, 0.0  ;;  %v253_v9 = vlaneseq }
  0x14   : > { %v192_v15 = vadd.f32 %v191_v10, %v190_v12 }
  0x15   : > { %v254_v10 = vshrl.u32 %v253_v9, 7 }
  0x16   : > { %v194_v18 = vadd.f32 %v193_v14, %v192_v15 }
  0x17   : > { %v255_v12 = vsub.s32 0, %v254_v10 }
  0x18   : > { %v196_v21 = vadd.f32 %v195_v17, %v194_v18 }
  0x1a   : > { %v198_v23 = vadd.f32 %v197_v20, %v196_v21 }
  0x1c   : > { %v200_v25 = vadd.f32 %v199_v22, %v198_v23 }
  0x1e   : > { %v202_v26 = vadd.f32 %v201_v24, %v200_v25 }
  0x20   : > { %v203_v27 = vrot.slane %v202_v26, 4 }
  0x22   : > { %v204_v28 = vadd.f32 %v203_v27, %v202_v26 }
  0x24   : > { %v205_v29 = vrot.slane %v204_v28, 2 }
  0x26   : > { %v206_v30 = vadd.f32 %v205_v29, %v204_v28 }
  0x28   : > { %v207_v31 = vrot.slane %v206_v30, 1 }
  0x2a   : > { %v208_v32 = vadd.f32 %v207_v31, %v206_v30 }
  0x2c   : > { %v210_v33 = vmul.f32 0.015625, %v208_v32 }
  0x2e   : > { %v211_v34 = vsub.f32 %v416_v3, %v210_v33  ;;  %v212_v35 = vsub.f32 %v417_v4, %v210_v33  ;;  %v213_v36 = vsub.f32 %v420_v5, %v210_v33  ;;  %v214_v37 = vsub.f32 %v421_v6, %v210_v33 }
  0x2f   : > { %v215_v38 = vsub.f32 %v424_v7, %v210_v33  ;;  %v216_v39 = vsub.f32 %v425_v13, %v210_v33  ;;  %v217_v44 = vsub.f32 %v428_v16, %v210_v33  ;;  %v218_v50 = vsub.f32 %v429_v19, %v210_v33  ;;  %v393_v16 = vld [vmem:[%s527_s2] ss:$0 sm:$0xff] }
  0x30   : > { %v219_v40 = vmul.f32 %v211_v34, %v211_v34  ;;  %v220_v41 = vmul.f32 %v212_v35, %v212_v35  ;;  %v221_v42 = vmul.f32 %v213_v36, %v213_v36  ;;  %v222_v43 = vmul.f32 %v214_v37, %v214_v37 }
  0x31   : > { %v223_v45 = vmul.f32 %v215_v38, %v215_v38  ;;  %v224_v51 = vmul.f32 %v216_v39, %v216_v39  ;;  %v225_v54 = vmul.f32 %v217_v44, %v217_v44  ;;  %v226_v57 = vmul.f32 %v218_v50, %v218_v50 }
  0x32   : > { %v227_v46 = vsel %vm187_vm0, %v219_v40, 0.0  ;;  %v228_v47 = vsel %vm187_vm0, %v220_v41, 0.0  ;;  %v230_v48 = vsel %vm187_vm0, %v221_v42, 0.0  ;;  %v232_v52 = vsel %vm187_vm0, %v222_v43, 0.0 }
  0x33   : > { %v229_v49 = vadd.f32 %v228_v47, %v227_v46  ;;  %v234_v55 = vsel %vm187_vm0, %v223_v45, 0.0  ;;  %v236_v58 = vsel %vm187_vm0, %v224_v51, 0.0  ;;  %v238_v60 = vsel %vm187_vm0, %v225_v54, 0.0 }
  0x34   : > { %v240_v62 = vsel %vm187_vm0, %v226_v57, 0.0 }
  0x35   : > { %v231_v53 = vadd.f32 %v230_v48, %v229_v49 }
  0x37   : > { %v233_v56 = vadd.f32 %v232_v52, %v231_v53 }
  0x39   : > { %v235_v59 = vadd.f32 %v234_v55, %v233_v56 }
  0x3b   : > { %v237_v61 = vadd.f32 %v236_v58, %v235_v59 }
  0x3d   : > { %v239_v63 = vadd.f32 %v238_v60, %v237_v61 }
  0x3f   : > { %v241_v0 = vadd.f32 %v240_v62, %v239_v63 }
  0x41   : > { %v242_v1 = vrot.slane %v241_v0, 4 }
  0x43   : > { %v243_v2 = vadd.f32 %v242_v1, %v241_v0 }
  0x45   : > { %v244_v3 = vrot.slane %v243_v2, 2 }
  0x47   : > { %v245_v4 = vadd.f32 %v244_v3, %v243_v2 }
  0x49   : > { %v246_v5 = vrot.slane %v245_v4, 1 }
  0x4b   : > { %v247_v6 = vadd.f32 %v246_v5, %v245_v4 }
  0x4d   : > { %v248_v7 = vmul.f32 0.015625, %v247_v6 }
  0x4f   : > { %v249_v8 = vadd.f32 1e-05, %v248_v7 }
  0x51   : > { %441 = vrsqrt.f32 %v249_v8 }
  0x5e   : > { %v442_v13 = vpop.eup %441 }
  0x5f   : > { %v252_v14 = vmul.f32 %v442_v13, %v251_v11 }
  0x61   : > { %v256_v15 = vrot.slane %v252_v14, %v255_v12 }
  0x63   : > { %v257_v17 = vmul.f32 %v256_v15, %v211_v34  ;;  %v258_v18 = vmul.f32 %v256_v15, %v212_v35  ;;  %v259_v19 = vmul.f32 %v256_v15, %v213_v36  ;;  %v260_v20 = vmul.f32 %v256_v15, %v214_v37 }
  0x64   : > { %v261_v21 = vmul.f32 %v256_v15, %v215_v38  ;;  %v262_v22 = vmul.f32 %v256_v15, %v216_v39  ;;  %v263_v23 = vmul.f32 %v256_v15, %v217_v44  ;;  %v264_v24 = vmul.f32 %v256_v15, %v218_v50 }
  0x65   : > { %v272_v25 = vadd.f32 %v393_v16, %v257_v17  ;;  %v273_v26 = vadd.f32 %v393_v16, %v258_v18  ;;  %v274_v27 = vadd.f32 %v393_v16, %v259_v19  ;;  %v275_v28 = vadd.f32 %v393_v16, %v260_v20 }
  0x66   : > { %v276_v29 = vadd.f32 %v393_v16, %v261_v21  ;;  %v277_v30 = vadd.f32 %v393_v16, %v262_v22  ;;  %v278_v31 = vadd.f32 %v393_v16, %v263_v23  ;;  %v279_v32 = vadd.f32 %v393_v16, %v264_v24 }
  0x67   : > { %v280_v33 = vmax.f32 %v272_v25, 0.0  ;;  %v281_v40 = vmax.f32 %v273_v26, 0.0  ;;  %v282_v41 = vmax.f32 %v274_v27, 0.0  ;;  %v283_v34 = vmax.f32 %v275_v28, 0.0 }
  0x68   : > { %v284_v35 = vmax.f32 %v276_v29, 0.0  ;;  %v285_v36 = vmax.f32 %v277_v30, 0.0  ;;  %v286_v37 = vmax.f32 %v278_v31, 0.0  ;;  %v287_v38 = vmax.f32 %v279_v32, 0.0 }
  0x69   : > { %v406_v39 = vpack.c.bf16 %v280_v33, %v280_v33  ;;  %v407_v42 = vpack.c.bf16 %v281_v40, %v281_v40  ;;  %v408_v43 = vpack.c.bf16 %v282_v41, %v282_v41  ;;  %v409_v44 = vpack.c.bf16 %v283_v34, %v283_v34 }
  0x6a   : > { %v410_v45 = vpack.c.bf16 %v284_v35, %v284_v35  ;;  %v411_v46 = vpack.c.bf16 %v285_v36, %v285_v36  ;;  %v412_v47 = vpack.c.bf16 %v286_v37, %v286_v37  ;;  %v413_v48 = vpack.c.bf16 %v287_v38, %v287_v38 }
  0x6b   : > { %321 = vst.msk [vmem:[%s170_s24] sm:$0xf] %vm320_vm1, %v406_v39  ;;  %322 = vst.msk [vmem:[%s170_s24 + $0x4] sm:$0xf] %vm320_vm1, %v407_v42 }
  0x6c   : > { %323 = vst.msk [vmem:[%s170_s24 + $0x8] sm:$0xf] %vm320_vm1, %v408_v43  ;;  %324 = vst.msk [vmem:[%s170_s24 + $0xc] sm:$0xf] %vm320_vm1, %v409_v44 }
  0x6d   : > { %325 = vst.msk [vmem:[%s170_s24 + $0x10] sm:$0xf] %vm320_vm1, %v410_v45  ;;  %326 = vst.msk [vmem:[%s170_s24 + $0x14] sm:$0xf] %vm320_vm1, %v411_v46 }
  0x6e   : > { %327 = vst.msk [vmem:[%s170_s24 + $0x18] sm:$0xf] %vm320_vm1, %v412_v47  ;;  %328 = vst.msk [vmem:[%s170_s24 + $0x1c] sm:$0xf] %vm320_vm1, %v413_v48 }
  0x6f PF: > { %s13_s12 = sadd.s32 1, %s449_s12  }
  0x70   : > { %p10_p4 = scmp.ge.s32.totalorder %s13_s12, 4  }
  0x72   :  { %12 = sbr.rel (!%p10_p4) target bundleno = 1 (0x1), region = 62 }

// kernel: confnet_forward.25
= control target key start
LH: loop header
LB: loop body
LE: loop exit
PB: predicated region body
PF: predicated region fallthrough
CT: control target
= control target key end

     0   :  { %s942_s1 = inlined_call_operand.vmem [shape: bf16[256,128], index: 1, kind: input, shape index: {}]   ;;  %s943_s0 = inlined_call_operand.vmem [shape: bf16[162,256], index: 0, kind: input, shape index: {}]   ;;  %s944_s2 = inlined_call_operand.vmem [shape: bf16[162,128], index: 2, kind: output, shape index: {}]  }
   0x1   :  { %v735_v0 = vld [vmem:[%s942_s1 + $0x78] sm:$0xff]   ;;  %v737_v2 = vld [vmem:[%s942_s1 + $0x70] sm:$0xff]   ;;  %v739_v4 = vld [vmem:[%s942_s1 + $0x68] sm:$0xff]  }
   0x2   :  { %v736_v1 = vld [vmem:[%s942_s1 + $0x38] sm:$0xff]   ;;  %637 = vmatprep.subr.bf16.mxu0 %v735_v0  ;;  %719 = vmatprep.subr.bf16.mxu1 %v735_v0  ;;  %v738_v3 = vld [vmem:[%s942_s1 + $0x30] sm:$0xff]   ;;  %v740_v5 = vld [vmem:[%s942_s1 + $0x28] sm:$0xff]  }
   0x3   :  { %638 = vmatpush3.bf16.msra.mxu0 %v736_v1  ;;  %727 = vmatpush3.bf16.msra.mxu1 %v736_v1  ;;  %v741_v6 = vld [vmem:[%s942_s1 + $0x60] sm:$0xff]   ;;  %v743_v8 = vld [vmem:[%s942_s1 + $0x58] sm:$0xff]   ;;  %v745_v10 = vld [vmem:[%s942_s1 + $0x50] sm:$0xff]  }
   0x4   :  { %639 = vmatprep.subr.bf16.mxu0 %v737_v2  ;;  %720 = vmatprep.subr.bf16.mxu1 %v737_v2  ;;  %v742_v7 = vld [vmem:[%s942_s1 + $0x20] sm:$0xff]   ;;  %v744_v9 = vld [vmem:[%s942_s1 + $0x18] sm:$0xff]   ;;  %v746_v13 = vld [vmem:[%s942_s1 + $0x10] sm:$0xff]  }
   0x5   :  { %v753_v11 = vld [vmem:[%s943_s0 + $0x4] ss:$8 sps:$4 sm:$0xff]   ;;  %v751_v18 = vld [vmem:[%s943_s0] ss:$8 sps:$4 sm:$0xff]   ;;  %v757_v20 = vld [vmem:[%s943_s0 + $0x14] ss:$8 sps:$4 sm:$0xff]  }
   0x6   :  { %v756_v12 = vld [vmem:[%s943_s0 + $0x64] ss:$8 sps:$4 sm:$0xff]   ;;  %300 = vmatprep.mubr.bf16.mxu0 %v753_v11  ;;  %v754_v19 = vld [vmem:[%s943_s0 + $0x60] ss:$8 sps:$4 sm:$0xff]   ;;  %v760_v21 = vld [vmem:[%s943_s0 + $0x74] ss:$8 sps:$4 sm:$0xff]  }
   0x7   :  { %640 = vmatpush3.bf16.msra.mxu0 %v738_v3  ;;  %728 = vmatpush3.bf16.msra.mxu1 %v738_v3  ;;  %v747_v14 = vld [vmem:[%s942_s1 + $0x48] sm:$0xff]   ;;  %v749_v16 = vld [vmem:[%s942_s1 + $0x40] sm:$0xff]   ;;  %v759_v22 = vld [vmem:[%s943_s0 + $0x10] ss:$8 sps:$4 sm:$0xff]  }
   0x8   :  { %641 = vmatprep.subr.bf16.mxu0 %v739_v4  ;;  %721 = vmatprep.subr.bf16.mxu1 %v739_v4  ;;  %v748_v15 = vld [vmem:[%s942_s1 + $0x8] sm:$0xff]   ;;  %v750_v17 = vld [vmem:[%s942_s1] sm:$0xff]   ;;  %v762_v23 = vld [vmem:[%s943_s0 + $0x70] ss:$8 sps:$4 sm:$0xff]  }
   0x9   :  { %348 = vmatprep.mubr.bf16.mxu1 %v756_v12  ;;  %v763_v24 = vld [vmem:[%s943_s0 + $0x24] ss:$8 sps:$4 sm:$0xff]   ;;  %v765_v26 = vld [vmem:[%s943_s0 + $0x20] ss:$8 sps:$4 sm:$0xff]   ;;  %v769_v28 = vld [vmem:[%s943_s0 + $0x34] ss:$8 sps:$4 sm:$0xff]  }
   0xa   :  { %v766_v25 = vld [vmem:[%s943_s0 + $0x84] ss:$8 sps:$4 sm:$0xff]   ;;  %v768_v27 = vld [vmem:[%s943_s0 + $0x80] ss:$8 sps:$4 sm:$0xff]   ;;  %v772_v29 = vld [vmem:[%s943_s0 + $0x94] ss:$8 sps:$4 sm:$0xff]  }
   0xb   :  { %642 = vmatpush3.bf16.msra.mxu0 %v740_v5  ;;  %729 = vmatpush3.bf16.msra.mxu1 %v740_v5  ;;  %v32_v30 = vld [vmem:[%s943_s0 + $0xa0] sm:$0x11]  ;;  %v771_v31 = vld [vmem:[%s943_s0 + $0x30] ss:$8 sps:$4 sm:$0xff]   ;;  %v780_v37 = vld [vmem:[%s943_s0 + $0x54] ss:$8 sps:$4 sm:$0xff]  }
   0xc   :  { %643 = vmatprep.subr.bf16.mxu0 %v741_v6  ;;  %722 = vmatprep.subr.bf16.mxu1 %v741_v6  ;;  %v774_v32 = vld [vmem:[%s943_s0 + $0x90] ss:$8 sps:$4 sm:$0xff]   ;;  %v775_v33 = vld [vmem:[%s943_s0 + $0x44] ss:$8 sps:$4 sm:$0xff]   ;;  %v519_v34 = vcombine.high %v32_v30, %v32_v30  ;;  %v777_v35 = vld [vmem:[%s943_s0 + $0x40] ss:$8 sps:$4 sm:$0xff]   ;;  %v518_v36 = vcombine.low %v32_v30, %v32_v30 }
   0xd   :  { %v782_v38 = vld [vmem:[%s943_s0 + $0x50] ss:$8 sps:$4 sm:$0xff]  }
   0xf   :  { %644 = vmatpush3.bf16.msra.mxu0 %v742_v7  ;;  %730 = vmatpush3.bf16.msra.mxu1 %v742_v7 }
  0x10   :  { %645 = vmatprep.subr.bf16.mxu0 %v743_v8  ;;  %723 = vmatprep.subr.bf16.mxu1 %v743_v8 }
  0x13   :  { %646 = vmatpush3.bf16.msra.mxu0 %v744_v9  ;;  %731 = vmatpush3.bf16.msra.mxu1 %v744_v9 }
  0x14   :  { %647 = vmatprep.subr.bf16.mxu0 %v745_v10  ;;  %724 = vmatprep.subr.bf16.mxu1 %v745_v10 }
  0x17   :  { %648 = vmatpush3.bf16.msra.mxu0 %v746_v13  ;;  %732 = vmatpush3.bf16.msra.mxu1 %v746_v13 }
  0x18   :  { %649 = vmatprep.subr.bf16.mxu0 %v747_v14  ;;  %725 = vmatprep.subr.bf16.mxu1 %v747_v14 }
  0x1b   :  { %650 = vmatpush3.bf16.msra.mxu0 %v748_v15  ;;  %733 = vmatpush3.bf16.msra.mxu1 %v748_v15 }
  0x1c   :  { %651 = vmatprep.subr.bf16.mxu0 %v749_v16  ;;  %726 = vmatprep.subr.bf16.mxu1 %v749_v16 }
  0x1f   :  { %652 = vmatpush3.bf16.msra.mxu0 %v750_v17  ;;  %734 = vmatpush3.bf16.msra.mxu1 %v750_v17 }
  0x22   :  { %301 = vmatmul.mubr.bf16.vlgmr.msra.gmra.mxu0 %v751_v18  ;;  %349 = vmatmul.mubr.bf16.vlgmr.msra.gmra.mxu1 %v754_v19 }
  0x23   :  { %308 = vmatprep.mubr.bf16.mxu0 %v757_v20  ;;  %356 = vmatprep.mubr.bf16.mxu1 %v760_v21 }
  0x2a   :  { %309 = vmatmul.mubr.bf16.gmra.mxu0 %v759_v22  ;;  %357 = vmatmul.mubr.bf16.gmra.mxu1 %v762_v23 }
  0x2b   :  { %316 = vmatprep.mubr.bf16.mxu0 %v763_v24  ;;  %364 = vmatprep.mubr.bf16.mxu1 %v766_v25 }
  0x32   :  { %317 = vmatmul.mubr.bf16.gmra.mxu0 %v765_v26  ;;  %365 = vmatmul.mubr.bf16.gmra.mxu1 %v768_v27 }
  0x33   :  { %324 = vmatprep.mubr.bf16.mxu0 %v769_v28  ;;  %372 = vmatprep.mubr.bf16.mxu1 %v772_v29 }
  0x3a   :  { %325 = vmatmul.mubr.bf16.gmra.mxu0 %v771_v31  ;;  %373 = vmatmul.mubr.bf16.gmra.mxu1 %v774_v32 }
  0x3b   :  { %332 = vmatprep.mubr.bf16.mxu0 %v775_v33  ;;  %380 = vmatprep.mubr.bf16.mxu1 %v519_v34 }
  0x42   :  { %333 = vmatmul.mubr.bf16.gmra.mxu0 %v777_v35  ;;  %381 = vmatmul.mubr.bf16.gmra.mxu1 %v518_v36 }
  0x43   :  { %340 = vmatprep.mubr.bf16.mxu0 %v780_v37 }
  0x4a   :  { %341 = vmatmul.mubr.bf16.gmra.mxu0 %v782_v38 }
  0xe2   :  { %v653_v39 = vpop.f32.mrf.mxu0  ;;  %v689_v40 = vpop.f32.mrf.mxu1 }
  0xe4   :  { %v654_v41 = vpop.f32.mrf.mxu0  ;;  %v690_v42 = vpop.f32.mrf.mxu1 }
  0xe5   :  { %v691_v45 = vadd.f32 %v690_v42, %v689_v40  ;;  %v655_v48 = vadd.f32 %v654_v41, %v653_v39 }
  0xe6   :  { %v656_v43 = vpop.f32.mrf.mxu0  ;;  %v692_v44 = vpop.f32.mrf.mxu1 }
  0xe8   :  { %v657_v46 = vpop.f32.mrf.mxu0  ;;  %v693_v47 = vpop.f32.mrf.mxu1 }
  0xe9   :  { %v658_v49 = vadd.f32 %v657_v46, %v656_v43  ;;  %v694_v50 = vadd.f32 %v693_v47, %v692_v44 }
  0xea   :  { %v659_v51 = vpop.f32.mrf.mxu0  ;;  %v695_v52 = vpop.f32.mrf.mxu1 }
  0xeb   :  { %v581_v53 = vpack.c.bf16 %v658_v49, %v655_v48  ;;  %v611_v54 = vpack.c.bf16 %v694_v50, %v691_v45 }
  0xec   :  { %v660_v55 = vpop.f32.mrf.mxu0  ;;  %v696_v56 = vpop.f32.mrf.mxu1 }
  0xed   :  { %582 = vst [vmem:[%s944_s2] sm:$0xff] %v581_v53   ;;  %633 = vst [vmem:[%s944_s2 + $0x30] sm:$0xff] %v611_v54   ;;  %v697_v59 = vadd.f32 %v696_v56, %v695_v52  ;;  %v661_v62 = vadd.f32 %v660_v55, %v659_v51 }
  0xee   :  { %v662_v57 = vpop.f32.mrf.mxu0  ;;  %v698_v58 = vpop.f32.mrf.mxu1 }
  0xf0   :  { %v663_v60 = vpop.f32.mrf.mxu0  ;;  %v699_v61 = vpop.f32.mrf.mxu1 }
  0xf1   :  { %v664_v63 = vadd.f32 %v663_v60, %v662_v57  ;;  %v700_v0 = vadd.f32 %v699_v61, %v698_v58 }
  0xf2   :  { %v665_v1 = vpop.f32.mrf.mxu0  ;;  %v701_v2 = vpop.f32.mrf.mxu1 }
  0xf3   :  { %v586_v3 = vpack.c.bf16 %v664_v63, %v661_v62  ;;  %v616_v4 = vpack.c.bf16 %v700_v0, %v697_v59 }
  0xf4   :  { %v666_v5 = vpop.f32.mrf.mxu0  ;;  %v702_v6 = vpop.f32.mrf.mxu1 }
  0xf5   :  { %628 = vst [vmem:[%s944_s2 + $0x8] sm:$0xff] %v586_v3   ;;  %634 = vst [vmem:[%s944_s2 + $0x38] sm:$0xff] %v616_v4   ;;  %v703_v9 = vadd.f32 %v702_v6, %v701_v2  ;;  %v667_v12 = vadd.f32 %v666_v5, %v665_v1 }
  0xf6   :  { %v668_v7 = vpop.f32.mrf.mxu0  ;;  %v704_v8 = vpop.f32.mrf.mxu1 }
  0xf8   :  { %v669_v10 = vpop.f32.mrf.mxu0  ;;  %v705_v11 = vpop.f32.mrf.mxu1 }
  0xf9   :  { %v670_v13 = vadd.f32 %v669_v10, %v668_v7  ;;  %v706_v14 = vadd.f32 %v705_v11, %v704_v8 }
  0xfa   :  { %v671_v15 = vpop.f32.mrf.mxu0  ;;  %v707_v16 = vpop.f32.mrf.mxu1 }
  0xfb   :  { %v591_v17 = vpack.c.bf16 %v670_v13, %v667_v12  ;;  %v621_v18 = vpack.c.bf16 %v706_v14, %v703_v9 }
  0xfc   :  { %v672_v19 = vpop.f32.mrf.mxu0  ;;  %v708_v20 = vpop.f32.mrf.mxu1 }
  0xfd   :  { %629 = vst [vmem:[%s944_s2 + $0x10] sm:$0xff] %v591_v17   ;;  %635 = vst [vmem:[%s944_s2 + $0x40] sm:$0xff] %v621_v18   ;;  %v709_v23 = vadd.f32 %v708_v20, %v707_v16  ;;  %v673_v26 = vadd.f32 %v672_v19, %v671_v15 }
  0xfe   :  { %v674_v21 = vpop.f32.mrf.mxu0  ;;  %v710_v22 = vpop.f32.mrf.mxu1 }
 0x100   :  { %v675_v24 = vpop.f32.mrf.mxu0  ;;  %v711_v25 = vpop.f32.mrf.mxu1 }
 0x101   :  { %v676_v27 = vadd.f32 %v675_v24, %v674_v21  ;;  %v712_v28 = vadd.f32 %v711_v25, %v710_v22 }
 0x102   :  { %v677_v29 = vpop.f32.mrf.mxu0  ;;  %v713_v30 = vpop.f32.mrf.mxu1 }
 0x103   :  { %v596_v31 = vpack.c.bf16 %v676_v27, %v673_v26  ;;  %v626_v32 = vpack.c.bf16 %v712_v28, %v709_v23 }
 0x104   :  { %v678_v33 = vpop.f32.mrf.mxu0  ;;  %v714_v34 = vpop.f32.mrf.mxu1 }
 0x105   :  { %630 = vst [vmem:[%s944_s2 + $0x18] sm:$0xff] %v596_v31   ;;  %636 = vst [vmem:[%s944_s2 + $0x48] sm:$0xff] %v626_v32   ;;  %v715_v35 = vadd.f32 %v714_v34, %v713_v30  ;;  %v679_v41 = vadd.f32 %v678_v33, %v677_v29 }
 0x106   :  { %v680_v36 = vpop.f32.mrf.mxu0  ;;  %v716_v37 = vpop.f32.mrf.mxu1 }
 0x107   :  { %v577_v38 = vpack.c.bf16 %v715_v35, %v715_v35 }
 0x108   :  { %v681_v39 = vpop.f32.mrf.mxu0  ;;  %v717_v40 = vpop.f32.mrf.mxu1 }
 0x109   :  { %v682_v42 = vadd.f32 %v681_v39, %v680_v36  ;;  %493 = vst [vmem:[%s944_s2 + $0x50] sm:$0x1] %v577_v38 }
 0x10a   :  { %v683_v43 = vpop.f32.mrf.mxu0 }
 0x10b   :  { %v601_v44 = vpack.c.bf16 %v682_v42, %v679_v41 }
 0x10c   :  { %v684_v45 = vpop.f32.mrf.mxu0 }
 0x10d   :  { %631 = vst [vmem:[%s944_s2 + $0x20] sm:$0xff] %v601_v44   ;;  %v685_v48 = vadd.f32 %v684_v45, %v683_v43 }
 0x10e   :  { %v686_v46 = vpop.f32.mrf.mxu0 }
 0x110   :  { %v687_v47 = vpop.f32.mrf.mxu0 }
 0x111   :  { %v688_v49 = vadd.f32 %v687_v47, %v686_v46 }
 0x113   :  { %v606_v50 = vpack.c.bf16 %v688_v49, %v685_v48 }
 0x115   :  { %632 = vst [vmem:[%s944_s2 + $0x28] sm:$0xff] %v606_v50  }

// kernel: confnet_forward.26
= control target key start
LH: loop header
LB: loop body
LE: loop exit
PB: predicated region body
PF: predicated region fallthrough
CT: control target
= control target key end

     0   :  { %s963_s12 = smov 0   ;;  %s1595_s0 = inlined_call_operand.vmem [shape: bf16[2,256,32], index: 0, kind: input, shape index: {}]   ;;  %s1596_s1 = inlined_call_operand.vmem [shape: f32[1,32], index: 1, kind: input, shape index: {}]   ;;  %s1597_s2 = inlined_call_operand.vmem [shape: f32[1,32], index: 2, kind: input, shape index: {}]   ;;  %s1598_s3 = inlined_call_operand.vmem [shape: bf16[2,256,32], index: 3, kind: output, shape index: {}]  }
   0x1 LB: > { %s768_s13 = sadd.s32 4294967295, %s941_s12   ;;  %p772_p0 = scmp.ge.s32.totalorder %s941_s12, 1  ;;  %s941_s12 = sphi %s963_s12, %s13_s12  }
   0x2   : > { %p137_p1 = scmp.lt.s32.totalorder %s941_s12, 3 }
   0x4   : > { %p138_p2 = pnand %p772_p0, %p137_p1 }
   0x5   : > { %p161_p3 = scmp.lt.s32.totalorder (!%p138_p2), %s768_s13, 1 }
   0x6   : > { %141 = sbr.rel (%p138_p2) target bundleno = 234 (0xea), region = 32 }
   0xb   : > { %s1600_s13 = smov (!%p161_p3, %s768_s13), 1  ;;  %vm235_vm0 = vcmask 261120   ;;  %vm680_vm1 = vcmask 257024  }
   0xc   : > { %s812_s14 = sshll.u32 %s1600_s13, 7 }
   0xd   : > { %s979_s17 = scalar_lea.vmem %s1595_s0, %s812_s14  ;;  %s1454_s24 = scalar_lea.vmem %s1598_s3, %s812_s14 }
   0xe   : > { %v982_v0 = vld [vmem:[%s979_s17] sm:$0xff]   ;;  %v985_v1 = vld [vmem:[%s979_s17 + $0x8] sm:$0xff]   ;;  %v991_v5 = vld [vmem:[%s979_s17 + $0x10] sm:$0xff]  }
   0xf   : > { %v848_v2 = vunpack.c.l.bf16 %v982_v0  ;;  %v849_v3 = vunpack.c.h.bf16 %v982_v0  ;;  %v852_v4 = vunpack.c.l.bf16 %v985_v1  ;;  %v853_v6 = vunpack.c.h.bf16 %v985_v1  ;;  %v1005_v11 = vld [vmem:[%s979_s17 + $0x18] sm:$0xff]   ;;  %v1016_v18 = vld [vmem:[%s979_s17 + $0x20] sm:$0xff]   ;;  %v1027_v25 = vld [vmem:[%s979_s17 + $0x28] sm:$0xff]  }
  0x10   : > { %v856_v7 = vunpack.c.l.bf16 %v991_v5  ;;  %v857_v13 = vunpack.c.h.bf16 %v991_v5  ;;  %v860_v16 = vunpack.c.l.bf16 %v1005_v11  ;;  %v861_v20 = vunpack.c.h.bf16 %v1005_v11  ;;  %v1038_v32 = vld [vmem:[%s979_s17 + $0x30] sm:$0xff]   ;;  %v1049_v39 = vld [vmem:[%s979_s17 + $0x38] sm:$0xff]   ;;  %v1060_v46 = vld [vmem:[%s979_s17 + $0x40] sm:$0xff]  }
  0x11   : > { %v236_v8 = vsel %vm235_vm0, %v848_v2, 0.0  ;;  %v237_v9 = vsel %vm235_vm0, %v849_v3, 0.0  ;;  %v239_v10 = vsel %vm235_vm0, %v852_v4, 0.0  ;;  %v241_v14 = vsel %vm235_vm0, %v853_v6, 0.0  ;;  %v1071_v53 = vld [vmem:[%s979_s17 + $0x48] sm:$0xff]   ;;  %v1082_v60 = vld [vmem:[%s979_s17 + $0x50] sm:$0xff]  }
  0x12   : > { %v238_v12 = vadd.f32 %v237_v9, %v236_v8  ;;  %v243_v17 = vsel %vm235_vm0, %v856_v7, 0.0  ;;  %v245_v21 = vsel %vm235_vm0, %v857_v13, 0.0  ;;  %v864_v23 = vunpack.c.l.bf16 %v1016_v18 }
  0x13   : > { %v247_v24 = vsel %vm235_vm0, %v860_v16, 0.0  ;;  %v865_v27 = vunpack.c.h.bf16 %v1016_v18  ;;  %v249_v28 = vsel %vm235_vm0, %v861_v20, 0.0  ;;  %v868_v30 = vunpack.c.l.bf16 %v1027_v25 }
  0x14   : > { %v240_v15 = vadd.f32 %v239_v10, %v238_v12  ;;  %v251_v31 = vsel %vm235_vm0, %v864_v23, 0.0  ;;  %v869_v34 = vunpack.c.h.bf16 %v1027_v25  ;;  %v872_v37 = vunpack.c.l.bf16 %v1038_v32  ;;  %v1093_v12 = vld [vmem:[%s979_s17 + $0x58] sm:$0xff]  }
  0x15   : > { %v253_v35 = vsel %vm235_vm0, %v865_v27, 0.0  ;;  %v255_v38 = vsel %vm235_vm0, %v868_v30, 0.0  ;;  %v873_v41 = vunpack.c.h.bf16 %v1038_v32  ;;  %v876_v44 = vunpack.c.l.bf16 %v1049_v39 }
  0x16   : > { %v242_v19 = vadd.f32 %v241_v14, %v240_v15  ;;  %v257_v42 = vsel %vm235_vm0, %v869_v34, 0.0  ;;  %v259_v45 = vsel %vm235_vm0, %v872_v37, 0.0  ;;  %v877_v48 = vunpack.c.h.bf16 %v1049_v39 }
  0x17   : > { %v261_v49 = vsel %vm235_vm0, %v873_v41, 0.0  ;;  %v880_v51 = vunpack.c.l.bf16 %v1060_v46  ;;  %v263_v52 = vsel %vm235_vm0, %v876_v44, 0.0  ;;  %v881_v55 = vunpack.c.h.bf16 %v1060_v46 }
  0x18   : > { %v244_v22 = vadd.f32 %v243_v17, %v242_v19  ;;  %v265_v56 = vsel %vm235_vm0, %v877_v48, 0.0  ;;  %v884_v58 = vunpack.c.l.bf16 %v1071_v53  ;;  %v885_v62 = vunpack.c.h.bf16 %v1071_v53 }
  0x19   : > { %v267_v59 = vsel %vm235_vm0, %v880_v51, 0.0  ;;  %v269_v63 = vsel %vm235_vm0, %v881_v55, 0.0  ;;  %v888_v9 = vunpack.c.l.bf16 %v1082_v60  ;;  %v889_v15 = vunpack.c.h.bf16 %v1082_v60 }
  0x1a   : > { %v246_v26 = vadd.f32 %v245_v21, %v244_v22  ;;  %v271_v10 = vsel %vm235_vm0, %v884_v58, 0.0  ;;  %v273_v17 = vsel %vm235_vm0, %v885_v62, 0.0  ;;  %v892_v21 = vunpack.c.l.bf16 %v1093_v12 }
  0x1b   : > { %v275_v22 = vsel %vm235_vm0, %v888_v9, 0.0 }
  0x1c   : > { %v248_v29 = vadd.f32 %v247_v24, %v246_v26  ;;  %v1104_v24 = vld [vmem:[%s979_s17 + $0x60] sm:$0xff]  }
  0x1e   : > { %v250_v33 = vadd.f32 %v249_v28, %v248_v29  ;;  %v893_v28 = vunpack.c.h.bf16 %v1093_v12  ;;  %v277_v29 = vsel %vm235_vm0, %v889_v15, 0.0 }
  0x20   : > { %v252_v36 = vadd.f32 %v251_v31, %v250_v33  ;;  %v896_v33 = vunpack.c.l.bf16 %v1104_v24 }
  0x22   : > { %v254_v40 = vadd.f32 %v253_v35, %v252_v36  ;;  %v279_v35 = vsel %vm235_vm0, %v892_v21, 0.0  ;;  %v1115_v36 = vld [vmem:[%s979_s17 + $0x68] sm:$0xff]  }
  0x24   : > { %v256_v43 = vadd.f32 %v255_v38, %v254_v40  ;;  %v897_v40 = vunpack.c.h.bf16 %v1104_v24 }
  0x26   : > { %v258_v47 = vadd.f32 %v257_v42, %v256_v43  ;;  %v281_v42 = vsel %vm235_vm0, %v893_v28, 0.0 }
  0x28   : > { %v260_v50 = vadd.f32 %v259_v45, %v258_v47  ;;  %v900_v45 = vunpack.c.l.bf16 %v1115_v36  ;;  %v283_v47 = vsel %vm235_vm0, %v896_v33, 0.0 }
  0x2a   : > { %v262_v54 = vadd.f32 %v261_v49, %v260_v50  ;;  %v1126_v49 = vld [vmem:[%s979_s17 + $0x70] sm:$0xff]  }
  0x2c   : > { %v264_v57 = vadd.f32 %v263_v52, %v262_v54  ;;  %v901_v52 = vunpack.c.h.bf16 %v1115_v36  ;;  %v285_v54 = vsel %vm235_vm0, %v897_v40, 0.0 }
  0x2e   : > { %v266_v61 = vadd.f32 %v265_v56, %v264_v57  ;;  %v904_v57 = vunpack.c.l.bf16 %v1126_v49 }
  0x30   : > { %v268_v8 = vadd.f32 %v267_v59, %v266_v61  ;;  %v287_v59 = vsel %vm235_vm0, %v900_v45, 0.0  ;;  %v1137_v61 = vld [vmem:[%s979_s17 + $0x78] sm:$0xff]  }
  0x32   : > { %v270_v14 = vadd.f32 %v269_v63, %v268_v8  ;;  %v905_v8 = vunpack.c.h.bf16 %v1126_v49 }
  0x34   : > { %v272_v19 = vadd.f32 %v271_v10, %v270_v14  ;;  %v289_v10 = vsel %vm235_vm0, %v901_v52, 0.0 }
  0x36   : > { %v274_v26 = vadd.f32 %v273_v17, %v272_v19  ;;  %v908_v17 = vunpack.c.l.bf16 %v1137_v61  ;;  %v291_v19 = vsel %vm235_vm0, %v904_v57, 0.0 }
  0x38   : > { %v276_v31 = vadd.f32 %v275_v22, %v274_v26  ;;  %v909_v26 = vunpack.c.h.bf16 %v1137_v61 }
  0x3a   : > { %v278_v38 = vadd.f32 %v277_v29, %v276_v31  ;;  %v293_v29 = vsel %vm235_vm0, %v905_v8, 0.0 }
  0x3c   : > { %v280_v43 = vadd.f32 %v279_v35, %v278_v38  ;;  %v295_v35 = vsel %vm235_vm0, %v908_v17, 0.0 }
  0x3e   : > { %v282_v50 = vadd.f32 %v281_v42, %v280_v43  ;;  %v297_v42 = vsel %vm235_vm0, %v909_v26, 0.0 }
  0x40   : > { %v284_v56 = vadd.f32 %v283_v47, %v282_v50 }
  0x42   : > { %v286_v63 = vadd.f32 %v285_v54, %v284_v56 }
  0x44   : > { %v288_v14 = vadd.f32 %v287_v59, %v286_v63 }
  0x46   : > { %v290_v22 = vadd.f32 %v289_v10, %v288_v14 }
  0x48   : > { %v292_v31 = vadd.f32 %v291_v19, %v290_v22 }
  0x4a   : > { %v294_v38 = vadd.f32 %v293_v29, %v292_v31 }
  0x4c   : > { %v296_v43 = vadd.f32 %v295_v35, %v294_v38 }
  0x4e   : > { %v298_v47 = vadd.f32 %v297_v42, %v296_v43 }
  0x50   : > { %v299_v50 = vrot.slane %v298_v47, 4 }
  0x52   : > { %v300_v54 = vadd.f32 %v299_v50, %v298_v47 }
  0x54   : > { %v301_v56 = vrot.slane %v300_v54, 2 }
  0x56   : > { %v302_v59 = vadd.f32 %v301_v56, %v300_v54 }
  0x58   : > { %v303_v63 = vrot.slane %v302_v59, 1 }
  0x5a   : > { %v304_v10 = vadd.f32 %v303_v63, %v302_v59 }
  0x5c   : > { %v1157_v14 = vmul.f32 0.00390625, %v304_v10 }
  0x5e   : > { %v1162_v19 = vsub.f32 %v848_v2, %v1157_v14  ;;  %v1167_v22 = vsub.f32 %v849_v3, %v1157_v14  ;;  %v1172_v29 = vsub.f32 %v852_v4, %v1157_v14  ;;  %v1177_v31 = vsub.f32 %v853_v6, %v1157_v14 }
  0x5f   : > { %v1182_v2 = vsub.f32 %v856_v7, %v1157_v14  ;;  %v1193_v1 = vsub.f32 %v857_v13, %v1157_v14  ;;  %v1200_v7 = vsub.f32 %v860_v16, %v1157_v14  ;;  %v1210_v13 = vsub.f32 %v861_v20, %v1157_v14 }
  0x60   : > { %v339_v0 = vmul.f32 %v1162_v19, %v1162_v19  ;;  %v340_v3 = vmul.f32 %v1167_v22, %v1167_v22  ;;  %v341_v4 = vmul.f32 %v1172_v29, %v1172_v29  ;;  %v342_v6 = vmul.f32 %v1177_v31, %v1177_v31 }
  0x61   : > { %v343_v35 = vmul.f32 %v1182_v2, %v1182_v2  ;;  %v344_v47 = vmul.f32 %v1193_v1, %v1193_v1  ;;  %v1218_v54 = vsub.f32 %v864_v23, %v1157_v14  ;;  %v345_v56 = vmul.f32 %v1200_v7, %v1200_v7 }
  0x62   : > { %v371_v38 = vsel %vm235_vm0, %v339_v0, 0.0  ;;  %v372_v42 = vsel %vm235_vm0, %v340_v3, 0.0  ;;  %v374_v43 = vsel %vm235_vm0, %v341_v4, 0.0  ;;  %v376_v16 = vsel %vm235_vm0, %v342_v6, 0.0 }
  0x63   : > { %v373_v5 = vadd.f32 %v372_v42, %v371_v38  ;;  %v378_v59 = vsel %vm235_vm0, %v343_v35, 0.0  ;;  %v1226_v11 = vsub.f32 %v865_v27, %v1157_v14  ;;  %v346_v20 = vmul.f32 %v1210_v13, %v1210_v13 }
  0x64   : > { %v380_v10 = vsel %vm235_vm0, %v344_v47, 0.0  ;;  %v1234_v23 = vsub.f32 %v868_v30, %v1157_v14  ;;  %v347_v3 = vmul.f32 %v1218_v54, %v1218_v54  ;;  %v382_v4 = vsel %vm235_vm0, %v345_v56, 0.0 }
  0x65   : > { %v375_v50 = vadd.f32 %v374_v43, %v373_v5  ;;  %v1242_v18 = vsub.f32 %v869_v34, %v1157_v14  ;;  %v348_v27 = vmul.f32 %v1226_v11, %v1226_v11  ;;  %v384_v35 = vsel %vm235_vm0, %v346_v20, 0.0 }
  0x66   : > { %v1250_v30 = vsub.f32 %v872_v37, %v1157_v14  ;;  %v349_v42 = vmul.f32 %v1234_v23, %v1234_v23  ;;  %v386_v43 = vsel %vm235_vm0, %v347_v3, 0.0  ;;  %v1258_v25 = vsub.f32 %v873_v41, %v1157_v14 }
  0x67   : > { %v377_v63 = vadd.f32 %v376_v16, %v375_v50  ;;  %v350_v34 = vmul.f32 %v1242_v18, %v1242_v18  ;;  %v388_v47 = vsel %vm235_vm0, %v348_v27, 0.0  ;;  %v1266_v37 = vsub.f32 %v876_v44, %v1157_v14 }
  0x68   : > { %v351_v50 = vmul.f32 %v1250_v30, %v1250_v30  ;;  %v390_v56 = vsel %vm235_vm0, %v349_v42, 0.0  ;;  %v1274_v32 = vsub.f32 %v877_v48, %v1157_v14  ;;  %v352_v41 = vmul.f32 %v1258_v25, %v1258_v25 }
  0x69   : > { %v379_v0 = vadd.f32 %v378_v59, %v377_v63  ;;  %v392_v63 = vsel %vm235_vm0, %v350_v34, 0.0  ;;  %v1282_v44 = vsub.f32 %v880_v51, %v1157_v14  ;;  %v1290_v39 = vsub.f32 %v881_v55, %v1157_v14 }
  0x6a   : > { %v354_v48 = vmul.f32 %v1274_v32, %v1274_v32  ;;  %v1298_v51 = vsub.f32 %v884_v58, %v1157_v14  ;;  %v1306_v46 = vsub.f32 %v885_v62, %v1157_v14  ;;  %v1314_v58 = vsub.f32 %v888_v9, %v1157_v14 }
  0x6b   : > { %v381_v6 = vadd.f32 %v380_v10, %v379_v0  ;;  %v353_v10 = vmul.f32 %v1266_v37, %v1266_v37  ;;  %v394_v0 = vsel %vm235_vm0, %v351_v50, 0.0  ;;  %v355_v27 = vmul.f32 %v1282_v44, %v1282_v44 }
  0x6c   : > { %v356_v55 = vmul.f32 %v1290_v39, %v1290_v39  ;;  %v400_v42 = vsel %vm235_vm0, %v354_v48, 0.0  ;;  %v1322_v53 = vsub.f32 %v889_v15, %v1157_v14  ;;  %v358_v62 = vmul.f32 %v1306_v46, %v1306_v46 }
  0x6d   : > { %v383_v38 = vadd.f32 %v382_v4, %v381_v6  ;;  %v396_v4 = vsel %vm235_vm0, %v352_v41, 0.0  ;;  %v402_v34 = vsel %vm235_vm0, %v355_v27, 0.0  ;;  %v1330_v9 = vsub.f32 %v892_v21, %v1157_v14 }
  0x6e   : > { %v1338_v60 = vsub.f32 %v893_v28, %v1157_v14  ;;  %v360_v15 = vmul.f32 %v1322_v53, %v1322_v53  ;;  %v1346_v21 = vsub.f32 %v896_v33, %v1157_v14  ;;  %v1354_v12 = vsub.f32 %v897_v40, %v1157_v14 }
  0x6f   : > { %v385_v5 = vadd.f32 %v384_v35, %v383_v38  ;;  %v398_v35 = vsel %vm235_vm0, %v353_v10, 0.0  ;;  %v361_v10 = vmul.f32 %v1330_v9, %v1330_v9  ;;  %v1362_v33 = vsub.f32 %v900_v45, %v1157_v14 }
  0x70   : > { %v362_v28 = vmul.f32 %v1338_v60, %v1338_v60  ;;  %v412_v48 = vsel %vm235_vm0, %v360_v15, 0.0  ;;  %v1370_v24 = vsub.f32 %v901_v52, %v1157_v14  ;;  %v364_v40 = vmul.f32 %v1354_v12, %v1354_v12 }
  0x71   : > { %v387_v16 = vadd.f32 %v386_v43, %v385_v5  ;;  %v357_v5 = vmul.f32 %v1298_v51, %v1298_v51  ;;  %v414_v27 = vsel %vm235_vm0, %v361_v10, 0.0  ;;  %v1378_v45 = vsub.f32 %v904_v57, %v1157_v14 }
  0x72   : > { %v1386_v36 = vsub.f32 %v905_v8, %v1157_v14  ;;  %v366_v52 = vmul.f32 %v1370_v24, %v1370_v24  ;;  %v1394_v57 = vsub.f32 %v908_v17, %v1157_v14  ;;  %v1402_v49 = vsub.f32 %v909_v26, %v1157_v14 }
  0x73   : > { %v389_v59 = vadd.f32 %v388_v47, %v387_v16  ;;  %v404_v16 = vsel %vm235_vm0, %v356_v55, 0.0 }
  0x74   : > { %v368_v8 = vmul.f32 %v1386_v36, %v1386_v36  ;;  %v369_v17 = vmul.f32 %v1394_v57, %v1394_v57 }
  0x75   : > { %v391_v20 = vadd.f32 %v390_v56, %v389_v59  ;;  %v359_v56 = vmul.f32 %v1314_v58, %v1314_v58  ;;  %v406_v59 = vsel %vm235_vm0, %v357_v5, 0.0 }
  0x76   : > { %v430_v26 = vsel %vm235_vm0, %v369_v17, 0.0 }
  0x77   : > { %v393_v3 = vadd.f32 %v392_v63, %v391_v20  ;;  %v408_v63 = vsel %vm235_vm0, %v358_v62, 0.0  ;;  %v367_v62 = vmul.f32 %v1378_v45, %v1378_v45 }
  0x79   : > { %v395_v6 = vadd.f32 %v394_v0, %v393_v3  ;;  %v410_v0 = vsel %vm235_vm0, %v359_v56, 0.0  ;;  %v424_v56 = vsel %vm235_vm0, %v366_v52, 0.0 }
  0x7b   : > { %v397_v38 = vadd.f32 %v396_v4, %v395_v6  ;;  %v363_v6 = vmul.f32 %v1346_v21, %v1346_v21 }
  0x7d   : > { %v399_v43 = vadd.f32 %v398_v35, %v397_v38  ;;  %v416_v38 = vsel %vm235_vm0, %v362_v28, 0.0 }
  0x7f   : > { %v401_v47 = vadd.f32 %v400_v42, %v399_v43  ;;  %v365_v42 = vmul.f32 %v1362_v33, %v1362_v33  ;;  %v418_v43 = vsel %vm235_vm0, %v363_v6, 0.0 }
  0x81   : > { %v403_v50 = vadd.f32 %v402_v34, %v401_v47  ;;  %v420_v34 = vsel %vm235_vm0, %v364_v40, 0.0 }
  0x83   : > { %v405_v41 = vadd.f32 %v404_v16, %v403_v50  ;;  %v422_v16 = vsel %vm235_vm0, %v365_v42, 0.0 }
  0x85   : > { %v407_v20 = vadd.f32 %v406_v59, %v405_v41  ;;  %v426_v41 = vsel %vm235_vm0, %v367_v62, 0.0  ;;  %v1423_v62 = vld [vmem:[%s1597_s2] ss:$0 sm:$0xff] }
  0x87   : > { %v409_v3 = vadd.f32 %v408_v63, %v407_v20  ;;  %v370_v63 = vmul.f32 %v1402_v49, %v1402_v49  ;;  %v428_v20 = vsel %vm235_vm0, %v368_v8, 0.0 }
  0x89   : > { %v411_v4 = vadd.f32 %v410_v0, %v409_v3  ;;  %v432_v10 = vsel %vm235_vm0, %v370_v63, 0.0 }
  0x8b   : > { %v413_v35 = vadd.f32 %v412_v48, %v411_v4 }
  0x8d   : > { %v415_v55 = vadd.f32 %v414_v27, %v413_v35 }
  0x8f   : > { %v417_v5 = vadd.f32 %v416_v38, %v415_v55  ;;  %v445_v55 = vlaneseq }
  0x91   : > { %v419_v47 = vadd.f32 %v418_v43, %v417_v5  ;;  %v446_v42 = vshrl.u32 %v445_v55, 7  ;;  %v443_v43 = vld [vmem:[%s1596_s1] sm:$0x1] }
  0x93   : > { %v421_v50 = vadd.f32 %v420_v34, %v419_v47  ;;  %v447_v5 = vsub.s32 0, %v446_v42 }
  0x95   : > { %v423_v59 = vadd.f32 %v422_v16, %v421_v50 }
  0x97   : > { %v425_v15 = vadd.f32 %v424_v56, %v423_v59 }
  0x99   : > { %v427_v61 = vadd.f32 %v426_v41, %v425_v15 }
  0x9b   : > { %v429_v14 = vadd.f32 %v428_v20, %v427_v61 }
  0x9d   : > { %v431_v0 = vadd.f32 %v430_v26, %v429_v14 }
  0x9f   : > { %v433_v3 = vadd.f32 %v432_v10, %v431_v0 }
  0xa1   : > { %v434_v28 = vrot.slane %v433_v3, 4 }
  0xa3   : > { %v435_v48 = vadd.f32 %v434_v28, %v433_v3 }
  0xa5   : > { %v436_v4 = vrot.slane %v435_v48, 2 }
  0xa7   : > { %v437_v6 = vadd.f32 %v436_v4, %v435_v48 }
  0xa9   : > { %v438_v27 = vrot.slane %v437_v6, 1 }
  0xab   : > { %v439_v35 = vadd.f32 %v438_v27, %v437_v6 }
  0xad   : > { %v440_v40 = vmul.f32 0.00390625, %v439_v35 }
  0xaf   : > { %v441_v38 = vadd.f32 1e-05, %v440_v40 }
  0xb1   : > { %933 = vrsqrt.f32 %v441_v38 }
  0xbe   : > { %v934_v52 = vpop.eup %933 }
  0xbf   : > { %v444_v34 = vmul.f32 %v934_v52, %v443_v43 }
  0xc1   : > { %v1418_v47 = vrot.slane %v444_v34, %v447_v5 }
  0xc3   : > { %v449_v16 = vmul.f32 %v1418_v47, %v1162_v19  ;;  %v450_v50 = vmul.f32 %v1418_v47, %v1167_v22  ;;  %v451_v8 = vmul.f32 %v1418_v47, %v1172_v29  ;;  %v452_v56 = vmul.f32 %v1418_v47, %v1177_v31 }
  0xc4   : > { %v453_v59 = vmul.f32 %v1418_v47, %v1182_v2  ;;  %v454_v17 = vmul.f32 %v1418_v47, %v1193_v1  ;;  %v455_v41 = vmul.f32 %v1418_v47, %v1200_v7  ;;  %v456_v19 = vmul.f32 %v1418_v47, %v1210_v13 }
  0xc5   : > { %v488_v22 = vadd.f32 %v1423_v62, %v449_v16  ;;  %v489_v29 = vadd.f32 %v1423_v62, %v450_v50  ;;  %v490_v15 = vadd.f32 %v1423_v62, %v451_v8  ;;  %v491_v31 = vadd.f32 %v1423_v62, %v452_v56 }
  0xc6   : > { %v492_v2 = vadd.f32 %v1423_v62, %v453_v59  ;;  %v493_v63 = vadd.f32 %v1423_v62, %v454_v17  ;;  %v494_v1 = vadd.f32 %v1423_v62, %v455_v41  ;;  %v495_v20 = vadd.f32 %v1423_v62, %v456_v19 }
  0xc7   : > { %v520_v7 = vmax.f32 %v488_v22, 0.0  ;;  %v521_v61 = vmax.f32 %v489_v29, 0.0  ;;  %v522_v26 = vmax.f32 %v490_v15, 0.0  ;;  %v523_v13 = vmax.f32 %v491_v31, 0.0 }
  0xc8   : > { %v524_v14 = vmax.f32 %v492_v2, 0.0  ;;  %v525_v10 = vmax.f32 %v493_v63, 0.0  ;;  %v526_v0 = vmax.f32 %v494_v1, 0.0  ;;  %v527_v3 = vmax.f32 %v495_v20, 0.0 }
  0xc9   : > { %v814_v28 = vpack.c.bf16 %v520_v7, %v520_v7  ;;  %v815_v48 = vpack.c.bf16 %v521_v61, %v521_v61  ;;  %v816_v4 = vpack.c.bf16 %v522_v26, %v522_v26  ;;  %v817_v6 = vpack.c.bf16 %v523_v13, %v523_v13 }
  0xca   : > { %v818_v27 = vpack.c.bf16 %v524_v14, %v524_v14  ;;  %v819_v35 = vpack.c.bf16 %v525_v10, %v525_v10  ;;  %v820_v40 = vpack.c.bf16 %v526_v0, %v526_v0  ;;  %v821_v38 = vpack.c.bf16 %v527_v3, %v527_v3 }
  0xcb   : > { %681 = vst.msk [vmem:[%s1454_s24] sm:$0xf] %vm680_vm1, %v814_v28  ;;  %682 = vst.msk [vmem:[%s1454_s24 + $0x4] sm:$0xf] %vm680_vm1, %v815_v48  ;;  %v457_v55 = vmul.f32 %v1418_v47, %v1218_v54  ;;  %v458_v42 = vmul.f32 %v1418_v47, %v1226_v11  ;;  %v459_v43 = vmul.f32 %v1418_v47, %v1234_v23 }
  0xcc   : > { %683 = vst.msk [vmem:[%s1454_s24 + $0x8] sm:$0xf] %vm680_vm1, %v816_v4  ;;  %684 = vst.msk [vmem:[%s1454_s24 + $0xc] sm:$0xf] %vm680_vm1, %v817_v6  ;;  %v460_v5 = vmul.f32 %v1418_v47, %v1242_v18  ;;  %v461_v54 = vmul.f32 %v1418_v47, %v1250_v30  ;;  %v462_v11 = vmul.f32 %v1418_v47, %v1258_v25 }
  0xcd   : > { %685 = vst.msk [vmem:[%s1454_s24 + $0x10] sm:$0xf] %vm680_vm1, %v818_v27  ;;  %686 = vst.msk [vmem:[%s1454_s24 + $0x14] sm:$0xf] %vm680_vm1, %v819_v35  ;;  %v463_v23 = vmul.f32 %v1418_v47, %v1266_v37  ;;  %v464_v18 = vmul.f32 %v1418_v47, %v1274_v32  ;;  %v496_v52 = vadd.f32 %v1423_v62, %v457_v55 }
  0xce   : > { %687 = vst.msk [vmem:[%s1454_s24 + $0x18] sm:$0xf] %vm680_vm1, %v820_v40  ;;  %688 = vst.msk [vmem:[%s1454_s24 + $0x1c] sm:$0xf] %vm680_vm1, %v821_v38  ;;  %v497_v34 = vadd.f32 %v1423_v62, %v458_v42  ;;  %v498_v16 = vadd.f32 %v1423_v62, %v459_v43  ;;  %v499_v50 = vadd.f32 %v1423_v62, %v460_v5 }
  0xcf   : > { %v500_v8 = vadd.f32 %v1423_v62, %v461_v54  ;;  %v501_v30 = vadd.f32 %v1423_v62, %v462_v11  ;;  %v502_v25 = vadd.f32 %v1423_v62, %v463_v23  ;;  %v503_v56 = vadd.f32 %v1423_v62, %v464_v18 }
  0xd0   : > { %v528_v37 = vmax.f32 %v496_v52, 0.0  ;;  %v529_v59 = vmax.f32 %v497_v34, 0.0  ;;  %v530_v32 = vmax.f32 %v498_v16, 0.0  ;;  %v531_v17 = vmax.f32 %v499_v50, 0.0 }
  0xd1   : > { %v532_v41 = vmax.f32 %v500_v8, 0.0  ;;  %v533_v19 = vmax.f32 %v501_v30, 0.0  ;;  %v534_v22 = vmax.f32 %v502_v25, 0.0  ;;  %v535_v29 = vmax.f32 %v503_v56, 0.0 }
  0xd2   : > { %v822_v15 = vpack.c.bf16 %v528_v37, %v528_v37  ;;  %v823_v31 = vpack.c.bf16 %v529_v59, %v529_v59  ;;  %v824_v2 = vpack.c.bf16 %v530_v32, %v530_v32  ;;  %v825_v63 = vpack.c.bf16 %v531_v17, %v531_v17 }
  0xd3   : > { %v826_v1 = vpack.c.bf16 %v532_v41, %v532_v41  ;;  %v827_v20 = vpack.c.bf16 %v533_v19, %v533_v19  ;;  %v828_v7 = vpack.c.bf16 %v534_v22, %v534_v22  ;;  %v829_v61 = vpack.c.bf16 %v535_v29, %v535_v29 }
  0xd4   : > { %689 = vst.msk [vmem:[%s1454_s24 + $0x20] sm:$0xf] %vm680_vm1, %v822_v15  ;;  %690 = vst.msk [vmem:[%s1454_s24 + $0x24] sm:$0xf] %vm680_vm1, %v823_v31  ;;  %v465_v26 = vmul.f32 %v1418_v47, %v1282_v44  ;;  %v466_v13 = vmul.f32 %v1418_v47, %v1290_v39  ;;  %v467_v14 = vmul.f32 %v1418_v47, %v1298_v51 }
  0xd5   : > { %691 = vst.msk [vmem:[%s1454_s24 + $0x28] sm:$0xf] %vm680_vm1, %v824_v2  ;;  %692 = vst.msk [vmem:[%s1454_s24 + $0x2c] sm:$0xf] %vm680_vm1, %v825_v63  ;;  %v468_v10 = vmul.f32 %v1418_v47, %v1306_v46  ;;  %v469_v44 = vmul.f32 %v1418_v47, %v1314_v58  ;;  %v470_v39 = vmul.f32 %v1418_v47, %v1322_v53 }
  0xd6   : > { %693 = vst.msk [vmem:[%s1454_s24 + $0x30] sm:$0xf] %vm680_vm1, %v826_v1  ;;  %694 = vst.msk [vmem:[%s1454_s24 + $0x34] sm:$0xf] %vm680_vm1, %v827_v20  ;;  %v471_v51 = vmul.f32 %v1418_v47, %v1330_v9  ;;  %v472_v46 = vmul.f32 %v1418_v47, %v1338_v60  ;;  %v504_v0 = vadd.f32 %v1423_v62, %v465_v26 }
  0xd7   : > { %695 = vst.msk [vmem:[%s1454_s24 + $0x38] sm:$0xf] %vm680_vm1, %v828_v7  ;;  %696 = vst.msk [vmem:[%s1454_s24 + $0x3c] sm:$0xf] %vm680_vm1, %v829_v61  ;;  %v505_v3 = vadd.f32 %v1423_v62, %v466_v13  ;;  %v506_v28 = vadd.f32 %v1423_v62, %v467_v14  ;;  %v507_v48 = vadd.f32 %v1423_v62, %v468_v10 }
  0xd8   : > { %v508_v4 = vadd.f32 %v1423_v62, %v469_v44  ;;  %v509_v58 = vadd.f32 %v1423_v62, %v470_v39  ;;  %v510_v53 = vadd.f32 %v1423_v62, %v471_v51  ;;  %v511_v6 = vadd.f32 %v1423_v62, %v472_v46 }
  0xd9   : > { %v536_v9 = vmax.f32 %v504_v0, 0.0  ;;  %v537_v27 = vmax.f32 %v505_v3, 0.0  ;;  %v538_v60 = vmax.f32 %v506_v28, 0.0  ;;  %v539_v35 = vmax.f32 %v507_v48, 0.0 }
  0xda   : > { %v540_v40 = vmax.f32 %v508_v4, 0.0  ;;  %v541_v38 = vmax.f32 %v509_v58, 0.0  ;;  %v542_v55 = vmax.f32 %v510_v53, 0.0  ;;  %v543_v42 = vmax.f32 %v511_v6, 0.0 }
  0xdb   : > { %v830_v43 = vpack.c.bf16 %v536_v9, %v536_v9  ;;  %v831_v5 = vpack.c.bf16 %v537_v27, %v537_v27  ;;  %v832_v54 = vpack.c.bf16 %v538_v60, %v538_v60  ;;  %v833_v11 = vpack.c.bf16 %v539_v35, %v539_v35 }
  0xdc   : > { %v834_v23 = vpack.c.bf16 %v540_v40, %v540_v40  ;;  %v835_v18 = vpack.c.bf16 %v541_v38, %v541_v38  ;;  %v836_v52 = vpack.c.bf16 %v542_v55, %v542_v55  ;;  %v837_v34 = vpack.c.bf16 %v543_v42, %v543_v42 }
  0xdd   : > { %697 = vst.msk [vmem:[%s1454_s24 + $0x40] sm:$0xf] %vm680_vm1, %v830_v43  ;;  %698 = vst.msk [vmem:[%s1454_s24 + $0x44] sm:$0xf] %vm680_vm1, %v831_v5  ;;  %v473_v16 = vmul.f32 %v1418_v47, %v1346_v21  ;;  %v474_v50 = vmul.f32 %v1418_v47, %v1354_v12  ;;  %v475_v8 = vmul.f32 %v1418_v47, %v1362_v33 }
  0xde   : > { %699 = vst.msk [vmem:[%s1454_s24 + $0x48] sm:$0xf] %vm680_vm1, %v832_v54  ;;  %700 = vst.msk [vmem:[%s1454_s24 + $0x4c] sm:$0xf] %vm680_vm1, %v833_v11  ;;  %v476_v30 = vmul.f32 %v1418_v47, %v1370_v24  ;;  %v477_v21 = vmul.f32 %v1418_v47, %v1378_v45  ;;  %v478_v12 = vmul.f32 %v1418_v47, %v1386_v36 }
  0xdf   : > { %701 = vst.msk [vmem:[%s1454_s24 + $0x50] sm:$0xf] %vm680_vm1, %v834_v23  ;;  %702 = vst.msk [vmem:[%s1454_s24 + $0x54] sm:$0xf] %vm680_vm1, %v835_v18  ;;  %v479_v33 = vmul.f32 %v1418_v47, %v1394_v57  ;;  %v480_v24 = vmul.f32 %v1418_v47, %v1402_v49  ;;  %v512_v25 = vadd.f32 %v1423_v62, %v473_v16 }
  0xe0   : > { %703 = vst.msk [vmem:[%s1454_s24 + $0x58] sm:$0xf] %vm680_vm1, %v836_v52  ;;  %704 = vst.msk [vmem:[%s1454_s24 + $0x5c] sm:$0xf] %vm680_vm1, %v837_v34  ;;  %v513_v56 = vadd.f32 %v1423_v62, %v474_v50  ;;  %v514_v37 = vadd.f32 %v1423_v62, %v475_v8  ;;  %v515_v59 = vadd.f32 %v1423_v62, %v476_v30 }
  0xe1   : > { %v516_v32 = vadd.f32 %v1423_v62, %v477_v21  ;;  %v517_v45 = vadd.f32 %v1423_v62, %v478_v12  ;;  %v518_v36 = vadd.f32 %v1423_v62, %v479_v33  ;;  %v519_v17 = vadd.f32 %v1423_v62, %v480_v24 }
  0xe2   : > { %v544_v57 = vmax.f32 %v512_v25, 0.0  ;;  %v545_v41 = vmax.f32 %v513_v56, 0.0  ;;  %v546_v49 = vmax.f32 %v514_v37, 0.0  ;;  %v547_v47 = vmax.f32 %v515_v59, 0.0 }
  0xe3   : > { %v548_v19 = vmax.f32 %v516_v32, 0.0  ;;  %v549_v22 = vmax.f32 %v517_v45, 0.0  ;;  %v550_v29 = vmax.f32 %v518_v36, 0.0  ;;  %v551_v15 = vmax.f32 %v519_v17, 0.0 }
  0xe4   : > { %v838_v31 = vpack.c.bf16 %v544_v57, %v544_v57  ;;  %v839_v2 = vpack.c.bf16 %v545_v41, %v545_v41  ;;  %v840_v63 = vpack.c.bf16 %v546_v49, %v546_v49  ;;  %v841_v62 = vpack.c.bf16 %v547_v47, %v547_v47 }
  0xe5   : > { %v842_v1 = vpack.c.bf16 %v548_v19, %v548_v19  ;;  %v843_v20 = vpack.c.bf16 %v549_v22, %v549_v22  ;;  %v844_v7 = vpack.c.bf16 %v550_v29, %v550_v29  ;;  %v845_v61 = vpack.c.bf16 %v551_v15, %v551_v15 }
  0xe6   : > { %705 = vst.msk [vmem:[%s1454_s24 + $0x60] sm:$0xf] %vm680_vm1, %v838_v31  ;;  %706 = vst.msk [vmem:[%s1454_s24 + $0x64] sm:$0xf] %vm680_vm1, %v839_v2 }
  0xe7   : > { %707 = vst.msk [vmem:[%s1454_s24 + $0x68] sm:$0xf] %vm680_vm1, %v840_v63  ;;  %708 = vst.msk [vmem:[%s1454_s24 + $0x6c] sm:$0xf] %vm680_vm1, %v841_v62 }
  0xe8   : > { %709 = vst.msk [vmem:[%s1454_s24 + $0x70] sm:$0xf] %vm680_vm1, %v842_v1  ;;  %710 = vst.msk [vmem:[%s1454_s24 + $0x74] sm:$0xf] %vm680_vm1, %v843_v20 }
  0xe9   : > { %711 = vst.msk [vmem:[%s1454_s24 + $0x78] sm:$0xf] %vm680_vm1, %v844_v7  ;;  %712 = vst.msk [vmem:[%s1454_s24 + $0x7c] sm:$0xf] %vm680_vm1, %v845_v61 }
  0xea PF: > { %s13_s12 = sadd.s32 1, %s941_s12  }
  0xeb   : > { %p10_p4 = scmp.ge.s32.totalorder %s13_s12, 4  }
  0xed   :  { %12 = sbr.rel (!%p10_p4) target bundleno = 1 (0x1), region = 62 }

// kernel: confnet_forward.27
= control target key start
LH: loop header
LB: loop body
LE: loop exit
PB: predicated region body
PF: predicated region fallthrough
CT: control target
= control target key end

     0   :  { %s2056_s9 = smov 0   ;;  %s2827_s0 = inlined_call_operand.vmem [shape: bf16[512,288], index: 0, kind: input, shape index: {}]   ;;  %s2828_s1 = inlined_call_operand.vmem [shape: bf16[288,2], index: 1, kind: input, shape index: {}]   ;;  %s2829_s2 = inlined_call_operand.vmem [shape: f32[512,2], index: 2, kind: output, shape index: {}]  }
   0x1 LB: > { %s1539_s10 = sadd.s32 4294967295, %s2039_s9   ;;  %p1543_p0 = scmp.ge.s32.totalorder %s2039_s9, 1  ;;  %s2039_s9 = sphi %s2056_s9, %s12_s9  }
   0x2   : > { %p114_p1 = scmp.lt.s32.totalorder %s2039_s9, 3 }
   0x4   : > { %p115_p2 = pnand %p1543_p0, %p114_p1 }
   0x6   : > { %118 = sbr.rel (%p115_p2) target bundleno = 427 (0x1ab), region = 28 }
   0xb   : > { %v1823_v0 = vld [vmem:[%s2828_s1 + $0x78] sm:$0xff]   ;;  %s1544_s13 = sshll.u32 %s1539_s10, 5  ;;  %v1825_v2 = vld [vmem:[%s2828_s1 + $0x70] sm:$0xff]   ;;  %v1827_v4 = vld [vmem:[%s2828_s1 + $0x68] sm:$0xff]   ;;  %vm599_vm0 = vcmask 261120   ;;  %vm1450_vm2 = vcmask 15360  }
   0xc   : > { %v1824_v1 = vld [vmem:[%s2828_s1 + $0x38] sm:$0xff]   ;;  %1632 = vmatprep.subr.bf16.mxu0 %v1823_v0  ;;  %1798 = vmatprep.subr.bf16.mxu1 %v1823_v0  ;;  %p138_p3 = scmp.lt.s32.totalorder %s1544_s13, 63  ;;  %v1826_v3 = vld [vmem:[%s2828_s1 + $0x30] sm:$0xff]   ;;  %v1828_v5 = vld [vmem:[%s2828_s1 + $0x28] sm:$0xff]  }
   0xd   : > { %1633 = vmatpush3.bf16.msra.mxu0 %v1824_v1  ;;  %1806 = vmatpush3.bf16.msra.mxu1 %v1824_v1  ;;  %v1829_v6 = vld [vmem:[%s2828_s1 + $0x60] sm:$0xff]   ;;  %v1831_v8 = vld [vmem:[%s2828_s1 + $0x58] sm:$0xff]   ;;  %v1833_v10 = vld [vmem:[%s2828_s1 + $0x50] sm:$0xff]  }
   0xe   : > { %1634 = vmatprep.subr.bf16.mxu0 %v1825_v2  ;;  %1799 = vmatprep.subr.bf16.mxu1 %v1825_v2  ;;  %s2891_s13 = smov (!%p138_p3, %s1544_s13), 63  ;;  %v1830_v7 = vld [vmem:[%s2828_s1 + $0x20] sm:$0xff]   ;;  %v1832_v9 = vld [vmem:[%s2828_s1 + $0x18] sm:$0xff]   ;;  %v1834_v13 = vld [vmem:[%s2828_s1 + $0x10] sm:$0xff]  }
   0xf   : > { %s1814_s26 = smul.u32 12, %s2891_s13  ;;  %v1835_v14 = vld [vmem:[%s2828_s1 + $0x48] sm:$0xff]   ;;  %v1837_v16 = vld [vmem:[%s2828_s1 + $0x40] sm:$0xff]  }
  0x10   : > { %v1836_v15 = vld [vmem:[%s2828_s1 + $0x8] sm:$0xff]   ;;  %v1838_v17 = vld [vmem:[%s2828_s1] sm:$0xff]  }
  0x11   : > { %1635 = vmatpush3.bf16.msra.mxu0 %v1826_v3  ;;  %1807 = vmatpush3.bf16.msra.mxu1 %v1826_v3  ;;  %s2097_s5 = scalar_lea.vmem %s2827_s0, %s1814_s26  ;;  %v1845_v18 = vld [vmem:[%s2828_s1 + $0x88] sm:$0xff]   ;;  %v1858_v23 = vld [vmem:[%s2828_s1 + $0x80] sm:$0xff]   ;;  %s1547_s26 = sshll.u32 %s2891_s13, 3 }
  0x12   : > { %1636 = vmatprep.subr.bf16.mxu0 %v1827_v4  ;;  %1800 = vmatprep.subr.bf16.mxu1 %v1827_v4  ;;  %v1841_v11 = vld [vmem:[%s2097_s5 + $0x4] ss:$12 sps:$4 sm:$0xff]   ;;  %v1839_v19 = vld [vmem:[%s2097_s5] ss:$12 sps:$4 sm:$0xff]   ;;  %v1846_v21 = vld [vmem:[%s2097_s5 + $0x1c] ss:$12 sps:$4 sm:$0xff]   ;;  %s2359_s28 = scalar_lea.vmem %s2829_s2, %s1547_s26 }
  0x13   : > { %v1844_v12 = vld [vmem:[%s2097_s5 + $0x124] ss:$12 sps:$4 sm:$0xff]   ;;  %680 = vmatprep.mubr.bf16.mxu0 %v1841_v11  ;;  %v1842_v20 = vld [vmem:[%s2097_s5 + $0x120] ss:$12 sps:$4 sm:$0xff]   ;;  %v1848_v22 = vld [vmem:[%s2097_s5 + $0x13c] ss:$12 sps:$4 sm:$0xff]  }
  0x14   : > { %776 = vmatprep.mubr.bf16.mxu1 %v1844_v12  ;;  %v1850_v24 = vld [vmem:[%s2097_s5 + $0x18] ss:$12 sps:$4 sm:$0xff]   ;;  %v1852_v26 = vld [vmem:[%s2097_s5 + $0x34] ss:$12 sps:$4 sm:$0xff]   ;;  %v1856_v28 = vld [vmem:[%s2097_s5 + $0x30] ss:$12 sps:$4 sm:$0xff]  }
  0x15   : > { %1637 = vmatpush3.bf16.msra.mxu0 %v1828_v5  ;;  %1808 = vmatpush3.bf16.msra.mxu1 %v1828_v5  ;;  %v1851_v25 = vld [vmem:[%s2097_s5 + $0x138] ss:$12 sps:$4 sm:$0xff]   ;;  %v1854_v27 = vld [vmem:[%s2097_s5 + $0x154] ss:$12 sps:$4 sm:$0xff]   ;;  %v1857_v29 = vld [vmem:[%s2097_s5 + $0x150] ss:$12 sps:$4 sm:$0xff]  }
  0x16   : > { %1638 = vmatprep.subr.bf16.mxu0 %v1829_v6  ;;  %1801 = vmatprep.subr.bf16.mxu1 %v1829_v6  ;;  %v1859_v30 = vld [vmem:[%s2097_s5 + $0x4c] ss:$12 sps:$4 sm:$0xff]   ;;  %v1863_v32 = vld [vmem:[%s2097_s5 + $0x48] ss:$12 sps:$4 sm:$0xff]   ;;  %v1865_v34 = vld [vmem:[%s2097_s5 + $0x64] ss:$12 sps:$4 sm:$0xff]  }
  0x17   : > { %v1861_v31 = vld [vmem:[%s2097_s5 + $0x16c] ss:$12 sps:$4 sm:$0xff]   ;;  %v1864_v33 = vld [vmem:[%s2097_s5 + $0x168] ss:$12 sps:$4 sm:$0xff]   ;;  %v1874_v41 = vld [vmem:[%s2097_s5 + $0x50] ss:$12 sps:$4 sm:$0xff]  }
  0x18   : > { %v1867_v35 = vld [vmem:[%s2097_s5 + $0x8] ss:$12 sps:$4 sm:$0xff]   ;;  %v1868_v36 = vld [vmem:[%s2097_s5 + $0x60] ss:$12 sps:$4 sm:$0xff]   ;;  %v1872_v39 = vld [vmem:[%s2097_s5 + $0x38] ss:$12 sps:$4 sm:$0xff]  }
  0x19   : > { %1639 = vmatpush3.bf16.msra.mxu0 %v1830_v7  ;;  %1809 = vmatpush3.bf16.msra.mxu1 %v1830_v7  ;;  %v1869_v37 = vld [vmem:[%s2097_s5 + $0x20] ss:$12 sps:$4 sm:$0xff]   ;;  %v1870_v38 = vld [vmem:[%s2097_s5 + $0x7c] ss:$12 sps:$4 sm:$0xff]   ;;  %v1873_v40 = vld [vmem:[%s2097_s5 + $0x78] ss:$12 sps:$4 sm:$0xff]  }
  0x1a   : > { %1640 = vmatprep.subr.bf16.mxu0 %v1831_v8  ;;  %1802 = vmatprep.subr.bf16.mxu1 %v1831_v8  ;;  %v1875_v42 = vld [vmem:[%s2097_s5 + $0x94] ss:$12 sps:$4 sm:$0xff]   ;;  %v1878_v44 = vld [vmem:[%s2097_s5 + $0x90] ss:$12 sps:$4 sm:$0xff]   ;;  %v1880_v46 = vld [vmem:[%s2097_s5 + $0xac] ss:$12 sps:$4 sm:$0xff]  }
  0x1b   : > { %v1877_v43 = vld [vmem:[%s2097_s5 + $0x68] ss:$12 sps:$4 sm:$0xff]   ;;  %v1879_v45 = vld [vmem:[%s2097_s5 + $0x80] ss:$12 sps:$4 sm:$0xff]   ;;  %v1882_v47 = vld [vmem:[%s2097_s5 + $0x98] ss:$12 sps:$4 sm:$0xff]  }
  0x1c   : > { %v1883_v48 = vld [vmem:[%s2097_s5 + $0xa8] ss:$12 sps:$4 sm:$0xff]   ;;  %v1884_v49 = vld [vmem:[%s2097_s5 + $0xb0] ss:$12 sps:$4 sm:$0xff]   ;;  %v1888_v52 = vld [vmem:[%s2097_s5 + $0xc0] ss:$12 sps:$4 sm:$0xff]  }
  0x1d   : > { %1641 = vmatpush3.bf16.msra.mxu0 %v1832_v9  ;;  %1810 = vmatpush3.bf16.msra.mxu1 %v1832_v9  ;;  %v1885_v50 = vld [vmem:[%s2097_s5 + $0xc4] ss:$12 sps:$4 sm:$0xff]   ;;  %v1887_v51 = vld [vmem:[%s2097_s5 + $0xc8] ss:$12 sps:$4 sm:$0xff]   ;;  %v1889_v53 = vld [vmem:[%s2097_s5 + $0xe0] ss:$12 sps:$4 sm:$0xff]  }
  0x1e   : > { %1642 = vmatprep.subr.bf16.mxu0 %v1833_v10  ;;  %1803 = vmatprep.subr.bf16.mxu1 %v1833_v10  ;;  %v1890_v54 = vld [vmem:[%s2097_s5 + $0xdc] ss:$12 sps:$4 sm:$0xff]   ;;  %v1892_v55 = vld [vmem:[%s2097_s5 + $0xf8] ss:$12 sps:$4 sm:$0xff]   ;;  %v1895_v58 = vld [vmem:[%s2097_s5 + $0xf4] ss:$12 sps:$4 sm:$0xff]  }
  0x1f   : > { %v1893_v56 = vld [vmem:[%s2097_s5 + $0xd8] ss:$12 sps:$4 sm:$0xff]   ;;  %v1894_v57 = vld [vmem:[%s2097_s5 + $0x110] ss:$12 sps:$4 sm:$0xff]   ;;  %v1897_v59 = vld [vmem:[%s2097_s5 + $0x128] ss:$12 sps:$4 sm:$0xff]  }
  0x20   : > { %v1898_v60 = vld [vmem:[%s2097_s5 + $0xf0] ss:$12 sps:$4 sm:$0xff]   ;;  %v1899_v61 = vld [vmem:[%s2097_s5 + $0x140] ss:$12 sps:$4 sm:$0xff]   ;;  %v1902_v63 = vld [vmem:[%s2097_s5 + $0x158] ss:$12 sps:$4 sm:$0xff]  }
  0x21   : > { %1643 = vmatpush3.bf16.msra.mxu0 %v1834_v13  ;;  %1811 = vmatpush3.bf16.msra.mxu1 %v1834_v13  ;;  %v1900_v62 = vld [vmem:[%s2097_s5 + $0x10c] ss:$12 sps:$4 sm:$0xff]   ;;  %v1903_v0 = vld [vmem:[%s2097_s5 + $0x108] ss:$12 sps:$4 sm:$0xff]   ;;  %v1904_v1 = vld [vmem:[%s2097_s5 + $0x170] ss:$12 sps:$4 sm:$0xff]  }
  0x22   : > { %1644 = vmatprep.subr.bf16.mxu0 %v1835_v14  ;;  %1804 = vmatprep.subr.bf16.mxu1 %v1835_v14 }
  0x25   : > { %1645 = vmatpush3.bf16.msra.mxu0 %v1836_v15  ;;  %1812 = vmatpush3.bf16.msra.mxu1 %v1836_v15 }
  0x26   : > { %1646 = vmatprep.subr.bf16.mxu0 %v1837_v16  ;;  %1805 = vmatprep.subr.bf16.mxu1 %v1837_v16 }
  0x29   : > { %1647 = vmatpush3.bf16.msra.mxu0 %v1838_v17  ;;  %1813 = vmatpush3.bf16.msra.mxu1 %v1838_v17 }
  0x2a   : > { %1762 = vmatprep.subr.bf16.mxu1 %v1845_v18 }
  0x2c   : > { %681 = vmatmul.mubr.bf16.vlgmr.msra.gmra.mxu0 %v1839_v19  ;;  %777 = vmatmul.mubr.bf16.vlgmr.msra.gmra.mxu1 %v1842_v20 }
  0x2d   : > { %1763 = vmatpush3.bf16.msra.mxu1 %v1845_v18  ;;  %688 = vmatprep.mubr.bf16.mxu0 %v1846_v21 }
  0x2e   : > { %784 = vmatprep.mubr.bf16.mxu1 %v1848_v22  ;;  %1764 = vmatprep.subr.bf16.mxu1 %v1858_v23 }
  0x31   : > { %1765 = vmatpush3.bf16.msra.mxu1 %v1858_v23 }
  0x34   : > { %689 = vmatmul.mubr.bf16.gmra.mxu0 %v1850_v24  ;;  %785 = vmatmul.mubr.bf16.gmra.mxu1 %v1851_v25 }
  0x35   : > { %696 = vmatprep.mubr.bf16.mxu0 %v1852_v26  ;;  %792 = vmatprep.mubr.bf16.mxu1 %v1854_v27 }
  0x3c   : > { %697 = vmatmul.mubr.bf16.gmra.mxu0 %v1856_v28  ;;  %793 = vmatmul.mubr.bf16.gmra.mxu1 %v1857_v29 }
  0x3d   : > { %704 = vmatprep.mubr.bf16.mxu0 %v1859_v30  ;;  %800 = vmatprep.mubr.bf16.mxu1 %v1861_v31 }
  0x44   : > { %705 = vmatmul.mubr.bf16.gmra.mxu0 %v1863_v32  ;;  %801 = vmatmul.mubr.bf16.gmra.mxu1 %v1864_v33 }
  0x45   : > { %712 = vmatprep.mubr.bf16.mxu0 %v1865_v34  ;;  %1766 = vmatprep.mubr.msk.bf16.mxu1 %vm599_vm0, %v1867_v35 }
  0x4c   : > { %713 = vmatmul.mubr.bf16.gmra.mxu0 %v1868_v36  ;;  %1767 = vmatmul.mubr.msk.bf16.vlgmr.msra.gmra.mxu1 %vm599_vm0, %v1869_v37 }
  0x4d   : > { %720 = vmatprep.mubr.bf16.mxu0 %v1870_v38  ;;  %1770 = vmatprep.mubr.msk.bf16.mxu1 %vm599_vm0, %v1872_v39 }
  0x54   : > { %721 = vmatmul.mubr.bf16.gmra.mxu0 %v1873_v40  ;;  %1771 = vmatmul.mubr.msk.bf16.gmra.mxu1 %vm599_vm0, %v1874_v41 }
  0x55   : > { %728 = vmatprep.mubr.bf16.mxu0 %v1875_v42  ;;  %1774 = vmatprep.mubr.msk.bf16.mxu1 %vm599_vm0, %v1877_v43 }
  0x5c   : > { %729 = vmatmul.mubr.bf16.gmra.mxu0 %v1878_v44  ;;  %1775 = vmatmul.mubr.msk.bf16.gmra.mxu1 %vm599_vm0, %v1879_v45 }
  0x5d   : > { %736 = vmatprep.mubr.bf16.mxu0 %v1880_v46  ;;  %1778 = vmatprep.mubr.msk.bf16.mxu1 %vm599_vm0, %v1882_v47 }
  0x64   : > { %737 = vmatmul.mubr.bf16.gmra.mxu0 %v1883_v48  ;;  %1779 = vmatmul.mubr.msk.bf16.gmra.mxu1 %vm599_vm0, %v1884_v49 }
  0x65   : > { %744 = vmatprep.mubr.bf16.mxu0 %v1885_v50  ;;  %1782 = vmatprep.mubr.msk.bf16.mxu1 %vm599_vm0, %v1887_v51 }
  0x6c   : > { %745 = vmatmul.mubr.bf16.gmra.mxu0 %v1888_v52  ;;  %1783 = vmatmul.mubr.msk.bf16.gmra.mxu1 %vm599_vm0, %v1889_v53 }
  0x6d   : > { %752 = vmatprep.mubr.bf16.mxu0 %v1890_v54  ;;  %1786 = vmatprep.mubr.msk.bf16.mxu1 %vm599_vm0, %v1892_v55 }
  0x74   : > { %753 = vmatmul.mubr.bf16.gmra.mxu0 %v1893_v56  ;;  %1787 = vmatmul.mubr.msk.bf16.gmra.mxu1 %vm599_vm0, %v1894_v57 }
  0x75   : > { %760 = vmatprep.mubr.bf16.mxu0 %v1895_v58  ;;  %1790 = vmatprep.mubr.msk.bf16.mxu1 %vm599_vm0, %v1897_v59 }
  0x7c   : > { %761 = vmatmul.mubr.bf16.gmra.mxu0 %v1898_v60  ;;  %1791 = vmatmul.mubr.msk.bf16.gmra.mxu1 %vm599_vm0, %v1899_v61 }
  0x7d   : > { %768 = vmatprep.mubr.bf16.mxu0 %v1900_v62  ;;  %1794 = vmatprep.mubr.msk.bf16.mxu1 %vm599_vm0, %v1902_v63 }
  0x84   : > { %769 = vmatmul.mubr.bf16.gmra.mxu0 %v1903_v0  ;;  %1795 = vmatmul.mubr.msk.bf16.gmra.mxu1 %vm599_vm0, %v1904_v1 }
  0xec   : > { %v1648_v2 = vpop.f32.mrf.mxu0  ;;  %v1720_v3 = vpop.f32.mrf.mxu1 }
  0xee   : > { %v1649_v4 = vpop.f32.mrf.mxu0  ;;  %v1721_v5 = vpop.f32.mrf.mxu1 }
  0xef   : > { %v2190_v6 = vadd.f32 %v1721_v5, %v1720_v3  ;;  %v1650_v45 = vadd.f32 %v1649_v4, %v1648_v2 }
  0xf0   : > { %v1651_v7 = vpop.f32.mrf.mxu0  ;;  %v1723_v8 = vpop.f32.mrf.mxu1 }
  0xf2   : > { %v1652_v9 = vpop.f32.mrf.mxu0  ;;  %v1724_v10 = vpop.f32.mrf.mxu1 }
  0xf3   : > { %v2192_v11 = vadd.f32 %v1724_v10, %v1723_v8  ;;  %v1653_v57 = vadd.f32 %v1652_v9, %v1651_v7 }
  0xf4   : > { %v1654_v12 = vpop.f32.mrf.mxu0  ;;  %v1726_v13 = vpop.f32.mrf.mxu1 }
  0xf5   : > { %2830 = vst [vmem:[#allocation2_spill] sm:$0xff] %v2192_v11 }
  0xf6   : > { %v1655_v14 = vpop.f32.mrf.mxu0  ;;  %v1727_v15 = vpop.f32.mrf.mxu1 }
  0xf7   : > { %v2194_v16 = vadd.f32 %v1727_v15, %v1726_v13  ;;  %v1656_v41 = vadd.f32 %v1655_v14, %v1654_v12 }
  0xf8   : > { %v1657_v17 = vpop.f32.mrf.mxu0  ;;  %v1729_v18 = vpop.f32.mrf.mxu1 }
  0xfa   : > { %v1658_v19 = vpop.f32.mrf.mxu0  ;;  %v1730_v20 = vpop.f32.mrf.mxu1 }
  0xfb   : > { %v2196_v21 = vadd.f32 %v1730_v20, %v1729_v18  ;;  %v1659_v49 = vadd.f32 %v1658_v19, %v1657_v17 }
  0xfc   : > { %v1660_v22 = vpop.f32.mrf.mxu0  ;;  %v1732_v23 = vpop.f32.mrf.mxu1 }
  0xfe   : > { %v1661_v24 = vpop.f32.mrf.mxu0  ;;  %v1733_v25 = vpop.f32.mrf.mxu1 }
  0xff   : > { %v2198_v26 = vadd.f32 %v1733_v25, %v1732_v23  ;;  %v1662_v8 = vadd.f32 %v1661_v24, %v1660_v22 }
 0x100   : > { %v1663_v27 = vpop.f32.mrf.mxu0  ;;  %v1735_v28 = vpop.f32.mrf.mxu1 }
 0x101   : > { %2831 = vst [vmem:[#allocation3_spill] sm:$0xff] %v2198_v26 }
 0x102   : > { %v1664_v29 = vpop.f32.mrf.mxu0  ;;  %v1736_v30 = vpop.f32.mrf.mxu1 }
 0x103   : > { %v2200_v31 = vadd.f32 %v1736_v30, %v1735_v28  ;;  %v1665_v25 = vadd.f32 %v1664_v29, %v1663_v27 }
 0x104   : > { %v1666_v32 = vpop.f32.mrf.mxu0  ;;  %v1738_v33 = vpop.f32.mrf.mxu1 }
 0x105   : > { %2832 = vst [vmem:[#allocation4_spill] sm:$0xff] %v2200_v31 }
 0x106   : > { %v1667_v34 = vpop.f32.mrf.mxu0  ;;  %v1739_v35 = vpop.f32.mrf.mxu1 }
 0x107   : > { %v2202_v36 = vadd.f32 %v1739_v35, %v1738_v33  ;;  %v1668_v60 = vadd.f32 %v1667_v34, %v1666_v32 }
 0x108   : > { %v1669_v37 = vpop.f32.mrf.mxu0  ;;  %v1741_v38 = vpop.f32.mrf.mxu1 }
 0x109   : > { %2833 = vst [vmem:[#allocation5_spill] sm:$0xff] %v2202_v36 }
 0x10a   : > { %v1670_v39 = vpop.f32.mrf.mxu0  ;;  %v1742_v40 = vpop.f32.mrf.mxu1 }
 0x10b   : > { %v2204_v42 = vadd.f32 %v1742_v40, %v1741_v38  ;;  %v1671_v12 = vadd.f32 %v1670_v39, %v1669_v37 }
 0x10c   : > { %v1672_v43 = vpop.f32.mrf.mxu0  ;;  %v1768_v44 = vpop.f32.mrf.mxu1 }
 0x10d   : > { %2834 = vst [vmem:[#allocation6_spill] sm:$0xff] %v2204_v42  ;;  %v2206_v46 = vadd.f32 %v1768_v44, %v1656_v41 }
 0x10e   : > { %v1673_v47 = vpop.f32.mrf.mxu0  ;;  %v843_v48 = vpop.f32.mrf.mxu1 }
 0x10f   : > { %v1004_v50 = vand.u32 2147483647, %v2206_v46  ;;  %v2209_v51 = vadd.f32 %v1650_v45, %v843_v48  ;;  %v1674_v27 = vadd.f32 %v1673_v47, %v1672_v43 }
 0x110   : > { %v2211_v52 = vpop.f32.mrf.mxu0  ;;  %v1769_v53 = vpop.f32.mrf.mxu1 }
 0x111   : > { %v1036_v54 = vsub.f32 0.0, %v1004_v50  ;;  %v1002_v55 = vand.u32 2147483647, %v2209_v51  ;;  %v2214_v56 = vadd.f32 %v1769_v53, %v1659_v49 }
 0x112   : > { %v2216_v58 = vpop.f32.mrf.mxu0  ;;  %v846_v59 = vpop.f32.mrf.mxu1 }
 0x113   : > { %v1070_v61 = vmul.f32 1.442695, %v1036_v54  ;;  %v1034_v62 = vsub.f32 0.0, %v1002_v55  ;;  %v1005_v63 = vand.u32 2147483647, %v2214_v56  ;;  %v2219_v0 = vadd.f32 %v1653_v57, %v846_v59 }
 0x114   : > { %v1678_v1 = vpop.f32.mrf.mxu0  ;;  %v1772_v2 = vpop.f32.mrf.mxu1 }
 0x115   : > { %1905 = vpow2.f32 %v1070_v61  ;;  %v1066_v3 = vmul.f32 1.442695, %v1034_v62  ;;  %v1037_v4 = vsub.f32 0.0, %v1005_v63  ;;  %v2221_v5 = vadd.f32 %v1772_v2, %v1668_v60 }
 0x116   : > { %v1003_v7 = vand.u32 2147483647, %v2219_v0  ;;  %v1679_v9 = vpop.f32.mrf.mxu0  ;;  %v859_v10 = vpop.f32.mrf.mxu1 }
 0x117   : > { %1907 = vpow2.f32 %v1066_v3  ;;  %v1072_v13 = vmul.f32 1.442695, %v1037_v4  ;;  %v1008_v14 = vand.u32 2147483647, %v2221_v5  ;;  %v2225_v17 = vadd.f32 %v1662_v8, %v859_v10 }
 0x118   : > { %v1035_v15 = vsub.f32 0.0, %v1003_v7  ;;  %v1681_v18 = vpop.f32.mrf.mxu0  ;;  %v1773_v19 = vpop.f32.mrf.mxu1  ;;  %v1680_v33 = vadd.f32 %v1679_v9, %v1678_v1 }
 0x119   : > { %1909 = vpow2.f32 %v1072_v13  ;;  %v1040_v20 = vsub.f32 0.0, %v1008_v14  ;;  %v2227_v23 = vadd.f32 %v1773_v19, %v1671_v12  ;;  %v1006_v24 = vand.u32 2147483647, %v2225_v17 }
 0x11a   : > { %v1068_v22 = vmul.f32 1.442695, %v1035_v15  ;;  %v1682_v28 = vpop.f32.mrf.mxu0  ;;  %v862_v30 = vpop.f32.mrf.mxu1  ;;  %v2266_v19 = vadd.f32 %v2216_v58, %v2211_v52 }
 0x11b   : > { %v1078_v32 = vmul.f32 1.442695, %v1040_v20  ;;  %v1009_v34 = vand.u32 2147483647, %v2227_v23  ;;  %v1038_v35 = vsub.f32 0.0, %v1006_v24  ;;  %v2231_v37 = vadd.f32 %v1665_v25, %v862_v30 }
 0x11c   : > { %1911 = vpow2.f32 %v1068_v22  ;;  %v2233_v38 = vpop.f32.mrf.mxu0  ;;  %v1776_v39 = vpop.f32.mrf.mxu1  ;;  %v1683_v59 = vadd.f32 %v1682_v28, %v1681_v18 }
 0x11d   : > { %1913 = vpow2.f32 %v1078_v32  ;;  %v1041_v40 = vsub.f32 0.0, %v1009_v34  ;;  %v2235_v41 = vadd.f32 %v1776_v39, %v1680_v33  ;;  %v1074_v29 = vmul.f32 1.442695, %v1038_v35 }
 0x11e   : > { %v1007_v44 = vand.u32 2147483647, %v2231_v37  ;;  %v2238_v45 = vpop.f32.mrf.mxu0  ;;  %v875_v48 = vpop.f32.mrf.mxu1 }
 0x11f   : > { %v1080_v49 = vmul.f32 1.442695, %v1041_v40  ;;  %v1012_v50 = vand.u32 2147483647, %v2235_v41  ;;  %1915 = vpow2.f32 %v1074_v29  ;;  %v2241_v54 = vadd.f32 %v1674_v27, %v875_v48 }
 0x120   : > { %v1039_v53 = vsub.f32 0.0, %v1007_v44  ;;  %v2243_v55 = vpop.f32.mrf.mxu0  ;;  %v1777_v57 = vpop.f32.mrf.mxu1 }
 0x121   : > { %1917 = vpow2.f32 %v1080_v49  ;;  %v1044_v60 = vsub.f32 0.0, %v1012_v50  ;;  %v1010_v61 = vand.u32 2147483647, %v2241_v54  ;;  %v2250_v3 = vadd.f32 %v1777_v57, %v1683_v59 }
 0x122   : > { %v1906_v43 = vpop.eup %1905  ;;  %v1076_v47 = vmul.f32 1.442695, %v1039_v53  ;;  %v2246_v62 = vpop.f32.mrf.mxu0 }
 0x123   : > { %v2248_v63 = vpop.f32.mrf.mxu1  ;;  %v1148_v1 = vadd.f32 1.0, %v1906_v43  ;;  %v1086_v2 = vmul.f32 1.442695, %v1044_v60  ;;  %v1042_v7 = vsub.f32 0.0, %v1010_v61  ;;  %v1151_v12 = vmul.f32 -0.5, %v1906_v43 }
 0x124   : > { %v2252_v4 = vpop.eup %1907  ;;  %1919 = vpow2.f32 %v1076_v47  ;;  %v2255_v9 = vpop.f32.mrf.mxu0  ;;  %v1013_v30 = vand.u32 2147483647, %v2250_v3  ;;  %v1154_v40 = vand.u32 2147483647, %v1906_v43 }
 0x125   : > { %v2257_v10 = vpop.f32.mrf.mxu1  ;;  %1921 = vlog2.f32 %v1148_v1  ;;  %v1130_v14 = vadd.f32 1.0, %v2252_v4  ;;  %v1082_v20 = vmul.f32 1.442695, %v1042_v7  ;;  %v1133_v32 = vmul.f32 -0.5, %v2252_v4 }
 0x126   : > { %v2261_v15 = vpop.eup %1909  ;;  %1923 = vpow2.f32 %v1086_v2  ;;  %v2268_v25 = vpop.f32.mrf.mxu0  ;;  %v1152_v39 = vadd.f32 1.0, %v1151_v12  ;;  %v1136_v44 = vand.u32 2147483647, %v2252_v4  ;;  %v1045_v61 = vsub.f32 0.0, %v1013_v30 }
 0x127   : > { %v2270_v22 = vpop.f32.mrf.mxu1  ;;  %1925 = vlog2.f32 %v1130_v14  ;;  %v1157_v24 = vadd.f32 1.0, %v2261_v15  ;;  %v1160_v48 = vmul.f32 -0.5, %v2261_v15  ;;  %v1134_v1 = vadd.f32 1.0, %v1133_v32 }
 0x128   : > { %1927 = vpow2.f32 %v1082_v20  ;;  %v2278_v58 = vpop.f32.mrf.mxu0  ;;  %v2296_v2 = vadd.f32 %v2238_v45, %v2233_v38  ;;  %vm2305_vm1 = vcmp.lt.f32.partialorder %v1154_v40, 0.0004427343  ;;  %v1163_v30 = vand.u32 2147483647, %v2261_v15 }
 0x129   : > { %v2280_v34 = vpop.f32.mrf.mxu1  ;;  %v1912_v35 = vpop.eup %1911  ;;  %1929 = vlog2.f32 %v1157_v24  ;;  %v1153_v24 = vmul.f32 %v1906_v43, %v1152_v39  ;;  %vm2310_vm3 = vcmp.lt.f32.partialorder %v1136_v44, 0.0004427343  ;;  %v1161_v45 = vadd.f32 1.0, %v1160_v48 }
 0x12a   : > { %v2283_v29 = vpop.eup %1913  ;;  %v1139_v49 = vadd.f32 1.0, %v1912_v35  ;;  %v1142_v50 = vmul.f32 -0.5, %v1912_v35  ;;  %v2287_v53 = vpop.f32.mrf.mxu0  ;;  %v1145_v40 = vand.u32 2147483647, %v1912_v35  ;;  %v1088_v52 = vmul.f32 1.442695, %v1045_v61 }
 0x12b   : > { %v2289_v57 = vpop.f32.mrf.mxu1  ;;  %v1184_v59 = vadd.f32 1.0, %v2283_v29  ;;  %v1187_v7 = vmul.f32 -0.5, %v2283_v29  ;;  %v1135_v44 = vmul.f32 %v2252_v4, %v1134_v1  ;;  %v2324_v48 = vadd.f32 %v2246_v62, %v2243_v55 }
 0x12c   : > { %1931 = vlog2.f32 %v1139_v49  ;;  %v2299_v12 = vpop.f32.mrf.mxu0  ;;  %v2303_v20 = vpop.eup %1915  ;;  %v1143_v49 = vadd.f32 1.0, %v1142_v50  ;;  %vm2328_vm4 = vcmp.lt.f32.partialorder %v1163_v30, 0.0004427343  ;;  %v1190_v18 = vand.u32 2147483647, %v2283_v29 }
 0x12d   : > { %v2301_v14 = vpop.f32.mrf.mxu1  ;;  %1933 = vlog2.f32 %v1184_v59  ;;  %v1166_v47 = vadd.f32 1.0, %v2303_v20  ;;  %v1169_v27 = vmul.f32 -0.5, %v2303_v20  ;;  %v2335_v61 = vadd.f32 %v2266_v19, %v2248_v63 }
 0x12e   : > { %v1918_v32 = vpop.eup %1917  ;;  %v2316_v43 = vpop.f32.mrf.mxu0  ;;  %v2339_v1 = vmul.f32 %v1912_v35, %v1143_v49  ;;  %v1188_v55 = vadd.f32 1.0, %v1187_v7  ;;  %vm2348_vm5 = vcmp.lt.f32.partialorder %v1145_v40, 0.0004427343  ;;  %v1172_v19 = vand.u32 2147483647, %v2303_v20 }
 0x12f   : > { %v2318_v39 = vpop.f32.mrf.mxu1  ;;  %v1193_v59 = vadd.f32 1.0, %v1918_v32  ;;  %1935 = vlog2.f32 %v1166_v47  ;;  %v1196_v33 = vmul.f32 -0.5, %v1918_v32  ;;  %v1162_v47 = vmul.f32 %v2261_v15, %v1161_v45 }
 0x130   : > { %v2342_v30 = vpop.f32.mrf.mxu0  ;;  %v1170_v63 = vadd.f32 1.0, %v1169_v27  ;;  %v1199_v7 = vand.u32 2147483647, %v1918_v32  ;;  %vm2363_vm6 = vcmp.lt.f32.partialorder %v1190_v18, 0.0004427343  ;;  %v1189_v26 = vmul.f32 %v2283_v29, %v1188_v55 }
 0x131   : > { %v2326_v50 = vpop.eup %1919  ;;  %1937 = vlog2.f32 %v1193_v59  ;;  %v2344_v13 = vpop.f32.mrf.mxu1  ;;  %v1197_v35 = vadd.f32 1.0, %v1196_v33  ;;  %v1011_v33 = vand.u32 2147483647, %v2335_v61  ;;  %vm2378_vm7 = vcmp.lt.f32.partialorder %v1172_v19, 0.0004427343 }
 0x132   : > { %v1922_v4 = vpop.eup %1921  ;;  %v1175_v62 = vadd.f32 1.0, %v2326_v50  ;;  %1939 = vpow2.f32 %v1088_v52  ;;  %v1178_v36 = vmul.f32 -0.5, %v2326_v50  ;;  %v2372_v11 = vpop.f32.mrf.mxu0  ;;  %v2848_v55 = vmax.f32 %v2209_v51, 0.0 }
 0x133   : > { %v2346_v8 = vpop.eup %1923  ;;  %v1150_v59 = vmul.f32 0.6931472, %v1922_v4  ;;  %v2374_v60 = vpop.f32.mrf.mxu1  ;;  %vm2389_vm8 = vcmp.lt.f32.partialorder %v1199_v7, 0.0004427343  ;;  %v2851_v51 = vmax.f32 %v2214_v56, 0.0  ;;  %v2415_v56 = vadd.f32 %v2296_v2, %v2270_v22 }
 0x134   : > { %v1926_v15 = vpop.eup %1925  ;;  %1941 = vlog2.f32 %v1175_v62  ;;  %v1220_v45 = vadd.f32 1.0, %v2346_v8  ;;  %v2845_v62 = vmax.f32 %v2206_v46, 0.0  ;;  %v1181_v46 = vand.u32 2147483647, %v2326_v50  ;;  %v2402_v7 = vpop.f32.mrf.mxu0 }
 0x135   : > { %v2354_v49 = vpop.eup %1927  ;;  %v1156_v40 = vsel %vm2305_vm1, %v1153_v24, %v1150_v59  ;;  %v1132_v27 = vmul.f32 0.6931472, %v1926_v15  ;;  %v2404_v28 = vpop.f32.mrf.mxu1  ;;  %v2432_v31 = vadd.f32 %v2324_v48, %v2289_v57  ;;  %v1014_v57 = vand.u32 2147483647, %v2415_v56 }
 0x136   : > { %v1930_v4 = vpop.eup %1929  ;;  %v1420_v42 = vadd.f32 %v1156_v40, %v2845_v62  ;;  %1943 = vlog2.f32 %v1220_v45  ;;  %v1202_v29 = vadd.f32 1.0, %v2354_v49  ;;  %v1171_v45 = vmul.f32 %v2303_v20, %v1170_v63 }
 0x137   : > { %v1138_v18 = vsel %vm2310_vm3, %v1135_v44, %v1132_v27  ;;  %v1159_v24 = vmul.f32 0.6931472, %v1930_v4  ;;  %v1198_v40 = vmul.f32 %v1918_v32, %v1197_v35  ;;  %v1043_v27 = vsub.f32 0.0, %v1011_v33 }
 0x138   : > { %1453 = vst.msk [vmem:[%s2359_s28 + $0x10] sm:$0xff] %vm1450_vm2, %v1420_v42  ;;  %v1418_v15 = vadd.f32 %v1138_v18, %v2848_v55  ;;  %1945 = vlog2.f32 %v1202_v29  ;;  %v1692_v42 = vadd.f32 %v2268_v25, %v2255_v9  ;;  %v1179_v63 = vadd.f32 1.0, %v1178_v36 }
 0x139   : > { %v1932_v44 = vpop.eup %1931  ;;  %v1165_v19 = vsel %vm2328_vm4, %v1162_v47, %v1159_v24  ;;  %v1223_v35 = vmul.f32 -0.5, %v2346_v8  ;;  %vm2406_vm9 = vcmp.lt.f32.partialorder %v1181_v46, 0.0004427343  ;;  %v1084_v9 = vmul.f32 1.442695, %v1043_v27 }
 0x13a   : > { %v1934_v4 = vpop.eup %1933  ;;  %1451 = vst.msk [vmem:[%s2359_s28] sm:$0xff] %vm1450_vm2, %v1418_v15  ;;  %v1421_v20 = vadd.f32 %v1165_v19, %v2851_v51  ;;  %v1141_v32 = vmul.f32 0.6931472, %v1932_v44  ;;  %v2411_v25 = vadd.f32 %v2257_v10, %v1692_v42  ;;  %v1226_v62 = vand.u32 2147483647, %v2346_v8 }
 0x13b   : > { %v1186_v47 = vmul.f32 0.6931472, %v1934_v4  ;;  %v1205_v18 = vmul.f32 -0.5, %v2354_v49  ;;  %v1695_v24 = vadd.f32 %v2287_v53, %v2278_v58  ;;  %v2854_v46 = vmax.f32 %v2219_v0, 0.0  ;;  %v1703_v53 = vpop.f32.mrf.mxu0  ;;  %v2437_v0 = vpop.f32.mrf.mxu1 }
 0x13c   : > { %1454 = vst.msk [vmem:[%s2359_s28 + $0x18] sm:$0xff] %vm1450_vm2, %v1421_v20  ;;  %v1147_v36 = vsel %vm2348_vm5, %v2339_v1, %v1141_v32  ;;  %v1936_v10 = vpop.eup %1935  ;;  %1947 = vpow2.f32 %v1084_v9  ;;  %v2855_v1 = vmax.f32 %v2221_v5, 0.0  ;;  %v1224_v44 = vadd.f32 1.0, %v1223_v35 }
 0x13d   : > { %v1419_v29 = vadd.f32 %v1147_v36, %v2854_v46  ;;  %v1192_v22 = vsel %vm2363_vm6, %v1189_v26, %v1186_v47  ;;  %v1168_v15 = vmul.f32 0.6931472, %v1936_v10  ;;  %v1016_v58 = vand.u32 2147483647, %v2411_v25  ;;  %v1705_v36 = vpop.f32.mrf.mxu0 }
 0x13e   : > { %v1938_v2 = vpop.eup %1937  ;;  %v1424_v55 = vadd.f32 %v1192_v22, %v2855_v1  ;;  %v1180_v52 = vmul.f32 %v2326_v50, %v1179_v63  ;;  %v1208_v19 = vand.u32 2147483647, %v2354_v49  ;;  %v1206_v27 = vadd.f32 1.0, %v1205_v18  ;;  %v2463_v18 = vpop.f32.mrf.mxu1 }
 0x13f   : > { %1452 = vst.msk [vmem:[%s2359_s28 + $0x8] sm:$0xff] %vm1450_vm2, %v1419_v29  ;;  %v1195_v26 = vmul.f32 0.6931472, %v1938_v2  ;;  %v2444_v48 = vpop.eup %1939  ;;  %v1174_v5 = vsel %vm2378_vm7, %v1171_v45, %v1168_v15  ;;  %v1048_v42 = vsub.f32 0.0, %v1016_v58  ;;  %v2451_v4 = vadd.f32 %v2280_v34, %v1695_v24  ;;  %v1706_v15 = vpop.f32.mrf.mxu0 }
 0x140   : > { %1457 = vst.msk [vmem:[%s2359_s28 + $0x30] sm:$0xff] %vm1450_vm2, %v1424_v55  ;;  %v2856_v50 = vmax.f32 %v2225_v17, 0.0  ;;  %v1229_v63 = vadd.f32 1.0, %v2444_v48  ;;  %v1015_v35 = vand.u32 2147483647, %v2432_v31  ;;  %v2857_v59 = vmax.f32 %v2227_v23, 0.0 }
 0x141   : > { %v1942_v51 = vpop.eup %1941  ;;  %v1201_v32 = vsel %vm2389_vm8, %v1198_v40, %v1195_v26  ;;  %v1094_v9 = vmul.f32 1.442695, %v1048_v42  ;;  %v1698_v34 = vadd.f32 %v2316_v43, %v2299_v12  ;;  %v1225_v40 = vmul.f32 %v2346_v8, %v1224_v44 }
 0x142   : > { %v1422_v20 = vadd.f32 %v1174_v5, %v2856_v50  ;;  %v1425_v45 = vadd.f32 %v1201_v32, %v2857_v59  ;;  %v1177_v47 = vmul.f32 0.6931472, %v1942_v51  ;;  %vm2468_vm10 = vcmp.lt.f32.partialorder %v1226_v62, 0.0004427343 }
 0x143   : > { %v1944_v17 = vpop.eup %1943  ;;  %1949 = vlog2.f32 %v1229_v63  ;;  %v1046_v23 = vsub.f32 0.0, %v1014_v57  ;;  %vm2476_vm11 = vcmp.lt.f32.partialorder %v1208_v19, 0.0004427343  ;;  %v2862_v8 = vmax.f32 %v2231_v37, 0.0  ;;  %v2491_v37 = vpop.f32.mrf.mxu1 }
 0x144   : > { %1455 = vst.msk [vmem:[%s2359_s28 + $0x20] sm:$0xff] %vm1450_vm2, %v1422_v20  ;;  %1458 = vst.msk [vmem:[%s2359_s28 + $0x38] sm:$0xff] %vm1450_vm2, %v1425_v45  ;;  %v1183_v12 = vsel %vm2406_vm9, %v1180_v52, %v1177_v47  ;;  %v1222_v43 = vmul.f32 0.6931472, %v1944_v17  ;;  %1951 = vpow2.f32 %v1094_v9  ;;  %v1207_v10 = vmul.f32 %v2354_v49, %v1206_v27  ;;  %v1708_v9 = vpop.f32.mrf.mxu0 }
 0x145   : > { %v1423_v62 = vadd.f32 %v1183_v12, %v2862_v8  ;;  %v1090_v46 = vmul.f32 1.442695, %v1046_v23  ;;  %v1017_v29 = vand.u32 2147483647, %v2451_v4  ;;  %v1946_v22 = vpop.eup %1945  ;;  %v1047_v2 = vsub.f32 0.0, %v1015_v35  ;;  %v1792_v20 = vpop.f32.mrf.mxu1 }
 0x146   : > { %v1228_v33 = vsel %vm2468_vm10, %v1225_v40, %v1222_v43  ;;  %v2487_v1 = vadd.f32 %v1698_v34, %v2318_v39  ;;  %v1701_v55 = vadd.f32 %v2372_v11, %v2342_v30  ;;  %v2863_v49 = vmax.f32 %v2235_v41, 0.0 }
 0x147   : > { %1456 = vst.msk [vmem:[%s2359_s28 + $0x28] sm:$0xff] %vm1450_vm2, %v1423_v62  ;;  %v1204_v58 = vmul.f32 0.6931472, %v1946_v22  ;;  %1953 = vpow2.f32 %v1090_v46  ;;  %v1049_v26 = vsub.f32 0.0, %v1017_v29  ;;  %v1232_v52 = vmul.f32 -0.5, %v2444_v48 }
 0x148   : > { %v1428_v44 = vadd.f32 %v1228_v33, %v2863_v49  ;;  %v1092_v19 = vmul.f32 1.442695, %v1047_v2  ;;  %v1018_v39 = vand.u32 2147483647, %v2487_v1  ;;  %v2500_v57 = vadd.f32 %v1701_v55, %v2374_v60 }
 0x149   : > { %v1210_v11 = vsel %vm2476_vm11, %v1207_v10, %v1204_v58  ;;  %v1096_v30 = vmul.f32 1.442695, %v1049_v26  ;;  %v1704_v41 = vadd.f32 %v1703_v53, %v2402_v7  ;;  %v1707_v5 = vadd.f32 %v1706_v15, %v1705_v36  ;;  %v2507_v27 = vpop.eup %1947  ;;  %v1709_v10 = vpop.f32.mrf.mxu0 }
 0x14a   : > { %1461 = vst.msk [vmem:[%s2359_s28 + $0x50] sm:$0xff] %vm1450_vm2, %v1428_v44  ;;  %v2864_v42 = vmax.f32 %v2241_v54, 0.0  ;;  %1955 = vpow2.f32 %v1092_v19  ;;  %v1050_v50 = vsub.f32 0.0, %v1018_v39  ;;  %v1211_v60 = vadd.f32 1.0, %v2507_v27  ;;  %v939_v26 = vpop.f32.mrf.mxu1 }
 0x14b   : > { %1957 = vpow2.f32 %v1096_v30  ;;  %v1019_v63 = vand.u32 2147483647, %v2500_v57  ;;  %v2516_v35 = vadd.f32 %v2301_v14, %v1704_v41  ;;  %v2519_v7 = vadd.f32 %v2344_v13, %v1707_v5 }
 0x14c   : > { %v1426_v51 = vadd.f32 %v1210_v11, %v2864_v42  ;;  %v1098_v32 = vmul.f32 1.442695, %v1050_v50  ;;  %v1233_v53 = vadd.f32 1.0, %v1232_v52  ;;  %1959 = vlog2.f32 %v1211_v60 }
 0x14d   : > { %v2522_v54 = vadd.f32 %v1792_v20, %v2194_v16  ;;  %v1235_v59 = vand.u32 2147483647, %v2444_v48  ;;  %v1051_v45 = vsub.f32 0.0, %v1019_v63  ;;  %v1020_v47 = vand.u32 2147483647, %v2516_v35 }
 0x14e   : > { %1459 = vst.msk [vmem:[%s2359_s28 + $0x40] sm:$0xff] %vm1450_vm2, %v1426_v51  ;;  %1961 = vpow2.f32 %v1098_v32  ;;  %v981_v34 = vmax.f32 %v2250_v3, 0.0  ;;  %v979_v14 = vmax.f32 %v2335_v61, 0.0  ;;  %v1021_v36 = vand.u32 2147483647, %v2519_v7 }
 0x14f   : > { %v1214_v17 = vmul.f32 -0.5, %v2507_v27  ;;  %v1100_v40 = vmul.f32 1.442695, %v1051_v45  ;;  %v1052_v38 = vsub.f32 0.0, %v1020_v47  ;;  %v1028_v16 = vand.u32 2147483647, %v2522_v54 }
 0x150   : > { %v1950_v13 = vpop.eup %1949  ;;  %v1234_v43 = vmul.f32 %v2444_v48, %v1233_v53  ;;  %v984_v24 = vmax.f32 %v2411_v25, 0.0  ;;  %v1053_v8 = vsub.f32 0.0, %v1021_v36  ;;  %vm1236_vm12 = vcmp.lt.f32.partialorder %v1235_v59, 0.0004427343  ;;  %v1793_v59 = vpop.f32.mrf.mxu1 }
 0x151   : > { %v2531_v23 = vpop.eup %1951  ;;  %v1231_v12 = vmul.f32 0.6931472, %v1950_v13  ;;  %v1217_v3 = vand.u32 2147483647, %v2507_v27  ;;  %1963 = vpow2.f32 %v1100_v40  ;;  %v1102_v29 = vmul.f32 1.442695, %v1052_v38 }
 0x152   : > { %v1256_v62 = vadd.f32 1.0, %v2531_v23  ;;  %v1104_v22 = vmul.f32 1.442695, %v1053_v8  ;;  %v1060_v33 = vsub.f32 0.0, %v1028_v16  ;;  %v1215_v15 = vadd.f32 1.0, %v1214_v17 }
 0x153   : > { %v1237_v46 = vsel %vm1236_vm12, %v1234_v43, %v1231_v12  ;;  %v982_v48 = vmax.f32 %v2415_v56, 0.0  ;;  %v983_v44 = vmax.f32 %v2432_v31, 0.0  ;;  %v1710_v58 = vadd.f32 %v1709_v10, %v1708_v9 }
 0x154   : > { %v2537_v2 = vpop.eup %1953  ;;  %v1429_v55 = vadd.f32 %v1237_v46, %v981_v34  ;;  %1965 = vlog2.f32 %v1256_v62  ;;  %v985_v52 = vmax.f32 %v2451_v4, 0.0  ;;  %v986_v19 = vmax.f32 %v2487_v1, 0.0  ;;  %v1711_v46 = vpop.f32.mrf.mxu0 }
 0x155   : > { %v1238_v49 = vadd.f32 1.0, %v2537_v2  ;;  %1967 = vpow2.f32 %v1102_v29  ;;  %v1118_v39 = vmul.f32 1.442695, %v1060_v33  ;;  %vm2546_vm13 = vcmp.lt.f32.partialorder %v1217_v3, 0.0004427343  ;;  %v942_v62 = vpop.f32.mrf.mxu1 }
 0x156   : > { %1462 = vst.msk [vmem:[%s2359_s28 + $0x58] sm:$0xff] %vm1450_vm2, %v1429_v55  ;;  %1969 = vpow2.f32 %v1104_v22  ;;  %v1259_v41 = vmul.f32 -0.5, %v2531_v23  ;;  %v987_v5 = vmax.f32 %v2500_v57, 0.0  ;;  %v1216_v51 = vmul.f32 %v2507_v27, %v1215_v15 }
 0x157   : > { %v1956_v11 = vpop.eup %1955  ;;  %1971 = vlog2.f32 %v1238_v49  ;;  %v988_v20 = vmax.f32 %v2516_v35, 0.0  ;;  %v1241_v60 = vmul.f32 -0.5, %v2537_v2  ;;  %v989_v63 = vmax.f32 %v2519_v7, 0.0 }
 0x158   : > { %v1958_v42 = vpop.eup %1957  ;;  %v1247_v50 = vadd.f32 1.0, %v1956_v11  ;;  %1973 = vpow2.f32 %v1118_v39  ;;  %v2557_v53 = vadd.f32 %v1710_v58, %v2437_v0  ;;  %v1262_v47 = vand.u32 2147483647, %v2531_v23 }
 0x159   : > { %v1265_v32 = vadd.f32 1.0, %v1958_v42  ;;  %v1960_v45 = vpop.eup %1959  ;;  %v996_v9 = vmax.f32 %v2522_v54, 0.0  ;;  %v2562_v27 = vadd.f32 %v2190_v6, %v939_v26  ;;  %v1260_v13 = vadd.f32 1.0, %v1259_v41 }
 0x15a   : > { %1975 = vlog2.f32 %v1247_v50  ;;  %v1213_v36 = vmul.f32 0.6931472, %v1960_v45  ;;  %v1250_v17 = vmul.f32 -0.5, %v1956_v11  ;;  %v1244_v40 = vand.u32 2147483647, %v2537_v2  ;;  %v2878_v45 = vld [vmem:[#allocation5_spill] sm:$0xff] }
 0x15b   : > { %v2564_v34 = vpop.eup %1961  ;;  %1977 = vlog2.f32 %v1265_v32  ;;  %v1268_v0 = vmul.f32 -0.5, %v1958_v42  ;;  %v2569_v16 = vadd.f32 %v1793_v59, %v2196_v21  ;;  %v1242_v6 = vadd.f32 1.0, %v1241_v60  ;;  %v1712_v32 = vpop.f32.mrf.mxu0 }
 0x15c   : > { %v1274_v38 = vadd.f32 1.0, %v2564_v34  ;;  %v1219_v12 = vsel %vm2546_vm13, %v1216_v51, %v1213_v36  ;;  %v1253_v43 = vand.u32 2147483647, %v1956_v11  ;;  %v1022_v8 = vand.u32 2147483647, %v2557_v53 }
 0x15d   : > { %v1427_v3 = vadd.f32 %v1219_v12, %v979_v14  ;;  %vm2576_vm14 = vcmp.lt.f32.partialorder %v1262_v47, 0.0004427343  ;;  %v1026_v10 = vand.u32 2147483647, %v2562_v27  ;;  %v1261_v29 = vmul.f32 %v2531_v23, %v1260_v13 }
 0x15e   : > { %1979 = vlog2.f32 %v1274_v38  ;;  %v2581_v21 = vpop.eup %1963  ;;  %v1271_v22 = vand.u32 2147483647, %v1958_v42  ;;  %v1251_v33 = vadd.f32 1.0, %v1250_v17  ;;  %v1054_v55 = vsub.f32 0.0, %v1022_v8 }
 0x15f   : > { %1460 = vst.msk [vmem:[%s2359_s28 + $0x48] sm:$0xff] %vm1450_vm2, %v1427_v3  ;;  %vm2586_vm15 = vcmp.lt.f32.partialorder %v1244_v40, 0.0004427343  ;;  %v1269_v14 = vadd.f32 1.0, %v1268_v0  ;;  %v1277_v15 = vmul.f32 -0.5, %v2564_v34  ;;  %v1283_v49 = vadd.f32 1.0, %v2581_v21 }
 0x160   : > { %v1243_v26 = vmul.f32 %v2537_v2, %v1242_v6  ;;  %vm2593_vm0 = vcmp.lt.f32.partialorder %v1253_v43, 0.0004427343  ;;  %v1280_v23 = vand.u32 2147483647, %v2564_v34  ;;  %v1106_v30 = vmul.f32 1.442695, %v1054_v55 }
 0x161   : > { %v1966_v58 = vpop.eup %1965  ;;  %1981 = vlog2.f32 %v1283_v49  ;;  %v1058_v50 = vsub.f32 0.0, %v1026_v10  ;;  %v1029_v60 = vand.u32 2147483647, %v2569_v16  ;;  %vm2603_vm1 = vcmp.lt.f32.partialorder %v1271_v22, 0.0004427343  ;;  %v1714_v10 = vpop.f32.mrf.mxu0 }
 0x162   : > { %v2598_v41 = vpop.eup %1967  ;;  %v1258_v51 = vmul.f32 0.6931472, %v1966_v58  ;;  %v1252_v2 = vmul.f32 %v1956_v11, %v1251_v33  ;;  %1983 = vpow2.f32 %v1106_v30  ;;  %v1270_v17 = vmul.f32 %v1958_v42, %v1269_v14 }
 0x163   : > { %v2601_v59 = vpop.eup %1969  ;;  %v1292_v47 = vadd.f32 1.0, %v2598_v41  ;;  %v1278_v40 = vadd.f32 1.0, %v1277_v15  ;;  %vm2615_vm3 = vcmp.lt.f32.partialorder %v1280_v23, 0.0004427343  ;;  %v1286_v43 = vmul.f32 -0.5, %v2581_v21 }
 0x164   : > { %v1972_v36 = vpop.eup %1971  ;;  %v1264_v13 = vsel %vm2576_vm14, %v1261_v29, %v1258_v51  ;;  %v1301_v0 = vadd.f32 1.0, %v2601_v59  ;;  %v1114_v8 = vmul.f32 1.442695, %v1058_v50  ;;  %v1061_v42 = vsub.f32 0.0, %v1029_v60 }
 0x165   : > { %v2611_v38 = vpop.eup %1973  ;;  %v1432_v12 = vadd.f32 %v1264_v13, %v984_v24  ;;  %v1240_v6 = vmul.f32 0.6931472, %v1972_v36  ;;  %1985 = vlog2.f32 %v1292_v47  ;;  %v1713_v3 = vadd.f32 %v1712_v32, %v1711_v46  ;;  %v2877_v13 = vld [vmem:[#allocation2_spill] sm:$0xff] }
 0x166   : > { %1987 = vlog2.f32 %v1301_v0  ;;  %v1295_v24 = vmul.f32 -0.5, %v2598_v41  ;;  %v1304_v22 = vmul.f32 -0.5, %v2601_v59  ;;  %v1364_v33 = vadd.f32 1.0, %v2611_v38 }
 0x167   : > { %v1976_v29 = vpop.eup %1975  ;;  %1465 = vst.msk [vmem:[%s2359_s28 + $0x70] sm:$0xff] %vm1450_vm2, %v1432_v12  ;;  %v1246_v25 = vsel %vm2586_vm15, %v1243_v26, %v1240_v6  ;;  %v1279_v15 = vmul.f32 %v2564_v34, %v1278_v40  ;;  %v1289_v49 = vand.u32 2147483647, %v2581_v21  ;;  %v1287_v23 = vadd.f32 1.0, %v1286_v43  ;;  %v1715_v34 = vpop.f32.mrf.mxu0 }
 0x168   : > { %v1978_v55 = vpop.eup %1977  ;;  %v1430_v14 = vadd.f32 %v1246_v25, %v982_v48  ;;  %v1249_v46 = vmul.f32 0.6931472, %v1976_v29  ;;  %v1298_v61 = vand.u32 2147483647, %v2598_v41  ;;  %1989 = vlog2.f32 %v1364_v33  ;;  %v1796_v48 = vpop.f32.mrf.mxu1 }
 0x169   : > { %v1267_v58 = vmul.f32 0.6931472, %v1978_v55  ;;  %1991 = vpow2.f32 %v1114_v8  ;;  %v1120_v30 = vmul.f32 1.442695, %v1061_v42  ;;  %v2637_v56 = vadd.f32 %v1713_v3, %v2491_v37 }
 0x16a   : > { %1463 = vst.msk [vmem:[%s2359_s28 + $0x60] sm:$0xff] %vm1450_vm2, %v1430_v14  ;;  %v1255_v26 = vsel %vm2593_vm0, %v1252_v2, %v1249_v46  ;;  %v1296_v32 = vadd.f32 1.0, %v1295_v24  ;;  %v1305_v47 = vadd.f32 1.0, %v1304_v22  ;;  %v1307_v36 = vand.u32 2147483647, %v2601_v59  ;;  %v955_v12 = vpop.f32.mrf.mxu1  ;;  %v1717_v22 = vpop.f32.mrf.mxu0 }
 0x16b   : > { %v1980_v51 = vpop.eup %1979  ;;  %v1273_v50 = vsel %vm2603_vm1, %v1270_v17, %v1267_v58  ;;  %v1431_v60 = vadd.f32 %v1255_v26, %v983_v44  ;;  %1993 = vpow2.f32 %v1120_v30  ;;  %v1023_v37 = vand.u32 2147483647, %v2637_v56  ;;  %v2885_v26 = vld [vmem:[#allocation3_spill] sm:$0xff] }
 0x16c   : > { %v1433_v39 = vadd.f32 %v1273_v50, %v985_v52  ;;  %v1276_v2 = vmul.f32 0.6931472, %v1980_v51  ;;  %v2650_v40 = vadd.f32 %v2877_v13, %v942_v62  ;;  %v2653_v17 = vadd.f32 %v1796_v48, %v2878_v45  ;;  %v1797_v46 = vpop.f32.mrf.mxu1  ;;  %v1718_v50 = vpop.f32.mrf.mxu0 }
 0x16d   : > { %1464 = vst.msk [vmem:[%s2359_s28 + $0x68] sm:$0xff] %vm1450_vm2, %v1431_v60  ;;  %v1716_v31 = vadd.f32 %v1715_v34, %v1714_v10  ;;  %v1288_v44 = vmul.f32 %v2581_v21, %v1287_v23  ;;  %vm2660_vm4 = vcmp.lt.f32.partialorder %v1289_v49, 0.0004427343  ;;  %v1367_v0 = vmul.f32 -0.5, %v2611_v38 }
 0x16e   : > { %1466 = vst.msk [vmem:[%s2359_s28 + $0x78] sm:$0xff] %vm1450_vm2, %v1433_v39  ;;  %v1282_v4 = vsel %vm2615_vm3, %v1279_v15, %v1276_v2  ;;  %v1982_v6 = vpop.eup %1981  ;;  %vm2667_vm5 = vcmp.lt.f32.partialorder %v1298_v61, 0.0004427343  ;;  %v1055_v11 = vsub.f32 0.0, %v1023_v37  ;;  %v1027_v42 = vand.u32 2147483647, %v2650_v40  ;;  %v958_v52 = vpop.f32.mrf.mxu1 }
 0x16f   : > { %v1434_v43 = vadd.f32 %v1282_v4, %v986_v19  ;;  %v2672_v3 = vpop.eup %1983  ;;  %v1285_v21 = vmul.f32 0.6931472, %v1982_v6  ;;  %v1297_v62 = vmul.f32 %v2598_v41, %v1296_v32  ;;  %v1306_v10 = vmul.f32 %v2601_v59, %v1305_v47 }
 0x170   : > { %v1032_v29 = vand.u32 2147483647, %v2653_v17  ;;  %vm2679_vm6 = vcmp.lt.f32.partialorder %v1307_v36, 0.0004427343  ;;  %v1310_v19 = vadd.f32 1.0, %v2672_v3  ;;  %v2685_v24 = vadd.f32 %v2404_v28, %v1716_v31 }
 0x171   : > { %1467 = vst.msk [vmem:[%s2359_s28 + $0x80] sm:$0xff] %vm1450_vm2, %v1434_v43  ;;  %v1108_v25 = vmul.f32 1.442695, %v1055_v11  ;;  %v1291_v41 = vsel %vm2660_vm4, %v1288_v44, %v1285_v21  ;;  %v1368_v59 = vadd.f32 1.0, %v1367_v0  ;;  %v1059_v55 = vsub.f32 0.0, %v1027_v42  ;;  %v2887_v11 = vld [vmem:[#allocation4_spill] sm:$0xff] }
 0x172   : > { %v1986_v33 = vpop.eup %1985  ;;  %v1064_v14 = vsub.f32 0.0, %v1032_v29  ;;  %v1435_v49 = vadd.f32 %v1291_v41, %v987_v5  ;;  %v1370_v23 = vand.u32 2147483647, %v2611_v38  ;;  %1995 = vlog2.f32 %v1310_v19  ;;  %v2886_v5 = vld [vmem:[#allocation6_spill] sm:$0xff] }
 0x173   : > { %v1988_v15 = vpop.eup %1987  ;;  %v1294_v58 = vmul.f32 0.6931472, %v1986_v33  ;;  %1997 = vpow2.f32 %v1108_v25  ;;  %v1116_v61 = vmul.f32 1.442695, %v1059_v55  ;;  %v2693_v30 = vadd.f32 %v2885_v26, %v955_v12 }
 0x174   : > { %v1303_v28 = vmul.f32 0.6931472, %v1988_v15  ;;  %1468 = vst.msk [vmem:[%s2359_s28 + $0x88] sm:$0xff] %vm1450_vm2, %v1435_v49  ;;  %v1126_v34 = vmul.f32 1.442695, %v1064_v14  ;;  %v2701_v51 = vadd.f32 %v1797_v46, %v2886_v5  ;;  %v1369_v39 = vmul.f32 %v2611_v38, %v1368_v59 }
 0x175   : > { %v1300_v48 = vsel %vm2667_vm5, %v1297_v62, %v1294_v58  ;;  %v1024_v57 = vand.u32 2147483647, %v2685_v24  ;;  %v1990_v60 = vpop.eup %1989  ;;  %1999 = vpow2.f32 %v1116_v61  ;;  %vm1371_vm7 = vcmp.lt.f32.partialorder %v1370_v23, 0.0004427343 }
 0x176   : > { %v1436_v32 = vadd.f32 %v1300_v48, %v988_v20  ;;  %v1309_v47 = vsel %vm2679_vm6, %v1306_v10, %v1303_v28  ;;  %v2708_v2 = vpop.eup %1991  ;;  %v1366_v37 = vmul.f32 0.6931472, %v1990_v60  ;;  %2001 = vpow2.f32 %v1126_v34 }
 0x177   : > { %v1437_v36 = vadd.f32 %v1309_v47, %v989_v63  ;;  %v1056_v13 = vsub.f32 0.0, %v1024_v57  ;;  %v1346_v35 = vadd.f32 1.0, %v2708_v2  ;;  %v1030_v20 = vand.u32 2147483647, %v2693_v30 }
 0x178   : > { %1469 = vst.msk [vmem:[%s2359_s28 + $0x90] sm:$0xff] %vm1450_vm2, %v1436_v32  ;;  %v1719_v45 = vadd.f32 %v1718_v50, %v1717_v22  ;;  %v2716_v31 = vpop.eup %1993  ;;  %v1372_v38 = vsel %vm1371_vm7, %v1369_v39, %v1366_v37  ;;  %v1313_v7 = vmul.f32 -0.5, %v2672_v3  ;;  %v1033_v4 = vand.u32 2147483647, %v2701_v51 }
 0x179   : > { %1470 = vst.msk [vmem:[%s2359_s28 + $0x98] sm:$0xff] %vm1450_vm2, %v1437_v36  ;;  %v1110_v63 = vmul.f32 1.442695, %v1056_v13  ;;  %v1444_v44 = vadd.f32 %v1372_v38, %v996_v9  ;;  %2003 = vlog2.f32 %v1346_v35  ;;  %v1373_v0 = vadd.f32 1.0, %v2716_v31 }
 0x17a   : > { %v1062_v12 = vsub.f32 0.0, %v1030_v20  ;;  %v1065_v6 = vsub.f32 0.0, %v1033_v4  ;;  %v2728_v43 = vadd.f32 %v2463_v18, %v1719_v45  ;;  %v1314_v8 = vadd.f32 1.0, %v1313_v7 }
 0x17b   : > { %2005 = vpow2.f32 %v1110_v63  ;;  %1477 = vst.msk [vmem:[%s2359_s28 + $0xd0] sm:$0xff] %vm1450_vm2, %v1444_v44  ;;  %v2731_v42 = vadd.f32 %v2887_v11, %v958_v52  ;;  %v1316_v54 = vand.u32 2147483647, %v2672_v3  ;;  %v1349_v1 = vmul.f32 -0.5, %v2708_v2 }
 0x17c   : > { %2007 = vlog2.f32 %v1373_v0  ;;  %v1122_v9 = vmul.f32 1.442695, %v1062_v12  ;;  %v1128_v21 = vmul.f32 1.442695, %v1065_v6  ;;  %v1025_v62 = vand.u32 2147483647, %v2728_v43 }
 0x17d   : > { %v1031_v10 = vand.u32 2147483647, %v2731_v42  ;;  %v1315_v25 = vmul.f32 %v2672_v3, %v1314_v8  ;;  %v990_v33 = vmax.f32 %v2557_v53, 0.0  ;;  %vm1317_vm8 = vcmp.lt.f32.partialorder %v1316_v54, 0.0004427343 }
 0x17e   : > { %2009 = vpow2.f32 %v1122_v9  ;;  %v1057_v22 = vsub.f32 0.0, %v1025_v62  ;;  %v1376_v46 = vmul.f32 -0.5, %v2716_v31  ;;  %v1350_v23 = vadd.f32 1.0, %v1349_v1 }
 0x17f   : > { %v1996_v29 = vpop.eup %1995  ;;  %2011 = vpow2.f32 %v1128_v21  ;;  %v1063_v59 = vsub.f32 0.0, %v1031_v10  ;;  %v1352_v3 = vand.u32 2147483647, %v2708_v2  ;;  %v1379_v50 = vand.u32 2147483647, %v2716_v31 }
 0x180   : > { %v2737_v19 = vpop.eup %1997  ;;  %v1312_v18 = vmul.f32 0.6931472, %v1996_v29  ;;  %v1112_v15 = vmul.f32 1.442695, %v1057_v22  ;;  %v1377_v48 = vadd.f32 1.0, %v1376_v46  ;;  %v1351_v5 = vmul.f32 %v2708_v2, %v1350_v23 }
 0x181   : > { %v1319_v41 = vadd.f32 1.0, %v2737_v19  ;;  %v1124_v61 = vmul.f32 1.442695, %v1063_v59  ;;  %v994_v60 = vmax.f32 %v2562_v27, 0.0  ;;  %vm1353_vm9 = vcmp.lt.f32.partialorder %v1352_v3, 0.0004427343 }
 0x182   : > { %v2742_v55 = vpop.eup %1999  ;;  %v1318_v14 = vsel %vm1317_vm8, %v1315_v25, %v1312_v18  ;;  %v1322_v36 = vmul.f32 -0.5, %v2737_v19  ;;  %v1378_v35 = vmul.f32 %v2716_v31, %v1377_v48  ;;  %v997_v2 = vmax.f32 %v2569_v16, 0.0 }
 0x183   : > { %v2745_v49 = vpop.eup %2001  ;;  %v1438_v58 = vadd.f32 %v1318_v14, %v990_v33  ;;  %2013 = vlog2.f32 %v1319_v41  ;;  %v1355_v28 = vadd.f32 1.0, %v2742_v55  ;;  %vm1380_vm10 = vcmp.lt.f32.partialorder %v1379_v50, 0.0004427343 }
 0x184   : > { %v1400_v53 = vadd.f32 1.0, %v2745_v49  ;;  %2015 = vpow2.f32 %v1112_v15  ;;  %v1358_v20 = vmul.f32 -0.5, %v2742_v55  ;;  %v1323_v63 = vadd.f32 1.0, %v1322_v36 }
 0x185   : > { %1471 = vst.msk [vmem:[%s2359_s28 + $0xa0] sm:$0xff] %vm1450_vm2, %v1438_v58  ;;  %2017 = vlog2.f32 %v1355_v28  ;;  %v1403_v4 = vmul.f32 -0.5, %v2745_v49  ;;  %v1325_v31 = vand.u32 2147483647, %v2737_v19  ;;  %v1361_v0 = vand.u32 2147483647, %v2742_v55 }
 0x186   : > { %v2004_v26 = vpop.eup %2003  ;;  %2019 = vlog2.f32 %v1400_v53  ;;  %v1359_v52 = vadd.f32 1.0, %v1358_v20  ;;  %v1324_v11 = vmul.f32 %v2737_v19, %v1323_v63  ;;  %v991_v21 = vmax.f32 %v2637_v56, 0.0 }
 0x187   : > { %v1348_v57 = vmul.f32 0.6931472, %v2004_v26  ;;  %2021 = vpow2.f32 %v1124_v61  ;;  %v1404_v54 = vadd.f32 1.0, %v1403_v4  ;;  %vm1326_vm11 = vcmp.lt.f32.partialorder %v1325_v31, 0.0004427343 }
 0x188   : > { %v2752_v34 = vpop.eup %2005  ;;  %v995_v62 = vmax.f32 %v2650_v40, 0.0  ;;  %v1406_v10 = vand.u32 2147483647, %v2745_v49  ;;  %v1360_v18 = vmul.f32 %v2742_v55, %v1359_v52  ;;  %vm2783_vm12 = vcmp.lt.f32.partialorder %v1361_v0, 0.0004427343 }
 0x189   : > { %v1328_v32 = vadd.f32 1.0, %v2752_v34  ;;  %v2008_v47 = vpop.eup %2007  ;;  %v1354_v39 = vsel %vm1353_vm9, %v1351_v5, %v1348_v57  ;;  %v1331_v6 = vmul.f32 -0.5, %v2752_v34  ;;  %v1334_v59 = vand.u32 2147483647, %v2752_v34 }
 0x18a   : > { %v1442_v37 = vadd.f32 %v1354_v39, %v994_v60  ;;  %v1375_v13 = vmul.f32 0.6931472, %v2008_v47  ;;  %v1405_v14 = vmul.f32 %v2745_v49, %v1404_v54  ;;  %v1000_v58 = vmax.f32 %v2653_v17, 0.0 }
 0x18b   : > { %2023 = vlog2.f32 %v1328_v32  ;;  %v2762_v27 = vpop.eup %2009  ;;  %v1332_v56 = vadd.f32 1.0, %v1331_v6  ;;  %vm1407_vm13 = vcmp.lt.f32.partialorder %v1406_v10, 0.0004427343  ;;  %v992_v57 = vmax.f32 %v2685_v24, 0.0 }
 0x18c   : > { %1475 = vst.msk [vmem:[%s2359_s28 + $0xc0] sm:$0xff] %vm1450_vm2, %v1442_v37  ;;  %v1381_v45 = vsel %vm1380_vm10, %v1378_v35, %v1375_v13  ;;  %v2766_v38 = vpop.eup %2011  ;;  %v1382_v44 = vadd.f32 1.0, %v2762_v27  ;;  %v1385_v46 = vmul.f32 -0.5, %v2762_v27  ;;  %vm1335_vm14 = vcmp.lt.f32.partialorder %v1334_v59, 0.0004427343 }
 0x18d   : > { %v1445_v7 = vadd.f32 %v1381_v45, %v997_v2  ;;  %v1409_v16 = vadd.f32 1.0, %v2766_v38  ;;  %v1412_v23 = vmul.f32 -0.5, %v2766_v38  ;;  %v1333_v48 = vmul.f32 %v2752_v34, %v1332_v56 }
 0x18e   : > { %2025 = vlog2.f32 %v1382_v44  ;;  %v1386_v5 = vadd.f32 1.0, %v1385_v46  ;;  %v1388_v50 = vand.u32 2147483647, %v2762_v27  ;;  %v1415_v47 = vand.u32 2147483647, %v2766_v38 }
 0x18f   : > { %1478 = vst.msk [vmem:[%s2359_s28 + $0xd8] sm:$0xff] %vm1450_vm2, %v1445_v7  ;;  %2027 = vlog2.f32 %v1409_v16  ;;  %v1413_v60 = vadd.f32 1.0, %v1412_v23  ;;  %v998_v24 = vmax.f32 %v2693_v30, 0.0  ;;  %v1001_v35 = vmax.f32 %v2701_v51, 0.0 }
 0x190   : > { %v2014_v12 = vpop.eup %2013  ;;  %v1387_v13 = vmul.f32 %v2762_v27, %v1386_v5  ;;  %vm1389_vm15 = vcmp.lt.f32.partialorder %v1388_v50, 0.0004427343  ;;  %vm1416_vm0 = vcmp.lt.f32.partialorder %v1415_v47, 0.0004427343  ;;  %v993_v52 = vmax.f32 %v2728_v43, 0.0 }
 0x191   : > { %v1321_v8 = vmul.f32 0.6931472, %v2014_v12  ;;  %v2777_v9 = vpop.eup %2015  ;;  %v1414_v20 = vmul.f32 %v2766_v38, %v1413_v60 }
 0x192   : > { %v2018_v29 = vpop.eup %2017  ;;  %v1337_v19 = vadd.f32 1.0, %v2777_v9  ;;  %v1340_v39 = vmul.f32 -0.5, %v2777_v9  ;;  %v1343_v31 = vand.u32 2147483647, %v2777_v9 }
 0x193   : > { %v1327_v1 = vsel %vm1326_vm11, %v1324_v11, %v1321_v8  ;;  %v2020_v22 = vpop.eup %2019  ;;  %v1357_v41 = vmul.f32 0.6931472, %v2018_v29 }
 0x194   : > { %v1439_v33 = vadd.f32 %v1327_v1, %v991_v21  ;;  %v1402_v40 = vmul.f32 0.6931472, %v2020_v22  ;;  %2029 = vlog2.f32 %v1337_v19  ;;  %v2022_v55 = vpop.eup %2021  ;;  %v1341_v7 = vadd.f32 1.0, %v1340_v39 }
 0x195   : > { %v1363_v15 = vsel %vm2783_vm12, %v1360_v18, %v1357_v41  ;;  %v1391_v49 = vadd.f32 1.0, %v2022_v55  ;;  %v1394_v63 = vmul.f32 -0.5, %v2022_v55  ;;  %vm1344_vm1 = vcmp.lt.f32.partialorder %v1343_v31, 0.0004427343 }
 0x196   : > { %1472 = vst.msk [vmem:[%s2359_s28 + $0xa8] sm:$0xff] %vm1450_vm2, %v1439_v33  ;;  %v1443_v28 = vadd.f32 %v1363_v15, %v995_v62  ;;  %v1408_v53 = vsel %vm1407_vm13, %v1405_v14, %v1402_v40  ;;  %v1342_v51 = vmul.f32 %v2777_v9, %v1341_v7  ;;  %v1397_v0 = vand.u32 2147483647, %v2022_v55 }
 0x197   : > { %v1448_v61 = vadd.f32 %v1408_v53, %v1000_v58  ;;  %2031 = vlog2.f32 %v1391_v49  ;;  %v1395_v38 = vadd.f32 1.0, %v1394_v63  ;;  %v999_v21 = vmax.f32 %v2731_v42, 0.0 }
 0x198   : > { %v2024_v3 = vpop.eup %2023  ;;  %1476 = vst.msk [vmem:[%s2359_s28 + $0xc8] sm:$0xff] %vm1450_vm2, %v1443_v28  ;;  %vm1398_vm3 = vcmp.lt.f32.partialorder %v1397_v0, 0.0004427343 }
 0x199   : > { %v1330_v26 = vmul.f32 0.6931472, %v2024_v3  ;;  %1481 = vst.msk [vmem:[%s2359_s28 + $0xf0] sm:$0xff] %vm1450_vm2, %v1448_v61  ;;  %v1396_v54 = vmul.f32 %v2022_v55, %v1395_v38 }
 0x19b   : > { %v1336_v17 = vsel %vm1335_vm14, %v1333_v48, %v1330_v26  ;;  %v2026_v36 = vpop.eup %2025 }
 0x19c   : > { %v1440_v32 = vadd.f32 %v1336_v17, %v992_v57  ;;  %v2028_v34 = vpop.eup %2027  ;;  %v1384_v37 = vmul.f32 0.6931472, %v2026_v36 }
 0x19d   : > { %v1411_v2 = vmul.f32 0.6931472, %v2028_v34 }
 0x19e   : > { %1473 = vst.msk [vmem:[%s2359_s28 + $0xb0] sm:$0xff] %vm1450_vm2, %v1440_v32  ;;  %v1390_v45 = vsel %vm1389_vm15, %v1387_v13, %v1384_v37 }
 0x19f   : > { %v1446_v4 = vadd.f32 %v1390_v45, %v998_v24  ;;  %v1417_v44 = vsel %vm1416_vm0, %v1414_v20, %v1411_v2 }
 0x1a0   : > { %v1449_v30 = vadd.f32 %v1417_v44, %v1001_v35 }
 0x1a1   : > { %v2030_v16 = vpop.eup %2029  ;;  %1479 = vst.msk [vmem:[%s2359_s28 + $0xe0] sm:$0xff] %vm1450_vm2, %v1446_v4 }
 0x1a2   : > { %1482 = vst.msk [vmem:[%s2359_s28 + $0xf8] sm:$0xff] %vm1450_vm2, %v1449_v30  ;;  %v1339_v27 = vmul.f32 0.6931472, %v2030_v16 }
 0x1a4   : > { %v1345_v12 = vsel %vm1344_vm1, %v1342_v51, %v1339_v27  ;;  %v2032_v6 = vpop.eup %2031 }
 0x1a5   : > { %v1441_v8 = vadd.f32 %v1345_v12, %v993_v52  ;;  %v1393_v11 = vmul.f32 0.6931472, %v2032_v6 }
 0x1a7   : > { %1474 = vst.msk [vmem:[%s2359_s28 + $0xb8] sm:$0xff] %vm1450_vm2, %v1441_v8  ;;  %v1399_v62 = vsel %vm1398_vm3, %v1396_v54, %v1393_v11 }
 0x1a8   : > { %v1447_v10 = vadd.f32 %v1399_v62, %v999_v21 }
 0x1aa   : > { %1480 = vst.msk [vmem:[%s2359_s28 + $0xe8] sm:$0xff] %vm1450_vm2, %v1447_v10 }
 0x1ab PF: > { %s12_s9 = sadd.s32 1, %s2039_s9  }
 0x1ac   : > { %p9_p4 = scmp.ge.s32.totalorder %s12_s9, 4  }
 0x1ae   :  { %11 = sbr.rel (!%p9_p4) target bundleno = 1 (0x1), region = 58 }

</bundles_post_ra>
